<compile_context>
chip_gen: v5e
topology: v5e:2x2
jax: 0.10.0
libtpu: 0.0.40
codegen_flags: <defaults>
</compile_context>

<pallas_src>
import functools
import math

import jax
import jax.numpy as jnp
from jax.experimental import pallas as pl
from jax.experimental.pallas import tpu as pltpu

PAD = 2   # 'same' padding of the 5x5 convs
KK = 5    # 5x5 kernels


def _net2_kernel(x_ref, mask_ref,
                 w1_ref, b1_ref, w2_ref, b2_ref, w3_ref, b3_ref,
                 w4_ref, b4_ref, w5_ref, b5_ref,
                 o_ref,
                 a1_ref, a2_ref,
                 *, N, H, W, marg):
    Hp, Wp = H + 2 * PAD, W + 2 * PAD
    L = N * Hp * Wp                       # flat padded spatial length (lane axis)
    mask = mask_ref[...]                  # (1, L): 1.0 on valid image positions

    # Zero ONLY the margin lanes of the padded-activation scratches; their
    # interiors are fully overwritten below (h * mask restores the padding ring).
    a1_ref[:, 0:marg] = jnp.zeros((8, marg), jnp.float32)
    a1_ref[:, marg + L:marg + L + marg] = jnp.zeros((8, marg), jnp.float32)
    a2_ref[:, 0:marg] = jnp.zeros((16, marg), jnp.float32)
    a2_ref[:, marg + L:marg + L + marg] = jnp.zeros((16, marg), jnp.float32)

    def taps():
        for kh in range(KK):
            for kw in range(KK):
                yield kh * KK + kw, (kh - PAD) * Wp + (kw - PAD)

    # ---- conv1 (1->6, 5x5, pad 2) + ReLU: pure VPU multiply-add, no patch. ----
    W1 = w1_ref[...]                                   # (8, 25); rows 6..7 are zero
    acc1 = None
    for t, s in taps():
        term = W1[:, t:t + 1] * x_ref[:, marg + s: marg + s + L]   # (8,1)*(1,L)
        acc1 = term if acc1 is None else acc1 + term
    h1 = jnp.maximum(acc1 + b1_ref[...], 0.0)          # (8, L); rows 6..7 stay zero
    a1_ref[:, marg: marg + L] = h1 * mask              # restore zero padding ring

    # ---- conv2 (6->16, 5x5) + ReLU: 25 accumulated K=8 MXU matmuls. ----
    acc2 = None
    for t, s in taps():
        term = jnp.dot(w2_ref[t],                                     # (16, 8)
                       a1_ref[:, marg + s: marg + s + L],             # (8, L)
                       preferred_element_type=jnp.float32)
        acc2 = term if acc2 is None else acc2 + term
    h2 = jnp.maximum(acc2 + b2_ref[...], 0.0)           # (16, L)
    a2_ref[:, marg: marg + L] = h2 * mask

    # ---- conv3 (16->6, 5x5) + ReLU: 25 accumulated K=16 MXU matmuls. ----
    acc3 = None
    for t, s in taps():
        term = jnp.dot(w3_ref[t],                                     # (6, 16)
                       a2_ref[:, marg + s: marg + s + L],             # (16, L)
                       preferred_element_type=jnp.float32)
        acc3 = term if acc3 is None else acc3 + term
    h3 = jnp.maximum(acc3 + b3_ref[...], 0.0)           # (6, L)

    # ---- conv4 (1x1, 6->1) + ReLU and conv5 (1x1, 1->1): VPU/XLU epilogue. ----
    h4 = jnp.sum(h3 * w4_ref[...], axis=0, keepdims=True) + b4_ref[0, 0]   # (1, L)
    h4 = jnp.maximum(h4, 0.0)
    o_ref[...] = h4 * w5_ref[0, 0] + b5_ref[0, 0]


def net2_forward(params, x):
    """x: (N, 1, H, W) float32 (PyTorch NCHW). Returns (N, 1, H, W)."""
    (w1, b1), (w2, b2), (w3, b3), (w4, b4), (w5, b5) = params
    N, cin, H, W = x.shape
    assert cin == 1 and w1.shape == (6, 1, KK, KK)      # Net2-specific layout assumptions
    Hp, Wp = H + 2 * PAD, W + 2 * PAD
    L = N * Hp * Wp
    MARG = 128                                          # >= PAD*Wp + PAD keeps tap slices in bounds
    assert MARG >= PAD * Wp + PAD
    M = MARG + L + MARG

    def prep_taps(w, cp):
        """OIHW -> (25, Cout, cp): per-tap weight matrices, zero-padded input channels."""
        cout, ci, kh, kw = w.shape
        wt = jnp.transpose(w, (2, 3, 0, 1))                       # (5, 5, cout, ci)
        wt = jnp.pad(wt, ((0, 0), (0, 0), (0, 0), (0, cp - ci)))  # pad cin -> cp
        return wt.reshape(kh * kw, cout, cp).astype(jnp.float32)

    # conv1 weights as (8, 25) tap columns (rows 6..7 zero), bias as (8, 1).
    w1_taps = jnp.pad(w1.reshape(6, KK * KK), ((0, 2), (0, 0))).astype(jnp.float32)
    b1_col = jnp.pad(b1.reshape(6, 1), ((0, 2), (0, 0))).astype(jnp.float32)

    # Input -> flat padded, lane-dense layout (1, MARG + N*Hp*Wp + MARG).
    xg = jnp.pad(x.transpose(1, 0, 2, 3), ((0, 0), (0, 0), (PAD, PAD), (PAD, PAD)))
    x_flat = jnp.pad(xg.reshape(1, L), ((0, 0), (MARG, MARG))).astype(jnp.float32)

    # Interior mask: 1.0 where a flat position holds real image data.
    ii = (jnp.arange(L) // Wp) % Hp
    jj = jnp.arange(L) % Wp
    mask = ((ii >= PAD) & (ii < PAD + H) & (jj >= PAD) & (jj < PAD + W))
    mask = mask.astype(jnp.float32).reshape(1, L)

    vmem = pl.BlockSpec(memory_space=pltpu.MemorySpace.VMEM)
    smem = pl.BlockSpec(memory_space=pltpu.MemorySpace.SMEM)

    kernel = functools.partial(_net2_kernel, N=N, H=H, W=W, marg=MARG)
    out_flat = pl.pallas_call(
        kernel,
        out_shape=jax.ShapeDtypeStruct((1, L), jnp.float32),
        in_specs=[vmem] * 9 + [smem] * 3,
        out_specs=vmem,
        scratch_shapes=[
            pltpu.VMEM((8, M), jnp.float32),    # conv1 output, flat padded (rows 6..7 zero)
            pltpu.VMEM((16, M), jnp.float32),   # conv2 output, flat padded
        ],
    )(
        x_flat, mask,
        w1_taps, b1_col,
        prep_taps(w2, 8), b2.reshape(16, 1).astype(jnp.float32),
        prep_taps(w3, 16), b3.reshape(6, 1).astype(jnp.float32),
        w4.reshape(6, 1).astype(jnp.float32),
        b4.reshape(1, 1).astype(jnp.float32),
        w5.reshape(1, 1).astype(jnp.float32),
        b5.reshape(1, 1).astype(jnp.float32),
    )

    # Flat padded -> NCHW (wrapper-side layout plumbing only; padding-ring lanes
    # of the kernel output are garbage by design and sliced away here).
    out = out_flat.reshape(1, N, Hp, Wp)[:, :, PAD:PAD + H, PAD:PAD + W]
    return out.transpose(1, 0, 2, 3)


def init_net2_params(key, dtype=jnp.float32):
    """PyTorch-style uniform(+-1/sqrt(fan_in)) init, weights in OIHW."""
    shapes = [(6, 1, 5, 5), (16, 6, 5, 5), (6, 16, 5, 5), (1, 6, 1, 1), (1, 1, 1, 1)]
    params = []
    for i, (cout, ci, kh, kw) in enumerate(shapes):
        wkey, bkey = jax.random.split(jax.random.fold_in(key, i))
        bound = 1.0 / math.sqrt(ci * kh * kw)
        w = jax.random.uniform(wkey, (cout, ci, kh, kw), dtype, -bound, bound)
        b = jax.random.uniform(bkey, (cout,), dtype, -bound, bound)
        params.append((w, b))
    return params


def _net2_reference(params, x):
    """Pure-JAX reference (lax conv, NCHW/OIHW) for a correctness check."""
    dn = ("NCHW", "OIHW", "NCHW")
    pads = [2, 2, 2, 0, 0]
    relus = [True, True, True, True, False]
    for (w, b), p, r in zip(params, pads, relus):
        x = jax.lax.conv_general_dilated(x, w, (1, 1), [(p, p), (p, p)],
                                         dimension_numbers=dn)
        x = x + b.reshape(1, -1, 1, 1)
        if r:
            x = jnp.maximum(x, 0.0)
    return x


if __name__ == "__main__":
    key = jax.random.PRNGKey(0)
    pkey, xkey = jax.random.split(key)

    params = init_net2_params(pkey)
    # Net2 expects a single input channel: NCHW = (2, 1, 16, 16)
    x = jax.random.normal(xkey, (2, 1, 16, 16), dtype=jnp.float32)

    fwd = jax.jit(net2_forward)
    out = jax.block_until_ready(fwd(params, x))
    ref = jax.block_until_ready(_net2_reference(params, x))

    assert out.shape == (2, 1, 16, 16), out.shape
    err = jnp.max(jnp.abs(out - ref))
    assert jnp.allclose(out, ref, atol=5e-4, rtol=5e-4), f"mismatch vs reference (max abs err {err})"

    print("KERNEL_OK")
</pallas_src>

<mosaic_0001>
module attributes {stable_mosaic.version = 11 : i64} {
  func.func @_net2_kernel(%arg0: memref<1x1056xf32, #tpu.memory_space<vmem>>, %arg1: memref<1x800xf32, #tpu.memory_space<vmem>>, %arg2: memref<8x25xf32, #tpu.memory_space<vmem>>, %arg3: memref<8x1xf32, #tpu.memory_space<vmem>>, %arg4: memref<25x16x8xf32, #tpu.memory_space<vmem>>, %arg5: memref<16x1xf32, #tpu.memory_space<vmem>>, %arg6: memref<25x6x16xf32, #tpu.memory_space<vmem>>, %arg7: memref<6x1xf32, #tpu.memory_space<vmem>>, %arg8: memref<6x1xf32, #tpu.memory_space<vmem>>, %arg9: memref<1x1xf32, #tpu.memory_space<smem>>, %arg10: memref<1x1xf32, #tpu.memory_space<smem>>, %arg11: memref<1x1xf32, #tpu.memory_space<smem>>, %arg12: memref<1x800xf32, #tpu.memory_space<vmem>>, %arg13: memref<8x1056xf32, #tpu.memory_space<vmem>>, %arg14: memref<16x1056xf32, #tpu.memory_space<vmem>>) attributes {dimension_semantics = [], scalar_prefetch = 0 : i64, scratch_operands = 2 : i64, tpu.core_type = #tpu.core_type<tc>} {
    %c0 = arith.constant 0 : index
    %c0_0 = arith.constant 0 : index
    %0 = vector.load %arg1[%c0, %c0_0] : memref<1x800xf32, #tpu.memory_space<vmem>>, vector<1x800xf32>
    %cst = arith.constant 0.000000e+00 : f32
    %1 = vector.broadcast %cst : f32 to vector<8x128xf32>
    %c0_1 = arith.constant 0 : index
    %c0_2 = arith.constant 0 : index
    %2 = vector.load %arg13[%c0_1, %c0_2] : memref<8x1056xf32, #tpu.memory_space<vmem>>, vector<8x128xf32>
    tpu.vector_store %arg13[%c0_1, %c0_2], %1 {strides = array<i32>} : memref<8x1056xf32, #tpu.memory_space<vmem>>, vector<8x128xf32>,
    %cst_3 = arith.constant 0.000000e+00 : f32
    %3 = vector.broadcast %cst_3 : f32 to vector<8x128xf32>
    %c0_4 = arith.constant 0 : index
    %c928 = arith.constant 928 : index
    %4 = vector.load %arg13[%c0_4, %c928] : memref<8x1056xf32, #tpu.memory_space<vmem>>, vector<8x128xf32>
    tpu.vector_store %arg13[%c0_4, %c928], %3 {strides = array<i32>} : memref<8x1056xf32, #tpu.memory_space<vmem>>, vector<8x128xf32>,
    %cst_5 = arith.constant 0.000000e+00 : f32
    %5 = vector.broadcast %cst_5 : f32 to vector<16x128xf32>
    %c0_6 = arith.constant 0 : index
    %c0_7 = arith.constant 0 : index
    %6 = vector.load %arg14[%c0_6, %c0_7] : memref<16x1056xf32, #tpu.memory_space<vmem>>, vector<16x128xf32>
    tpu.vector_store %arg14[%c0_6, %c0_7], %5 {strides = array<i32>} : memref<16x1056xf32, #tpu.memory_space<vmem>>, vector<16x128xf32>,
    %cst_8 = arith.constant 0.000000e+00 : f32
    %7 = vector.broadcast %cst_8 : f32 to vector<16x128xf32>
    %c0_9 = arith.constant 0 : index
    %c928_10 = arith.constant 928 : index
    %8 = vector.load %arg14[%c0_9, %c928_10] : memref<16x1056xf32, #tpu.memory_space<vmem>>, vector<16x128xf32>
    tpu.vector_store %arg14[%c0_9, %c928_10], %7 {strides = array<i32>} : memref<16x1056xf32, #tpu.memory_space<vmem>>, vector<16x128xf32>,
    %c0_11 = arith.constant 0 : index
    %c0_12 = arith.constant 0 : index
    %9 = vector.load %arg2[%c0_11, %c0_12] : memref<8x25xf32, #tpu.memory_space<vmem>>, vector<8x25xf32>
    %10 = vector.extract_strided_slice %9 {offsets = [0, 0], sizes = [8, 1], strides = [1, 1]} : vector<8x25xf32> to vector<8x1xf32>
    %c0_13 = arith.constant 0 : index
    %c86 = arith.constant 86 : index
    %11 = vector.load %arg0[%c0_13, %c86] : memref<1x1056xf32, #tpu.memory_space<vmem>>, vector<1x800xf32>
    %12 = vector.broadcast %10 : vector<8x1xf32> to vector<8x800xf32>
    %13 = vector.broadcast %11 : vector<1x800xf32> to vector<8x800xf32>
    %14 = arith.mulf %12, %13 : vector<8x800xf32>
    %15 = vector.extract_strided_slice %9 {offsets = [0, 1], sizes = [8, 1], strides = [1, 1]} : vector<8x25xf32> to vector<8x1xf32>
    %c0_14 = arith.constant 0 : index
    %c87 = arith.constant 87 : index
    %16 = vector.load %arg0[%c0_14, %c87] : memref<1x1056xf32, #tpu.memory_space<vmem>>, vector<1x800xf32>
    %17 = vector.broadcast %15 : vector<8x1xf32> to vector<8x800xf32>
    %18 = vector.broadcast %16 : vector<1x800xf32> to vector<8x800xf32>
    %19 = arith.mulf %17, %18 : vector<8x800xf32>
    %20 = arith.addf %14, %19 : vector<8x800xf32>
    %21 = vector.extract_strided_slice %9 {offsets = [0, 2], sizes = [8, 1], strides = [1, 1]} : vector<8x25xf32> to vector<8x1xf32>
    %c0_15 = arith.constant 0 : index
    %c88 = arith.constant 88 : index
    %22 = vector.load %arg0[%c0_15, %c88] : memref<1x1056xf32, #tpu.memory_space<vmem>>, vector<1x800xf32>
    %23 = vector.broadcast %21 : vector<8x1xf32> to vector<8x800xf32>
    %24 = vector.broadcast %22 : vector<1x800xf32> to vector<8x800xf32>
    %25 = arith.mulf %23, %24 : vector<8x800xf32>
    %26 = arith.addf %20, %25 : vector<8x800xf32>
    %27 = vector.extract_strided_slice %9 {offsets = [0, 3], sizes = [8, 1], strides = [1, 1]} : vector<8x25xf32> to vector<8x1xf32>
    %c0_16 = arith.constant 0 : index
    %c89 = arith.constant 89 : index
    %28 = vector.load %arg0[%c0_16, %c89] : memref<1x1056xf32, #tpu.memory_space<vmem>>, vector<1x800xf32>
    %29 = vector.broadcast %27 : vector<8x1xf32> to vector<8x800xf32>
    %30 = vector.broadcast %28 : vector<1x800xf32> to vector<8x800xf32>
    %31 = arith.mulf %29, %30 : vector<8x800xf32>
    %32 = arith.addf %26, %31 : vector<8x800xf32>
    %33 = vector.extract_strided_slice %9 {offsets = [0, 4], sizes = [8, 1], strides = [1, 1]} : vector<8x25xf32> to vector<8x1xf32>
    %c0_17 = arith.constant 0 : index
    %c90 = arith.constant 90 : index
    %34 = vector.load %arg0[%c0_17, %c90] : memref<1x1056xf32, #tpu.memory_space<vmem>>, vector<1x800xf32>
    %35 = vector.broadcast %33 : vector<8x1xf32> to vector<8x800xf32>
    %36 = vector.broadcast %34 : vector<1x800xf32> to vector<8x800xf32>
    %37 = arith.mulf %35, %36 : vector<8x800xf32>
    %38 = arith.addf %32, %37 : vector<8x800xf32>
    %39 = vector.extract_strided_slice %9 {offsets = [0, 5], sizes = [8, 1], strides = [1, 1]} : vector<8x25xf32> to vector<8x1xf32>
    %c0_18 = arith.constant 0 : index
    %c106 = arith.constant 106 : index
    %40 = vector.load %arg0[%c0_18, %c106] : memref<1x1056xf32, #tpu.memory_space<vmem>>, vector<1x800xf32>
    %41 = vector.broadcast %39 : vector<8x1xf32> to vector<8x800xf32>
    %42 = vector.broadcast %40 : vector<1x800xf32> to vector<8x800xf32>
    %43 = arith.mulf %41, %42 : vector<8x800xf32>
    %44 = arith.addf %38, %43 : vector<8x800xf32>
    %45 = vector.extract_strided_slice %9 {offsets = [0, 6], sizes = [8, 1], strides = [1, 1]} : vector<8x25xf32> to vector<8x1xf32>
    %c0_19 = arith.constant 0 : index
    %c107 = arith.constant 107 : index
    %46 = vector.load %arg0[%c0_19, %c107] : memref<1x1056xf32, #tpu.memory_space<vmem>>, vector<1x800xf32>
    %47 = vector.broadcast %45 : vector<8x1xf32> to vector<8x800xf32>
    %48 = vector.broadcast %46 : vector<1x800xf32> to vector<8x800xf32>
    %49 = arith.mulf %47, %48 : vector<8x800xf32>
    %50 = arith.addf %44, %49 : vector<8x800xf32>
    %51 = vector.extract_strided_slice %9 {offsets = [0, 7], sizes = [8, 1], strides = [1, 1]} : vector<8x25xf32> to vector<8x1xf32>
    %c0_20 = arith.constant 0 : index
    %c108 = arith.constant 108 : index
    %52 = vector.load %arg0[%c0_20, %c108] : memref<1x1056xf32, #tpu.memory_space<vmem>>, vector<1x800xf32>
    %53 = vector.broadcast %51 : vector<8x1xf32> to vector<8x800xf32>
    %54 = vector.broadcast %52 : vector<1x800xf32> to vector<8x800xf32>
    %55 = arith.mulf %53, %54 : vector<8x800xf32>
    %56 = arith.addf %50, %55 : vector<8x800xf32>
    %57 = vector.extract_strided_slice %9 {offsets = [0, 8], sizes = [8, 1], strides = [1, 1]} : vector<8x25xf32> to vector<8x1xf32>
    %c0_21 = arith.constant 0 : index
    %c109 = arith.constant 109 : index
    %58 = vector.load %arg0[%c0_21, %c109] : memref<1x1056xf32, #tpu.memory_space<vmem>>, vector<1x800xf32>
    %59 = vector.broadcast %57 : vector<8x1xf32> to vector<8x800xf32>
    %60 = vector.broadcast %58 : vector<1x800xf32> to vector<8x800xf32>
    %61 = arith.mulf %59, %60 : vector<8x800xf32>
    %62 = arith.addf %56, %61 : vector<8x800xf32>
    %63 = vector.extract_strided_slice %9 {offsets = [0, 9], sizes = [8, 1], strides = [1, 1]} : vector<8x25xf32> to vector<8x1xf32>
    %c0_22 = arith.constant 0 : index
    %c110 = arith.constant 110 : index
    %64 = vector.load %arg0[%c0_22, %c110] : memref<1x1056xf32, #tpu.memory_space<vmem>>, vector<1x800xf32>
    %65 = vector.broadcast %63 : vector<8x1xf32> to vector<8x800xf32>
    %66 = vector.broadcast %64 : vector<1x800xf32> to vector<8x800xf32>
    %67 = arith.mulf %65, %66 : vector<8x800xf32>
    %68 = arith.addf %62, %67 : vector<8x800xf32>
    %69 = vector.extract_strided_slice %9 {offsets = [0, 10], sizes = [8, 1], strides = [1, 1]} : vector<8x25xf32> to vector<8x1xf32>
    %c0_23 = arith.constant 0 : index
    %c126 = arith.constant 126 : index
    %70 = vector.load %arg0[%c0_23, %c126] : memref<1x1056xf32, #tpu.memory_space<vmem>>, vector<1x800xf32>
    %71 = vector.broadcast %69 : vector<8x1xf32> to vector<8x800xf32>
    %72 = vector.broadcast %70 : vector<1x800xf32> to vector<8x800xf32>
    %73 = arith.mulf %71, %72 : vector<8x800xf32>
    %74 = arith.addf %68, %73 : vector<8x800xf32>
    %75 = vector.extract_strided_slice %9 {offsets = [0, 11], sizes = [8, 1], strides = [1, 1]} : vector<8x25xf32> to vector<8x1xf32>
    %c0_24 = arith.constant 0 : index
    %c127 = arith.constant 127 : index
    %76 = vector.load %arg0[%c0_24, %c127] : memref<1x1056xf32, #tpu.memory_space<vmem>>, vector<1x800xf32>
    %77 = vector.broadcast %75 : vector<8x1xf32> to vector<8x800xf32>
    %78 = vector.broadcast %76 : vector<1x800xf32> to vector<8x800xf32>
    %79 = arith.mulf %77, %78 : vector<8x800xf32>
    %80 = arith.addf %74, %79 : vector<8x800xf32>
    %81 = vector.extract_strided_slice %9 {offsets = [0, 12], sizes = [8, 1], strides = [1, 1]} : vector<8x25xf32> to vector<8x1xf32>
    %c0_25 = arith.constant 0 : index
    %c128 = arith.constant 128 : index
    %82 = vector.load %arg0[%c0_25, %c128] : memref<1x1056xf32, #tpu.memory_space<vmem>>, vector<1x800xf32>
    %83 = vector.broadcast %81 : vector<8x1xf32> to vector<8x800xf32>
    %84 = vector.broadcast %82 : vector<1x800xf32> to vector<8x800xf32>
    %85 = arith.mulf %83, %84 : vector<8x800xf32>
    %86 = arith.addf %80, %85 : vector<8x800xf32>
    %87 = vector.extract_strided_slice %9 {offsets = [0, 13], sizes = [8, 1], strides = [1, 1]} : vector<8x25xf32> to vector<8x1xf32>
    %c0_26 = arith.constant 0 : index
    %c129 = arith.constant 129 : index
    %88 = vector.load %arg0[%c0_26, %c129] : memref<1x1056xf32, #tpu.memory_space<vmem>>, vector<1x800xf32>
    %89 = vector.broadcast %87 : vector<8x1xf32> to vector<8x800xf32>
    %90 = vector.broadcast %88 : vector<1x800xf32> to vector<8x800xf32>
    %91 = arith.mulf %89, %90 : vector<8x800xf32>
    %92 = arith.addf %86, %91 : vector<8x800xf32>
    %93 = vector.extract_strided_slice %9 {offsets = [0, 14], sizes = [8, 1], strides = [1, 1]} : vector<8x25xf32> to vector<8x1xf32>
    %c0_27 = arith.constant 0 : index
    %c130 = arith.constant 130 : index
    %94 = vector.load %arg0[%c0_27, %c130] : memref<1x1056xf32, #tpu.memory_space<vmem>>, vector<1x800xf32>
    %95 = vector.broadcast %93 : vector<8x1xf32> to vector<8x800xf32>
    %96 = vector.broadcast %94 : vector<1x800xf32> to vector<8x800xf32>
    %97 = arith.mulf %95, %96 : vector<8x800xf32>
    %98 = arith.addf %92, %97 : vector<8x800xf32>
    %99 = vector.extract_strided_slice %9 {offsets = [0, 15], sizes = [8, 1], strides = [1, 1]} : vector<8x25xf32> to vector<8x1xf32>
    %c0_28 = arith.constant 0 : index
    %c146 = arith.constant 146 : index
    %100 = vector.load %arg0[%c0_28, %c146] : memref<1x1056xf32, #tpu.memory_space<vmem>>, vector<1x800xf32>
    %101 = vector.broadcast %99 : vector<8x1xf32> to vector<8x800xf32>
    %102 = vector.broadcast %100 : vector<1x800xf32> to vector<8x800xf32>
    %103 = arith.mulf %101, %102 : vector<8x800xf32>
    %104 = arith.addf %98, %103 : vector<8x800xf32>
    %105 = vector.extract_strided_slice %9 {offsets = [0, 16], sizes = [8, 1], strides = [1, 1]} : vector<8x25xf32> to vector<8x1xf32>
    %c0_29 = arith.constant 0 : index
    %c147 = arith.constant 147 : index
    %106 = vector.load %arg0[%c0_29, %c147] : memref<1x1056xf32, #tpu.memory_space<vmem>>, vector<1x800xf32>
    %107 = vector.broadcast %105 : vector<8x1xf32> to vector<8x800xf32>
    %108 = vector.broadcast %106 : vector<1x800xf32> to vector<8x800xf32>
    %109 = arith.mulf %107, %108 : vector<8x800xf32>
    %110 = arith.addf %104, %109 : vector<8x800xf32>
    %111 = vector.extract_strided_slice %9 {offsets = [0, 17], sizes = [8, 1], strides = [1, 1]} : vector<8x25xf32> to vector<8x1xf32>
    %c0_30 = arith.constant 0 : index
    %c148 = arith.constant 148 : index
    %112 = vector.load %arg0[%c0_30, %c148] : memref<1x1056xf32, #tpu.memory_space<vmem>>, vector<1x800xf32>
    %113 = vector.broadcast %111 : vector<8x1xf32> to vector<8x800xf32>
    %114 = vector.broadcast %112 : vector<1x800xf32> to vector<8x800xf32>
    %115 = arith.mulf %113, %114 : vector<8x800xf32>
    %116 = arith.addf %110, %115 : vector<8x800xf32>
    %117 = vector.extract_strided_slice %9 {offsets = [0, 18], sizes = [8, 1], strides = [1, 1]} : vector<8x25xf32> to vector<8x1xf32>
    %c0_31 = arith.constant 0 : index
    %c149 = arith.constant 149 : index
    %118 = vector.load %arg0[%c0_31, %c149] : memref<1x1056xf32, #tpu.memory_space<vmem>>, vector<1x800xf32>
    %119 = vector.broadcast %117 : vector<8x1xf32> to vector<8x800xf32>
    %120 = vector.broadcast %118 : vector<1x800xf32> to vector<8x800xf32>
    %121 = arith.mulf %119, %120 : vector<8x800xf32>
    %122 = arith.addf %116, %121 : vector<8x800xf32>
    %123 = vector.extract_strided_slice %9 {offsets = [0, 19], sizes = [8, 1], strides = [1, 1]} : vector<8x25xf32> to vector<8x1xf32>
    %c0_32 = arith.constant 0 : index
    %c150 = arith.constant 150 : index
    %124 = vector.load %arg0[%c0_32, %c150] : memref<1x1056xf32, #tpu.memory_space<vmem>>, vector<1x800xf32>
    %125 = vector.broadcast %123 : vector<8x1xf32> to vector<8x800xf32>
    %126 = vector.broadcast %124 : vector<1x800xf32> to vector<8x800xf32>
    %127 = arith.mulf %125, %126 : vector<8x800xf32>
    %128 = arith.addf %122, %127 : vector<8x800xf32>
    %129 = vector.extract_strided_slice %9 {offsets = [0, 20], sizes = [8, 1], strides = [1, 1]} : vector<8x25xf32> to vector<8x1xf32>
    %c0_33 = arith.constant 0 : index
    %c166 = arith.constant 166 : index
    %130 = vector.load %arg0[%c0_33, %c166] : memref<1x1056xf32, #tpu.memory_space<vmem>>, vector<1x800xf32>
    %131 = vector.broadcast %129 : vector<8x1xf32> to vector<8x800xf32>
    %132 = vector.broadcast %130 : vector<1x800xf32> to vector<8x800xf32>
    %133 = arith.mulf %131, %132 : vector<8x800xf32>
    %134 = arith.addf %128, %133 : vector<8x800xf32>
    %135 = vector.extract_strided_slice %9 {offsets = [0, 21], sizes = [8, 1], strides = [1, 1]} : vector<8x25xf32> to vector<8x1xf32>
    %c0_34 = arith.constant 0 : index
    %c167 = arith.constant 167 : index
    %136 = vector.load %arg0[%c0_34, %c167] : memref<1x1056xf32, #tpu.memory_space<vmem>>, vector<1x800xf32>
    %137 = vector.broadcast %135 : vector<8x1xf32> to vector<8x800xf32>
    %138 = vector.broadcast %136 : vector<1x800xf32> to vector<8x800xf32>
    %139 = arith.mulf %137, %138 : vector<8x800xf32>
    %140 = arith.addf %134, %139 : vector<8x800xf32>
    %141 = vector.extract_strided_slice %9 {offsets = [0, 22], sizes = [8, 1], strides = [1, 1]} : vector<8x25xf32> to vector<8x1xf32>
    %c0_35 = arith.constant 0 : index
    %c168 = arith.constant 168 : index
    %142 = vector.load %arg0[%c0_35, %c168] : memref<1x1056xf32, #tpu.memory_space<vmem>>, vector<1x800xf32>
    %143 = vector.broadcast %141 : vector<8x1xf32> to vector<8x800xf32>
    %144 = vector.broadcast %142 : vector<1x800xf32> to vector<8x800xf32>
    %145 = arith.mulf %143, %144 : vector<8x800xf32>
    %146 = arith.addf %140, %145 : vector<8x800xf32>
    %147 = vector.extract_strided_slice %9 {offsets = [0, 23], sizes = [8, 1], strides = [1, 1]} : vector<8x25xf32> to vector<8x1xf32>
    %c0_36 = arith.constant 0 : index
    %c169 = arith.constant 169 : index
    %148 = vector.load %arg0[%c0_36, %c169] : memref<1x1056xf32, #tpu.memory_space<vmem>>, vector<1x800xf32>
    %149 = vector.broadcast %147 : vector<8x1xf32> to vector<8x800xf32>
    %150 = vector.broadcast %148 : vector<1x800xf32> to vector<8x800xf32>
    %151 = arith.mulf %149, %150 : vector<8x800xf32>
    %152 = arith.addf %146, %151 : vector<8x800xf32>
    %153 = vector.extract_strided_slice %9 {offsets = [0, 24], sizes = [8, 1], strides = [1, 1]} : vector<8x25xf32> to vector<8x1xf32>
    %c0_37 = arith.constant 0 : index
    %c170 = arith.constant 170 : index
    %154 = vector.load %arg0[%c0_37, %c170] : memref<1x1056xf32, #tpu.memory_space<vmem>>, vector<1x800xf32>
    %155 = vector.broadcast %153 : vector<8x1xf32> to vector<8x800xf32>
    %156 = vector.broadcast %154 : vector<1x800xf32> to vector<8x800xf32>
    %157 = arith.mulf %155, %156 : vector<8x800xf32>
    %158 = arith.addf %152, %157 : vector<8x800xf32>
    %c0_38 = arith.constant 0 : index
    %c0_39 = arith.constant 0 : index
    %159 = vector.load %arg3[%c0_38, %c0_39] : memref<8x1xf32, #tpu.memory_space<vmem>>, vector<8x1xf32>
    %160 = vector.broadcast %159 : vector<8x1xf32> to vector<8x800xf32>
    %161 = arith.addf %158, %160 : vector<8x800xf32>
    %cst_40 = arith.constant 0.000000e+00 : f32
    %162 = vector.broadcast %cst_40 : f32 to vector<8x800xf32>
    %163 = arith.maximumf %161, %162 : vector<8x800xf32>
    %164 = vector.broadcast %0 : vector<1x800xf32> to vector<8x800xf32>
    %165 = arith.mulf %163, %164 : vector<8x800xf32>
    %c0_41 = arith.constant 0 : index
    %c128_42 = arith.constant 128 : index
    %166 = vector.load %arg13[%c0_41, %c128_42] : memref<8x1056xf32, #tpu.memory_space<vmem>>, vector<8x800xf32>
    tpu.vector_store %arg13[%c0_41, %c128_42], %165 {strides = array<i32>} : memref<8x1056xf32, #tpu.memory_space<vmem>>, vector<8x800xf32>,
    %c0_43 = arith.constant 0 : index
    %c0_44 = arith.constant 0 : index
    %c0_45 = arith.constant 0 : index
    %167 = vector.load %arg4[%c0_43, %c0_44, %c0_45] : memref<25x16x8xf32, #tpu.memory_space<vmem>>, vector<1x16x8xf32>
    %168 = vector.shape_cast %167 : vector<1x16x8xf32> to vector<16x8xf32>
    %c0_46 = arith.constant 0 : index
    %c86_47 = arith.constant 86 : index
    %169 = vector.load %arg13[%c0_46, %c86_47] : memref<8x1056xf32, #tpu.memory_space<vmem>>, vector<8x800xf32>
    %cst_48 = arith.constant dense<0.000000e+00> : vector<16x800xf32>
    %170 = tpu.matmul %168, %169, %cst_48 {dimension_numbers = #tpu.dot_dimension_numbers<[1], [0], [0], [1], [0, 0, 1, 1], [], []>} : vector<16x8xf32>, vector<8x800xf32>, vector<16x800xf32> -> vector<16x800xf32>
    %c1 = arith.constant 1 : index
    %c0_49 = arith.constant 0 : index
    %c0_50 = arith.constant 0 : index
    %171 = vector.load %arg4[%c1, %c0_49, %c0_50] : memref<25x16x8xf32, #tpu.memory_space<vmem>>, vector<1x16x8xf32>
    %172 = vector.shape_cast %171 : vector<1x16x8xf32> to vector<16x8xf32>
    %c0_51 = arith.constant 0 : index
    %c87_52 = arith.constant 87 : index
    %173 = vector.load %arg13[%c0_51, %c87_52] : memref<8x1056xf32, #tpu.memory_space<vmem>>, vector<8x800xf32>
    %cst_53 = arith.constant dense<0.000000e+00> : vector<16x800xf32>
    %174 = tpu.matmul %172, %173, %cst_53 {dimension_numbers = #tpu.dot_dimension_numbers<[1], [0], [0], [1], [0, 0, 1, 1], [], []>} : vector<16x8xf32>, vector<8x800xf32>, vector<16x800xf32> -> vector<16x800xf32>
    %175 = arith.addf %170, %174 : vector<16x800xf32>
    %c2 = arith.constant 2 : index
    %c0_54 = arith.constant 0 : index
    %c0_55 = arith.constant 0 : index
    %176 = vector.load %arg4[%c2, %c0_54, %c0_55] : memref<25x16x8xf32, #tpu.memory_space<vmem>>, vector<1x16x8xf32>
    %177 = vector.shape_cast %176 : vector<1x16x8xf32> to vector<16x8xf32>
    %c0_56 = arith.constant 0 : index
    %c88_57 = arith.constant 88 : index
    %178 = vector.load %arg13[%c0_56, %c88_57] : memref<8x1056xf32, #tpu.memory_space<vmem>>, vector<8x800xf32>
    %cst_58 = arith.constant dense<0.000000e+00> : vector<16x800xf32>
    %179 = tpu.matmul %177, %178, %cst_58 {dimension_numbers = #tpu.dot_dimension_numbers<[1], [0], [0], [1], [0, 0, 1, 1], [], []>} : vector<16x8xf32>, vector<8x800xf32>, vector<16x800xf32> -> vector<16x800xf32>
    %180 = arith.addf %175, %179 : vector<16x800xf32>
    %c3 = arith.constant 3 : index
    %c0_59 = arith.constant 0 : index
    %c0_60 = arith.constant 0 : index
    %181 = vector.load %arg4[%c3, %c0_59, %c0_60] : memref<25x16x8xf32, #tpu.memory_space<vmem>>, vector<1x16x8xf32>
    %182 = vector.shape_cast %181 : vector<1x16x8xf32> to vector<16x8xf32>
    %c0_61 = arith.constant 0 : index
    %c89_62 = arith.constant 89 : index
    %183 = vector.load %arg13[%c0_61, %c89_62] : memref<8x1056xf32, #tpu.memory_space<vmem>>, vector<8x800xf32>
    %cst_63 = arith.constant dense<0.000000e+00> : vector<16x800xf32>
    %184 = tpu.matmul %182, %183, %cst_63 {dimension_numbers = #tpu.dot_dimension_numbers<[1], [0], [0], [1], [0, 0, 1, 1], [], []>} : vector<16x8xf32>, vector<8x800xf32>, vector<16x800xf32> -> vector<16x800xf32>
    %185 = arith.addf %180, %184 : vector<16x800xf32>
    %c4 = arith.constant 4 : index
    %c0_64 = arith.constant 0 : index
    %c0_65 = arith.constant 0 : index
    %186 = vector.load %arg4[%c4, %c0_64, %c0_65] : memref<25x16x8xf32, #tpu.memory_space<vmem>>, vector<1x16x8xf32>
    %187 = vector.shape_cast %186 : vector<1x16x8xf32> to vector<16x8xf32>
    %c0_66 = arith.constant 0 : index
    %c90_67 = arith.constant 90 : index
    %188 = vector.load %arg13[%c0_66, %c90_67] : memref<8x1056xf32, #tpu.memory_space<vmem>>, vector<8x800xf32>
    %cst_68 = arith.constant dense<0.000000e+00> : vector<16x800xf32>
    %189 = tpu.matmul %187, %188, %cst_68 {dimension_numbers = #tpu.dot_dimension_numbers<[1], [0], [0], [1], [0, 0, 1, 1], [], []>} : vector<16x8xf32>, vector<8x800xf32>, vector<16x800xf32> -> vector<16x800xf32>
    %190 = arith.addf %185, %189 : vector<16x800xf32>
    %c5 = arith.constant 5 : index
    %c0_69 = arith.constant 0 : index
    %c0_70 = arith.constant 0 : index
    %191 = vector.load %arg4[%c5, %c0_69, %c0_70] : memref<25x16x8xf32, #tpu.memory_space<vmem>>, vector<1x16x8xf32>
    %192 = vector.shape_cast %191 : vector<1x16x8xf32> to vector<16x8xf32>
    %c0_71 = arith.constant 0 : index
    %c106_72 = arith.constant 106 : index
    %193 = vector.load %arg13[%c0_71, %c106_72] : memref<8x1056xf32, #tpu.memory_space<vmem>>, vector<8x800xf32>
    %cst_73 = arith.constant dense<0.000000e+00> : vector<16x800xf32>
    %194 = tpu.matmul %192, %193, %cst_73 {dimension_numbers = #tpu.dot_dimension_numbers<[1], [0], [0], [1], [0, 0, 1, 1], [], []>} : vector<16x8xf32>, vector<8x800xf32>, vector<16x800xf32> -> vector<16x800xf32>
    %195 = arith.addf %190, %194 : vector<16x800xf32>
    %c6 = arith.constant 6 : index
    %c0_74 = arith.constant 0 : index
    %c0_75 = arith.constant 0 : index
    %196 = vector.load %arg4[%c6, %c0_74, %c0_75] : memref<25x16x8xf32, #tpu.memory_space<vmem>>, vector<1x16x8xf32>
    %197 = vector.shape_cast %196 : vector<1x16x8xf32> to vector<16x8xf32>
    %c0_76 = arith.constant 0 : index
    %c107_77 = arith.constant 107 : index
    %198 = vector.load %arg13[%c0_76, %c107_77] : memref<8x1056xf32, #tpu.memory_space<vmem>>, vector<8x800xf32>
    %cst_78 = arith.constant dense<0.000000e+00> : vector<16x800xf32>
    %199 = tpu.matmul %197, %198, %cst_78 {dimension_numbers = #tpu.dot_dimension_numbers<[1], [0], [0], [1], [0, 0, 1, 1], [], []>} : vector<16x8xf32>, vector<8x800xf32>, vector<16x800xf32> -> vector<16x800xf32>
    %200 = arith.addf %195, %199 : vector<16x800xf32>
    %c7 = arith.constant 7 : index
    %c0_79 = arith.constant 0 : index
    %c0_80 = arith.constant 0 : index
    %201 = vector.load %arg4[%c7, %c0_79, %c0_80] : memref<25x16x8xf32, #tpu.memory_space<vmem>>, vector<1x16x8xf32>
    %202 = vector.shape_cast %201 : vector<1x16x8xf32> to vector<16x8xf32>
    %c0_81 = arith.constant 0 : index
    %c108_82 = arith.constant 108 : index
    %203 = vector.load %arg13[%c0_81, %c108_82] : memref<8x1056xf32, #tpu.memory_space<vmem>>, vector<8x800xf32>
    %cst_83 = arith.constant dense<0.000000e+00> : vector<16x800xf32>
    %204 = tpu.matmul %202, %203, %cst_83 {dimension_numbers = #tpu.dot_dimension_numbers<[1], [0], [0], [1], [0, 0, 1, 1], [], []>} : vector<16x8xf32>, vector<8x800xf32>, vector<16x800xf32> -> vector<16x800xf32>
    %205 = arith.addf %200, %204 : vector<16x800xf32>
    %c8 = arith.constant 8 : index
    %c0_84 = arith.constant 0 : index
    %c0_85 = arith.constant 0 : index
    %206 = vector.load %arg4[%c8, %c0_84, %c0_85] : memref<25x16x8xf32, #tpu.memory_space<vmem>>, vector<1x16x8xf32>
    %207 = vector.shape_cast %206 : vector<1x16x8xf32> to vector<16x8xf32>
    %c0_86 = arith.constant 0 : index
    %c109_87 = arith.constant 109 : index
    %208 = vector.load %arg13[%c0_86, %c109_87] : memref<8x1056xf32, #tpu.memory_space<vmem>>, vector<8x800xf32>
    %cst_88 = arith.constant dense<0.000000e+00> : vector<16x800xf32>
    %209 = tpu.matmul %207, %208, %cst_88 {dimension_numbers = #tpu.dot_dimension_numbers<[1], [0], [0], [1], [0, 0, 1, 1], [], []>} : vector<16x8xf32>, vector<8x800xf32>, vector<16x800xf32> -> vector<16x800xf32>
    %210 = arith.addf %205, %209 : vector<16x800xf32>
    %c9 = arith.constant 9 : index
    %c0_89 = arith.constant 0 : index
    %c0_90 = arith.constant 0 : index
    %211 = vector.load %arg4[%c9, %c0_89, %c0_90] : memref<25x16x8xf32, #tpu.memory_space<vmem>>, vector<1x16x8xf32>
    %212 = vector.shape_cast %211 : vector<1x16x8xf32> to vector<16x8xf32>
    %c0_91 = arith.constant 0 : index
    %c110_92 = arith.constant 110 : index
    %213 = vector.load %arg13[%c0_91, %c110_92] : memref<8x1056xf32, #tpu.memory_space<vmem>>, vector<8x800xf32>
    %cst_93 = arith.constant dense<0.000000e+00> : vector<16x800xf32>
    %214 = tpu.matmul %212, %213, %cst_93 {dimension_numbers = #tpu.dot_dimension_numbers<[1], [0], [0], [1], [0, 0, 1, 1], [], []>} : vector<16x8xf32>, vector<8x800xf32>, vector<16x800xf32> -> vector<16x800xf32>
    %215 = arith.addf %210, %214 : vector<16x800xf32>
    %c10 = arith.constant 10 : index
    %c0_94 = arith.constant 0 : index
    %c0_95 = arith.constant 0 : index
    %216 = vector.load %arg4[%c10, %c0_94, %c0_95] : memref<25x16x8xf32, #tpu.memory_space<vmem>>, vector<1x16x8xf32>
    %217 = vector.shape_cast %216 : vector<1x16x8xf32> to vector<16x8xf32>
    %c0_96 = arith.constant 0 : index
    %c126_97 = arith.constant 126 : index
    %218 = vector.load %arg13[%c0_96, %c126_97] : memref<8x1056xf32, #tpu.memory_space<vmem>>, vector<8x800xf32>
    %cst_98 = arith.constant dense<0.000000e+00> : vector<16x800xf32>
    %219 = tpu.matmul %217, %218, %cst_98 {dimension_numbers = #tpu.dot_dimension_numbers<[1], [0], [0], [1], [0, 0, 1, 1], [], []>} : vector<16x8xf32>, vector<8x800xf32>, vector<16x800xf32> -> vector<16x800xf32>
    %220 = arith.addf %215, %219 : vector<16x800xf32>
    %c11 = arith.constant 11 : index
    %c0_99 = arith.constant 0 : index
    %c0_100 = arith.constant 0 : index
    %221 = vector.load %arg4[%c11, %c0_99, %c0_100] : memref<25x16x8xf32, #tpu.memory_space<vmem>>, vector<1x16x8xf32>
    %222 = vector.shape_cast %221 : vector<1x16x8xf32> to vector<16x8xf32>
    %c0_101 = arith.constant 0 : index
    %c127_102 = arith.constant 127 : index
    %223 = vector.load %arg13[%c0_101, %c127_102] : memref<8x1056xf32, #tpu.memory_space<vmem>>, vector<8x800xf32>
    %cst_103 = arith.constant dense<0.000000e+00> : vector<16x800xf32>
    %224 = tpu.matmul %222, %223, %cst_103 {dimension_numbers = #tpu.dot_dimension_numbers<[1], [0], [0], [1], [0, 0, 1, 1], [], []>} : vector<16x8xf32>, vector<8x800xf32>, vector<16x800xf32> -> vector<16x800xf32>
    %225 = arith.addf %220, %224 : vector<16x800xf32>
    %c12 = arith.constant 12 : index
    %c0_104 = arith.constant 0 : index
    %c0_105 = arith.constant 0 : index
    %226 = vector.load %arg4[%c12, %c0_104, %c0_105] : memref<25x16x8xf32, #tpu.memory_space<vmem>>, vector<1x16x8xf32>
    %227 = vector.shape_cast %226 : vector<1x16x8xf32> to vector<16x8xf32>
    %c0_106 = arith.constant 0 : index
    %c128_107 = arith.constant 128 : index
    %228 = vector.load %arg13[%c0_106, %c128_107] : memref<8x1056xf32, #tpu.memory_space<vmem>>, vector<8x800xf32>
    %cst_108 = arith.constant dense<0.000000e+00> : vector<16x800xf32>
    %229 = tpu.matmul %227, %228, %cst_108 {dimension_numbers = #tpu.dot_dimension_numbers<[1], [0], [0], [1], [0, 0, 1, 1], [], []>} : vector<16x8xf32>, vector<8x800xf32>, vector<16x800xf32> -> vector<16x800xf32>
    %230 = arith.addf %225, %229 : vector<16x800xf32>
    %c13 = arith.constant 13 : index
    %c0_109 = arith.constant 0 : index
    %c0_110 = arith.constant 0 : index
    %231 = vector.load %arg4[%c13, %c0_109, %c0_110] : memref<25x16x8xf32, #tpu.memory_space<vmem>>, vector<1x16x8xf32>
    %232 = vector.shape_cast %231 : vector<1x16x8xf32> to vector<16x8xf32>
    %c0_111 = arith.constant 0 : index
    %c129_112 = arith.constant 129 : index
    %233 = vector.load %arg13[%c0_111, %c129_112] : memref<8x1056xf32, #tpu.memory_space<vmem>>, vector<8x800xf32>
    %cst_113 = arith.constant dense<0.000000e+00> : vector<16x800xf32>
    %234 = tpu.matmul %232, %233, %cst_113 {dimension_numbers = #tpu.dot_dimension_numbers<[1], [0], [0], [1], [0, 0, 1, 1], [], []>} : vector<16x8xf32>, vector<8x800xf32>, vector<16x800xf32> -> vector<16x800xf32>
    %235 = arith.addf %230, %234 : vector<16x800xf32>
    %c14 = arith.constant 14 : index
    %c0_114 = arith.constant 0 : index
    %c0_115 = arith.constant 0 : index
    %236 = vector.load %arg4[%c14, %c0_114, %c0_115] : memref<25x16x8xf32, #tpu.memory_space<vmem>>, vector<1x16x8xf32>
    %237 = vector.shape_cast %236 : vector<1x16x8xf32> to vector<16x8xf32>
    %c0_116 = arith.constant 0 : index
    %c130_117 = arith.constant 130 : index
    %238 = vector.load %arg13[%c0_116, %c130_117] : memref<8x1056xf32, #tpu.memory_space<vmem>>, vector<8x800xf32>
    %cst_118 = arith.constant dense<0.000000e+00> : vector<16x800xf32>
    %239 = tpu.matmul %237, %238, %cst_118 {dimension_numbers = #tpu.dot_dimension_numbers<[1], [0], [0], [1], [0, 0, 1, 1], [], []>} : vector<16x8xf32>, vector<8x800xf32>, vector<16x800xf32> -> vector<16x800xf32>
    %240 = arith.addf %235, %239 : vector<16x800xf32>
    %c15 = arith.constant 15 : index
    %c0_119 = arith.constant 0 : index
    %c0_120 = arith.constant 0 : index
    %241 = vector.load %arg4[%c15, %c0_119, %c0_120] : memref<25x16x8xf32, #tpu.memory_space<vmem>>, vector<1x16x8xf32>
    %242 = vector.shape_cast %241 : vector<1x16x8xf32> to vector<16x8xf32>
    %c0_121 = arith.constant 0 : index
    %c146_122 = arith.constant 146 : index
    %243 = vector.load %arg13[%c0_121, %c146_122] : memref<8x1056xf32, #tpu.memory_space<vmem>>, vector<8x800xf32>
    %cst_123 = arith.constant dense<0.000000e+00> : vector<16x800xf32>
    %244 = tpu.matmul %242, %243, %cst_123 {dimension_numbers = #tpu.dot_dimension_numbers<[1], [0], [0], [1], [0, 0, 1, 1], [], []>} : vector<16x8xf32>, vector<8x800xf32>, vector<16x800xf32> -> vector<16x800xf32>
    %245 = arith.addf %240, %244 : vector<16x800xf32>
    %c16 = arith.constant 16 : index
    %c0_124 = arith.constant 0 : index
    %c0_125 = arith.constant 0 : index
    %246 = vector.load %arg4[%c16, %c0_124, %c0_125] : memref<25x16x8xf32, #tpu.memory_space<vmem>>, vector<1x16x8xf32>
    %247 = vector.shape_cast %246 : vector<1x16x8xf32> to vector<16x8xf32>
    %c0_126 = arith.constant 0 : index
    %c147_127 = arith.constant 147 : index
    %248 = vector.load %arg13[%c0_126, %c147_127] : memref<8x1056xf32, #tpu.memory_space<vmem>>, vector<8x800xf32>
    %cst_128 = arith.constant dense<0.000000e+00> : vector<16x800xf32>
    %249 = tpu.matmul %247, %248, %cst_128 {dimension_numbers = #tpu.dot_dimension_numbers<[1], [0], [0], [1], [0, 0, 1, 1], [], []>} : vector<16x8xf32>, vector<8x800xf32>, vector<16x800xf32> -> vector<16x800xf32>
    %250 = arith.addf %245, %249 : vector<16x800xf32>
    %c17 = arith.constant 17 : index
    %c0_129 = arith.constant 0 : index
    %c0_130 = arith.constant 0 : index
    %251 = vector.load %arg4[%c17, %c0_129, %c0_130] : memref<25x16x8xf32, #tpu.memory_space<vmem>>, vector<1x16x8xf32>
    %252 = vector.shape_cast %251 : vector<1x16x8xf32> to vector<16x8xf32>
    %c0_131 = arith.constant 0 : index
    %c148_132 = arith.constant 148 : index
    %253 = vector.load %arg13[%c0_131, %c148_132] : memref<8x1056xf32, #tpu.memory_space<vmem>>, vector<8x800xf32>
    %cst_133 = arith.constant dense<0.000000e+00> : vector<16x800xf32>
    %254 = tpu.matmul %252, %253, %cst_133 {dimension_numbers = #tpu.dot_dimension_numbers<[1], [0], [0], [1], [0, 0, 1, 1], [], []>} : vector<16x8xf32>, vector<8x800xf32>, vector<16x800xf32> -> vector<16x800xf32>
    %255 = arith.addf %250, %254 : vector<16x800xf32>
    %c18 = arith.constant 18 : index
    %c0_134 = arith.constant 0 : index
    %c0_135 = arith.constant 0 : index
    %256 = vector.load %arg4[%c18, %c0_134, %c0_135] : memref<25x16x8xf32, #tpu.memory_space<vmem>>, vector<1x16x8xf32>
    %257 = vector.shape_cast %256 : vector<1x16x8xf32> to vector<16x8xf32>
    %c0_136 = arith.constant 0 : index
    %c149_137 = arith.constant 149 : index
    %258 = vector.load %arg13[%c0_136, %c149_137] : memref<8x1056xf32, #tpu.memory_space<vmem>>, vector<8x800xf32>
    %cst_138 = arith.constant dense<0.000000e+00> : vector<16x800xf32>
    %259 = tpu.matmul %257, %258, %cst_138 {dimension_numbers = #tpu.dot_dimension_numbers<[1], [0], [0], [1], [0, 0, 1, 1], [], []>} : vector<16x8xf32>, vector<8x800xf32>, vector<16x800xf32> -> vector<16x800xf32>
    %260 = arith.addf %255, %259 : vector<16x800xf32>
    %c19 = arith.constant 19 : index
    %c0_139 = arith.constant 0 : index
    %c0_140 = arith.constant 0 : index
    %261 = vector.load %arg4[%c19, %c0_139, %c0_140] : memref<25x16x8xf32, #tpu.memory_space<vmem>>, vector<1x16x8xf32>
    %262 = vector.shape_cast %261 : vector<1x16x8xf32> to vector<16x8xf32>
    %c0_141 = arith.constant 0 : index
    %c150_142 = arith.constant 150 : index
    %263 = vector.load %arg13[%c0_141, %c150_142] : memref<8x1056xf32, #tpu.memory_space<vmem>>, vector<8x800xf32>
    %cst_143 = arith.constant dense<0.000000e+00> : vector<16x800xf32>
    %264 = tpu.matmul %262, %263, %cst_143 {dimension_numbers = #tpu.dot_dimension_numbers<[1], [0], [0], [1], [0, 0, 1, 1], [], []>} : vector<16x8xf32>, vector<8x800xf32>, vector<16x800xf32> -> vector<16x800xf32>
    %265 = arith.addf %260, %264 : vector<16x800xf32>
    %c20 = arith.constant 20 : index
    %c0_144 = arith.constant 0 : index
    %c0_145 = arith.constant 0 : index
    %266 = vector.load %arg4[%c20, %c0_144, %c0_145] : memref<25x16x8xf32, #tpu.memory_space<vmem>>, vector<1x16x8xf32>
    %267 = vector.shape_cast %266 : vector<1x16x8xf32> to vector<16x8xf32>
    %c0_146 = arith.constant 0 : index
    %c166_147 = arith.constant 166 : index
    %268 = vector.load %arg13[%c0_146, %c166_147] : memref<8x1056xf32, #tpu.memory_space<vmem>>, vector<8x800xf32>
    %cst_148 = arith.constant dense<0.000000e+00> : vector<16x800xf32>
    %269 = tpu.matmul %267, %268, %cst_148 {dimension_numbers = #tpu.dot_dimension_numbers<[1], [0], [0], [1], [0, 0, 1, 1], [], []>} : vector<16x8xf32>, vector<8x800xf32>, vector<16x800xf32> -> vector<16x800xf32>
    %270 = arith.addf %265, %269 : vector<16x800xf32>
    %c21 = arith.constant 21 : index
    %c0_149 = arith.constant 0 : index
    %c0_150 = arith.constant 0 : index
    %271 = vector.load %arg4[%c21, %c0_149, %c0_150] : memref<25x16x8xf32, #tpu.memory_space<vmem>>, vector<1x16x8xf32>
    %272 = vector.shape_cast %271 : vector<1x16x8xf32> to vector<16x8xf32>
    %c0_151 = arith.constant 0 : index
    %c167_152 = arith.constant 167 : index
    %273 = vector.load %arg13[%c0_151, %c167_152] : memref<8x1056xf32, #tpu.memory_space<vmem>>, vector<8x800xf32>
    %cst_153 = arith.constant dense<0.000000e+00> : vector<16x800xf32>
    %274 = tpu.matmul %272, %273, %cst_153 {dimension_numbers = #tpu.dot_dimension_numbers<[1], [0], [0], [1], [0, 0, 1, 1], [], []>} : vector<16x8xf32>, vector<8x800xf32>, vector<16x800xf32> -> vector<16x800xf32>
    %275 = arith.addf %270, %274 : vector<16x800xf32>
    %c22 = arith.constant 22 : index
    %c0_154 = arith.constant 0 : index
    %c0_155 = arith.constant 0 : index
    %276 = vector.load %arg4[%c22, %c0_154, %c0_155] : memref<25x16x8xf32, #tpu.memory_space<vmem>>, vector<1x16x8xf32>
    %277 = vector.shape_cast %276 : vector<1x16x8xf32> to vector<16x8xf32>
    %c0_156 = arith.constant 0 : index
    %c168_157 = arith.constant 168 : index
    %278 = vector.load %arg13[%c0_156, %c168_157] : memref<8x1056xf32, #tpu.memory_space<vmem>>, vector<8x800xf32>
    %cst_158 = arith.constant dense<0.000000e+00> : vector<16x800xf32>
    %279 = tpu.matmul %277, %278, %cst_158 {dimension_numbers = #tpu.dot_dimension_numbers<[1], [0], [0], [1], [0, 0, 1, 1], [], []>} : vector<16x8xf32>, vector<8x800xf32>, vector<16x800xf32> -> vector<16x800xf32>
    %280 = arith.addf %275, %279 : vector<16x800xf32>
    %c23 = arith.constant 23 : index
    %c0_159 = arith.constant 0 : index
    %c0_160 = arith.constant 0 : index
    %281 = vector.load %arg4[%c23, %c0_159, %c0_160] : memref<25x16x8xf32, #tpu.memory_space<vmem>>, vector<1x16x8xf32>
    %282 = vector.shape_cast %281 : vector<1x16x8xf32> to vector<16x8xf32>
    %c0_161 = arith.constant 0 : index
    %c169_162 = arith.constant 169 : index
    %283 = vector.load %arg13[%c0_161, %c169_162] : memref<8x1056xf32, #tpu.memory_space<vmem>>, vector<8x800xf32>
    %cst_163 = arith.constant dense<0.000000e+00> : vector<16x800xf32>
    %284 = tpu.matmul %282, %283, %cst_163 {dimension_numbers = #tpu.dot_dimension_numbers<[1], [0], [0], [1], [0, 0, 1, 1], [], []>} : vector<16x8xf32>, vector<8x800xf32>, vector<16x800xf32> -> vector<16x800xf32>
    %285 = arith.addf %280, %284 : vector<16x800xf32>
    %c24 = arith.constant 24 : index
    %c0_164 = arith.constant 0 : index
    %c0_165 = arith.constant 0 : index
    %286 = vector.load %arg4[%c24, %c0_164, %c0_165] : memref<25x16x8xf32, #tpu.memory_space<vmem>>, vector<1x16x8xf32>
    %287 = vector.shape_cast %286 : vector<1x16x8xf32> to vector<16x8xf32>
    %c0_166 = arith.constant 0 : index
    %c170_167 = arith.constant 170 : index
    %288 = vector.load %arg13[%c0_166, %c170_167] : memref<8x1056xf32, #tpu.memory_space<vmem>>, vector<8x800xf32>
    %cst_168 = arith.constant dense<0.000000e+00> : vector<16x800xf32>
    %289 = tpu.matmul %287, %288, %cst_168 {dimension_numbers = #tpu.dot_dimension_numbers<[1], [0], [0], [1], [0, 0, 1, 1], [], []>} : vector<16x8xf32>, vector<8x800xf32>, vector<16x800xf32> -> vector<16x800xf32>
    %290 = arith.addf %285, %289 : vector<16x800xf32>
    %c0_169 = arith.constant 0 : index
    %c0_170 = arith.constant 0 : index
    %291 = vector.load %arg5[%c0_169, %c0_170] : memref<16x1xf32, #tpu.memory_space<vmem>>, vector<16x1xf32>
    %292 = vector.broadcast %291 : vector<16x1xf32> to vector<16x800xf32>
    %293 = arith.addf %290, %292 : vector<16x800xf32>
    %cst_171 = arith.constant 0.000000e+00 : f32
    %294 = vector.broadcast %cst_171 : f32 to vector<16x800xf32>
    %295 = arith.maximumf %293, %294 : vector<16x800xf32>
    %296 = vector.broadcast %0 : vector<1x800xf32> to vector<16x800xf32>
    %297 = arith.mulf %295, %296 : vector<16x800xf32>
    %c0_172 = arith.constant 0 : index
    %c128_173 = arith.constant 128 : index
    %298 = vector.load %arg14[%c0_172, %c128_173] : memref<16x1056xf32, #tpu.memory_space<vmem>>, vector<16x800xf32>
    tpu.vector_store %arg14[%c0_172, %c128_173], %297 {strides = array<i32>} : memref<16x1056xf32, #tpu.memory_space<vmem>>, vector<16x800xf32>,
    %c0_174 = arith.constant 0 : index
    %c0_175 = arith.constant 0 : index
    %c0_176 = arith.constant 0 : index
    %299 = vector.load %arg6[%c0_174, %c0_175, %c0_176] : memref<25x6x16xf32, #tpu.memory_space<vmem>>, vector<1x6x16xf32>
    %300 = vector.shape_cast %299 : vector<1x6x16xf32> to vector<6x16xf32>
    %c0_177 = arith.constant 0 : index
    %c86_178 = arith.constant 86 : index
    %301 = vector.load %arg14[%c0_177, %c86_178] : memref<16x1056xf32, #tpu.memory_space<vmem>>, vector<16x800xf32>
    %cst_179 = arith.constant dense<0.000000e+00> : vector<6x800xf32>
    %302 = tpu.matmul %300, %301, %cst_179 {dimension_numbers = #tpu.dot_dimension_numbers<[1], [0], [0], [1], [0, 0, 1, 1], [], []>} : vector<6x16xf32>, vector<16x800xf32>, vector<6x800xf32> -> vector<6x800xf32>
    %c1_180 = arith.constant 1 : index
    %c0_181 = arith.constant 0 : index
    %c0_182 = arith.constant 0 : index
    %303 = vector.load %arg6[%c1_180, %c0_181, %c0_182] : memref<25x6x16xf32, #tpu.memory_space<vmem>>, vector<1x6x16xf32>
    %304 = vector.shape_cast %303 : vector<1x6x16xf32> to vector<6x16xf32>
    %c0_183 = arith.constant 0 : index
    %c87_184 = arith.constant 87 : index
    %305 = vector.load %arg14[%c0_183, %c87_184] : memref<16x1056xf32, #tpu.memory_space<vmem>>, vector<16x800xf32>
    %cst_185 = arith.constant dense<0.000000e+00> : vector<6x800xf32>
    %306 = tpu.matmul %304, %305, %cst_185 {dimension_numbers = #tpu.dot_dimension_numbers<[1], [0], [0], [1], [0, 0, 1, 1], [], []>} : vector<6x16xf32>, vector<16x800xf32>, vector<6x800xf32> -> vector<6x800xf32>
    %307 = arith.addf %302, %306 : vector<6x800xf32>
    %c2_186 = arith.constant 2 : index
    %c0_187 = arith.constant 0 : index
    %c0_188 = arith.constant 0 : index
    %308 = vector.load %arg6[%c2_186, %c0_187, %c0_188] : memref<25x6x16xf32, #tpu.memory_space<vmem>>, vector<1x6x16xf32>
    %309 = vector.shape_cast %308 : vector<1x6x16xf32> to vector<6x16xf32>
    %c0_189 = arith.constant 0 : index
    %c88_190 = arith.constant 88 : index
    %310 = vector.load %arg14[%c0_189, %c88_190] : memref<16x1056xf32, #tpu.memory_space<vmem>>, vector<16x800xf32>
    %cst_191 = arith.constant dense<0.000000e+00> : vector<6x800xf32>
    %311 = tpu.matmul %309, %310, %cst_191 {dimension_numbers = #tpu.dot_dimension_numbers<[1], [0], [0], [1], [0, 0, 1, 1], [], []>} : vector<6x16xf32>, vector<16x800xf32>, vector<6x800xf32> -> vector<6x800xf32>
    %312 = arith.addf %307, %311 : vector<6x800xf32>
    %c3_192 = arith.constant 3 : index
    %c0_193 = arith.constant 0 : index
    %c0_194 = arith.constant 0 : index
    %313 = vector.load %arg6[%c3_192, %c0_193, %c0_194] : memref<25x6x16xf32, #tpu.memory_space<vmem>>, vector<1x6x16xf32>
    %314 = vector.shape_cast %313 : vector<1x6x16xf32> to vector<6x16xf32>
    %c0_195 = arith.constant 0 : index
    %c89_196 = arith.constant 89 : index
    %315 = vector.load %arg14[%c0_195, %c89_196] : memref<16x1056xf32, #tpu.memory_space<vmem>>, vector<16x800xf32>
    %cst_197 = arith.constant dense<0.000000e+00> : vector<6x800xf32>
    %316 = tpu.matmul %314, %315, %cst_197 {dimension_numbers = #tpu.dot_dimension_numbers<[1], [0], [0], [1], [0, 0, 1, 1], [], []>} : vector<6x16xf32>, vector<16x800xf32>, vector<6x800xf32> -> vector<6x800xf32>
    %317 = arith.addf %312, %316 : vector<6x800xf32>
    %c4_198 = arith.constant 4 : index
    %c0_199 = arith.constant 0 : index
    %c0_200 = arith.constant 0 : index
    %318 = vector.load %arg6[%c4_198, %c0_199, %c0_200] : memref<25x6x16xf32, #tpu.memory_space<vmem>>, vector<1x6x16xf32>
    %319 = vector.shape_cast %318 : vector<1x6x16xf32> to vector<6x16xf32>
    %c0_201 = arith.constant 0 : index
    %c90_202 = arith.constant 90 : index
    %320 = vector.load %arg14[%c0_201, %c90_202] : memref<16x1056xf32, #tpu.memory_space<vmem>>, vector<16x800xf32>
    %cst_203 = arith.constant dense<0.000000e+00> : vector<6x800xf32>
    %321 = tpu.matmul %319, %320, %cst_203 {dimension_numbers = #tpu.dot_dimension_numbers<[1], [0], [0], [1], [0, 0, 1, 1], [], []>} : vector<6x16xf32>, vector<16x800xf32>, vector<6x800xf32> -> vector<6x800xf32>
    %322 = arith.addf %317, %321 : vector<6x800xf32>
    %c5_204 = arith.constant 5 : index
    %c0_205 = arith.constant 0 : index
    %c0_206 = arith.constant 0 : index
    %323 = vector.load %arg6[%c5_204, %c0_205, %c0_206] : memref<25x6x16xf32, #tpu.memory_space<vmem>>, vector<1x6x16xf32>
    %324 = vector.shape_cast %323 : vector<1x6x16xf32> to vector<6x16xf32>
    %c0_207 = arith.constant 0 : index
    %c106_208 = arith.constant 106 : index
    %325 = vector.load %arg14[%c0_207, %c106_208] : memref<16x1056xf32, #tpu.memory_space<vmem>>, vector<16x800xf32>
    %cst_209 = arith.constant dense<0.000000e+00> : vector<6x800xf32>
    %326 = tpu.matmul %324, %325, %cst_209 {dimension_numbers = #tpu.dot_dimension_numbers<[1], [0], [0], [1], [0, 0, 1, 1], [], []>} : vector<6x16xf32>, vector<16x800xf32>, vector<6x800xf32> -> vector<6x800xf32>
    %327 = arith.addf %322, %326 : vector<6x800xf32>
    %c6_210 = arith.constant 6 : index
    %c0_211 = arith.constant 0 : index
    %c0_212 = arith.constant 0 : index
    %328 = vector.load %arg6[%c6_210, %c0_211, %c0_212] : memref<25x6x16xf32, #tpu.memory_space<vmem>>, vector<1x6x16xf32>
    %329 = vector.shape_cast %328 : vector<1x6x16xf32> to vector<6x16xf32>
    %c0_213 = arith.constant 0 : index
    %c107_214 = arith.constant 107 : index
    %330 = vector.load %arg14[%c0_213, %c107_214] : memref<16x1056xf32, #tpu.memory_space<vmem>>, vector<16x800xf32>
    %cst_215 = arith.constant dense<0.000000e+00> : vector<6x800xf32>
    %331 = tpu.matmul %329, %330, %cst_215 {dimension_numbers = #tpu.dot_dimension_numbers<[1], [0], [0], [1], [0, 0, 1, 1], [], []>} : vector<6x16xf32>, vector<16x800xf32>, vector<6x800xf32> -> vector<6x800xf32>
    %332 = arith.addf %327, %331 : vector<6x800xf32>
    %c7_216 = arith.constant 7 : index
    %c0_217 = arith.constant 0 : index
    %c0_218 = arith.constant 0 : index
    %333 = vector.load %arg6[%c7_216, %c0_217, %c0_218] : memref<25x6x16xf32, #tpu.memory_space<vmem>>, vector<1x6x16xf32>
    %334 = vector.shape_cast %333 : vector<1x6x16xf32> to vector<6x16xf32>
    %c0_219 = arith.constant 0 : index
    %c108_220 = arith.constant 108 : index
    %335 = vector.load %arg14[%c0_219, %c108_220] : memref<16x1056xf32, #tpu.memory_space<vmem>>, vector<16x800xf32>
    %cst_221 = arith.constant dense<0.000000e+00> : vector<6x800xf32>
    %336 = tpu.matmul %334, %335, %cst_221 {dimension_numbers = #tpu.dot_dimension_numbers<[1], [0], [0], [1], [0, 0, 1, 1], [], []>} : vector<6x16xf32>, vector<16x800xf32>, vector<6x800xf32> -> vector<6x800xf32>
    %337 = arith.addf %332, %336 : vector<6x800xf32>
    %c8_222 = arith.constant 8 : index
    %c0_223 = arith.constant 0 : index
    %c0_224 = arith.constant 0 : index
    %338 = vector.load %arg6[%c8_222, %c0_223, %c0_224] : memref<25x6x16xf32, #tpu.memory_space<vmem>>, vector<1x6x16xf32>
    %339 = vector.shape_cast %338 : vector<1x6x16xf32> to vector<6x16xf32>
    %c0_225 = arith.constant 0 : index
    %c109_226 = arith.constant 109 : index
    %340 = vector.load %arg14[%c0_225, %c109_226] : memref<16x1056xf32, #tpu.memory_space<vmem>>, vector<16x800xf32>
    %cst_227 = arith.constant dense<0.000000e+00> : vector<6x800xf32>
    %341 = tpu.matmul %339, %340, %cst_227 {dimension_numbers = #tpu.dot_dimension_numbers<[1], [0], [0], [1], [0, 0, 1, 1], [], []>} : vector<6x16xf32>, vector<16x800xf32>, vector<6x800xf32> -> vector<6x800xf32>
    %342 = arith.addf %337, %341 : vector<6x800xf32>
    %c9_228 = arith.constant 9 : index
    %c0_229 = arith.constant 0 : index
    %c0_230 = arith.constant 0 : index
    %343 = vector.load %arg6[%c9_228, %c0_229, %c0_230] : memref<25x6x16xf32, #tpu.memory_space<vmem>>, vector<1x6x16xf32>
    %344 = vector.shape_cast %343 : vector<1x6x16xf32> to vector<6x16xf32>
    %c0_231 = arith.constant 0 : index
    %c110_232 = arith.constant 110 : index
    %345 = vector.load %arg14[%c0_231, %c110_232] : memref<16x1056xf32, #tpu.memory_space<vmem>>, vector<16x800xf32>
    %cst_233 = arith.constant dense<0.000000e+00> : vector<6x800xf32>
    %346 = tpu.matmul %344, %345, %cst_233 {dimension_numbers = #tpu.dot_dimension_numbers<[1], [0], [0], [1], [0, 0, 1, 1], [], []>} : vector<6x16xf32>, vector<16x800xf32>, vector<6x800xf32> -> vector<6x800xf32>
    %347 = arith.addf %342, %346 : vector<6x800xf32>
    %c10_234 = arith.constant 10 : index
    %c0_235 = arith.constant 0 : index
    %c0_236 = arith.constant 0 : index
    %348 = vector.load %arg6[%c10_234, %c0_235, %c0_236] : memref<25x6x16xf32, #tpu.memory_space<vmem>>, vector<1x6x16xf32>
    %349 = vector.shape_cast %348 : vector<1x6x16xf32> to vector<6x16xf32>
    %c0_237 = arith.constant 0 : index
    %c126_238 = arith.constant 126 : index
    %350 = vector.load %arg14[%c0_237, %c126_238] : memref<16x1056xf32, #tpu.memory_space<vmem>>, vector<16x800xf32>
    %cst_239 = arith.constant dense<0.000000e+00> : vector<6x800xf32>
    %351 = tpu.matmul %349, %350, %cst_239 {dimension_numbers = #tpu.dot_dimension_numbers<[1], [0], [0], [1], [0, 0, 1, 1], [], []>} : vector<6x16xf32>, vector<16x800xf32>, vector<6x800xf32> -> vector<6x800xf32>
    %352 = arith.addf %347, %351 : vector<6x800xf32>
    %c11_240 = arith.constant 11 : index
    %c0_241 = arith.constant 0 : index
    %c0_242 = arith.constant 0 : index
    %353 = vector.load %arg6[%c11_240, %c0_241, %c0_242] : memref<25x6x16xf32, #tpu.memory_space<vmem>>, vector<1x6x16xf32>
    %354 = vector.shape_cast %353 : vector<1x6x16xf32> to vector<6x16xf32>
    %c0_243 = arith.constant 0 : index
    %c127_244 = arith.constant 127 : index
    %355 = vector.load %arg14[%c0_243, %c127_244] : memref<16x1056xf32, #tpu.memory_space<vmem>>, vector<16x800xf32>
    %cst_245 = arith.constant dense<0.000000e+00> : vector<6x800xf32>
    %356 = tpu.matmul %354, %355, %cst_245 {dimension_numbers = #tpu.dot_dimension_numbers<[1], [0], [0], [1], [0, 0, 1, 1], [], []>} : vector<6x16xf32>, vector<16x800xf32>, vector<6x800xf32> -> vector<6x800xf32>
    %357 = arith.addf %352, %356 : vector<6x800xf32>
    %c12_246 = arith.constant 12 : index
    %c0_247 = arith.constant 0 : index
    %c0_248 = arith.constant 0 : index
    %358 = vector.load %arg6[%c12_246, %c0_247, %c0_248] : memref<25x6x16xf32, #tpu.memory_space<vmem>>, vector<1x6x16xf32>
    %359 = vector.shape_cast %358 : vector<1x6x16xf32> to vector<6x16xf32>
    %c0_249 = arith.constant 0 : index
    %c128_250 = arith.constant 128 : index
    %360 = vector.load %arg14[%c0_249, %c128_250] : memref<16x1056xf32, #tpu.memory_space<vmem>>, vector<16x800xf32>
    %cst_251 = arith.constant dense<0.000000e+00> : vector<6x800xf32>
    %361 = tpu.matmul %359, %360, %cst_251 {dimension_numbers = #tpu.dot_dimension_numbers<[1], [0], [0], [1], [0, 0, 1, 1], [], []>} : vector<6x16xf32>, vector<16x800xf32>, vector<6x800xf32> -> vector<6x800xf32>
    %362 = arith.addf %357, %361 : vector<6x800xf32>
    %c13_252 = arith.constant 13 : index
    %c0_253 = arith.constant 0 : index
    %c0_254 = arith.constant 0 : index
    %363 = vector.load %arg6[%c13_252, %c0_253, %c0_254] : memref<25x6x16xf32, #tpu.memory_space<vmem>>, vector<1x6x16xf32>
    %364 = vector.shape_cast %363 : vector<1x6x16xf32> to vector<6x16xf32>
    %c0_255 = arith.constant 0 : index
    %c129_256 = arith.constant 129 : index
    %365 = vector.load %arg14[%c0_255, %c129_256] : memref<16x1056xf32, #tpu.memory_space<vmem>>, vector<16x800xf32>
    %cst_257 = arith.constant dense<0.000000e+00> : vector<6x800xf32>
    %366 = tpu.matmul %364, %365, %cst_257 {dimension_numbers = #tpu.dot_dimension_numbers<[1], [0], [0], [1], [0, 0, 1, 1], [], []>} : vector<6x16xf32>, vector<16x800xf32>, vector<6x800xf32> -> vector<6x800xf32>
    %367 = arith.addf %362, %366 : vector<6x800xf32>
    %c14_258 = arith.constant 14 : index
    %c0_259 = arith.constant 0 : index
    %c0_260 = arith.constant 0 : index
    %368 = vector.load %arg6[%c14_258, %c0_259, %c0_260] : memref<25x6x16xf32, #tpu.memory_space<vmem>>, vector<1x6x16xf32>
    %369 = vector.shape_cast %368 : vector<1x6x16xf32> to vector<6x16xf32>
    %c0_261 = arith.constant 0 : index
    %c130_262 = arith.constant 130 : index
    %370 = vector.load %arg14[%c0_261, %c130_262] : memref<16x1056xf32, #tpu.memory_space<vmem>>, vector<16x800xf32>
    %cst_263 = arith.constant dense<0.000000e+00> : vector<6x800xf32>
    %371 = tpu.matmul %369, %370, %cst_263 {dimension_numbers = #tpu.dot_dimension_numbers<[1], [0], [0], [1], [0, 0, 1, 1], [], []>} : vector<6x16xf32>, vector<16x800xf32>, vector<6x800xf32> -> vector<6x800xf32>
    %372 = arith.addf %367, %371 : vector<6x800xf32>
    %c15_264 = arith.constant 15 : index
    %c0_265 = arith.constant 0 : index
    %c0_266 = arith.constant 0 : index
    %373 = vector.load %arg6[%c15_264, %c0_265, %c0_266] : memref<25x6x16xf32, #tpu.memory_space<vmem>>, vector<1x6x16xf32>
    %374 = vector.shape_cast %373 : vector<1x6x16xf32> to vector<6x16xf32>
    %c0_267 = arith.constant 0 : index
    %c146_268 = arith.constant 146 : index
    %375 = vector.load %arg14[%c0_267, %c146_268] : memref<16x1056xf32, #tpu.memory_space<vmem>>, vector<16x800xf32>
    %cst_269 = arith.constant dense<0.000000e+00> : vector<6x800xf32>
    %376 = tpu.matmul %374, %375, %cst_269 {dimension_numbers = #tpu.dot_dimension_numbers<[1], [0], [0], [1], [0, 0, 1, 1], [], []>} : vector<6x16xf32>, vector<16x800xf32>, vector<6x800xf32> -> vector<6x800xf32>
    %377 = arith.addf %372, %376 : vector<6x800xf32>
    %c16_270 = arith.constant 16 : index
    %c0_271 = arith.constant 0 : index
    %c0_272 = arith.constant 0 : index
    %378 = vector.load %arg6[%c16_270, %c0_271, %c0_272] : memref<25x6x16xf32, #tpu.memory_space<vmem>>, vector<1x6x16xf32>
    %379 = vector.shape_cast %378 : vector<1x6x16xf32> to vector<6x16xf32>
    %c0_273 = arith.constant 0 : index
    %c147_274 = arith.constant 147 : index
    %380 = vector.load %arg14[%c0_273, %c147_274] : memref<16x1056xf32, #tpu.memory_space<vmem>>, vector<16x800xf32>
    %cst_275 = arith.constant dense<0.000000e+00> : vector<6x800xf32>
    %381 = tpu.matmul %379, %380, %cst_275 {dimension_numbers = #tpu.dot_dimension_numbers<[1], [0], [0], [1], [0, 0, 1, 1], [], []>} : vector<6x16xf32>, vector<16x800xf32>, vector<6x800xf32> -> vector<6x800xf32>
    %382 = arith.addf %377, %381 : vector<6x800xf32>
    %c17_276 = arith.constant 17 : index
    %c0_277 = arith.constant 0 : index
    %c0_278 = arith.constant 0 : index
    %383 = vector.load %arg6[%c17_276, %c0_277, %c0_278] : memref<25x6x16xf32, #tpu.memory_space<vmem>>, vector<1x6x16xf32>
    %384 = vector.shape_cast %383 : vector<1x6x16xf32> to vector<6x16xf32>
    %c0_279 = arith.constant 0 : index
    %c148_280 = arith.constant 148 : index
    %385 = vector.load %arg14[%c0_279, %c148_280] : memref<16x1056xf32, #tpu.memory_space<vmem>>, vector<16x800xf32>
    %cst_281 = arith.constant dense<0.000000e+00> : vector<6x800xf32>
    %386 = tpu.matmul %384, %385, %cst_281 {dimension_numbers = #tpu.dot_dimension_numbers<[1], [0], [0], [1], [0, 0, 1, 1], [], []>} : vector<6x16xf32>, vector<16x800xf32>, vector<6x800xf32> -> vector<6x800xf32>
    %387 = arith.addf %382, %386 : vector<6x800xf32>
    %c18_282 = arith.constant 18 : index
    %c0_283 = arith.constant 0 : index
    %c0_284 = arith.constant 0 : index
    %388 = vector.load %arg6[%c18_282, %c0_283, %c0_284] : memref<25x6x16xf32, #tpu.memory_space<vmem>>, vector<1x6x16xf32>
    %389 = vector.shape_cast %388 : vector<1x6x16xf32> to vector<6x16xf32>
    %c0_285 = arith.constant 0 : index
    %c149_286 = arith.constant 149 : index
    %390 = vector.load %arg14[%c0_285, %c149_286] : memref<16x1056xf32, #tpu.memory_space<vmem>>, vector<16x800xf32>
    %cst_287 = arith.constant dense<0.000000e+00> : vector<6x800xf32>
    %391 = tpu.matmul %389, %390, %cst_287 {dimension_numbers = #tpu.dot_dimension_numbers<[1], [0], [0], [1], [0, 0, 1, 1], [], []>} : vector<6x16xf32>, vector<16x800xf32>, vector<6x800xf32> -> vector<6x800xf32>
    %392 = arith.addf %387, %391 : vector<6x800xf32>
    %c19_288 = arith.constant 19 : index
    %c0_289 = arith.constant 0 : index
    %c0_290 = arith.constant 0 : index
    %393 = vector.load %arg6[%c19_288, %c0_289, %c0_290] : memref<25x6x16xf32, #tpu.memory_space<vmem>>, vector<1x6x16xf32>
    %394 = vector.shape_cast %393 : vector<1x6x16xf32> to vector<6x16xf32>
    %c0_291 = arith.constant 0 : index
    %c150_292 = arith.constant 150 : index
    %395 = vector.load %arg14[%c0_291, %c150_292] : memref<16x1056xf32, #tpu.memory_space<vmem>>, vector<16x800xf32>
    %cst_293 = arith.constant dense<0.000000e+00> : vector<6x800xf32>
    %396 = tpu.matmul %394, %395, %cst_293 {dimension_numbers = #tpu.dot_dimension_numbers<[1], [0], [0], [1], [0, 0, 1, 1], [], []>} : vector<6x16xf32>, vector<16x800xf32>, vector<6x800xf32> -> vector<6x800xf32>
    %397 = arith.addf %392, %396 : vector<6x800xf32>
    %c20_294 = arith.constant 20 : index
    %c0_295 = arith.constant 0 : index
    %c0_296 = arith.constant 0 : index
    %398 = vector.load %arg6[%c20_294, %c0_295, %c0_296] : memref<25x6x16xf32, #tpu.memory_space<vmem>>, vector<1x6x16xf32>
    %399 = vector.shape_cast %398 : vector<1x6x16xf32> to vector<6x16xf32>
    %c0_297 = arith.constant 0 : index
    %c166_298 = arith.constant 166 : index
    %400 = vector.load %arg14[%c0_297, %c166_298] : memref<16x1056xf32, #tpu.memory_space<vmem>>, vector<16x800xf32>
    %cst_299 = arith.constant dense<0.000000e+00> : vector<6x800xf32>
    %401 = tpu.matmul %399, %400, %cst_299 {dimension_numbers = #tpu.dot_dimension_numbers<[1], [0], [0], [1], [0, 0, 1, 1], [], []>} : vector<6x16xf32>, vector<16x800xf32>, vector<6x800xf32> -> vector<6x800xf32>
    %402 = arith.addf %397, %401 : vector<6x800xf32>
    %c21_300 = arith.constant 21 : index
    %c0_301 = arith.constant 0 : index
    %c0_302 = arith.constant 0 : index
    %403 = vector.load %arg6[%c21_300, %c0_301, %c0_302] : memref<25x6x16xf32, #tpu.memory_space<vmem>>, vector<1x6x16xf32>
    %404 = vector.shape_cast %403 : vector<1x6x16xf32> to vector<6x16xf32>
    %c0_303 = arith.constant 0 : index
    %c167_304 = arith.constant 167 : index
    %405 = vector.load %arg14[%c0_303, %c167_304] : memref<16x1056xf32, #tpu.memory_space<vmem>>, vector<16x800xf32>
    %cst_305 = arith.constant dense<0.000000e+00> : vector<6x800xf32>
    %406 = tpu.matmul %404, %405, %cst_305 {dimension_numbers = #tpu.dot_dimension_numbers<[1], [0], [0], [1], [0, 0, 1, 1], [], []>} : vector<6x16xf32>, vector<16x800xf32>, vector<6x800xf32> -> vector<6x800xf32>
    %407 = arith.addf %402, %406 : vector<6x800xf32>
    %c22_306 = arith.constant 22 : index
    %c0_307 = arith.constant 0 : index
    %c0_308 = arith.constant 0 : index
    %408 = vector.load %arg6[%c22_306, %c0_307, %c0_308] : memref<25x6x16xf32, #tpu.memory_space<vmem>>, vector<1x6x16xf32>
    %409 = vector.shape_cast %408 : vector<1x6x16xf32> to vector<6x16xf32>
    %c0_309 = arith.constant 0 : index
    %c168_310 = arith.constant 168 : index
    %410 = vector.load %arg14[%c0_309, %c168_310] : memref<16x1056xf32, #tpu.memory_space<vmem>>, vector<16x800xf32>
    %cst_311 = arith.constant dense<0.000000e+00> : vector<6x800xf32>
    %411 = tpu.matmul %409, %410, %cst_311 {dimension_numbers = #tpu.dot_dimension_numbers<[1], [0], [0], [1], [0, 0, 1, 1], [], []>} : vector<6x16xf32>, vector<16x800xf32>, vector<6x800xf32> -> vector<6x800xf32>
    %412 = arith.addf %407, %411 : vector<6x800xf32>
    %c23_312 = arith.constant 23 : index
    %c0_313 = arith.constant 0 : index
    %c0_314 = arith.constant 0 : index
    %413 = vector.load %arg6[%c23_312, %c0_313, %c0_314] : memref<25x6x16xf32, #tpu.memory_space<vmem>>, vector<1x6x16xf32>
    %414 = vector.shape_cast %413 : vector<1x6x16xf32> to vector<6x16xf32>
    %c0_315 = arith.constant 0 : index
    %c169_316 = arith.constant 169 : index
    %415 = vector.load %arg14[%c0_315, %c169_316] : memref<16x1056xf32, #tpu.memory_space<vmem>>, vector<16x800xf32>
    %cst_317 = arith.constant dense<0.000000e+00> : vector<6x800xf32>
    %416 = tpu.matmul %414, %415, %cst_317 {dimension_numbers = #tpu.dot_dimension_numbers<[1], [0], [0], [1], [0, 0, 1, 1], [], []>} : vector<6x16xf32>, vector<16x800xf32>, vector<6x800xf32> -> vector<6x800xf32>
    %417 = arith.addf %412, %416 : vector<6x800xf32>
    %c24_318 = arith.constant 24 : index
    %c0_319 = arith.constant 0 : index
    %c0_320 = arith.constant 0 : index
    %418 = vector.load %arg6[%c24_318, %c0_319, %c0_320] : memref<25x6x16xf32, #tpu.memory_space<vmem>>, vector<1x6x16xf32>
    %419 = vector.shape_cast %418 : vector<1x6x16xf32> to vector<6x16xf32>
    %c0_321 = arith.constant 0 : index
    %c170_322 = arith.constant 170 : index
    %420 = vector.load %arg14[%c0_321, %c170_322] : memref<16x1056xf32, #tpu.memory_space<vmem>>, vector<16x800xf32>
    %cst_323 = arith.constant dense<0.000000e+00> : vector<6x800xf32>
    %421 = tpu.matmul %419, %420, %cst_323 {dimension_numbers = #tpu.dot_dimension_numbers<[1], [0], [0], [1], [0, 0, 1, 1], [], []>} : vector<6x16xf32>, vector<16x800xf32>, vector<6x800xf32> -> vector<6x800xf32>
    %422 = arith.addf %417, %421 : vector<6x800xf32>
    %c0_324 = arith.constant 0 : index
    %c0_325 = arith.constant 0 : index
    %423 = vector.load %arg7[%c0_324, %c0_325] : memref<6x1xf32, #tpu.memory_space<vmem>>, vector<6x1xf32>
    %424 = vector.broadcast %423 : vector<6x1xf32> to vector<6x800xf32>
    %425 = arith.addf %422, %424 : vector<6x800xf32>
    %cst_326 = arith.constant 0.000000e+00 : f32
    %426 = vector.broadcast %cst_326 : f32 to vector<6x800xf32>
    %427 = arith.maximumf %425, %426 : vector<6x800xf32>
    %c0_327 = arith.constant 0 : index
    %c0_328 = arith.constant 0 : index
    %428 = vector.load %arg8[%c0_327, %c0_328] : memref<6x1xf32, #tpu.memory_space<vmem>>, vector<6x1xf32>
    %429 = vector.broadcast %428 : vector<6x1xf32> to vector<6x800xf32>
    %430 = arith.mulf %427, %429 : vector<6x800xf32>
    %cst_329 = arith.constant dense<0.000000e+00> : vector<800xf32>
    %431 = vector.multi_reduction <add>, %430, %cst_329 [0] : vector<6x800xf32> to vector<800xf32>
    %432 = vector.shape_cast %431 : vector<800xf32> to vector<1x800xf32>
    %c0_330 = arith.constant 0 : index
    %c0_331 = arith.constant 0 : index
    %433 = memref.load %arg9[%c0_330, %c0_331] : memref<1x1xf32, #tpu.memory_space<smem>>
    %434 = vector.broadcast %433 : f32 to vector<1x800xf32>
    %435 = arith.addf %432, %434 : vector<1x800xf32>
    %cst_332 = arith.constant 0.000000e+00 : f32
    %436 = vector.broadcast %cst_332 : f32 to vector<1x800xf32>
    %437 = arith.maximumf %435, %436 : vector<1x800xf32>
    %c0_333 = arith.constant 0 : index
    %c0_334 = arith.constant 0 : index
    %438 = memref.load %arg10[%c0_333, %c0_334] : memref<1x1xf32, #tpu.memory_space<smem>>
    %439 = vector.broadcast %438 : f32 to vector<1x800xf32>
    %440 = arith.mulf %437, %439 : vector<1x800xf32>
    %c0_335 = arith.constant 0 : index
    %c0_336 = arith.constant 0 : index
    %441 = memref.load %arg11[%c0_335, %c0_336] : memref<1x1xf32, #tpu.memory_space<smem>>
    %442 = vector.broadcast %441 : f32 to vector<1x800xf32>
    %443 = arith.addf %440, %442 : vector<1x800xf32>
    %c0_337 = arith.constant 0 : index
    %c0_338 = arith.constant 0 : index
    %444 = vector.load %arg12[%c0_337, %c0_338] : memref<1x800xf32, #tpu.memory_space<vmem>>, vector<1x800xf32>
    tpu.vector_store %arg12[%c0_337, %c0_338], %443 {strides = array<i32>} : memref<1x800xf32, #tpu.memory_space<vmem>>, vector<1x800xf32>,
    return
  }
}

</mosaic_0001>

<bundles_post_ra>
// kernel: net2_forward.1
= control target key start
LH: loop header
LB: loop body
LE: loop exit
PB: predicated region body
PF: predicated region fallthrough
CT: control target
= control target key end

     0   :  { %v20102_v0 = vmov 0   ;;  %v14216_v2 = vmov 2   ;;  %v14217_v3 = vmov 1   ;;  %v14218_v4 = vmov 3   ;;  %s20208_s25 = smov 127   ;;  %s20210_s26 = smov 126   ;;  %s20089_s2 = inlined_call_operand.vmem [shape: f32[8,25], index: 2, kind: input, shape index: {}]   ;;  %s20090_s0 = inlined_call_operand.vmem [shape: f32[1,1056], index: 0, kind: input, shape index: {}]   ;;  %s20091_s3 = inlined_call_operand.vmem [shape: f32[8,1], index: 3, kind: input, shape index: {}]   ;;  %s20092_s1 = inlined_call_operand.vmem [shape: f32[1,800], index: 1, kind: input, shape index: {}]   ;;  %s20093_s4 = inlined_call_operand.vmem [shape: f32[25,16,8], index: 4, kind: input, shape index: {}]   ;;  %s20094_s5 = inlined_call_operand.vmem [shape: f32[16,1], index: 5, kind: input, shape index: {}]   ;;  %s20095_s6 = inlined_call_operand.vmem [shape: f32[25,6,16], index: 6, kind: input, shape index: {}]   ;;  %s20096_s8 = inlined_call_operand.vmem [shape: f32[6,1], index: 8, kind: input, shape index: {}]   ;;  %s20097_s7 = inlined_call_operand.vmem [shape: f32[6,1], index: 7, kind: input, shape index: {}]   ;;  %s20098_s9 = inlined_call_operand.<no memory space> [shape: f32[1,1], index: 9, kind: input, shape index: {}]   ;;  %s20099_s10 = inlined_call_operand.<no memory space> [shape: f32[1,1], index: 10, kind: input, shape index: {}]   ;;  %s20100_s11 = inlined_call_operand.<no memory space> [shape: f32[1,1], index: 11, kind: input, shape index: {}]   ;;  %s20101_s12 = inlined_call_operand.vmem [shape: f32[1,800], index: 12, kind: output, shape index: {}]  }
   0x1   :  { %12891 = vset.pattern.permute.xlu0 %v20102_v0  ;;  %v14350_v1 = vld [vmem:[%s20089_s2] sm:$0xff]  ;;  %12893 = vset.pattern.permute.xlu1 %v14216_v2  ;;  %v14219_v5 = vmov 4   ;;  %v14220_v6 = vmov 5   ;;  %s14223_s27 = smov 125   ;;  %s14224_s28 = smov 124   ;;  %v14226_v51 = vmov 6  }
   0x2   :  { %60 = vperm.xlu0 %12891, %v14350_v1   ;;  %139 = vperm.xlu1 %12893, %v14350_v1   ;;  %v57_v8 = vld [vmem:[%s20090_s0] sm:$0x7f]  ;;  %s14225_s13 = smov 108   ;;  %s20214_s14 = smov 107   ;;  %vm117_vm0 = vcmask 1039360   ;;  %vm170_vm1 = vcmask 1031168  }
   0x3   :  { %13313 = vset.pattern.permute.xlu2 %v20102_v0  ;;  %v14364_v9 = vperm.slane %v57_v8, 6  ;;  %v14366_v10 = vperm.slane %v57_v8, 2  ;;  %v14368_v11 = vperm.slane %v57_v8, 0  ;;  %v14376_v17 = vperm.slane %v57_v8, 1  ;;  %v297_v36 = vld [vmem:[%s20090_s0] sm:$0xff]  ;;  %s20212_s15 = smov 106  }
   0x4   :  { %v14378_v18 = vperm.slane %v57_v8, 3  ;;  %v14386_v22 = vperm.slane %v57_v8, 4  ;;  %v14388_v23 = vperm.slane %v57_v8, 5  ;;  %v14415_v39 = vperm.slane %v297_v36, 4  ;;  %s14232_s16 = smov 105   ;;  %s14234_s17 = smov 104  }
   0x5   :  { %v14423_v43 = vperm.slane %v297_v36, 7  ;;  %v14443_v54 = vperm.slane %v297_v36, 0  ;;  %v14449_v57 = vperm.slane %v297_v36, 1  ;;  %v14451_v58 = vperm.slane %v297_v36, 2  ;;  %s14236_s18 = smov 88   ;;  %s20228_s19 = smov 87  }
   0x6   :  { %v14457_v61 = vperm.slane %v297_v36, 3  ;;  %v14459_v62 = vperm.slane %v297_v36, 5  ;;  %s20226_s22 = smov 86   ;;  %s14244_s23 = smov 84   ;;  %vm223_vm2 = vcmask 1022976   ;;  %vm276_vm3 = vcmask 1014784  }
   0x7   :  { %s14246_s24 = smov 68   ;;  %s14252_s29 = smov 65   ;;  %vm351_vm4 = vcmask 883712   ;;  %vm409_vm5 = vcmask 875520   ;;  %vm20224_vm6 = vcmask 867328   ;;  %vm525_vm7 = vcmask 859136  }
   0x8   :  { %s14254_s30 = smov 64   ;;  %vm583_vm8 = vcmask 850944   ;;  %vm641_vm9 = vcmask 719872   ;;  %vm20274_vm10 = vcmask 711680   ;;  %vm20270_vm11 = vcmask 703488   ;;  %s14270_s20 = smov 22  }
   0x9   :  { %vm822_vm12 = vcmask 695296   ;;  %vm875_vm13 = vcmask 687104   ;;  %vm928_vm14 = vcmask 556032   ;;  %vm981_vm15 = vcmask 547840   ;;  %s14271_s21 = smov 21  }
   0xa   :  { %12892 = vset.pattern.permute.xlu0 %v14217_v3  ;;  %12897 = vset.pattern.permute.xlu1 %v14226_v51  ;;  %v14465_v3 = vperm.slane %v297_v36, 6  ;;  %v14231_v51 = vmov 9  }
   0xb   :  { %86 = vperm.xlu0 %12892, %v14350_v1  }
  0x13   :  { %12894 = vset.pattern.permute.xlu0 %v14218_v4 }
  0x14   :  { %192 = vperm.xlu0 %12894, %v14350_v1  }
  0x1c   :  { %12895 = vset.pattern.permute.xlu0 %v14219_v5 }
  0x1d   :  { %245 = vperm.xlu0 %12895, %v14350_v1  }
  0x25   :  { %12896 = vset.pattern.permute.xlu0 %v14220_v6 }
  0x26   :  { %299 = vperm.xlu0 %12896, %v14350_v1  }
  0x74   :  { %v14359_v7 = vpop.permute.xlu0 %60  ;;  %v140_v16 = vpop.permute.xlu1 %139 }
  0x75   :  { %v143_v19 = vmul.f32 %v140_v16, %v14376_v17  ;;  %v146_v24 = vmul.f32 %v140_v16, %v14386_v22  ;;  %v142_v28 = vmul.f32 %v140_v16, %v14368_v11  ;;  %v144_v30 = vmul.f32 %v140_v16, %v14366_v10 }
  0x76   :  { %v145_v33 = vmul.f32 %v140_v16, %v14378_v18  ;;  %v147_v34 = vmul.f32 %v140_v16, %v14388_v23  ;;  %v148_v37 = vmul.f32 %v140_v16, %v14364_v9 }
  0x7d   :  { %v87_v12 = vpop.permute.xlu0 %86 }
  0x7e   :  { %v95_v13 = vmul.f32 %v87_v12, %v14364_v9  ;;  %v91_v14 = vmul.f32 %v87_v12, %v14366_v10  ;;  %v89_v15 = vmul.f32 %v87_v12, %v14368_v11  ;;  %v92_v20 = vmul.f32 %v87_v12, %v14378_v18 }
  0x7f   :  { %v90_v21 = vmul.f32 %v87_v12, %v14376_v17  ;;  %v94_v25 = vmul.f32 %v87_v12, %v14388_v23  ;;  %v93_v26 = vmul.f32 %v87_v12, %v14386_v22 }
  0x80   :  { %115 = vrot.lane.b32.xlu0 %v95_v13, %s20208_s25  ;;  %107 = vrot.lane.b32.xlu2 %v91_v14, %s20208_s25 }
  0x81   :  { %103 = vrot.lane.b32.xlu1 %v89_v15, %s20208_s25 }
  0x86   :  { %v193_v27 = vpop.permute.xlu0 %192 }
  0x87   :  { %v199_v29 = vmul.f32 %v193_v27, %v14386_v22  ;;  %v195_v35 = vmul.f32 %v193_v27, %v14368_v11  ;;  %v196_v41 = vmul.f32 %v193_v27, %v14376_v17  ;;  %v197_v42 = vmul.f32 %v193_v27, %v14366_v10 }
  0x88   :  { %109 = vrot.lane.b32.xlu2 %v92_v20, %s20208_s25  ;;  %158 = vrot.lane.b32.xlu0 %v143_v19, %s20210_s26  ;;  %v198_v45 = vmul.f32 %v193_v27, %v14378_v18  ;;  %v200_v46 = vmul.f32 %v193_v27, %v14388_v23  ;;  %v201_v48 = vmul.f32 %v193_v27, %v14364_v9 }
  0x89   :  { %105 = vrot.lane.b32.xlu1 %v90_v21, %s20208_s25 }
  0x8f   :  { %v246_v31 = vpop.permute.xlu0 %245 }
  0x90   :  { %113 = vrot.lane.b32.xlu2 %v94_v25, %s20208_s25  ;;  %164 = vrot.lane.b32.xlu0 %v146_v24, %s20210_s26  ;;  %v252_v32 = vmul.f32 %v246_v31, %v14386_v22  ;;  %v248_v47 = vmul.f32 %v246_v31, %v14368_v11  ;;  %v249_v49 = vmul.f32 %v246_v31, %v14376_v17  ;;  %v14227_v25 = vmov 7  }
  0x91   :  { %111 = vrot.lane.b32.xlu1 %v93_v26, %s20208_s25  ;;  %v250_v50 = vmul.f32 %v246_v31, %v14366_v10  ;;  %v251_v52 = vmul.f32 %v246_v31, %v14378_v18  ;;  %v253_v53 = vmul.f32 %v246_v31, %v14388_v23  ;;  %v254_v56 = vmul.f32 %v246_v31, %v14364_v9 }
  0x98   :  { %156 = vrot.lane.b32.xlu2 %v142_v28, %s20210_s26  ;;  %217 = vrot.lane.b32.xlu0 %v199_v29, %s14223_s27  ;;  %v300_v38 = vpop.permute.xlu0 %299 }
  0x99   :  { %160 = vrot.lane.b32.xlu1 %v144_v30, %s20210_s26  ;;  %v323_v40 = vmul.f32 %v14415_v39, %v300_v38  ;;  %v326_v44 = vmul.f32 %v14423_v43, %v300_v38  ;;  %v319_v55 = vmul.f32 %v14443_v54, %v300_v38  ;;  %v320_v59 = vmul.f32 %v14449_v57, %v300_v38 }
  0x9a   :  { %v321_v60 = vmul.f32 %v14451_v58, %v300_v38  ;;  %v322_v63 = vmul.f32 %v14457_v61, %v300_v38  ;;  %v324_v2 = vmul.f32 %v14459_v62, %v300_v38  ;;  %v325_v4 = vmul.f32 %v14465_v3, %v300_v38 }
  0xa0   :  { %162 = vrot.lane.b32.xlu2 %v145_v33, %s20210_s26  ;;  %270 = vrot.lane.b32.xlu0 %v252_v32, %s14224_s28 }
  0xa1   :  { %166 = vrot.lane.b32.xlu1 %v147_v34, %s20210_s26 }
  0xa8   :  { %168 = vrot.lane.b32.xlu2 %v148_v37, %s20210_s26  ;;  %343 = vrot.lane.b32.xlu0 %v323_v40, %s14225_s13  ;;  %v14229_v37 = vmov 8  }
  0xa9   :  { %209 = vrot.lane.b32.xlu1 %v195_v35, %s14223_s27 }
  0xb0   :  { %211 = vrot.lane.b32.xlu2 %v196_v41, %s14223_s27  ;;  %349 = vrot.lane.b32.xlu0 %v326_v44, %s14225_s13 }
  0xb1   :  { %213 = vrot.lane.b32.xlu1 %v197_v42, %s14223_s27 }
  0xb8   :  { %215 = vrot.lane.b32.xlu2 %v198_v45, %s14223_s27 }
  0xb9   :  { %219 = vrot.lane.b32.xlu1 %v200_v46, %s14223_s27 }
  0xc0   :  { %221 = vrot.lane.b32.xlu2 %v201_v48, %s14223_s27  ;;  %s14248_s27 = smov 67  }
  0xc1   :  { %262 = vrot.lane.b32.xlu1 %v248_v47, %s14224_s28 }
  0xc8   :  { %264 = vrot.lane.b32.xlu2 %v249_v49, %s14224_s28 }
  0xc9   :  { %266 = vrot.lane.b32.xlu1 %v250_v50, %s14224_s28 }
  0xd0   :  { %268 = vrot.lane.b32.xlu2 %v251_v52, %s14224_s28 }
  0xd1   :  { %272 = vrot.lane.b32.xlu1 %v253_v53, %s14224_s28 }
  0xd8   :  { %274 = vrot.lane.b32.xlu2 %v254_v56, %s14224_s28  ;;  %s14250_s28 = smov 66  }
  0xd9   :  { %335 = vrot.lane.b32.xlu1 %v319_v55, %s14225_s13 }
  0xe0   :  { %337 = vrot.lane.b32.xlu2 %v320_v59, %s14225_s13 }
  0xe1   :  { %339 = vrot.lane.b32.xlu1 %v321_v60, %s14225_s13 }
  0xe8   :  { %341 = vrot.lane.b32.xlu2 %v322_v63, %s14225_s13 }
  0xe9   :  { %345 = vrot.lane.b32.xlu1 %v324_v2, %s14225_s13 }
  0xf0   :  { %347 = vrot.lane.b32.xlu2 %v325_v4, %s14225_s13 }
  0xf1   :  { %374 = vperm.xlu1 %12897, %v14350_v1  }
  0xf3   :  { %v14470_v5 = vpop.permute.xlu1 %103 }
  0xf9   :  { %12898 = vset.pattern.permute.xlu1 %v14227_v25 }
  0xfb   :  { %v14472_v6 = vpop.permute.xlu1 %105 }
 0x103   :  { %v14474_v8 = vpop.permute.xlu1 %111 }
 0x10b   :  { %v14476_v12 = vpop.permute.xlu1 %160 }
 0x113   :  { %v14478_v13 = vpop.permute.xlu1 %166 }
 0x11b   :  { %v14480_v14 = vpop.permute.xlu1 %209 }
 0x123   :  { %v14482_v15 = vpop.permute.xlu1 %213 }
 0x12b   :  { %v14484_v16 = vpop.permute.xlu1 %219 }
 0x133   :  { %v14486_v19 = vpop.permute.xlu1 %262 }
 0x13b   :  { %v14488_v20 = vpop.permute.xlu1 %266 }
 0x143   :  { %v14490_v21 = vpop.permute.xlu1 %272 }
 0x14b   :  { %v14492_v24 = vpop.permute.xlu1 %335 }
 0x153   :  { %v14494_v26 = vpop.permute.xlu1 %339 }
 0x15b   :  { %v14496_v27 = vpop.permute.xlu1 %345 }
 0x163   :  { %v375_v28 = vpop.permute.xlu1 %374 }
 0x164   :  { %v379_v29 = vmul.f32 %v375_v28, %v14451_v58  ;;  %v378_v30 = vmul.f32 %v375_v28, %v14449_v57  ;;  %v377_v31 = vmul.f32 %v375_v28, %v14443_v54  ;;  %v382_v32 = vmul.f32 %v375_v28, %v14459_v62 }
 0x165   :  { %v381_v33 = vmul.f32 %v375_v28, %v14415_v39  ;;  %v380_v34 = vmul.f32 %v375_v28, %v14457_v61  ;;  %v384_v35 = vmul.f32 %v375_v28, %v14423_v43  ;;  %v383_v36 = vmul.f32 %v375_v28, %v14465_v3 }
 0x166   :  { %397 = vrot.lane.b32.xlu1 %v379_v29, %s20214_s14  ;;  %395 = vrot.lane.b32.xlu0 %v378_v30, %s20214_s14  ;;  %v14233_v29 = vmov 10  }
 0x167   :  { %393 = vrot.lane.b32.xlu2 %v377_v31, %s20214_s14 }
 0x16e   :  { %403 = vrot.lane.b32.xlu1 %v382_v32, %s20214_s14  ;;  %401 = vrot.lane.b32.xlu0 %v381_v33, %s20214_s14 }
 0x16f   :  { %399 = vrot.lane.b32.xlu2 %v380_v34, %s20214_s14 }
 0x176   :  { %432 = vperm.xlu1 %12898, %v14350_v1   ;;  %407 = vrot.lane.b32.xlu0 %v384_v35, %s20214_s14 }
 0x177   :  { %405 = vrot.lane.b32.xlu2 %v383_v36, %s20214_s14 }
 0x17e   :  { %12899 = vset.pattern.permute.xlu1 %v14229_v37 }
 0x1d8   :  { %v14515_v38 = vpop.permute.xlu1 %397 }
 0x1d9   :  { %20297 = vst [vmem:[#allocation7_spill] sm:$0xff] %v14515_v38 }
 0x1e0   :  { %v14517_v40 = vpop.permute.xlu1 %403 }
 0x1e1   :  { %20298 = vst [vmem:[#allocation8_spill] sm:$0xff] %v14517_v40 }
 0x1e8   :  { %v433_v41 = vpop.permute.xlu1 %432 }
 0x1e9   :  { %v437_v42 = vmul.f32 %v433_v41, %v14451_v58  ;;  %v436_v44 = vmul.f32 %v433_v41, %v14449_v57  ;;  %v435_v45 = vmul.f32 %v433_v41, %v14443_v54  ;;  %v440_v46 = vmul.f32 %v433_v41, %v14459_v62 }
 0x1ea   :  { %v439_v47 = vmul.f32 %v433_v41, %v14415_v39  ;;  %v438_v48 = vmul.f32 %v433_v41, %v14457_v61  ;;  %v442_v49 = vmul.f32 %v433_v41, %v14423_v43  ;;  %v441_v50 = vmul.f32 %v433_v41, %v14465_v3 }
 0x1eb   :  { %455 = vrot.lane.b32.xlu1 %v437_v42, %s20212_s15  ;;  %453 = vrot.lane.b32.xlu0 %v436_v44, %s20212_s15 }
 0x1ec   :  { %451 = vrot.lane.b32.xlu2 %v435_v45, %s20212_s15  ;;  %v14235_v45 = vmov 11  }
 0x1f3   :  { %461 = vrot.lane.b32.xlu1 %v440_v46, %s20212_s15  ;;  %459 = vrot.lane.b32.xlu0 %v439_v47, %s20212_s15 }
 0x1f4   :  { %457 = vrot.lane.b32.xlu2 %v438_v48, %s20212_s15 }
 0x1fb   :  { %490 = vperm.xlu1 %12899, %v14350_v1   ;;  %465 = vrot.lane.b32.xlu0 %v442_v49, %s20212_s15 }
 0x1fc   :  { %463 = vrot.lane.b32.xlu2 %v441_v50, %s20212_s15 }
 0x203   :  { %12900 = vset.pattern.permute.xlu1 %v14231_v51 }
 0x25d   :  { %v14536_v52 = vpop.permute.xlu1 %455 }
 0x25e   :  { %20299 = vst [vmem:[#allocation9_spill] sm:$0xff] %v14536_v52 }
 0x265   :  { %v14538_v53 = vpop.permute.xlu1 %461 }
 0x266   :  { %20300 = vst [vmem:[#allocation10_spill] sm:$0xff] %v14538_v53 }
 0x26d   :  { %v491_v55 = vpop.permute.xlu1 %490 }
 0x26e   :  { %v495_v56 = vmul.f32 %v491_v55, %v14451_v58  ;;  %v494_v59 = vmul.f32 %v491_v55, %v14449_v57  ;;  %v493_v60 = vmul.f32 %v491_v55, %v14443_v54  ;;  %v498_v63 = vmul.f32 %v491_v55, %v14459_v62 }
 0x26f   :  { %v497_v2 = vmul.f32 %v491_v55, %v14415_v39  ;;  %v496_v4 = vmul.f32 %v491_v55, %v14457_v61  ;;  %v500_v25 = vmul.f32 %v491_v55, %v14423_v43  ;;  %v499_v28 = vmul.f32 %v491_v55, %v14465_v3 }
 0x270   :  { %513 = vrot.lane.b32.xlu1 %v495_v56, %s14232_s16  ;;  %511 = vrot.lane.b32.xlu0 %v494_v59, %s14232_s16 }
 0x271   :  { %509 = vrot.lane.b32.xlu2 %v493_v60, %s14232_s16 }
 0x278   :  { %519 = vrot.lane.b32.xlu1 %v498_v63, %s14232_s16  ;;  %517 = vrot.lane.b32.xlu0 %v497_v2, %s14232_s16  ;;  %v14237_v2 = vmov 12  }
 0x279   :  { %515 = vrot.lane.b32.xlu2 %v496_v4, %s14232_s16 }
 0x280   :  { %548 = vperm.xlu1 %12900, %v14350_v1   ;;  %523 = vrot.lane.b32.xlu0 %v500_v25, %s14232_s16 }
 0x281   :  { %521 = vrot.lane.b32.xlu2 %v499_v28, %s14232_s16  ;;  %s14256_s16 = smov 48  }
 0x288   :  { %12901 = vset.pattern.permute.xlu1 %v14233_v29 }
 0x2e2   :  { %v14549_v30 = vpop.permute.xlu1 %513 }
 0x2e3   :  { %20301 = vst [vmem:[#allocation11_spill] sm:$0xff] %v14549_v30 }
 0x2ea   :  { %v14551_v31 = vpop.permute.xlu1 %519 }
 0x2eb   :  { %20302 = vst [vmem:[#allocation12_spill] sm:$0xff] %v14551_v31 }
 0x2f2   :  { %v549_v32 = vpop.permute.xlu1 %548 }
 0x2f3   :  { %v553_v33 = vmul.f32 %v549_v32, %v14451_v58  ;;  %v552_v34 = vmul.f32 %v549_v32, %v14449_v57  ;;  %v551_v35 = vmul.f32 %v549_v32, %v14443_v54  ;;  %v556_v36 = vmul.f32 %v549_v32, %v14459_v62 }
 0x2f4   :  { %v555_v37 = vmul.f32 %v549_v32, %v14415_v39  ;;  %v554_v41 = vmul.f32 %v549_v32, %v14457_v61  ;;  %v558_v42 = vmul.f32 %v549_v32, %v14423_v43  ;;  %v557_v44 = vmul.f32 %v549_v32, %v14465_v3 }
 0x2f5   :  { %571 = vrot.lane.b32.xlu1 %v553_v33, %s14234_s17  ;;  %569 = vrot.lane.b32.xlu0 %v552_v34, %s14234_s17 }
 0x2f6   :  { %567 = vrot.lane.b32.xlu2 %v551_v35, %s14234_s17 }
 0x2fd   :  { %577 = vrot.lane.b32.xlu1 %v556_v36, %s14234_s17  ;;  %575 = vrot.lane.b32.xlu0 %v555_v37, %s14234_s17 }
 0x2fe   :  { %573 = vrot.lane.b32.xlu2 %v554_v41, %s14234_s17 }
 0x305   :  { %606 = vperm.xlu1 %12901, %v14350_v1   ;;  %581 = vrot.lane.b32.xlu0 %v558_v42, %s14234_s17 }
 0x306   :  { %579 = vrot.lane.b32.xlu2 %v557_v44, %s14234_s17  ;;  %s14258_s17 = smov 47  }
 0x30d   :  { %12902 = vset.pattern.permute.xlu1 %v14235_v45 }
 0x367   :  { %v14562_v46 = vpop.permute.xlu1 %571 }
 0x368   :  { %20303 = vst [vmem:[#allocation13_spill] sm:$0xff] %v14562_v46 }
 0x36f   :  { %v14564_v47 = vpop.permute.xlu1 %577 }
 0x370   :  { %20304 = vst [vmem:[#allocation14_spill] sm:$0xff] %v14564_v47 }
 0x377   :  { %v607_v48 = vpop.permute.xlu1 %606 }
 0x378   :  { %v611_v49 = vmul.f32 %v607_v48, %v14451_v58  ;;  %v610_v50 = vmul.f32 %v607_v48, %v14449_v57  ;;  %v609_v51 = vmul.f32 %v607_v48, %v14443_v54  ;;  %v614_v55 = vmul.f32 %v607_v48, %v14459_v62 }
 0x379   :  { %v613_v56 = vmul.f32 %v607_v48, %v14415_v39  ;;  %v612_v59 = vmul.f32 %v607_v48, %v14457_v61  ;;  %v616_v60 = vmul.f32 %v607_v48, %v14423_v43  ;;  %v615_v63 = vmul.f32 %v607_v48, %v14465_v3 }
 0x37a   :  { %629 = vrot.lane.b32.xlu1 %v611_v49, %s14236_s18  ;;  %627 = vrot.lane.b32.xlu0 %v610_v50, %s14236_s18  ;;  %v14239_v48 = vmov 13  }
 0x37b   :  { %625 = vrot.lane.b32.xlu2 %v609_v51, %s14236_s18  ;;  %12904 = vset.pattern.permute.xlu0 %v14239_v48 }
 0x382   :  { %635 = vrot.lane.b32.xlu1 %v614_v55, %s14236_s18  ;;  %633 = vrot.lane.b32.xlu0 %v613_v56, %s14236_s18  ;;  %v721_v55 = vld [vmem:[%s20090_s0 + $0x1] sm:$0x7f]  ;;  %s14242_s0 = smov 85  }
 0x383   :  { %631 = vrot.lane.b32.xlu2 %v612_v59, %s14236_s18  ;;  %v14636_v56 = vperm.slane %v721_v55, 0  ;;  %v14638_v59 = vperm.slane %v721_v55, 1 }
 0x38a   :  { %664 = vperm.xlu1 %12902, %v14350_v1   ;;  %639 = vrot.lane.b32.xlu0 %v616_v60, %s14236_s18  ;;  %v14640_v60 = vperm.slane %v721_v55, 2 }
 0x38b   :  { %637 = vrot.lane.b32.xlu2 %v615_v63, %s14236_s18 }
 0x392   :  { %12903 = vset.pattern.permute.xlu1 %v14237_v2 }
 0x3ec   :  { %v14583_v4 = vpop.permute.xlu1 %629 }
 0x3ed   :  { %20305 = vst [vmem:[#allocation15_spill] sm:$0xff] %v14583_v4  ;;  %v14241_v4 = vmov 14  }
 0x3f4   :  { %v14585_v25 = vpop.permute.xlu1 %635 }
 0x3f5   :  { %20306 = vst [vmem:[#allocation16_spill] sm:$0xff] %v14585_v25 }
 0x3fc   :  { %v665_v28 = vpop.permute.xlu1 %664 }
 0x3fd   :  { %v669_v29 = vmul.f32 %v665_v28, %v14451_v58  ;;  %v668_v32 = vmul.f32 %v665_v28, %v14449_v57  ;;  %v667_v33 = vmul.f32 %v665_v28, %v14443_v54  ;;  %v672_v34 = vmul.f32 %v665_v28, %v14459_v62  ;;  %v14603_v58 = vpop.permute.xlu0 %115 }
 0x3fe   :  { %v671_v35 = vmul.f32 %v665_v28, %v14415_v39  ;;  %v670_v36 = vmul.f32 %v665_v28, %v14457_v61  ;;  %v674_v54 = vmul.f32 %v665_v28, %v14423_v43  ;;  %v673_v57 = vmul.f32 %v665_v28, %v14465_v3 }
 0x3ff   :  { %687 = vrot.lane.b32.xlu1 %v669_v29, %s20228_s19  ;;  %685 = vrot.lane.b32.xlu0 %v668_v32, %s20228_s19 }
 0x400   :  { %683 = vrot.lane.b32.xlu2 %v667_v33, %s20228_s19  ;;  %v14650_v33 = vperm.slane %v721_v55, 4 }
 0x405   :  { %v14607_v39 = vpop.permute.xlu0 %158 }
 0x407   :  { %693 = vrot.lane.b32.xlu1 %v672_v34, %s20228_s19  ;;  %691 = vrot.lane.b32.xlu0 %v671_v35, %s20228_s19  ;;  %v14652_v34 = vperm.slane %v721_v55, 5 }
 0x408   :  { %689 = vrot.lane.b32.xlu2 %v670_v36, %s20228_s19  ;;  %v14656_v36 = vperm.slane %v721_v55, 3 }
 0x40d   :  { %v14609_v61 = vpop.permute.xlu0 %164 }
 0x40f   :  { %723 = vperm.xlu1 %12903, %v14350_v1   ;;  %697 = vrot.lane.b32.xlu0 %v674_v54, %s20228_s19 }
 0x410   :  { %695 = vrot.lane.b32.xlu2 %v673_v57, %s20228_s19 }
 0x415   :  { %v14611_v62 = vpop.permute.xlu0 %217 }
 0x417   :  { %13312 = vset.pattern.permute.xlu1 %v20102_v0 }
 0x41d   :  { %v14613_v37 = vpop.permute.xlu0 %270 }
 0x425   :  { %v14615_v43 = vpop.permute.xlu0 %343 }
 0x42d   :  { %v14617_v3 = vpop.permute.xlu0 %349 }
 0x435   :  { %v14619_v41 = vpop.permute.xlu0 %395 }
 0x436   :  { %20307 = vst [vmem:[#allocation17_spill] sm:$0xff] %v14619_v41 }
 0x43d   :  { %v14621_v42 = vpop.permute.xlu0 %401 }
 0x43e   :  { %20308 = vst [vmem:[#allocation18_spill] sm:$0xff] %v14621_v42 }
 0x445   :  { %v14623_v44 = vpop.permute.xlu0 %407 }
 0x446   :  { %20309 = vst [vmem:[#allocation19_spill] sm:$0xff] %v14623_v44 }
 0x44d   :  { %v14625_v45 = vpop.permute.xlu0 %453 }
 0x44e   :  { %20310 = vst [vmem:[#allocation20_spill] sm:$0xff] %v14625_v45 }
 0x455   :  { %v14629_v50 = vpop.permute.xlu0 %459 }
 0x456   :  { %20312 = vst [vmem:[#allocation22_spill] sm:$0xff] %v14629_v50 }
 0x45d   :  { %v14642_v63 = vpop.permute.xlu0 %465 }
 0x45e   :  { %20314 = vst [vmem:[#allocation24_spill] sm:$0xff] %v14642_v63 }
 0x465   :  { %v14654_v35 = vpop.permute.xlu0 %511 }
 0x466   :  { %20315 = vst [vmem:[#allocation25_spill] sm:$0xff] %v14654_v35 }
 0x471   :  { %v14627_v49 = vpop.permute.xlu1 %687 }
 0x472   :  { %20311 = vst [vmem:[#allocation21_spill] sm:$0xff] %v14627_v49 }
 0x479   :  { %v14631_v51 = vpop.permute.xlu1 %693 }
 0x47a   :  { %20313 = vst [vmem:[#allocation23_spill] sm:$0xff] %v14631_v51 }
 0x481   :  { %v724_v2 = vpop.permute.xlu1 %723 }
 0x482   :  { %v743_v28 = vmul.f32 %v14640_v60, %v724_v2  ;;  %v742_v29 = vmul.f32 %v14638_v59, %v724_v2  ;;  %v741_v32 = vmul.f32 %v14636_v56, %v724_v2  ;;  %v746_v54 = vmul.f32 %v14652_v34, %v724_v2 }
 0x483   :  { %v745_v57 = vmul.f32 %v14650_v33, %v724_v2  ;;  %v744_v48 = vmul.f32 %v14656_v36, %v724_v2 }
 0x484   :  { %759 = vrot.lane.b32.xlu1 %v743_v28, %s20226_s22  ;;  %757 = vrot.lane.b32.xlu0 %v742_v29, %s20226_s22  ;;  %v14664_v28 = vperm.slane %v721_v55, 6  ;;  %v14666_v29 = vpop.permute.xlu0 %517 }
 0x485   :  { %755 = vrot.lane.b32.xlu2 %v741_v32, %s20226_s22  ;;  %20316 = vst [vmem:[#allocation26_spill] sm:$0xff] %v14666_v29 }
 0x486   :  { %v747_v32 = vmul.f32 %v14664_v28, %v724_v2 }
 0x48c   :  { %765 = vrot.lane.b32.xlu1 %v746_v54, %s20226_s22  ;;  %763 = vrot.lane.b32.xlu0 %v745_v57, %s20226_s22  ;;  %v14671_v0 = vpop.permute.xlu0 %523 }
 0x48d   :  { %761 = vrot.lane.b32.xlu2 %v744_v48, %s20226_s22  ;;  %20317 = vst [vmem:[#allocation27_spill] sm:$0xff] %v14671_v0 }
 0x494   :  { %791 = vperm.xlu0 %12904, %v14350_v1   ;;  %v14673_v51 = vpop.permute.xlu0 %569 }
 0x495   :  { %767 = vrot.lane.b32.xlu2 %v747_v32, %s20226_s22  ;;  %20318 = vst [vmem:[#allocation28_spill] sm:$0xff] %v14673_v51 }
 0x49c   :  { %v14675_v49 = vpop.permute.xlu0 %575  ;;  %12905 = vset.pattern.permute.xlu0 %v14241_v4 }
 0x49d   :  { %20319 = vst [vmem:[#allocation29_spill] sm:$0xff] %v14675_v49 }
 0x4a4   :  { %v14677_v54 = vpop.permute.xlu0 %581 }
 0x4a5   :  { %20320 = vst [vmem:[#allocation30_spill] sm:$0xff] %v14677_v54 }
 0x4ac   :  { %v14679_v57 = vpop.permute.xlu0 %627 }
 0x4ad   :  { %20321 = vst [vmem:[#allocation31_spill] sm:$0xff] %v14679_v57 }
 0x4b4   :  { %v14681_v55 = vpop.permute.xlu0 %633 }
 0x4b5   :  { %20322 = vst [vmem:[#allocation32_spill] sm:$0xff] %v14681_v55 }
 0x4bc   :  { %v14683_v48 = vpop.permute.xlu0 %639 }
 0x4bd   :  { %20323 = vst [vmem:[#allocation33_spill] sm:$0xff] %v14683_v48 }
 0x4c4   :  { %v14685_v25 = vpop.permute.xlu0 %685 }
 0x4c5   :  { %20324 = vst [vmem:[#allocation34_spill] sm:$0xff] %v14685_v25 }
 0x4cc   :  { %v14687_v2 = vpop.permute.xlu0 %691 }
 0x4cd   :  { %20325 = vst [vmem:[#allocation35_spill] sm:$0xff] %v14687_v2 }
 0x4d4   :  { %v14689_v32 = vpop.permute.xlu0 %697 }
 0x4d5   :  { %20326 = vst [vmem:[#allocation36_spill] sm:$0xff] %v14689_v32  ;;  %v14243_v32 = vmov 15  }
 0x4f6   :  { %v14691_v47 = vpop.permute.xlu0 %757 }
 0x4f7   :  { %20327 = vst [vmem:[#allocation37_spill] sm:$0xff] %v14691_v47 }
 0x4fe   :  { %v14693_v51 = vpop.permute.xlu0 %763 }
 0x4ff   :  { %20328 = vst [vmem:[#allocation38_spill] sm:$0xff] %v14693_v51 }
 0x506   :  { %v792_v49 = vpop.permute.xlu0 %791 }
 0x507   :  { %v798_v54 = vmul.f32 %v792_v49, %v14650_v33  ;;  %v794_v57 = vmul.f32 %v792_v49, %v14636_v56  ;;  %v795_v55 = vmul.f32 %v792_v49, %v14638_v59  ;;  %v796_v2 = vmul.f32 %v792_v49, %v14640_v60 }
 0x508   :  { %v797_v4 = vmul.f32 %v792_v49, %v14656_v36  ;;  %v799_v51 = vmul.f32 %v792_v49, %v14652_v34  ;;  %v800_v47 = vmul.f32 %v792_v49, %v14664_v28 }
 0x509   :  { %816 = vrot.lane.b32.xlu0 %v798_v54, %s14242_s0  ;;  %808 = vrot.lane.b32.xlu1 %v794_v57, %s14242_s0 }
 0x50a   :  { %810 = vrot.lane.b32.xlu2 %v795_v55, %s14242_s0 }
 0x511   :  { %844 = vperm.xlu0 %12905, %v14350_v1   ;;  %812 = vrot.lane.b32.xlu1 %v796_v2, %s14242_s0 }
 0x512   :  { %814 = vrot.lane.b32.xlu2 %v797_v4, %s14242_s0 }
 0x519   :  { %818 = vrot.lane.b32.xlu1 %v799_v51, %s14242_s0  ;;  %12906 = vset.pattern.permute.xlu0 %v14243_v32  ;;  %v14245_v32 = vmov 16  }
 0x51a   :  { %820 = vrot.lane.b32.xlu2 %v800_v47, %s14242_s0  ;;  %s14262_s0 = smov 45  }
 0x57b   :  { %v14703_v25 = vpop.permute.xlu0 %816 }
 0x57c   :  { %20329 = vst [vmem:[#allocation39_spill] sm:$0xff] %v14703_v25 }
 0x583   :  { %v845_v54 = vpop.permute.xlu0 %844 }
 0x584   :  { %v851_v57 = vmul.f32 %v845_v54, %v14650_v33  ;;  %v847_v55 = vmul.f32 %v845_v54, %v14636_v56  ;;  %v848_v48 = vmul.f32 %v845_v54, %v14638_v59  ;;  %v849_v2 = vmul.f32 %v845_v54, %v14640_v60 }
 0x585   :  { %v850_v49 = vmul.f32 %v845_v54, %v14656_v36  ;;  %v852_v47 = vmul.f32 %v845_v54, %v14652_v34  ;;  %v853_v51 = vmul.f32 %v845_v54, %v14664_v28 }
 0x586   :  { %869 = vrot.lane.b32.xlu0 %v851_v57, %s14244_s23  ;;  %861 = vrot.lane.b32.xlu1 %v847_v55, %s14244_s23 }
 0x587   :  { %863 = vrot.lane.b32.xlu2 %v848_v48, %s14244_s23 }
 0x58e   :  { %897 = vperm.xlu0 %12906, %v14350_v1   ;;  %865 = vrot.lane.b32.xlu1 %v849_v2, %s14244_s23 }
 0x58f   :  { %867 = vrot.lane.b32.xlu2 %v850_v49, %s14244_s23 }
 0x596   :  { %871 = vrot.lane.b32.xlu1 %v852_v47, %s14244_s23  ;;  %12907 = vset.pattern.permute.xlu0 %v14245_v32 }
 0x597   :  { %873 = vrot.lane.b32.xlu2 %v853_v51, %s14244_s23  ;;  %v14247_v51 = vmov 17   ;;  %s14263_s23 = smov 44  }
 0x5f8   :  { %v14713_v4 = vpop.permute.xlu0 %869 }
 0x5f9   :  { %20330 = vst [vmem:[#allocation40_spill] sm:$0xff] %v14713_v4 }
 0x600   :  { %v898_v57 = vpop.permute.xlu0 %897 }
 0x601   :  { %v904_v48 = vmul.f32 %v898_v57, %v14650_v33  ;;  %v900_v55 = vmul.f32 %v898_v57, %v14636_v56  ;;  %v901_v25 = vmul.f32 %v898_v57, %v14638_v59  ;;  %v902_v2 = vmul.f32 %v898_v57, %v14640_v60 }
 0x602   :  { %v903_v54 = vmul.f32 %v898_v57, %v14656_v36  ;;  %v905_v49 = vmul.f32 %v898_v57, %v14652_v34  ;;  %v906_v47 = vmul.f32 %v898_v57, %v14664_v28 }
 0x603   :  { %922 = vrot.lane.b32.xlu0 %v904_v48, %s14246_s24  ;;  %914 = vrot.lane.b32.xlu1 %v900_v55, %s14246_s24 }
 0x604   :  { %916 = vrot.lane.b32.xlu2 %v901_v25, %s14246_s24 }
 0x60b   :  { %950 = vperm.xlu0 %12907, %v14350_v1   ;;  %918 = vrot.lane.b32.xlu1 %v902_v2, %s14246_s24 }
 0x60c   :  { %920 = vrot.lane.b32.xlu2 %v903_v54, %s14246_s24 }
 0x613   :  { %924 = vrot.lane.b32.xlu1 %v905_v49, %s14246_s24  ;;  %12908 = vset.pattern.permute.xlu0 %v14247_v51 }
 0x614   :  { %926 = vrot.lane.b32.xlu2 %v906_v47, %s14246_s24  ;;  %v14249_v47 = vmov 18   ;;  %s14276_s24 = smov 1  }
 0x675   :  { %v14723_v32 = vpop.permute.xlu0 %922 }
 0x676   :  { %20331 = vst [vmem:[#allocation41_spill] sm:$0xff] %v14723_v32 }
 0x67d   :  { %v951_v48 = vpop.permute.xlu0 %950 }
 0x67e   :  { %v957_v25 = vmul.f32 %v951_v48, %v14650_v33  ;;  %v953_v55 = vmul.f32 %v951_v48, %v14636_v56  ;;  %v954_v4 = vmul.f32 %v951_v48, %v14638_v59  ;;  %v955_v2 = vmul.f32 %v951_v48, %v14640_v60 }
 0x67f   :  { %v956_v57 = vmul.f32 %v951_v48, %v14656_v36  ;;  %v958_v54 = vmul.f32 %v951_v48, %v14652_v34  ;;  %v959_v49 = vmul.f32 %v951_v48, %v14664_v28  ;;  %v14739_v48 = vpop.permute.xlu2 %107 }
 0x680   :  { %975 = vrot.lane.b32.xlu0 %v957_v25, %s14248_s27  ;;  %967 = vrot.lane.b32.xlu1 %v953_v55, %s14248_s27 }
 0x681   :  { %969 = vrot.lane.b32.xlu2 %v954_v4, %s14248_s27 }
 0x688   :  { %1003 = vperm.xlu0 %12908, %v14350_v1   ;;  %971 = vrot.lane.b32.xlu1 %v955_v2, %s14248_s27 }
 0x689   :  { %973 = vrot.lane.b32.xlu2 %v956_v57, %s14248_s27 }
 0x690   :  { %977 = vrot.lane.b32.xlu1 %v958_v54, %s14248_s27  ;;  %12909 = vset.pattern.permute.xlu0 %v14249_v47  ;;  %v14745_v47 = vpop.permute.xlu2 %109 }
 0x691   :  { %979 = vrot.lane.b32.xlu2 %v959_v49, %s14248_s27  ;;  %s14274_s27 = smov 18  }
 0x6f2   :  { %v14733_v51 = vpop.permute.xlu0 %975 }
 0x6f3   :  { %20332 = vst [vmem:[#allocation42_spill] sm:$0xff] %v14733_v51 }
 0x6fa   :  { %v1004_v25 = vpop.permute.xlu0 %1003 }
 0x6fb   :  { %v1010_v4 = vmul.f32 %v1004_v25, %v14650_v33  ;;  %v1006_v55 = vmul.f32 %v1004_v25, %v14636_v56  ;;  %v1007_v32 = vmul.f32 %v1004_v25, %v14638_v59  ;;  %v1008_v2 = vmul.f32 %v1004_v25, %v14640_v60 }
 0x6fc   :  { %v1009_v57 = vmul.f32 %v1004_v25, %v14656_v36  ;;  %v1011_v54 = vmul.f32 %v1004_v25, %v14652_v34  ;;  %v1012_v49 = vmul.f32 %v1004_v25, %v14664_v28 }
 0x6fd   :  { %1028 = vrot.lane.b32.xlu0 %v1010_v4, %s14250_s28  ;;  %1020 = vrot.lane.b32.xlu1 %v1006_v55, %s14250_s28  ;;  %v14251_v4 = vmov 19   ;;  %v14749_v55 = vpop.permute.xlu2 %113 }
 0x6fe   :  { %1022 = vrot.lane.b32.xlu2 %v1007_v32, %s14250_s28 }
 0x705   :  { %1056 = vperm.xlu0 %12909, %v14350_v1   ;;  %1024 = vrot.lane.b32.xlu1 %v1008_v2, %s14250_s28 }
 0x706   :  { %1026 = vrot.lane.b32.xlu2 %v1009_v57, %s14250_s28 }
 0x70d   :  { %1030 = vrot.lane.b32.xlu1 %v1011_v54, %s14250_s28  ;;  %12910 = vset.pattern.permute.xlu0 %v14251_v4  ;;  %v14755_v54 = vpop.permute.xlu2 %156 }
 0x70e   :  { %1032 = vrot.lane.b32.xlu2 %v1012_v49, %s14250_s28  ;;  %s14278_s28 = smov 109  }
 0x715   :  { %v14761_v0 = vpop.permute.xlu2 %162 }
 0x76f   :  { %v14747_v32 = vpop.permute.xlu0 %1028 }
 0x770   :  { %20333 = vst [vmem:[#allocation43_spill] sm:$0xff] %v14747_v32 }
 0x777   :  { %v1057_v51 = vpop.permute.xlu0 %1056 }
 0x778   :  { %v1063_v46 = vmul.f32 %v1057_v51, %v14650_v33  ;;  %v1059_v2 = vmul.f32 %v1057_v51, %v14636_v56  ;;  %v1060_v57 = vmul.f32 %v1057_v51, %v14638_v59  ;;  %v1061_v25 = vmul.f32 %v1057_v51, %v14640_v60 }
 0x779   :  { %v1062_v49 = vmul.f32 %v1057_v51, %v14656_v36  ;;  %v1064_v4 = vmul.f32 %v1057_v51, %v14652_v34  ;;  %v1065_v32 = vmul.f32 %v1057_v51, %v14664_v28 }
 0x77a   :  { %1081 = vrot.lane.b32.xlu0 %v1063_v46, %s14252_s29  ;;  %1073 = vrot.lane.b32.xlu1 %v1059_v2, %s14252_s29  ;;  %v14253_v46 = vmov 20  }
 0x77b   :  { %1075 = vrot.lane.b32.xlu2 %v1060_v57, %s14252_s29  ;;  %v14765_v57 = vpop.permute.xlu2 %168 }
 0x782   :  { %1109 = vperm.xlu0 %12910, %v14350_v1   ;;  %1077 = vrot.lane.b32.xlu1 %v1061_v25, %s14252_s29 }
 0x783   :  { %1079 = vrot.lane.b32.xlu2 %v1062_v49, %s14252_s29 }
 0x78a   :  { %1083 = vrot.lane.b32.xlu1 %v1064_v4, %s14252_s29  ;;  %12911 = vset.pattern.permute.xlu0 %v14253_v46 }
 0x78b   :  { %1085 = vrot.lane.b32.xlu2 %v1065_v32, %s14252_s29  ;;  %v14771_v32 = vpop.permute.xlu2 %211  ;;  %s14280_s29 = smov 89  }
 0x793   :  { %v14777_v35 = vpop.permute.xlu2 %215 }
 0x7ec   :  { %v14763_v2 = vpop.permute.xlu0 %1081 }
 0x7ed   :  { %20334 = vst [vmem:[#allocation44_spill] sm:$0xff] %v14763_v2 }
 0x7f4   :  { %v1110_v29 = vpop.permute.xlu0 %1109 }
 0x7f5   :  { %v1116_v31 = vmul.f32 %v1110_v29, %v14650_v33  ;;  %v1112_v25 = vmul.f32 %v1110_v29, %v14636_v56  ;;  %v1113_v49 = vmul.f32 %v1110_v29, %v14638_v59  ;;  %v1114_v51 = vmul.f32 %v1110_v29, %v14640_v60 }
 0x7f6   :  { %v1115_v4 = vmul.f32 %v1110_v29, %v14656_v36  ;;  %v1117_v46 = vmul.f32 %v1110_v29, %v14652_v34  ;;  %v1118_v2 = vmul.f32 %v1110_v29, %v14664_v28 }
 0x7f7   :  { %1134 = vrot.lane.b32.xlu0 %v1116_v31, %s14254_s30  ;;  %1126 = vrot.lane.b32.xlu1 %v1112_v25, %s14254_s30  ;;  %v14255_v31 = vmov 21  }
 0x7f8   :  { %1128 = vrot.lane.b32.xlu2 %v1113_v49, %s14254_s30  ;;  %v14781_v49 = vpop.permute.xlu2 %221 }
 0x7ff   :  { %1162 = vperm.xlu0 %12911, %v14350_v1   ;;  %1130 = vrot.lane.b32.xlu1 %v1114_v51, %s14254_s30 }
 0x800   :  { %1132 = vrot.lane.b32.xlu2 %v1115_v4, %s14254_s30 }
 0x807   :  { %1136 = vrot.lane.b32.xlu1 %v1117_v46, %s14254_s30  ;;  %12912 = vset.pattern.permute.xlu0 %v14255_v31 }
 0x808   :  { %1138 = vrot.lane.b32.xlu2 %v1118_v2, %s14254_s30  ;;  %v14787_v2 = vpop.permute.xlu2 %264  ;;  %s14267_s30 = smov 40  }
 0x810   :  { %v14793_v50 = vpop.permute.xlu2 %268 }
 0x869   :  { %v14779_v25 = vpop.permute.xlu0 %1134 }
 0x86a   :  { %20335 = vst [vmem:[#allocation45_spill] sm:$0xff] %v14779_v25 }
 0x871   :  { %v1163_v30 = vpop.permute.xlu0 %1162 }
 0x872   :  { %v1169_v63 = vmul.f32 %v1163_v30, %v14650_v33  ;;  %v1165_v51 = vmul.f32 %v1163_v30, %v14636_v56  ;;  %v1166_v4 = vmul.f32 %v1163_v30, %v14638_v59  ;;  %v1167_v29 = vmul.f32 %v1163_v30, %v14640_v60 }
 0x873   :  { %v1168_v46 = vmul.f32 %v1163_v30, %v14656_v36  ;;  %v1170_v31 = vmul.f32 %v1163_v30, %v14652_v34  ;;  %v1171_v25 = vmul.f32 %v1163_v30, %v14664_v28 }
 0x874   :  { %1187 = vrot.lane.b32.xlu0 %v1169_v63, %s14256_s16  ;;  %1179 = vrot.lane.b32.xlu1 %v1165_v51, %s14256_s16  ;;  %v14795_v63 = vpop.permute.xlu2 %274 }
 0x875   :  { %1181 = vrot.lane.b32.xlu2 %v1166_v4, %s14256_s16 }
 0x87c   :  { %1215 = vperm.xlu0 %12912, %v14350_v1   ;;  %1183 = vrot.lane.b32.xlu1 %v1167_v29, %s14256_s16  ;;  %v14797_v51 = vpop.permute.xlu2 %337  ;;  %v14257_v1 = vmov 22  }
 0x87d   :  { %1185 = vrot.lane.b32.xlu2 %v1168_v46, %s14256_s16 }
 0x884   :  { %1189 = vrot.lane.b32.xlu1 %v1170_v31, %s14256_s16  ;;  %v14799_v4 = vpop.permute.xlu2 %341  ;;  %12913 = vset.pattern.permute.xlu0 %v14257_v1 }
 0x885   :  { %1191 = vrot.lane.b32.xlu2 %v1171_v25, %s14256_s16  ;;  %s14268_s16 = smov 39  }
 0x88c   :  { %v14801_v53 = vpop.permute.xlu2 %347 }
 0x894   :  { %v14803_v45 = vpop.permute.xlu2 %393 }
 0x895   :  { %20336 = vst [vmem:[#allocation46_spill] sm:$0xff] %v14803_v45 }
 0x89c   :  { %v14805_v29 = vpop.permute.xlu2 %399 }
 0x89d   :  { %20337 = vst [vmem:[#allocation47_spill] sm:$0xff] %v14805_v29 }
 0x8a4   :  { %v14809_v30 = vpop.permute.xlu2 %405 }
 0x8a5   :  { %20339 = vst [vmem:[#allocation49_spill] sm:$0xff] %v14809_v30 }
 0x8ac   :  { %v14814_v42 = vpop.permute.xlu2 %451 }
 0x8ad   :  { %20340 = vst [vmem:[#allocation50_spill] sm:$0xff] %v14814_v42 }
 0x8b4   :  { %v14824_v30 = vpop.permute.xlu2 %457 }
 0x8b5   :  { %20341 = vst [vmem:[#allocation51_spill] sm:$0xff] %v14824_v30 }
 0x8e6   :  { %v14807_v46 = vpop.permute.xlu0 %1187 }
 0x8e7   :  { %20338 = vst [vmem:[#allocation48_spill] sm:$0xff] %v14807_v46  ;;  %v14821_v46 = vld [vmem:[%s20089_s2] sm:$0xff]  ;;  %s14260_s2 = smov 46  }
 0x8ee   :  { %v1216_v31 = vpop.permute.xlu0 %1215 }
 0x8ef   :  { %v1222_v25 = vmul.f32 %v1216_v31, %v14650_v33  ;;  %v1218_v52 = vmul.f32 %v1216_v31, %v14636_v56  ;;  %v1219_v44 = vmul.f32 %v1216_v31, %v14638_v59  ;;  %v1220_v1 = vmul.f32 %v1216_v31, %v14640_v60 }
 0x8f0   :  { %v1221_v40 = vmul.f32 %v1216_v31, %v14656_v36 }
 0x8f1   :  { %1240 = vrot.lane.b32.xlu0 %v1222_v25, %s14258_s17  ;;  %1232 = vrot.lane.b32.xlu1 %v1218_v52, %s14258_s17  ;;  %v1223_v52 = vmul.f32 %v1216_v31, %v14652_v34  ;;  %v14828_v25 = vpop.permute.xlu2 %463 }
 0x8f2   :  { %1234 = vrot.lane.b32.xlu2 %v1219_v44, %s14258_s17  ;;  %v1224_v44 = vmul.f32 %v1216_v31, %v14664_v28  ;;  %20342 = vst [vmem:[#allocation52_spill] sm:$0xff] %v14828_v25  ;;  %v14259_v31 = vmov 23  }
 0x8f9   :  { %1268 = vperm.xlu0 %12913, %v14821_v46   ;;  %1236 = vrot.lane.b32.xlu1 %v1220_v1, %s14258_s17  ;;  %v14830_v42 = vpop.permute.xlu2 %509 }
 0x8fa   :  { %1238 = vrot.lane.b32.xlu2 %v1221_v40, %s14258_s17  ;;  %20343 = vst [vmem:[#allocation53_spill] sm:$0xff] %v14830_v42 }
 0x901   :  { %1242 = vrot.lane.b32.xlu1 %v1223_v52, %s14258_s17  ;;  %v14832_v45 = vpop.permute.xlu2 %515  ;;  %12914 = vset.pattern.permute.xlu0 %v14259_v31 }
 0x902   :  { %1244 = vrot.lane.b32.xlu2 %v1224_v44, %s14258_s17  ;;  %20344 = vst [vmem:[#allocation54_spill] sm:$0xff] %v14832_v45  ;;  %s14269_s17 = smov 38  }
 0x909   :  { %v14834_v41 = vpop.permute.xlu2 %521 }
 0x90a   :  { %20345 = vst [vmem:[#allocation55_spill] sm:$0xff] %v14834_v41 }
 0x911   :  { %v14836_v38 = vpop.permute.xlu2 %567 }
 0x912   :  { %20346 = vst [vmem:[#allocation56_spill] sm:$0xff] %v14836_v38 }
 0x919   :  { %v14838_v1 = vpop.permute.xlu2 %573 }
 0x91a   :  { %20347 = vst [vmem:[#allocation57_spill] sm:$0xff] %v14838_v1 }
 0x921   :  { %v14840_v40 = vpop.permute.xlu2 %579 }
 0x922   :  { %20348 = vst [vmem:[#allocation58_spill] sm:$0xff] %v14840_v40 }
 0x929   :  { %v14842_v30 = vpop.permute.xlu2 %625 }
 0x92a   :  { %20349 = vst [vmem:[#allocation59_spill] sm:$0xff] %v14842_v30 }
 0x931   :  { %v14844_v29 = vpop.permute.xlu2 %631 }
 0x932   :  { %20350 = vst [vmem:[#allocation60_spill] sm:$0xff] %v14844_v29 }
 0x939   :  { %v14846_v52 = vpop.permute.xlu2 %637 }
 0x93a   :  { %20351 = vst [vmem:[#allocation61_spill] sm:$0xff] %v14846_v52 }
 0x941   :  { %v14848_v44 = vpop.permute.xlu2 %683 }
 0x942   :  { %20352 = vst [vmem:[#allocation62_spill] sm:$0xff] %v14848_v44 }
 0x949   :  { %v14854_v1 = vpop.permute.xlu2 %689 }
 0x94a   :  { %20354 = vst [vmem:[#allocation64_spill] sm:$0xff] %v14854_v1 }
 0x963   :  { %v14850_v42 = vpop.permute.xlu0 %1240 }
 0x964   :  { %20353 = vst [vmem:[#allocation63_spill] sm:$0xff] %v14850_v42  ;;  %v14860_v42 = vpop.permute.xlu2 %695 }
 0x965   :  { %20355 = vst [vmem:[#allocation65_spill] sm:$0xff] %v14860_v42 }
 0x96b   :  { %v1269_v45 = vpop.permute.xlu0 %1268 }
 0x96c   :  { %v1275_v41 = vmul.f32 %v1269_v45, %v14650_v33  ;;  %v1271_v38 = vmul.f32 %v1269_v45, %v14636_v56  ;;  %v1272_v40 = vmul.f32 %v1269_v45, %v14638_v59  ;;  %v1273_v31 = vmul.f32 %v1269_v45, %v14640_v60  ;;  %v14864_v30 = vpop.permute.xlu2 %755 }
 0x96d   :  { %v1274_v52 = vmul.f32 %v1269_v45, %v14656_v36  ;;  %v1276_v44 = vmul.f32 %v1269_v45, %v14652_v34  ;;  %v1277_v1 = vmul.f32 %v1269_v45, %v14664_v28  ;;  %20356 = vst [vmem:[#allocation66_spill] sm:$0xff] %v14864_v30 }
 0x96e   :  { %1293 = vrot.lane.b32.xlu0 %v1275_v41, %s14260_s2  ;;  %1285 = vrot.lane.b32.xlu1 %v1271_v38, %s14260_s2 }
 0x96f   :  { %1287 = vrot.lane.b32.xlu2 %v1272_v40, %s14260_s2  ;;  %v14870_v40 = vpop.permute.xlu1 %759 }
 0x970   :  { %20358 = vst [vmem:[#allocation68_spill] sm:$0xff] %v14870_v40 }
 0x974   :  { %v14866_v38 = vpop.permute.xlu2 %761 }
 0x976   :  { %1321 = vperm.xlu0 %12914, %v14821_v46   ;;  %1289 = vrot.lane.b32.xlu1 %v1273_v31, %s14260_s2 }
 0x977   :  { %1291 = vrot.lane.b32.xlu2 %v1274_v52, %s14260_s2  ;;  %v14874_v31 = vpop.permute.xlu1 %765 }
 0x978   :  { %20360 = vst [vmem:[#allocation70_spill] sm:$0xff] %v14874_v31 }
 0x97c   :  { %v14868_v41 = vpop.permute.xlu2 %767 }
 0x97d   :  { %20357 = vst [vmem:[#allocation67_spill] sm:$0xff] %v14868_v41 }
 0x97e   :  { %1295 = vrot.lane.b32.xlu1 %v1276_v44, %s14260_s2 }
 0x97f   :  { %1297 = vrot.lane.b32.xlu2 %v1277_v1, %s14260_s2  ;;  %v14878_v52 = vpop.permute.xlu1 %808  ;;  %s14272_s2 = smov 20  }
 0x980   :  { %20362 = vst [vmem:[#allocation72_spill] sm:$0xff] %v14878_v52 }
 0x984   :  { %v14872_v29 = vpop.permute.xlu2 %810 }
 0x985   :  { %20359 = vst [vmem:[#allocation69_spill] sm:$0xff] %v14872_v29 }
 0x987   :  { %v14882_v45 = vpop.permute.xlu1 %812 }
 0x988   :  { %20364 = vst [vmem:[#allocation74_spill] sm:$0xff] %v14882_v45 }
 0x98c   :  { %v14876_v42 = vpop.permute.xlu2 %814 }
 0x98d   :  { %20361 = vst [vmem:[#allocation71_spill] sm:$0xff] %v14876_v42  ;;  %v14261_v42 = vmov 24  }
 0x98e   :  { %12915 = vset.pattern.permute.xlu0 %v14261_v42 }
 0x98f   :  { %v14886_v1 = vpop.permute.xlu1 %818 }
 0x990   :  { %20366 = vst [vmem:[#allocation76_spill] sm:$0xff] %v14886_v1 }
 0x994   :  { %v14880_v25 = vpop.permute.xlu2 %820 }
 0x995   :  { %20363 = vst [vmem:[#allocation73_spill] sm:$0xff] %v14880_v25 }
 0x997   :  { %v14890_v41 = vpop.permute.xlu1 %861 }
 0x998   :  { %20368 = vst [vmem:[#allocation78_spill] sm:$0xff] %v14890_v41 }
 0x99c   :  { %v14884_v44 = vpop.permute.xlu2 %863 }
 0x99d   :  { %20365 = vst [vmem:[#allocation75_spill] sm:$0xff] %v14884_v44 }
 0x99f   :  { %v14894_v29 = vpop.permute.xlu1 %865 }
 0x9a0   :  { %20370 = vst [vmem:[#allocation80_spill] sm:$0xff] %v14894_v29 }
 0x9a4   :  { %v14888_v30 = vpop.permute.xlu2 %867 }
 0x9a5   :  { %20367 = vst [vmem:[#allocation77_spill] sm:$0xff] %v14888_v30 }
 0x9a7   :  { %v14898_v52 = vpop.permute.xlu1 %871 }
 0x9a8   :  { %20372 = vst [vmem:[#allocation82_spill] sm:$0xff] %v14898_v52 }
 0x9ac   :  { %v14892_v40 = vpop.permute.xlu2 %873 }
 0x9ad   :  { %20369 = vst [vmem:[#allocation79_spill] sm:$0xff] %v14892_v40 }
 0x9af   :  { %v14902_v45 = vpop.permute.xlu1 %914 }
 0x9b0   :  { %20374 = vst [vmem:[#allocation84_spill] sm:$0xff] %v14902_v45 }
 0x9b4   :  { %v14896_v31 = vpop.permute.xlu2 %916 }
 0x9b5   :  { %20371 = vst [vmem:[#allocation81_spill] sm:$0xff] %v14896_v31 }
 0x9b7   :  { %v14908_v30 = vpop.permute.xlu1 %918 }
 0x9b8   :  { %20377 = vst [vmem:[#allocation87_spill] sm:$0xff] %v14908_v30 }
 0x9bc   :  { %v14900_v25 = vpop.permute.xlu2 %920 }
 0x9bd   :  { %20373 = vst [vmem:[#allocation83_spill] sm:$0xff] %v14900_v25 }
 0x9c4   :  { %v14906_v1 = vpop.permute.xlu2 %926 }
 0x9c5   :  { %20376 = vst [vmem:[#allocation86_spill] sm:$0xff] %v14906_v1 }
 0x9cc   :  { %v14913_v42 = vpop.permute.xlu2 %969 }
 0x9cd   :  { %20378 = vst [vmem:[#allocation88_spill] sm:$0xff] %v14913_v42 }
 0x9d4   :  { %v14921_v25 = vpop.permute.xlu2 %973 }
 0x9d5   :  { %20380 = vst [vmem:[#allocation90_spill] sm:$0xff] %v14921_v25 }
 0x9e0   :  { %v14904_v44 = vpop.permute.xlu0 %1293 }
 0x9e1   :  { %20375 = vst [vmem:[#allocation85_spill] sm:$0xff] %v14904_v44  ;;  %v14916_v44 = vpop.permute.xlu1 %924 }
 0x9e2   :  { %20379 = vst [vmem:[#allocation89_spill] sm:$0xff] %v14916_v44 }
 0x9e8   :  { %v1322_v41 = vpop.permute.xlu0 %1321 }
 0x9e9   :  { %v1328_v40 = vmul.f32 %v1322_v41, %v14650_v33  ;;  %v1324_v29 = vmul.f32 %v1322_v41, %v14636_v56  ;;  %v1325_v31 = vmul.f32 %v1322_v41, %v14638_v59  ;;  %v1326_v45 = vmul.f32 %v1322_v41, %v14640_v60  ;;  %v14923_v52 = vpop.permute.xlu1 %967 }
 0x9ea   :  { %v1327_v1 = vmul.f32 %v1322_v41, %v14656_v36  ;;  %v1329_v30 = vmul.f32 %v1322_v41, %v14652_v34  ;;  %20381 = vst [vmem:[#allocation91_spill] sm:$0xff] %v14923_v52 }
 0x9eb   :  { %1346 = vrot.lane.b32.xlu0 %v1328_v40, %s14262_s0  ;;  %1338 = vrot.lane.b32.xlu1 %v1324_v29, %s14262_s0  ;;  %v1330_v29 = vmul.f32 %v1322_v41, %v14664_v28  ;;  %v20382_v40 = vmov 0  }
 0x9ec   :  { %1340 = vrot.lane.b32.xlu2 %v1325_v31, %s14262_s0  ;;  %v14927_v31 = vpop.permute.xlu2 %979 }
 0x9ed   :  { %20383 = vst [vmem:[#allocation92_spill] sm:$0xff] %v14927_v31 }
 0x9f1   :  { %v14929_v42 = vpop.permute.xlu1 %971 }
 0x9f3   :  { %1374 = vperm.xlu0 %12915, %v14821_v46   ;;  %1342 = vrot.lane.b32.xlu1 %v1326_v45, %s14262_s0 }
 0x9f4   :  { %1344 = vrot.lane.b32.xlu2 %v1327_v1, %s14262_s0  ;;  %v14931_v44 = vpop.permute.xlu2 %1022 }
 0x9f5   :  { %20384 = vst [vmem:[#allocation93_spill] sm:$0xff] %v14931_v44 }
 0x9f9   :  { %v14933_v46 = vpop.permute.xlu1 %977 }
 0x9fa   :  { %20385 = vst [vmem:[#allocation94_spill] sm:$0xff] %v14933_v46 }
 0x9fb   :  { %1348 = vrot.lane.b32.xlu1 %v1329_v30, %s14262_s0  ;;  %12916 = vset.pattern.permute.xlu0 %v20382_v40 }
 0x9fc   :  { %1350 = vrot.lane.b32.xlu2 %v1330_v29, %s14262_s0  ;;  %v14935_v45 = vpop.permute.xlu2 %1026  ;;  %s14273_s0 = smov 19  }
 0x9fd   :  { %20386 = vst [vmem:[#allocation95_spill] sm:$0xff] %v14935_v45 }
 0xa01   :  { %v14937_v1 = vpop.permute.xlu1 %1020 }
 0xa02   :  { %20387 = vst [vmem:[#allocation96_spill] sm:$0xff] %v14937_v1 }
 0xa04   :  { %v14939_v25 = vpop.permute.xlu2 %1032 }
 0xa05   :  { %20388 = vst [vmem:[#allocation97_spill] sm:$0xff] %v14939_v25 }
 0xa09   :  { %v14941_v52 = vpop.permute.xlu1 %1024 }
 0xa0a   :  { %20389 = vst [vmem:[#allocation98_spill] sm:$0xff] %v14941_v52 }
 0xa0c   :  { %v14943_v30 = vpop.permute.xlu2 %1075 }
 0xa0d   :  { %20390 = vst [vmem:[#allocation99_spill] sm:$0xff] %v14943_v30 }
 0xa11   :  { %v14945_v41 = vpop.permute.xlu1 %1030 }
 0xa12   :  { %20391 = vst [vmem:[#allocation100_spill] sm:$0xff] %v14945_v41 }
 0xa14   :  { %v14947_v29 = vpop.permute.xlu2 %1079 }
 0xa15   :  { %20392 = vst [vmem:[#allocation101_spill] sm:$0xff] %v14947_v29 }
 0xa19   :  { %v14949_v40 = vpop.permute.xlu1 %1073 }
 0xa1a   :  { %20393 = vst [vmem:[#allocation102_spill] sm:$0xff] %v14949_v40 }
 0xa1c   :  { %v14951_v31 = vpop.permute.xlu2 %1085 }
 0xa1d   :  { %20394 = vst [vmem:[#allocation103_spill] sm:$0xff] %v14951_v31 }
 0xa21   :  { %v14953_v44 = vpop.permute.xlu1 %1077 }
 0xa22   :  { %20395 = vst [vmem:[#allocation104_spill] sm:$0xff] %v14953_v44 }
 0xa24   :  { %v14955_v46 = vpop.permute.xlu2 %1128 }
 0xa25   :  { %20396 = vst [vmem:[#allocation105_spill] sm:$0xff] %v14955_v46 }
 0xa29   :  { %v14957_v45 = vpop.permute.xlu1 %1083 }
 0xa2a   :  { %20397 = vst [vmem:[#allocation106_spill] sm:$0xff] %v14957_v45 }
 0xa2c   :  { %v14959_v1 = vpop.permute.xlu2 %1132 }
 0xa31   :  { %v14961_v25 = vpop.permute.xlu1 %1126 }
 0xa34   :  { %v14963_v52 = vpop.permute.xlu2 %1138 }
 0xa35   :  { %20398 = vst [vmem:[#allocation107_spill] sm:$0xff] %v14963_v52 }
 0xa39   :  { %v14965_v30 = vpop.permute.xlu1 %1130 }
 0xa3a   :  { %20399 = vst [vmem:[#allocation108_spill] sm:$0xff] %v14965_v30 }
 0xa3c   :  { %v14969_v29 = vpop.permute.xlu2 %1181 }
 0xa41   :  { %v14971_v40 = vpop.permute.xlu1 %1136 }
 0xa42   :  { %20401 = vst [vmem:[#allocation110_spill] sm:$0xff] %v14971_v40 }
 0xa44   :  { %v14976_v52 = vpop.permute.xlu2 %1185 }
 0xa45   :  { %20402 = vst [vmem:[#allocation111_spill] sm:$0xff] %v14976_v52 }
 0xa49   :  { %v14978_v30 = vpop.permute.xlu1 %1179 }
 0xa5d   :  { %v14967_v41 = vpop.permute.xlu0 %1346 }
 0xa5e   :  { %20400 = vst [vmem:[#allocation109_spill] sm:$0xff] %v14967_v41  ;;  %v1426_v41 = vld [vmem:[%s20091_s3] sm:$0xff]  ;;  %s14266_s3 = smov 41  }
 0xa65   :  { %v1375_v31 = vpop.permute.xlu0 %1374 }
 0xa66   :  { %v1381_v44 = vmul.f32 %v1375_v31, %v14650_v33  ;;  %v1377_v46 = vmul.f32 %v1375_v31, %v14636_v56  ;;  %v1378_v45 = vmul.f32 %v1375_v31, %v14638_v59  ;;  %v1379_v40 = vmul.f32 %v1375_v31, %v14640_v60  ;;  %v44_v56 = vld [vmem:[%s20092_s1] sm:$0x7f]  ;;  %v14988_v59 = vpop.permute.xlu2 %1191  ;;  %s14264_s1 = smov 42  }
 0xa67   :  { %v1380_v33 = vmul.f32 %v1375_v31, %v14656_v36  ;;  %20403 = vst [vmem:[#allocation112_spill] sm:$0xff] %v14988_v59  ;;  %v1383_v52 = vmul.f32 %v1375_v31, %v14664_v28  ;;  %v15000_v36 = vperm.slane %v44_v56, 0  ;;  %v15012_v28 = vperm.slane %v44_v56, 3 }
 0xa68   :  { %1399 = vrot.lane.b32.xlu0 %v1381_v44, %s14263_s23  ;;  %1391 = vrot.lane.b32.xlu1 %v1377_v46, %s14263_s23  ;;  %v14990_v44 = vpop.permute.xlu1 %1183  ;;  %v14992_v46 = vperm.slane %v44_v56, 4  ;;  %v119_v59 = vsel %vm117_vm0, %v14472_v6, %v14739_v48 }
 0xa69   :  { %1393 = vrot.lane.b32.xlu2 %v1378_v45, %s14263_s23  ;;  %20404 = vst [vmem:[#allocation113_spill] sm:$0xff] %v14990_v44  ;;  %v1382_v45 = vmul.f32 %v1375_v31, %v14652_v34  ;;  %v15010_v34 = vperm.slane %v44_v56, 2 }
 0xa6a   :  { %20405 = vst [vmem:[#allocation114_spill] sm:$0xff] %v14992_v46 }
 0xa6b   :  { %20406 = vst [vmem:[#allocation115_spill] sm:$0xff] %v15000_v36 }
 0xa6c   :  { %20409 = vst [vmem:[#allocation118_spill] sm:$0xff] %v15010_v34 }
 0xa6d   :  { %20410 = vst [vmem:[#allocation119_spill] sm:$0xff] %v15012_v28 }
 0xa6e   :  { %v14998_v60 = vpop.permute.xlu2 %1234 }
 0xa70   :  { %1429 = vperm.xlu0 %12916, %v1426_v41   ;;  %1395 = vrot.lane.b32.xlu1 %v1379_v40, %s14263_s23  ;;  %v15002_v41 = vperm.slane %v44_v56, 1  ;;  %v15004_v40 = vpop.permute.xlu1 %1189 }
 0xa71   :  { %1397 = vrot.lane.b32.xlu2 %v1380_v33, %s14263_s23  ;;  %20408 = vst [vmem:[#allocation117_spill] sm:$0xff] %v15004_v40  ;;  %v15022_v33 = vperm.slane %v44_v56, 5 }
 0xa72   :  { %20407 = vst [vmem:[#allocation116_spill] sm:$0xff] %v15002_v41 }
 0xa73   :  { %20412 = vst [vmem:[#allocation121_spill] sm:$0xff] %v15022_v33 }
 0xa76   :  { %v15014_v31 = vpop.permute.xlu2 %1238 }
 0xa77   :  { %20411 = vst [vmem:[#allocation120_spill] sm:$0xff] %v15014_v31 }
 0xa78   :  { %1462 = vrot.lane.b32.xlu0 %v14992_v46, %s20226_s22  ;;  %1401 = vrot.lane.b32.xlu1 %v1382_v45, %s14263_s23  ;;  %v15024_v45 = vperm.slane %v44_v56, 6  ;;  %v118_v56 = vsel %vm117_vm0, %v14470_v5, %v14472_v6  ;;  %v123_v5 = vsel %vm117_vm0, %v14749_v55, %v14603_v58  ;;  %v171_v6 = vsel %vm170_vm1, %v14755_v54, %v14607_v39 }
 0xa79   :  { %1403 = vrot.lane.b32.xlu2 %v1383_v52, %s14263_s23  ;;  %v15016_v52 = vpop.permute.xlu1 %1232  ;;  %v227_v54 = vsel %vm223_vm2, %v14777_v35, %v14611_v62  ;;  %s14275_s23 = smov 2  }
 0xa7a   :  { %20413 = vst [vmem:[#allocation122_spill] sm:$0xff] %v15024_v45 }
 0xa7e   :  { %v15026_v46 = vpop.permute.xlu2 %1244 }
 0xa7f   :  { %20414 = vst [vmem:[#allocation123_spill] sm:$0xff] %v15026_v46  ;;  %v78_v46 = vmul.f32 %v14368_v11, %v14359_v7  ;;  %v84_v11 = vmul.f32 %v14364_v9, %v14359_v7 }
 0xa80   :  { %1454 = vrot.lane.b32.xlu1 %v15000_v36, %s20226_s22 }
 0xa81   :  { %1456 = vrot.lane.b32.xlu2 %v15002_v41, %s20226_s22  ;;  %v15028_v41 = vpop.permute.xlu1 %1236  ;;  %v131_v40 = vadd.f32 %v118_v56, %v78_v46 }
 0xa82   :  { %20415 = vst [vmem:[#allocation124_spill] sm:$0xff] %v15028_v41 }
 0xa86   :  { %v15034_v36 = vpop.permute.xlu2 %1287 }
 0xa87   :  { %20416 = vst [vmem:[#allocation125_spill] sm:$0xff] %v15034_v36  ;;  %v137_v36 = vadd.f32 %v14603_v58, %v84_v11  ;;  %v172_v58 = vsel %vm170_vm1, %v14607_v39, %v14476_v12  ;;  %v175_v39 = vsel %vm170_vm1, %v14609_v61, %v14478_v13 }
 0xa88   :  { %1458 = vrot.lane.b32.xlu1 %v15010_v34, %s20226_s22 }
 0xa89   :  { %1460 = vrot.lane.b32.xlu2 %v15012_v28, %s20226_s22  ;;  %v15036_v34 = vpop.permute.xlu1 %1242  ;;  %v80_v28 = vmul.f32 %v14366_v10, %v14359_v7  ;;  %v81_v10 = vmul.f32 %v14378_v18, %v14359_v7  ;;  %v82_v18 = vmul.f32 %v14386_v22, %v14359_v7  ;;  %v173_v22 = vsel %vm170_vm1, %v14476_v12, %v14761_v0 }
 0xa8a   :  { %20417 = vst [vmem:[#allocation126_spill] sm:$0xff] %v15036_v34  ;;  %v83_v34 = vmul.f32 %v14388_v23, %v14359_v7  ;;  %v190_v46 = vadd.f32 %v14765_v57, %v137_v36  ;;  %v225_v36 = vsel %vm223_vm2, %v14771_v32, %v14482_v15 }
 0xa8c   :  { %v136_v41 = vadd.f32 %v123_v5, %v83_v34  ;;  %v278_v5 = vsel %vm276_vm3, %v14787_v2, %v14488_v20 }
 0xa8e   :  { %v15068_v44 = vpop.permute.xlu2 %1291 }
 0xa90   :  { %1464 = vrot.lane.b32.xlu1 %v15022_v33, %s20226_s22  ;;  %v121_v33 = vsel %vm117_vm0, %v14745_v47, %v14474_v8 }
 0xa91   :  { %1466 = vrot.lane.b32.xlu2 %v15024_v45, %s20226_s22  ;;  %v120_v45 = vsel %vm117_vm0, %v14739_v48, %v14745_v47  ;;  %v79_v47 = vmul.f32 %v14376_v17, %v14359_v7  ;;  %v134_v23 = vadd.f32 %v121_v33, %v81_v10  ;;  %v15070_v9 = vpop.permute.xlu1 %1285  ;;  %v122_v17 = vsel %vm117_vm0, %v14474_v8, %v14749_v55 }
 0xa92   :  { %v133_v31 = vadd.f32 %v120_v45, %v80_v28  ;;  %v174_v7 = vsel %vm170_vm1, %v14761_v0, %v14609_v61  ;;  %v135_v55 = vadd.f32 %v122_v17, %v82_v18  ;;  %v176_v28 = vsel %vm170_vm1, %v14478_v13, %v14765_v57 }
 0xa93   :  { %v132_v48 = vadd.f32 %v119_v59, %v79_v47  ;;  %v184_v59 = vadd.f32 %v171_v6, %v131_v40  ;;  %v187_v8 = vadd.f32 %v174_v7, %v134_v23  ;;  %v224_v0 = vsel %vm223_vm2, %v14480_v14, %v14771_v32 }
 0xa94   :  { %v186_v12 = vadd.f32 %v173_v22, %v133_v31  ;;  %v226_v61 = vsel %vm223_vm2, %v14482_v15, %v14777_v35  ;;  %v188_v33 = vadd.f32 %v175_v39, %v135_v55  ;;  %v280_v45 = vsel %vm276_vm3, %v14793_v50, %v14613_v37 }
 0xa95   :  { %v185_v34 = vadd.f32 %v172_v58, %v132_v48  ;;  %v240_v40 = vadd.f32 %v227_v54, %v187_v8  ;;  %v228_v13 = vsel %vm223_vm2, %v14611_v62, %v14484_v16  ;;  %v189_v14 = vadd.f32 %v176_v28, %v136_v41  ;;  %v20419_v54 = vld [vmem:[#allocation7_spill] sm:$0xff]  ;;  %v20423_v28 = vld [vmem:[#allocation8_spill] sm:$0xff] }
 0xa96   :  { %v243_v57 = vadd.f32 %v14781_v49, %v190_v46  ;;  %v237_v31 = vadd.f32 %v224_v0, %v184_v59  ;;  %v229_v32 = vsel %vm223_vm2, %v14484_v16, %v14781_v49  ;;  %v239_v15 = vadd.f32 %v226_v61, %v186_v12  ;;  %v15135_v47 = vpop.permute.xlu2 %1297  ;;  %v20421_v46 = vld [vmem:[#allocation46_spill] sm:$0xff] }
 0xa97   :  { %v238_v56 = vadd.f32 %v225_v36, %v185_v34  ;;  %v277_v35 = vsel %vm276_vm3, %v14486_v19, %v14787_v2  ;;  %v293_v62 = vadd.f32 %v280_v45, %v240_v40  ;;  %v241_v10 = vadd.f32 %v228_v13, %v188_v33  ;;  %v20422_v34 = vld [vmem:[#allocation49_spill] sm:$0xff]  ;;  %v20425_v45 = vld [vmem:[#allocation19_spill] sm:$0xff] }
 0xa98   :  { %v279_v41 = vsel %vm276_vm3, %v14488_v20, %v14793_v50  ;;  %v355_v16 = vsel %vm351_vm4, %v14799_v4, %v14615_v43  ;;  %v242_v49 = vadd.f32 %v229_v32, %v189_v14  ;;  %v296_v11 = vadd.f32 %v14795_v63, %v243_v57  ;;  %v20426_v14 = vld [vmem:[#allocation51_spill] sm:$0xff]  ;;  %v20427_v57 = vld [vmem:[#allocation9_spill] sm:$0xff]  ;;  %v20428_v32 = vld [vmem:[#allocation20_spill] sm:$0xff] }
 0xa99   :  { %v281_v19 = vsel %vm276_vm3, %v14613_v37, %v14490_v21  ;;  %v282_v2 = vsel %vm276_vm3, %v14490_v21, %v14795_v63  ;;  %v15137_v23 = vpop.permute.xlu1 %1289  ;;  %v290_v20 = vadd.f32 %v277_v35, %v237_v31  ;;  %v291_v50 = vadd.f32 %v278_v5, %v238_v56  ;;  %v20429_v56 = vld [vmem:[#allocation50_spill] sm:$0xff] }
 0xa9a   :  { %v358_v18 = vsel %vm351_vm4, %v14801_v53, %v14617_v3  ;;  %v292_v6 = vadd.f32 %v279_v41, %v239_v15  ;;  %v369_v48 = vadd.f32 %v355_v16, %v293_v62  ;;  %v352_v37 = vsel %vm351_vm4, %v14492_v24, %v14797_v51  ;;  %v20418_v24 = vld [vmem:[#allocation47_spill] sm:$0xff]  ;;  %v20430_v16 = vld [vmem:[#allocation52_spill] sm:$0xff] }
 0xa9b   :  { %v354_v21 = vsel %vm351_vm4, %v14494_v26, %v14799_v4  ;;  %v294_v63 = vadd.f32 %v281_v19, %v241_v10  ;;  %v295_v17 = vadd.f32 %v282_v2, %v242_v49  ;;  %v353_v58 = vsel %vm351_vm4, %v14797_v51, %v14494_v26  ;;  %v20420_v4 = vld [vmem:[#allocation17_spill] sm:$0xff]  ;;  %v20431_v49 = vld [vmem:[#allocation10_spill] sm:$0xff] }
 0xa9c   :  { %v356_v3 = vsel %vm351_vm4, %v14615_v43, %v14496_v27  ;;  %v372_v7 = vadd.f32 %v358_v18, %v296_v11  ;;  %v357_v22 = vsel %vm351_vm4, %v14496_v27, %v14801_v53  ;;  %v412_v59 = vsel %vm409_vm5, %v20419_v54, %v20418_v24  ;;  %v20424_v53 = vld [vmem:[#allocation18_spill] sm:$0xff] }
 0xa9d   :  { %v410_v8 = vsel %vm409_vm5, %v20421_v46, %v20420_v4  ;;  %v366_v39 = vadd.f32 %v352_v37, %v290_v20  ;;  %v368_v55 = vadd.f32 %v354_v21, %v292_v6  ;;  %v411_v26 = vsel %vm409_vm5, %v20420_v4, %v20419_v54  ;;  %v20432_v19 = vld [vmem:[#allocation22_spill] sm:$0xff]  ;;  %v20433_v37 = vld [vmem:[#allocation24_spill] sm:$0xff] }
 0xa9e   :  { %v367_v43 = vadd.f32 %v353_v58, %v291_v50  ;;  %v370_v51 = vadd.f32 %v356_v3, %v294_v63  ;;  %v415_v27 = vsel %vm409_vm5, %v20423_v28, %v20422_v34  ;;  %v413_v0 = vsel %vm409_vm5, %v20418_v24, %v20424_v53  ;;  %v15184_v35 = vpop.permute.xlu2 %1340  ;;  %v20435_v58 = vld [vmem:[#allocation11_spill] sm:$0xff]  ;;  %v20437_v24 = vld [vmem:[#allocation53_spill] sm:$0xff] }
 0xa9f   :  { %v371_v12 = vadd.f32 %v357_v22, %v295_v17  ;;  %v426_v40 = vadd.f32 %v412_v59, %v368_v55  ;;  %v424_v36 = vadd.f32 %v410_v8, %v366_v39  ;;  %v414_v61 = vsel %vm409_vm5, %v20424_v53, %v20423_v28  ;;  %v20434_v17 = vld [vmem:[#allocation54_spill] sm:$0xff]  ;;  %v20436_v22 = vld [vmem:[#allocation25_spill] sm:$0xff]  ;;  %v20438_v39 = vld [vmem:[#allocation55_spill] sm:$0xff] }
 0xaa0   :  { %v425_v33 = vadd.f32 %v411_v26, %v367_v43  ;;  %v416_v13 = vsel %vm409_vm5, %v20422_v34, %v20425_v45  ;;  %v470_v31 = vsel %vm20224_vm6, %v20427_v57, %v20426_v14  ;;  %v468_v15 = vsel %vm20224_vm6, %v20429_v56, %v20428_v32  ;;  %v20439_v55 = vld [vmem:[#allocation12_spill] sm:$0xff]  ;;  %v20440_v43 = vld [vmem:[#allocation26_spill] sm:$0xff]  ;;  %v20441_v53 = vld [vmem:[#allocation27_spill] sm:$0xff] }
 0xaa1   :  { %v429_v5 = vadd.f32 %v415_v27, %v371_v12  ;;  %v427_v62 = vadd.f32 %v413_v0, %v369_v48  ;;  %v469_v10 = vsel %vm20224_vm6, %v20428_v32, %v20427_v57  ;;  %v428_v41 = vadd.f32 %v414_v61, %v370_v51  ;;  %v15198_v50 = vpop.permute.xlu1 %1295  ;;  %v20442_v12 = vld [vmem:[#allocation57_spill] sm:$0xff]  ;;  %v20445_v45 = vld [vmem:[#allocation56_spill] sm:$0xff]  ;;  %v20446_v56 = vld [vmem:[#allocation58_spill] sm:$0xff] }
 0xaa2   :  { %v473_v11 = vsel %vm20224_vm6, %v20431_v49, %v20430_v16  ;;  %v471_v2 = vsel %vm20224_vm6, %v20426_v14, %v20432_v19  ;;  %v472_v20 = vsel %vm20224_vm6, %v20432_v19, %v20431_v49  ;;  %v430_v18 = vadd.f32 %v416_v13, %v372_v7 }
 0xaa3   :  { %v484_v6 = vadd.f32 %v470_v31, %v426_v40  ;;  %v482_v48 = vadd.f32 %v468_v15, %v424_v36  ;;  %v474_v21 = vsel %vm20224_vm6, %v20430_v16, %v20433_v37  ;;  %v483_v63 = vadd.f32 %v469_v10, %v425_v33  ;;  %v20443_v40 = vld [vmem:[#allocation13_spill] sm:$0xff]  ;;  %v20444_v33 = vld [vmem:[#allocation28_spill] sm:$0xff]  ;;  %v20447_v15 = vld [vmem:[#allocation14_spill] sm:$0xff] }
 0xaa4   :  { %v528_v3 = vsel %vm525_vm7, %v20435_v58, %v20434_v17  ;;  %v526_v54 = vsel %vm525_vm7, %v20437_v24, %v20436_v22  ;;  %v487_v59 = vadd.f32 %v473_v11, %v429_v5  ;;  %v485_v4 = vadd.f32 %v471_v2, %v427_v62  ;;  %v20451_v37 = vld [vmem:[#allocation15_spill] sm:$0xff] }
 0xaa5   :  { %v486_v46 = vadd.f32 %v472_v20, %v428_v41  ;;  %v527_v7 = vsel %vm525_vm7, %v20436_v22, %v20435_v58  ;;  %v488_v8 = vadd.f32 %v474_v21, %v430_v18  ;;  %v531_v26 = vsel %vm525_vm7, %v20439_v55, %v20438_v39  ;;  %v20448_v41 = vld [vmem:[#allocation29_spill] sm:$0xff]  ;;  %v20449_v18 = vld [vmem:[#allocation30_spill] sm:$0xff]  ;;  %v20453_v58 = vld [vmem:[#allocation59_spill] sm:$0xff] }
 0xaa6   :  { %v529_v51 = vsel %vm525_vm7, %v20434_v17, %v20440_v43  ;;  %v530_v34 = vsel %vm525_vm7, %v20440_v43, %v20439_v55  ;;  %v542_v28 = vadd.f32 %v528_v3, %v484_v6  ;;  %v540_v27 = vadd.f32 %v526_v54, %v482_v48  ;;  %v15242_v11 = vpop.permute.xlu2 %1344  ;;  %v20450_v48 = vld [vmem:[#allocation60_spill] sm:$0xff]  ;;  %v20452_v17 = vld [vmem:[#allocation31_spill] sm:$0xff]  ;;  %v20457_v43 = vld [vmem:[#allocation33_spill] sm:$0xff] }
 0xaa7   :  { %v532_v0 = vsel %vm525_vm7, %v20438_v39, %v20441_v53  ;;  %v586_v36 = vsel %vm583_vm8, %v20443_v40, %v20442_v12  ;;  %v541_v61 = vadd.f32 %v527_v7, %v483_v63  ;;  %v584_v13 = vsel %vm583_vm8, %v20445_v45, %v20444_v33  ;;  %v20456_v7 = vld [vmem:[#allocation32_spill] sm:$0xff]  ;;  %v20459_v53 = vld [vmem:[#allocation21_spill] sm:$0xff] }
 0xaa8   :  { %v585_v14 = vsel %vm583_vm8, %v20444_v33, %v20443_v40  ;;  %v545_v57 = vadd.f32 %v531_v26, %v487_v59  ;;  %v543_v31 = vadd.f32 %v529_v51, %v485_v4  ;;  %v544_v32 = vadd.f32 %v530_v34, %v486_v46  ;;  %v20454_v59 = vld [vmem:[#allocation61_spill] sm:$0xff]  ;;  %v20455_v4 = vld [vmem:[#allocation16_spill] sm:$0xff]  ;;  %v20461_v40 = vld [vmem:[#allocation62_spill] sm:$0xff] }
 0xaa9   :  { %v589_v5 = vsel %vm583_vm8, %v20447_v15, %v20446_v56  ;;  %v546_v62 = vadd.f32 %v532_v0, %v488_v8  ;;  %v600_v10 = vadd.f32 %v586_v36, %v542_v28  ;;  %v587_v16 = vsel %vm583_vm8, %v20442_v12, %v20448_v41  ;;  %v15244_v19 = vpop.permute.xlu1 %1338  ;;  %v20460_v12 = vld [vmem:[#allocation34_spill] sm:$0xff] }
 0xaaa   :  { %v588_v49 = vsel %vm583_vm8, %v20448_v41, %v20447_v15  ;;  %v598_v2 = vadd.f32 %v584_v13, %v540_v27  ;;  %v599_v20 = vadd.f32 %v585_v14, %v541_v61  ;;  %v590_v6 = vsel %vm583_vm8, %v20446_v56, %v20449_v18  ;;  %v20458_v27 = vld [vmem:[#allocation64_spill] sm:$0xff]  ;;  %v20464_v56 = vld [vmem:[#allocation35_spill] sm:$0xff]  ;;  %v20467_v18 = vld [vmem:[#allocation37_spill] sm:$0xff] }
 0xaab   :  { %v644_v21 = vsel %vm641_vm9, %v20451_v37, %v20450_v48  ;;  %v603_v63 = vadd.f32 %v589_v5, %v545_v57  ;;  %v642_v3 = vsel %vm641_vm9, %v20453_v58, %v20452_v17  ;;  %v643_v22 = vsel %vm641_vm9, %v20452_v17, %v20451_v37  ;;  %v20462_v57 = vld [vmem:[#allocation65_spill] sm:$0xff]  ;;  %v20465_v41 = vld [vmem:[#allocation36_spill] sm:$0xff]  ;;  %v20469_v17 = vld [vmem:[#allocation38_spill] sm:$0xff] }
 0xaac   :  { %v601_v24 = vadd.f32 %v587_v16, %v543_v31  ;;  %v602_v54 = vadd.f32 %v588_v49, %v544_v32  ;;  %v647_v46 = vsel %vm641_vm9, %v20455_v4, %v20454_v59  ;;  %v645_v8 = vsel %vm641_vm9, %v20450_v48, %v20456_v7  ;;  %v20463_v31 = vld [vmem:[#allocation23_spill] sm:$0xff] }
 0xaad   :  { %v604_v39 = vadd.f32 %v590_v6, %v546_v62  ;;  %v658_v55 = vadd.f32 %v644_v21, %v600_v10  ;;  %v646_v26 = vsel %vm641_vm9, %v20456_v7, %v20455_v4  ;;  %v648_v51 = vsel %vm641_vm9, %v20454_v59, %v20457_v43  ;;  %v20468_v6 = vld [vmem:[#allocation66_spill] sm:$0xff]  ;;  %v20470_v59 = vld [vmem:[#allocation67_spill] sm:$0xff] }
 0xaae   :  { %v656_v34 = vadd.f32 %v642_v3, %v598_v2  ;;  %v657_v28 = vadd.f32 %v643_v22, %v599_v20  ;;  %v702_v0 = vsel %vm20274_vm10, %v20459_v53, %v20458_v27  ;;  %v700_v36 = vsel %vm20274_vm10, %v20461_v40, %v20460_v12  ;;  %v20466_v2 = vld [vmem:[#allocation68_spill] sm:$0xff]  ;;  %v15303_v3 = vpop.permute.xlu2 %1350  ;;  %v20471_v4 = vld [vmem:[#allocation70_spill] sm:$0xff] }
 0xaaf   :  { %v661_v61 = vadd.f32 %v647_v46, %v603_v63  ;;  %v659_v33 = vadd.f32 %v645_v8, %v601_v24  ;;  %v701_v45 = vsel %vm20274_vm10, %v20460_v12, %v20459_v53  ;;  %v660_v13 = vadd.f32 %v646_v26, %v602_v54  ;;  %v20472_v26 = vld [vmem:[#allocation39_spill] sm:$0xff]  ;;  %v20476_v40 = vld [vmem:[#allocation74_spill] sm:$0xff] }
 0xab0   :  { %v662_v14 = vadd.f32 %v648_v51, %v604_v39  ;;  %v705_v32 = vsel %vm20274_vm10, %v20463_v31, %v20462_v57  ;;  %v703_v15 = vsel %vm20274_vm10, %v20458_v27, %v20464_v56  ;;  %v716_v5 = vadd.f32 %v702_v0, %v658_v55  ;;  %v20475_v27 = vld [vmem:[#allocation72_spill] sm:$0xff] }
 0xab1   :  { %v714_v62 = vadd.f32 %v700_v36, %v656_v34  ;;  %v704_v10 = vsel %vm20274_vm10, %v20464_v56, %v20463_v31  ;;  %v706_v16 = vsel %vm20274_vm10, %v20462_v57, %v20465_v41  ;;  %v715_v49 = vadd.f32 %v701_v45, %v657_v28  ;;  %v15305_v22 = vpop.permute.xlu1 %1342  ;;  %v20474_v28 = vld [vmem:[#allocation69_spill] sm:$0xff]  ;;  %v20479_v56 = vld [vmem:[#allocation40_spill] sm:$0xff] }
 0xab2   :  { %v772_v20 = vsel %vm20270_vm11, %v20466_v2, %v14866_v38  ;;  %v770_v48 = vsel %vm20270_vm11, %v20468_v6, %v20467_v18  ;;  %v719_v37 = vadd.f32 %v705_v32, %v661_v61  ;;  %v717_v21 = vadd.f32 %v703_v15, %v659_v33  ;;  %v20478_v57 = vld [vmem:[#allocation73_spill] sm:$0xff] }
 0xab3   :  { %v771_v63 = vsel %vm20270_vm11, %v20467_v18, %v20466_v2  ;;  %v773_v58 = vsel %vm20270_vm11, %v14866_v38, %v20469_v17  ;;  %v718_v24 = vadd.f32 %v704_v10, %v660_v13  ;;  %v720_v54 = vadd.f32 %v706_v16, %v662_v14  ;;  %v20473_v38 = vld [vmem:[#allocation71_spill] sm:$0xff]  ;;  %v20477_v13 = vld [vmem:[#allocation76_spill] sm:$0xff]  ;;  %v20480_v15 = vld [vmem:[#allocation77_spill] sm:$0xff] }
 0xab4   :  { %v775_v46 = vsel %vm20270_vm11, %v20471_v4, %v20470_v59  ;;  %v774_v7 = vsel %vm20270_vm11, %v20469_v17, %v20471_v4  ;;  %v783_v8 = vadd.f32 %v20468_v6, %v714_v62  ;;  %v786_v39 = vadd.f32 %v772_v20, %v717_v21  ;;  %v20481_v62 = vld [vmem:[#allocation75_spill] sm:$0xff]  ;;  %v20482_v10 = vld [vmem:[#allocation78_spill] sm:$0xff]  ;;  %v20483_v2 = vld [vmem:[#allocation80_spill] sm:$0xff] }
 0xab5   :  { %v784_v55 = vadd.f32 %v770_v48, %v715_v49  ;;  %v826_v43 = vsel %vm822_vm12, %v20473_v38, %v20472_v26  ;;  %v785_v51 = vadd.f32 %v771_v63, %v716_v5  ;;  %v787_v34 = vadd.f32 %v773_v58, %v718_v24  ;;  %v20484_v21 = vld [vmem:[#allocation82_spill] sm:$0xff]  ;;  %v20486_v4 = vld [vmem:[#allocation41_spill] sm:$0xff] }
 0xab6   :  { %v823_v53 = vsel %vm822_vm12, %v20475_v27, %v20474_v28  ;;  %v789_v0 = vadd.f32 %v775_v46, %v720_v54  ;;  %v788_v12 = vadd.f32 %v774_v7, %v719_v37  ;;  %v824_v36 = vsel %vm822_vm12, %v20474_v28, %v20476_v40  ;;  %v20485_v54 = vld [vmem:[#allocation79_spill] sm:$0xff] }
 0xab7   :  { %v825_v61 = vsel %vm822_vm12, %v20476_v40, %v20473_v38  ;;  %v840_v33 = vadd.f32 %v826_v43, %v787_v34  ;;  %v836_v45 = vadd.f32 %v20475_v27, %v783_v8  ;;  %v827_v14 = vsel %vm822_vm12, %v20472_v26, %v20477_v13  ;;  %v20487_v46 = vld [vmem:[#allocation83_spill] sm:$0xff]  ;;  %v20489_v26 = vld [vmem:[#allocation84_spill] sm:$0xff] }
 0xab8   :  { %v828_v31 = vsel %vm822_vm12, %v20477_v13, %v20478_v57  ;;  %v837_v32 = vadd.f32 %v823_v53, %v784_v55  ;;  %v879_v5 = vsel %vm875_vm13, %v20480_v15, %v20479_v56  ;;  %v876_v41 = vsel %vm875_vm13, %v20482_v10, %v20481_v62  ;;  %v20488_v55 = vld [vmem:[#allocation81_spill] sm:$0xff]  ;;  %v20490_v34 = vld [vmem:[#allocation87_spill] sm:$0xff]  ;;  %v20493_v13 = vld [vmem:[#allocation42_spill] sm:$0xff] }
 0xab9   :  { %v838_v16 = vadd.f32 %v824_v36, %v785_v51  ;;  %v839_v49 = vadd.f32 %v825_v61, %v786_v39  ;;  %v877_v20 = vsel %vm875_vm13, %v20481_v62, %v20483_v2  ;;  %v878_v18 = vsel %vm875_vm13, %v20483_v2, %v20480_v15  ;;  %v15360_v43 = vpop.permute.xlu1 %1348  ;;  %v20491_v53 = vld [vmem:[#allocation89_spill] sm:$0xff]  ;;  %v20492_v61 = vld [vmem:[#allocation86_spill] sm:$0xff] }
 0xaba   :  { %v841_v6 = vadd.f32 %v827_v14, %v788_v12  ;;  %v842_v48 = vadd.f32 %v828_v31, %v789_v0  ;;  %v889_v37 = vadd.f32 %v20482_v10, %v836_v45  ;;  %v880_v63 = vsel %vm875_vm13, %v20479_v56, %v20484_v21  ;;  %v20494_v14 = vld [vmem:[#allocation90_spill] sm:$0xff]  ;;  %v20495_v31 = vld [vmem:[#allocation88_spill] sm:$0xff] }
 0xabb   :  { %v893_v58 = vadd.f32 %v879_v5, %v840_v33  ;;  %v890_v24 = vadd.f32 %v876_v41, %v837_v32  ;;  %v881_v59 = vsel %vm875_vm13, %v20484_v21, %v20485_v54  ;;  %v932_v7 = vsel %vm928_vm14, %v20487_v46, %v20486_v4  ;;  %v20496_v32 = vld [vmem:[#allocation91_spill] sm:$0xff]  ;;  %v20497_v2 = vld [vmem:[#allocation94_spill] sm:$0xff]  ;;  %v20501_v54 = vld [vmem:[#allocation93_spill] sm:$0xff] }
 0xabc   :  { %v891_v8 = vadd.f32 %v877_v20, %v838_v16  ;;  %v892_v39 = vadd.f32 %v878_v18, %v839_v49  ;;  %v929_v38 = vsel %vm928_vm14, %v20489_v26, %v20488_v55  ;;  %v894_v51 = vadd.f32 %v880_v63, %v841_v6  ;;  %v20499_v21 = vld [vmem:[#allocation43_spill] sm:$0xff] }
 0xabd   :  { %v930_v28 = vsel %vm928_vm14, %v20488_v55, %v20490_v34  ;;  %v931_v27 = vsel %vm928_vm14, %v20490_v34, %v20487_v46  ;;  %v933_v0 = vsel %vm928_vm14, %v20486_v4, %v20491_v53  ;;  %v895_v12 = vadd.f32 %v881_v59, %v842_v48  ;;  %v20498_v48 = vld [vmem:[#allocation92_spill] sm:$0xff]  ;;  %v20500_v63 = vld [vmem:[#allocation95_spill] sm:$0xff] }
 0xabe   :  { %v946_v40 = vadd.f32 %v932_v7, %v893_v58  ;;  %v942_v36 = vadd.f32 %v20489_v26, %v889_v37  ;;  %v934_v33 = vsel %vm928_vm14, %v20491_v53, %v20492_v61  ;;  %v943_v45 = vadd.f32 %v929_v38, %v890_v24  ;;  %v20502_v59 = vld [vmem:[#allocation96_spill] sm:$0xff]  ;;  %v20505_v53 = vld [vmem:[#allocation97_spill] sm:$0xff] }
 0xabf   :  { %v985_v57 = vsel %vm981_vm15, %v20494_v14, %v20493_v13  ;;  %v982_v56 = vsel %vm981_vm15, %v20496_v32, %v20495_v31  ;;  %vm1034_vm2 = vcmask 539648   ;;  %v944_v15 = vadd.f32 %v930_v28, %v891_v8  ;;  %v20504_v55 = vld [vmem:[#allocation100_spill] sm:$0xff] }
 0xac0   :  { %v945_v5 = vadd.f32 %v931_v27, %v892_v39  ;;  %v947_v62 = vadd.f32 %v933_v0, %v894_v51  ;;  %v983_v10 = vsel %vm981_vm15, %v20495_v31, %v14929_v42  ;;  %v948_v41 = vadd.f32 %v934_v33, %v895_v12  ;;  %v20506_v33 = vld [vmem:[#allocation44_spill] sm:$0xff] }
 0xac1   :  { %v995_v16 = vadd.f32 %v20496_v32, %v942_v36  ;;  %v984_v49 = vsel %vm981_vm15, %v14929_v42, %v20494_v14  ;;  %v986_v20 = vsel %vm981_vm15, %v20493_v13, %v20497_v2  ;;  %v999_v18 = vadd.f32 %v985_v57, %v946_v40  ;;  %v20503_v42 = vld [vmem:[#allocation98_spill] sm:$0xff]  ;;  %v20508_v14 = vld [vmem:[#allocation99_spill] sm:$0xff]  ;;  %v20510_v32 = vld [vmem:[#allocation104_spill] sm:$0xff] }
 0xac2   :  { %v996_v6 = vadd.f32 %v982_v56, %v943_v45  ;;  %v987_v37 = vsel %vm981_vm15, %v20497_v2, %v20498_v48  ;;  %v1038_v58 = vsel %vm1034_vm2, %v20500_v63, %v20499_v21  ;;  %v997_v24 = vadd.f32 %v983_v10, %v944_v15  ;;  %v20507_v45 = vld [vmem:[#allocation101_spill] sm:$0xff]  ;;  %v20509_v57 = vld [vmem:[#allocation102_spill] sm:$0xff] }
 0xac3   :  { %v15349_v17 = vpop.permute.xlu2 %1393  ;;  %v1035_v4 = vsel %vm1034_vm2, %v20502_v59, %v20501_v54  ;;  %v1036_v46 = vsel %vm1034_vm2, %v20501_v54, %v20503_v42  ;;  %v1037_v7 = vsel %vm1034_vm2, %v20503_v42, %v20500_v63  ;;  %v998_v8 = vadd.f32 %v984_v49, %v945_v5  ;;  %v20513_v2 = vld [vmem:[#allocation45_spill] sm:$0xff] }
 0xac4   :  { %v1000_v39 = vadd.f32 %v986_v20, %v947_v62  ;;  %v1039_v26 = vsel %vm1034_vm2, %v20499_v21, %v20504_v55  ;;  %vm1087_vm3 = vcmask 531456   ;;  %v1001_v34 = vadd.f32 %v987_v37, %v948_v41  ;;  %v20511_v62 = vld [vmem:[#allocation106_spill] sm:$0xff] }
 0xac5   :  { %v1052_v28 = vadd.f32 %v1038_v58, %v999_v18  ;;  %v1048_v27 = vadd.f32 %v20502_v59, %v995_v16  ;;  %v1040_v0 = vsel %vm1034_vm2, %v20504_v55, %v20505_v53  ;;  %v1049_v12 = vadd.f32 %v1035_v4, %v996_v6  ;;  %v20512_v16 = vld [vmem:[#allocation103_spill] sm:$0xff]  ;;  %v20514_v18 = vld [vmem:[#allocation105_spill] sm:$0xff] }
 0xac6   :  { %v1050_v40 = vadd.f32 %v1036_v46, %v997_v24  ;;  %v1051_v36 = vadd.f32 %v1037_v7, %v998_v8  ;;  %vm1140_vm7 = vcmask 523264   ;;  %v1053_v61 = vadd.f32 %v1039_v26, %v1000_v39  ;;  %v20515_v8 = vld [vmem:[#allocation108_spill] sm:$0xff] }
 0xac7   :  { %v1091_v13 = vsel %vm1087_vm3, %v20507_v45, %v20506_v33  ;;  %v1088_v31 = vsel %vm1087_vm3, %v20509_v57, %v20508_v14  ;;  %v1089_v56 = vsel %vm1087_vm3, %v20508_v14, %v20510_v32  ;;  %v1054_v15 = vadd.f32 %v1040_v0, %v1001_v34  ;;  %v20516_v34 = vld [vmem:[#allocation110_spill] sm:$0xff] }
 0xac8   :  { %v1090_v5 = vsel %vm1087_vm3, %v20510_v32, %v20507_v45  ;;  %v1092_v10 = vsel %vm1087_vm3, %v20506_v33, %v20511_v62  ;;  %vm1193_vm8 = vcmask 392192   ;;  %v1101_v41 = vadd.f32 %v20509_v57, %v1048_v27  ;;  %v20517_v27 = vld [vmem:[#allocation107_spill] sm:$0xff]  ;;  %v20521_v45 = vld [vmem:[#allocation125_spill] sm:$0xff] }
 0xac9   :  { %v1093_v49 = vsel %vm1087_vm3, %v20511_v62, %v20512_v16  ;;  %v1144_v20 = vsel %vm1140_vm7, %v14959_v1, %v20513_v2  ;;  %v1141_v6 = vsel %vm1140_vm7, %v14961_v25, %v20514_v18  ;;  %v1105_v48 = vadd.f32 %v1091_v13, %v1052_v28 }
 0xaca   :  { %v1102_v37 = vadd.f32 %v1088_v31, %v1049_v12  ;;  %v1103_v21 = vadd.f32 %v1089_v56, %v1050_v40  ;;  %vm1246_vm12 = vcmask 384000   ;;  %v1104_v58 = vadd.f32 %v1090_v5, %v1051_v36  ;;  %v20518_v40 = vld [vmem:[#allocation48_spill] sm:$0xff]  ;;  %v20520_v36 = vld [vmem:[#allocation113_spill] sm:$0xff] }
 0xacb   :  { %v15409_v38 = vpop.permute.xlu2 %1397  ;;  %v1106_v24 = vadd.f32 %v1092_v10, %v1053_v61  ;;  %v1154_v54 = vadd.f32 %v14961_v25, %v1101_v41  ;;  %v1194_v59 = vsel %vm1193_vm8, %v14978_v30, %v14969_v29  ;;  %v1107_v4 = vadd.f32 %v1093_v49, %v1054_v15  ;;  %v20522_v41 = vld [vmem:[#allocation124_spill] sm:$0xff] }
 0xacc   :  { %v1158_v42 = vadd.f32 %v1144_v20, %v1105_v48  ;;  %v1155_v46 = vadd.f32 %v1141_v6, %v1102_v37  ;;  %vm1299_vm13 = vcmask 375808   ;;  %v1142_v39 = vsel %vm1140_vm7, %v20514_v18, %v20515_v8  ;;  %v20523_v49 = vld [vmem:[#allocation120_spill] sm:$0xff]  ;;  %v20524_v6 = vld [vmem:[#allocation117_spill] sm:$0xff]  ;;  %v20525_v37 = vld [vmem:[#allocation63_spill] sm:$0xff] }
 0xacd   :  { %v1143_v55 = vsel %vm1140_vm7, %v20515_v8, %v14959_v1  ;;  %v1207_v26 = vadd.f32 %v14978_v30, %v1154_v54  ;;  %v1247_v25 = vsel %vm1246_vm12, %v15016_v52, %v14998_v60  ;;  %v1145_v28 = vsel %vm1140_vm7, %v20513_v2, %v20516_v34  ;;  %v20519_v1 = vld [vmem:[#allocation111_spill] sm:$0xff]  ;;  %v20526_v54 = vld [vmem:[#allocation112_spill] sm:$0xff] }
 0xace   :  { %v1146_v53 = vsel %vm1140_vm7, %v20516_v34, %v20517_v27  ;;  %v1208_v0 = vadd.f32 %v1194_v59, %v1155_v46  ;;  %vm1352_vm14 = vcmask 367616   ;;  %v1197_v30 = vsel %vm1193_vm8, %v20519_v1, %v20518_v40 }
 0xacf   :  { %v1195_v61 = vsel %vm1193_vm8, %v14969_v29, %v20520_v36  ;;  %v1260_v33 = vadd.f32 %v15016_v52, %v1207_v26  ;;  %v1300_v13 = vsel %vm1299_vm13, %v15070_v9, %v20521_v45  ;;  %v1156_v14 = vadd.f32 %v1142_v39, %v1103_v21  ;;  %v20527_v39 = vld [vmem:[#allocation85_spill] sm:$0xff] }
 0xad0   :  { %v1157_v57 = vadd.f32 %v1143_v55, %v1104_v58  ;;  %v1261_v31 = vadd.f32 %v1247_v25, %v1208_v0  ;;  %vm1405_vm15 = vcmask 359424   ;;  %v1159_v32 = vadd.f32 %v1145_v28, %v1106_v24  ;;  %v20528_v0 = vld [vmem:[#allocation109_spill] sm:$0xff] }
 0xad1   :  { %v1196_v56 = vsel %vm1193_vm8, %v20520_v36, %v20519_v1  ;;  %v1313_v15 = vadd.f32 %v15070_v9, %v1260_v33  ;;  %v1353_v29 = vsel %vm1352_vm14, %v15244_v19, %v15184_v35  ;;  %v1160_v52 = vadd.f32 %v1146_v53, %v1107_v4 }
 0xad2   :  { %v1211_v5 = vadd.f32 %v1197_v30, %v1158_v42  ;;  %v1209_v62 = vadd.f32 %v1195_v61, %v1156_v14  ;;  %v1314_v10 = vadd.f32 %v1300_v13, %v1261_v31  ;;  %v1248_v16 = vsel %vm1246_vm12, %v14998_v60, %v20522_v41  ;;  %v20529_v13 = vld [vmem:[#allocation126_spill] sm:$0xff]  ;;  %v20530_v14 = vld [vmem:[#allocation123_spill] sm:$0xff] }
 0xad3   :  { %v15464_v12 = vpop.permute.xlu2 %1403  ;;  %v1249_v2 = vsel %vm1246_vm12, %v20522_v41, %v20523_v49  ;;  %v1366_v20 = vadd.f32 %v15244_v19, %v1313_v15  ;;  %v1210_v18 = vadd.f32 %v1196_v56, %v1157_v57  ;;  %v1198_v48 = vsel %vm1193_vm8, %v20518_v40, %v20524_v6 }
 0xad4   :  { %v1250_v21 = vsel %vm1246_vm12, %v20523_v49, %v20525_v37  ;;  %v1367_v60 = vadd.f32 %v1353_v29, %v1314_v10  ;;  %v1199_v19 = vsel %vm1193_vm8, %v20524_v6, %v20526_v54  ;;  %v1301_v59 = vsel %vm1299_vm13, %v20521_v45, %v15137_v23 }
 0xad5   :  { %v1302_v4 = vsel %vm1299_vm13, %v15137_v23, %v15068_v44  ;;  %v1262_v46 = vadd.f32 %v1248_v16, %v1209_v62  ;;  %v1263_v8 = vadd.f32 %v1249_v2, %v1210_v18  ;;  %v1303_v55 = vsel %vm1299_vm13, %v15068_v44, %v20527_v39 }
 0xad6   :  { %v1264_v34 = vadd.f32 %v1250_v21, %v1211_v5  ;;  %v1354_v28 = vsel %vm1352_vm14, %v15184_v35, %v15305_v22  ;;  %v1355_v27 = vsel %vm1352_vm14, %v15305_v22, %v15242_v11  ;;  %v1356_v40 = vsel %vm1352_vm14, %v15242_v11, %v20528_v0 }
 0xad7   :  { %v1316_v53 = vadd.f32 %v1302_v4, %v1263_v8  ;;  %v1212_v1 = vadd.f32 %v1198_v48, %v1159_v32  ;;  %v1213_v61 = vadd.f32 %v1199_v19, %v1160_v52  ;;  %v1251_v11 = vsel %vm1246_vm12, %v20525_v37, %v20529_v13 }
 0xad8   :  { %v1317_v30 = vadd.f32 %v1303_v55, %v1264_v34  ;;  %v1252_v57 = vsel %vm1246_vm12, %v20529_v13, %v20530_v14  ;;  %v1357_v49 = vsel %vm1352_vm14, %v20528_v0, %v15360_v43  ;;  %v1358_v2 = vsel %vm1352_vm14, %v15360_v43, %v15303_v3 }
 0xad9   :  { %v1369_v33 = vadd.f32 %v1355_v27, %v1316_v53  ;;  %v1265_v10 = vadd.f32 %v1251_v11, %v1212_v1  ;;  %v1266_v41 = vadd.f32 %v1252_v57, %v1213_v61  ;;  %vm46_vm2 = vcmask 1047808  }
 0xada   :  { %v15411_v51 = vpop.permute.xlu1 %1391  ;;  %v15442_v63 = vpop.permute.xlu0 %1399  ;;  %v1370_v31 = vadd.f32 %v1356_v40, %v1317_v30  ;;  %v14265_v40 = vmov 0.0   ;;  %vm48_vm3 = vcmask 261120   ;;  %vm1509_vm7 = vcmask 343040  }
 0xadb   :  { %v1406_v9 = vsel %vm1405_vm15, %v15411_v51, %v15349_v17  ;;  %v1419_v42 = vadd.f32 %v15411_v51, %v1366_v20  ;;  %v1457_v25 = vpop.permute.xlu2 %1456  ;;  %v1315_v51 = vadd.f32 %v1301_v59, %v1262_v46  ;;  %v1409_v45 = vsel %vm1405_vm15, %v15409_v38, %v15442_v63  ;;  %45 = vst [vmem:[#allocation2] sm:$0xff] %v14265_v40 }
 0xadc   :  { %v1420_v26 = vadd.f32 %v1406_v9, %v1367_v60  ;;  %v1423_v52 = vadd.f32 %v1409_v45, %v1370_v31  ;;  %47 = vst.msk [vmem:[#allocation2 + $0x38] sm:$0xff] %vm46_vm2, %v14265_v40  ;;  %vm1563_vm8 = vcmask 334848   ;;  %vm1577_vm12 = vcmask 64512  }
 0xadd   :  { %v1368_v22 = vadd.f32 %v1354_v28, %v1315_v51  ;;  %52 = vst.msk [vmem:[#allocation3 + $0x38] sm:$0xff] %vm46_vm2, %v14265_v40  ;;  %vm2168_vm14 = vcmask 318464  }
 0xade   :  { %54 = vst.msk [vmem:[#allocation3 + $0x80] sm:$0xff] %vm46_vm2, %v14265_v40  ;;  %vm2610_vm2 = vcmask 179200  }
 0xae2   :  { %v1396_v7 = vpop.permute.xlu1 %1395  ;;  %v15499_v58 = vpop.permute.xlu0 %1429 }
 0xae3   :  { %v1432_v23 = vadd.f32 %v15499_v58, %v1419_v42  ;;  %v1433_v44 = vadd.f32 %v15499_v58, %v1420_v26  ;;  %v1407_v36 = vsel %vm1405_vm15, %v15349_v17, %v1396_v7  ;;  %v1408_v35 = vsel %vm1405_vm15, %v1396_v7, %v15409_v38  ;;  %v1461_v48 = vpop.permute.xlu2 %1460 }
 0xae4   :  { %v1304_v7 = vsel %vm1299_vm13, %v20527_v39, %v15198_v50  ;;  %v1421_v32 = vadd.f32 %v1407_v36, %v1368_v22  ;;  %v1422_v56 = vadd.f32 %v1408_v35, %v1369_v33  ;;  %v1305_v38 = vsel %vm1299_vm13, %v15198_v50, %v15135_v47 }
 0xae5   :  { %v1439_v17 = vmax.f32 %v1432_v23, 0.0  ;;  %v1440_v29 = vmax.f32 %v1433_v44, 0.0  ;;  %v1436_v20 = vadd.f32 %v15499_v58, %v1423_v52  ;;  %v1318_v47 = vadd.f32 %v1304_v7, %v1265_v10 }
 0xae6   :  { %v1319_v50 = vadd.f32 %v1305_v38, %v1266_v41  ;;  %v1434_v9 = vadd.f32 %v15499_v58, %v1421_v32  ;;  %v1435_v18 = vadd.f32 %v15499_v58, %v1422_v56  ;;  %v15689_v38 = vld [vmem:[%s20093_s4 + $0x10] sm:$0xff]  ;;  %vm20216_vm13 = vcmask 326656  }
 0xae7   :  { %v1371_v43 = vadd.f32 %v1357_v49, %v1318_v47  ;;  %v1443_v60 = vmax.f32 %v1436_v20, 0.0 }
 0xae8   :  { %v1372_v21 = vadd.f32 %v1358_v2, %v1319_v50  ;;  %v1441_v42 = vmax.f32 %v1434_v9, 0.0  ;;  %v1442_v46 = vmax.f32 %v1435_v18, 0.0 }
 0xaea   :  { %v1402_v24 = vpop.permute.xlu1 %1401  ;;  %v1463_v6 = vpop.permute.xlu0 %1462 }
 0xaeb   :  { %v1410_v37 = vsel %vm1405_vm15, %v15442_v63, %v1402_v24  ;;  %v1411_v3 = vsel %vm1405_vm15, %v1402_v24, %v15464_v12  ;;  %v1471_v54 = vsel %vm20270_vm11, %v1461_v48, %v1463_v6  ;;  %v1467_v24 = vpop.permute.xlu2 %1466  ;;  %vm20217_vm15 = vcmask 310272  }
 0xaec   :  { %v1424_v19 = vadd.f32 %v1410_v37, %v1371_v43  ;;  %v1425_v59 = vadd.f32 %v1411_v3, %v1372_v21  ;;  %v1485_v55 = vmul.f32 %v1471_v54, %v1443_v60 }
 0xaee   :  { %v1437_v34 = vadd.f32 %v15499_v58, %v1424_v19  ;;  %v1438_v12 = vadd.f32 %v15499_v58, %v1425_v59 }
 0xaf0   :  { %v1444_v27 = vmax.f32 %v1437_v34, 0.0  ;;  %v1445_v23 = vmax.f32 %v1438_v12, 0.0 }
 0xaf2   :  { %v1455_v15 = vpop.permute.xlu1 %1454 }
 0xaf3   :  { %v1468_v5 = vsel %vm20270_vm11, %v1455_v15, %v1457_v25  ;;  %v1481_v62 = vmul.f32 %v1455_v15, %v1439_v17 }
 0xaf4   :  { %v1482_v16 = vmul.f32 %v1468_v5, %v1440_v29  ;;  %v15703_v5 = vld [vmem:[%s20093_s4 + $0x18] sm:$0xff] }
 0xaf5   :  { %1495 = vrot.lane.b32.xlu0 %v1481_v62, %s14264_s1 }
 0xaf6   :  { %1497 = vrot.lane.b32.xlu1 %v1482_v16, %s14264_s1 }
 0xafa   :  { %v1459_v4 = vpop.permute.xlu1 %1458 }
 0xafb   :  { %v1469_v8 = vsel %vm20270_vm11, %v1457_v25, %v1459_v4  ;;  %v1470_v39 = vsel %vm20270_vm11, %v1459_v4, %v1461_v48 }
 0xafc   :  { %v1483_v26 = vmul.f32 %v1469_v8, %v1441_v42  ;;  %v1484_v63 = vmul.f32 %v1470_v39, %v1442_v46 }
 0xafe   :  { %1499 = vrot.lane.b32.xlu2 %v1483_v26, %s14264_s1  ;;  %1503 = vrot.lane.b32.xlu1 %v1485_v55, %s14264_s1 }
 0xaff   :  { %1501 = vrot.lane.b32.xlu0 %v1484_v63, %s14264_s1 }
 0xb02   :  { %v1465_v28 = vpop.permute.xlu1 %1464 }
 0xb03   :  { %v1472_v25 = vsel %vm20270_vm11, %v1463_v6, %v1465_v28  ;;  %v1473_v51 = vsel %vm20270_vm11, %v1465_v28, %v1467_v24 }
 0xb04   :  { %v1486_v53 = vmul.f32 %v1472_v25, %v1444_v27  ;;  %v1487_v0 = vmul.f32 %v1473_v51, %v1445_v23  ;;  %v1530_v51 = vld [vmem:[%s20093_s4] sm:$0xff] }
 0xb06   :  { %1505 = vrot.lane.b32.xlu2 %v1486_v53, %s14264_s1 }
 0xb07   :  { %1507 = vrot.lane.b32.xlu0 %v1487_v0, %s14264_s1 }
 0xb58   :  { %v1500_v58 = vpop.permute.xlu2 %1499 }
 0xb60   :  { %v1506_v61 = vpop.permute.xlu2 %1505 }
 0xb67   :  { %v1496_v44 = vpop.permute.xlu0 %1495 }
 0xb68   :  { %v1498_v1 = vpop.permute.xlu1 %1497 }
 0xb69   :  { %v15573_v30 = vsel %vm1509_vm7, %v1496_v44, %v1498_v1  ;;  %v15576_v36 = vsel %vm1509_vm7, %v1498_v1, %v1500_v58 }
 0xb6a   :  { %1523 = vst [vmem:[#allocation2 + $0x8] sm:$0xff] %v15573_v30  ;;  %v15580_v35 = vpack.i.bf16 %v15573_v30, %v14265_v40  ;;  %v15745_v59 = vpack.i.bf16 %v15576_v36, %v15573_v30 }
 0xb6b   :  { %1524 = vst [vmem:[#allocation2 + $0x10] sm:$0xff] %v15576_v36 }
 0xb6c   :  { %12918 = vrot.lane.b32.xlu1 %v15580_v35, %s14266_s3 }
 0xb70   :  { %v1504_v22 = vpop.permute.xlu1 %1503 }
 0xb71   :  { %v15586_v33 = vsel %vm1509_vm7, %v1504_v22, %v1506_v61  ;;  %v1502_v45 = vpop.permute.xlu0 %1501 }
 0xb72   :  { %1527 = vst [vmem:[#allocation2 + $0x28] sm:$0xff] %v15586_v33  ;;  %v15590_v13 = vsel %vm1509_vm7, %v1500_v58, %v1502_v45  ;;  %v15593_v11 = vsel %vm1509_vm7, %v1502_v45, %v1504_v22 }
 0xb73   :  { %1525 = vst [vmem:[#allocation2 + $0x18] sm:$0xff] %v15590_v13  ;;  %v15598_v14 = vpack.i.bf16 %v15586_v33, %v15593_v11  ;;  %v15602_v57 = vpack.i.bf16 %v15590_v13, %v15576_v36  ;;  %v15761_v8 = vpack.i.bf16 %v15593_v11, %v15590_v13  ;;  %v1531_v36 = vld [vmem:[%s20093_s4 + $0x8] sm:$0xff] }
 0xb74   :  { %1526 = vst [vmem:[#allocation2 + $0x20] sm:$0xff] %v15593_v11 }
 0xb75   :  { %12928 = vrot.lane.b32.xlu0 %v15598_v14, %s14266_s3  ;;  %12923 = vrot.lane.b32.xlu2 %v15602_v57, %s14266_s3 }
 0xb79   :  { %v1508_v31 = vpop.permute.xlu0 %1507 }
 0xb7a   :  { %v15610_v17 = vsel %vm1509_vm7, %v1506_v61, %v1508_v31  ;;  %1529 = vst.msk [vmem:[#allocation2 + $0x38] sm:$0xff] %vm48_vm3, %v1508_v31 }
 0xb7b   :  { %1528 = vst [vmem:[#allocation2 + $0x30] sm:$0xff] %v15610_v17  ;;  %1561 = vrot.lane.b32.xlu1 %v15610_v17, %s14266_s3  ;;  %v15753_v46 = vpack.i.bf16 %v15610_v17, %v15586_v33 }
 0xb7d   :  { %12938 = vrot.lane.b32.xlu0 %v15602_v57, %s14264_s1  ;;  %12933 = vrot.lane.b32.xlu2 %v15580_v35, %s14264_s1 }
 0xb81   :  { %v15650_v7 = vld [vmem:[#allocation2 + $0x38] sm:$0xff] }
 0xb82   :  { %v15656_v32 = vpack.i.bf16 %v15650_v7, %v15610_v17 }
 0xb83   :  { %12943 = vrot.lane.b32.xlu1 %v15598_v14, %s14264_s1 }
 0xb85   :  { %12948 = vrot.lane.b32.xlu0 %v15580_v35, %s14267_s30  ;;  %1757 = vrot.lane.b32.xlu2 %v15610_v17, %s14264_s1 }
 0xb8b   :  { %12953 = vrot.lane.b32.xlu1 %v15602_v57, %s14267_s30 }
 0xb8d   :  { %1954 = vrot.lane.b32.xlu0 %v15610_v17, %s14267_s30  ;;  %12958 = vrot.lane.b32.xlu2 %v15598_v14, %s14267_s30 }
 0xb93   :  { %12963 = vrot.lane.b32.xlu1 %v15580_v35, %s14268_s16 }
 0xb95   :  { %12973 = vrot.lane.b32.xlu0 %v15598_v14, %s14268_s16  ;;  %12968 = vrot.lane.b32.xlu2 %v15602_v57, %s14268_s16 }
 0xb9b   :  { %2166 = vrot.lane.b32.xlu1 %v15610_v17, %s14268_s16 }
 0xb9d   :  { %12983 = vrot.lane.b32.xlu0 %v15602_v57, %s14269_s17  ;;  %12978 = vrot.lane.b32.xlu2 %v15580_v35, %s14269_s17 }
 0xba3   :  { %12988 = vrot.lane.b32.xlu1 %v15598_v14, %s14269_s17 }
 0xba5   :  { %12993 = vrot.lane.b32.xlu0 %v15580_v35, %s14270_s20  ;;  %2378 = vrot.lane.b32.xlu2 %v15610_v17, %s14269_s17 }
 0xbab   :  { %12998 = vrot.lane.b32.xlu1 %v15602_v57, %s14270_s20 }
 0xbad   :  { %13008 = vrot.lane.b32.xlu0 %v15656_v32, %s14270_s20  ;;  %13003 = vrot.lane.b32.xlu2 %v15598_v14, %s14270_s20 }
 0xbb3   :  { %13013 = vrot.lane.b32.xlu1 %v15580_v35, %s14271_s21 }
 0xbb5   :  { %13023 = vrot.lane.b32.xlu0 %v15598_v14, %s14271_s21  ;;  %13018 = vrot.lane.b32.xlu2 %v15602_v57, %s14271_s21 }
 0xbbb   :  { %13028 = vrot.lane.b32.xlu1 %v15656_v32, %s14271_s21 }
 0xbbd   :  { %13038 = vrot.lane.b32.xlu0 %v15602_v57, %s14272_s2  ;;  %13033 = vrot.lane.b32.xlu2 %v15580_v35, %s14272_s2 }
 0xbc3   :  { %13043 = vrot.lane.b32.xlu1 %v15598_v14, %s14272_s2 }
 0xbc5   :  { %13053 = vrot.lane.b32.xlu0 %v15580_v35, %s14273_s0  ;;  %13048 = vrot.lane.b32.xlu2 %v15656_v32, %s14272_s2 }
 0xbcb   :  { %13058 = vrot.lane.b32.xlu1 %v15602_v57, %s14273_s0 }
 0xbcd   :  { %13068 = vrot.lane.b32.xlu0 %v15656_v32, %s14273_s0  ;;  %13063 = vrot.lane.b32.xlu2 %v15598_v14, %s14273_s0 }
 0xbcf   :  { %v12924_v56 = vpop.permute.xlu2 %12923 }
 0xbd0   :  { %v12926_v15 = vunpack.i.h.bf16 %v12924_v56  ;;  %v12925_v29 = vunpack.i.l.bf16 %v12924_v56 }
 0xbd2   :  { %v1566_v52 = vsel %vm1563_vm8, %v12925_v29, %v12926_v15 }
 0xbd3   :  { %1645 = vmatpush.msra.mxu2 %v1566_v52  ;;  %13073 = vrot.lane.b32.xlu1 %v15580_v35, %s14274_s27 }
 0xbd4   :  { %12234 = vmatmul.msk.f32.vlgmr.msra.gmra.mxu2 %vm1577_vm12, %v15689_v38 }
 0xbd5   :  { %13083 = vrot.lane.b32.xlu0 %v15598_v14, %s14274_s27  ;;  %13078 = vrot.lane.b32.xlu2 %v15602_v57, %s14274_s27 }
 0xbd7   :  { %v12934_v2 = vpop.permute.xlu2 %12933 }
 0xbd8   :  { %v12936_v9 = vunpack.i.h.bf16 %v12934_v2  ;;  %v12935_v18 = vunpack.i.l.bf16 %v12934_v2 }
 0xbda   :  { %v1759_v37 = vsel %vm1509_vm7, %v12935_v18, %v12936_v9 }
 0xbdb   :  { %13088 = vrot.lane.b32.xlu1 %v15656_v32, %s14274_s27 }
 0xbdc   :  { %12235 = vmatmul.msk.f32.gmra.mxu2 %vm1577_vm12, %v15703_v5 }
 0xbdd   :  { %13098 = vrot.lane.b32.xlu0 %v15602_v57, %s14275_s23  ;;  %13093 = vrot.lane.b32.xlu2 %v15580_v35, %s14275_s23 }
 0xbde   :  { %v12919_v62 = vpop.permute.xlu1 %12918 }
 0xbdf   :  { %v12921_v10 = vunpack.i.h.bf16 %v12919_v62  ;;  %v12920_v41 = vunpack.i.l.bf16 %v12919_v62  ;;  %v1758_v21 = vpop.permute.xlu2 %1757 }
 0xbe1   :  { %v1564_v16 = vsel %vm1563_vm8, %v12920_v41, %v12921_v10  ;;  %v1565_v49 = vsel %vm1563_vm8, %v12921_v10, %v12925_v29 }
 0xbe2   :  { %1599 = vmatpush.msra.mxu0 %v1564_v16  ;;  %1622 = vmatpush.msra.mxu1 %v1565_v49 }
 0xbe3   :  { %13103 = vrot.lane.b32.xlu1 %v15598_v14, %s14275_s23  ;;  %12230 = vmatmul.msk.f32.vlgmr.msra.gmra.mxu0 %vm1577_vm12, %v15689_v38 }
 0xbe4   :  { %12232 = vmatmul.msk.f32.vlgmr.msra.gmra.mxu1 %vm1577_vm12, %v15689_v38 }
 0xbe5   :  { %13113 = vrot.lane.b32.xlu0 %v15580_v35, %s14276_s24  ;;  %13108 = vrot.lane.b32.xlu2 %v15656_v32, %s14275_s23 }
 0xbe7   :  { %v12929_v20 = vpop.permute.xlu0 %12928  ;;  %v12959_v24 = vpop.permute.xlu2 %12958 }
 0xbe8   :  { %v12931_v47 = vunpack.i.h.bf16 %v12929_v20  ;;  %v12930_v50 = vunpack.i.l.bf16 %v12929_v20  ;;  %v12961_v53 = vunpack.i.h.bf16 %v12959_v24  ;;  %v12960_v0 = vunpack.i.l.bf16 %v12959_v24 }
 0xbea   :  { %v1567_v6 = vsel %vm1563_vm8, %v12926_v15, %v12930_v50  ;;  %v1568_v48 = vsel %vm1563_vm8, %v12930_v50, %v12931_v47  ;;  %v1961_v44 = vsel %vm20216_vm13, %v12960_v0, %v12961_v53 }
 0xbeb   :  { %13118 = vrot.lane.b32.xlu1 %v15602_v57, %s14276_s24  ;;  %1668 = vmatpush.msra.mxu3 %v1567_v6 }
 0xbec   :  { %1691 = vmatpush.msrb.mxu0 %v1568_v48  ;;  %12233 = vmatmul.msk.f32.gmra.mxu1 %vm1577_vm12, %v15703_v5 }
 0xbed   :  { %12231 = vmatmul.msk.f32.gmra.mxu0 %vm1577_vm12, %v15703_v5  ;;  %12236 = vmatmul.msk.f32.vlgmr.msra.gmra.mxu3 %vm1577_vm12, %v15689_v38  ;;  %v1562_v3 = vpop.permute.xlu1 %1561 }
 0xbee   :  { %1793 = vmatpush.msrb.mxu3 %v1759_v37  ;;  %13128 = vrot.lane.b32.xlu0 %v15656_v32, %s14276_s24  ;;  %v1569_v43 = vsel %vm1563_vm8, %v12931_v47, %v1562_v3  ;;  %v15832_v32 = vld [vmem:[%s20093_s4 + $0x28] sm:$0xff]  ;;  %v12274_v47 = vld [vmem:[%s20093_s4 + $0x30] sm:$0xff]  ;;  %v12275_v37 = vld [vmem:[%s20093_s4 + $0x38] sm:$0xff] }
 0xbef   :  { %13123 = vrot.lane.b32.xlu2 %v15598_v14, %s14276_s24  ;;  %1737 = vmatpush.msrb.mxu2 %v1562_v3  ;;  %v12939_v60 = vpop.permute.xlu0 %12938  ;;  %v12969_v45 = vpop.permute.xlu2 %12968  ;;  %v15815_v14 = vld [vmem:[%s20093_s4 + $0x20] sm:$0xff] }
 0xbf0   :  { %12242 = vmatmul.msk.f32.vlgmr.msrb.gmra.mxu2 %vm1577_vm12, %v15689_v38  ;;  %v12941_v54 = vunpack.i.h.bf16 %v12939_v60  ;;  %v12940_v19 = vunpack.i.l.bf16 %v12939_v60  ;;  %1714 = vmatpush.msrb.mxu1 %v1569_v43  ;;  %v12970_v57 = vunpack.i.l.bf16 %v12969_v45  ;;  %v12971_v15 = vunpack.i.h.bf16 %v12969_v45 }
 0xbf2   :  { %v1760_v4 = vsel %vm1509_vm7, %v12936_v9, %v12940_v19  ;;  %v1761_v42 = vsel %vm1509_vm7, %v12940_v19, %v12941_v54  ;;  %v2171_v52 = vsel %vm2168_vm14, %v12970_v57, %v12971_v15 }
 0xbf3   :  { %13133 = vrot.lane.b32.xlu1 %v15745_v59, %s20208_s25  ;;  %1816 = vmatpush.msra.mxu0 %v1760_v4 }
 0xbf4   :  { %1839 = vmatpush.msra.mxu1 %v1761_v42 }
 0xbf5   :  { %12237 = vmatmul.msk.f32.gmra.mxu3 %vm1577_vm12, %v15703_v5  ;;  %12238 = vmatmul.msk.f32.vlgmr.msrb.gmra.mxu0 %vm1577_vm12, %v15689_v38  ;;  %v12944_v39 = vpop.permute.xlu1 %12943 }
 0xbf6   :  { %12240 = vmatmul.msk.f32.vlgmr.msrb.gmra.mxu1 %vm1577_vm12, %v15689_v38  ;;  %13143 = vrot.lane.b32.xlu0 %v15753_v46, %s20208_s25  ;;  %v12946_v55 = vunpack.i.h.bf16 %v12944_v39  ;;  %v12945_v26 = vunpack.i.l.bf16 %v12944_v39 }
 0xbf7   :  { %1931 = vmatpush.msrb.mxu1 %v1758_v21  ;;  %13138 = vrot.lane.b32.xlu2 %v15761_v8, %s20208_s25  ;;  %v12949_v63 = vpop.permute.xlu0 %12948  ;;  %v12979_v50 = vpop.permute.xlu2 %12978 }
 0xbf8   :  { %12243 = vmatmul.msk.f32.gmra.mxu2 %vm1577_vm12, %v15703_v5  ;;  %v12951_v34 = vunpack.i.h.bf16 %v12949_v63  ;;  %v12950_v12 = vunpack.i.l.bf16 %v12949_v63  ;;  %v1762_v28 = vsel %vm1509_vm7, %v12941_v54, %v12945_v26  ;;  %v1763_v27 = vsel %vm1509_vm7, %v12945_v26, %v12946_v55 }
 0xbf9   :  { %v1764_v23 = vsel %vm1509_vm7, %v12946_v55, %v1758_v21  ;;  %1862 = vmatpush.msra.mxu2 %v1762_v28  ;;  %1885 = vmatpush.msra.mxu3 %v1763_v27  ;;  %v12981_v18 = vunpack.i.h.bf16 %v12979_v50  ;;  %v12980_v6 = vunpack.i.l.bf16 %v12979_v50  ;;  %v12290_v28 = vld [vmem:[%s20093_s4 + $0x40] sm:$0xff] }
 0xbfa   :  { %v1957_v25 = vsel %vm20216_vm13, %v12950_v12, %v12951_v34  ;;  %1908 = vmatpush.msrb.mxu0 %v1764_v23 }
 0xbfb   :  { %4295 = vrot.lane.b32.xlu1 %v15650_v7, %s20208_s25  ;;  %1991 = vmatpush.msrb.mxu2 %v1957_v25  ;;  %s14277_s25 = smov 110   ;;  %v2381_v48 = vsel %vm20217_vm15, %v12980_v6, %v12981_v18 }
 0xbfd   :  { %12239 = vmatmul.msk.f32.gmra.mxu0 %vm1577_vm12, %v15703_v5  ;;  %12244 = vmatmul.msk.f32.vlgmr.msrb.gmra.mxu3 %vm1577_vm12, %v1530_v51  ;;  %v12954_v40 = vpop.permute.xlu1 %12953 }
 0xbfe   :  { %12241 = vmatmul.msk.f32.gmra.mxu1 %vm1577_vm12, %v15703_v5  ;;  %13153 = vrot.lane.b32.xlu0 %v15761_v8, %s20210_s26  ;;  %v12955_v58 = vunpack.i.l.bf16 %v12954_v40  ;;  %v12956_v30 = vunpack.i.h.bf16 %v12954_v40 }
 0xbff   :  { %13148 = vrot.lane.b32.xlu2 %v15745_v59, %s20210_s26  ;;  %v1955_v33 = vpop.permute.xlu0 %1954  ;;  %v2379_v54 = vpop.permute.xlu2 %2378 }
 0xc00   :  { %12250 = vmatmul.msk.f32.vlgmr.msra.gmra.mxu2 %vm1577_vm12, %v1530_v51  ;;  %v1958_v1 = vsel %vm20216_vm13, %v12951_v34, %v12955_v58  ;;  %v1959_v35 = vsel %vm20216_vm13, %v12955_v58, %v12956_v30  ;;  %v1960_v61 = vsel %vm20216_vm13, %v12956_v30, %v12960_v0  ;;  %v1962_v11 = vsel %vm20216_vm13, %v12961_v53, %v1955_v33  ;;  %v12291_v53 = vld [vmem:[%s20093_s4 + $0x48] sm:$0xff] }
 0xc01   :  { %2083 = vmatpush.msra.mxu2 %v1961_v44  ;;  %2014 = vmatpush.msrb.mxu3 %v1958_v1  ;;  %vm20218_vm13 = vcmask 171008  }
 0xc03   :  { %13158 = vrot.lane.b32.xlu1 %v15753_v46, %s20210_s26 }
 0xc05   :  { %12245 = vmatmul.msk.f32.gmra.mxu3 %vm1577_vm12, %v1531_v36  ;;  %12246 = vmatmul.msk.f32.vlgmr.msra.gmra.mxu0 %vm1577_vm12, %v1530_v51  ;;  %v12964_v22 = vpop.permute.xlu1 %12963 }
 0xc06   :  { %12248 = vmatmul.msk.f32.vlgmr.msra.gmra.mxu1 %vm1577_vm12, %v1530_v51  ;;  %2037 = vmatpush.msra.mxu0 %v1959_v35  ;;  %v12966_v13 = vunpack.i.h.bf16 %v12964_v22  ;;  %v12965_v17 = vunpack.i.l.bf16 %v12964_v22 }
 0xc07   :  { %2060 = vmatpush.msra.mxu1 %v1960_v61  ;;  %13163 = vrot.lane.b32.xlu0 %v15745_v59, %s14277_s25  ;;  %v12974_v29 = vpop.permute.xlu0 %12973  ;;  %v13004_v34 = vpop.permute.xlu2 %13003 }
 0xc08   :  { %4506 = vrot.lane.b32.xlu2 %v15650_v7, %s20210_s26  ;;  %12251 = vmatmul.msk.f32.gmra.mxu2 %vm1577_vm12, %v1531_v36  ;;  %v2170_v31 = vsel %vm2168_vm14, %v12966_v13, %v12970_v57  ;;  %v2169_v56 = vsel %vm2168_vm14, %v12965_v17, %v12966_v13  ;;  %v12976_v5 = vunpack.i.h.bf16 %v12974_v29  ;;  %v12975_v10 = vunpack.i.l.bf16 %v12974_v29  ;;  %s14279_s26 = smov 90  }
 0xc09   :  { %v13005_v27 = vunpack.i.l.bf16 %v13004_v34  ;;  %v13006_v40 = vunpack.i.h.bf16 %v13004_v34 }
 0xc0a   :  { %v2172_v41 = vsel %vm2168_vm14, %v12971_v15, %v12975_v10  ;;  %v2173_v16 = vsel %vm2168_vm14, %v12975_v10, %v12976_v5  ;;  %v12306_v15 = vld [vmem:[%s20093_s4 + $0x50] sm:$0xff] }
 0xc0b   :  { %13168 = vrot.lane.b32.xlu1 %v15761_v8, %s14277_s25  ;;  %v2615_v30 = vsel %vm2610_vm2, %v13005_v27, %v13006_v40 }
 0xc0d   :  { %12247 = vmatmul.msk.f32.gmra.mxu0 %vm1577_vm12, %v1531_v36  ;;  %12252 = vmatmul.msk.f32.vlgmr.msra.gmra.mxu3 %vm1577_vm12, %v1530_v51  ;;  %v2167_v38 = vpop.permute.xlu1 %2166 }
 0xc0e   :  { %12249 = vmatmul.msk.f32.gmra.mxu1 %vm1577_vm12, %v1531_v36  ;;  %2106 = vmatpush.msra.mxu3 %v1962_v11  ;;  %v2174_v62 = vsel %vm2168_vm14, %v12976_v5, %v2167_v38 }
 0xc0f   :  { %4717 = vrot.lane.b32.xlu0 %v15650_v7, %s14277_s25  ;;  %v12984_v49 = vpop.permute.xlu0 %12983  ;;  %v13019_v57 = vpop.permute.xlu2 %13018 }
 0xc10   :  { %13173 = vrot.lane.b32.xlu2 %v15753_v46, %s14277_s25  ;;  %12260 = vmatmul.msk.f32.vlgmr.msrb.gmra.mxu2 %vm1577_vm12, %v15815_v14  ;;  %v12986_v2 = vunpack.i.h.bf16 %v12984_v49  ;;  %v12985_v20 = vunpack.i.l.bf16 %v12984_v49  ;;  %v13020_v29 = vunpack.i.l.bf16 %v13019_v57 }
 0xc11   :  { %2226 = vmatpush.msrb.mxu2 %v2170_v31 }
 0xc12   :  { %v2383_v9 = vsel %vm20217_vm15, %v12985_v20, %v12986_v2  ;;  %v2382_v43 = vsel %vm20217_vm15, %v12981_v18, %v12985_v20 }
 0xc13   :  { %13178 = vrot.lane.b32.xlu1 %v15745_v59, %s14278_s28 }
 0xc15   :  { %12253 = vmatmul.msk.f32.gmra.mxu3 %vm1577_vm12, %v1531_v36  ;;  %12254 = vmatmul.msk.f32.vlgmr.msrb.gmra.mxu0 %vm1577_vm12, %v1530_v51  ;;  %v12989_v3 = vpop.permute.xlu1 %12988 }
 0xc16   :  { %12256 = vmatmul.msk.f32.vlgmr.msrb.gmra.mxu1 %vm1577_vm12, %v1530_v51  ;;  %2129 = vmatpush.msrb.mxu0 %v1955_v33  ;;  %v12990_v21 = vunpack.i.l.bf16 %v12989_v3  ;;  %v12991_v19 = vunpack.i.h.bf16 %v12989_v3 }
 0xc17   :  { %2203 = vmatpush.msrb.mxu1 %v2169_v56  ;;  %13188 = vrot.lane.b32.xlu0 %v15753_v46, %s14278_s28  ;;  %v12994_v42 = vpop.permute.xlu0 %12993 }
 0xc18   :  { %13183 = vrot.lane.b32.xlu2 %v15761_v8, %s14278_s28  ;;  %12261 = vmatmul.msk.f32.gmra.mxu2 %vm1577_vm12, %v15832_v32  ;;  %v2384_v60 = vsel %vm20217_vm15, %v12986_v2, %v12990_v21  ;;  %v2385_v4 = vsel %vm20217_vm15, %v12990_v21, %v12991_v19  ;;  %v2386_v39 = vsel %vm20217_vm15, %v12991_v19, %v2379_v54  ;;  %v12996_v55 = vunpack.i.h.bf16 %v12994_v42 }
 0xc19   :  { %v12995_v26 = vunpack.i.l.bf16 %v12994_v42  ;;  %vm20220_vm15 = vcmask 162816  }
 0xc1b   :  { %4929 = vrot.lane.b32.xlu1 %v15650_v7, %s14278_s28  ;;  %v2611_v24 = vsel %vm2610_vm2, %v12995_v26, %v12996_v55 }
 0xc1d   :  { %12255 = vmatmul.msk.f32.gmra.mxu0 %vm1577_vm12, %v1531_v36  ;;  %12262 = vmatmul.msk.f32.vlgmr.msrb.gmra.mxu3 %vm1577_vm12, %v15815_v14  ;;  %v12999_v63 = vpop.permute.xlu1 %12998 }
 0xc1e   :  { %12257 = vmatmul.msk.f32.gmra.mxu1 %vm1577_vm12, %v1531_v36  ;;  %2249 = vmatpush.msrb.mxu3 %v2171_v52  ;;  %v13001_v12 = vunpack.i.h.bf16 %v12999_v63  ;;  %v13000_v25 = vunpack.i.l.bf16 %v12999_v63 }
 0xc1f   :  { %13198 = vrot.lane.b32.xlu0 %v15761_v8, %s14225_s13  ;;  %v13009_v36 = vpop.permute.xlu0 %13008 }
 0xc20   :  { %13193 = vrot.lane.b32.xlu2 %v15745_v59, %s14225_s13  ;;  %12268 = vmatmul.msk.f32.vlgmr.msra.gmra.mxu2 %vm1577_vm12, %v15815_v14  ;;  %v2614_v23 = vsel %vm2610_vm2, %v13001_v12, %v13005_v27  ;;  %v2612_v51 = vsel %vm2610_vm2, %v12996_v55, %v13000_v25  ;;  %v2613_v0 = vsel %vm2610_vm2, %v13000_v25, %v13001_v12  ;;  %v13010_v33 = vunpack.i.l.bf16 %v13009_v36  ;;  %v16060_v12 = vld [vmem:[%s20093_s4 + $0x68] sm:$0xff] }
 0xc21   :  { %2318 = vmatpush.msra.mxu2 %v2174_v62  ;;  %v13011_v13 = vunpack.i.h.bf16 %v13009_v36  ;;  %v13021_v62 = vunpack.i.h.bf16 %v13019_v57 }
 0xc22   :  { %v2616_v11 = vsel %vm2610_vm2, %v13006_v40, %v13010_v33 }
 0xc23   :  { %13203 = vrot.lane.b32.xlu1 %v15753_v46, %s14225_s13 }
 0xc25   :  { %12263 = vmatmul.msk.f32.gmra.mxu3 %vm1577_vm12, %v15832_v32  ;;  %12264 = vmatmul.msk.f32.vlgmr.msra.gmra.mxu0 %vm1577_vm12, %v15815_v14  ;;  %v13014_v58 = vpop.permute.xlu1 %13013 }
 0xc26   :  { %12266 = vmatmul.msk.f32.vlgmr.msra.gmra.mxu1 %vm1577_vm12, %v15815_v14  ;;  %2272 = vmatpush.msra.mxu0 %v2172_v41  ;;  %v13016_v44 = vunpack.i.h.bf16 %v13014_v58  ;;  %v13015_v1 = vunpack.i.l.bf16 %v13014_v58  ;;  %v12307_v41 = vld [vmem:[%s20093_s4 + $0x58] sm:$0xff] }
 0xc27   :  { %2295 = vmatpush.msra.mxu1 %v2173_v16  ;;  %13208 = vrot.lane.b32.xlu0 %v15745_v59, %s20214_s14  ;;  %v13024_v31 = vpop.permute.xlu0 %13023 }
 0xc28   :  { %5141 = vrot.lane.b32.xlu2 %v15650_v7, %s14225_s13  ;;  %12269 = vmatmul.msk.f32.gmra.mxu2 %vm1577_vm12, %v15832_v32  ;;  %v2826_v61 = vsel %vm20218_vm13, %v13015_v1, %v13016_v44  ;;  %v2827_v52 = vsel %vm20218_vm13, %v13016_v44, %v13020_v29 }
 0xc2b   :  { %13213 = vrot.lane.b32.xlu1 %v15761_v8, %s20214_s14 }
 0xc2d   :  { %12265 = vmatmul.msk.f32.gmra.mxu0 %vm1577_vm12, %v15832_v32  ;;  %12270 = vmatmul.msk.f32.vlgmr.msra.gmra.mxu3 %vm1577_vm12, %v15815_v14 }
 0xc2e   :  { %12267 = vmatmul.msk.f32.gmra.mxu1 %vm1577_vm12, %v15832_v32  ;;  %2341 = vmatpush.msra.mxu3 %v2167_v38  ;;  %v13025_v38 = vunpack.i.l.bf16 %v13024_v31 }
 0xc2f   :  { %5352 = vrot.lane.b32.xlu0 %v15650_v7, %s20214_s14  ;;  %v16026_v50 = vpop.permute.xlu0 %13038 }
 0xc30   :  { %13218 = vrot.lane.b32.xlu2 %v15753_v46, %s20214_s14  ;;  %12278 = vmatmul.msk.f32.vlgmr.msrb.gmra.mxu2 %vm1577_vm12, %v12274_v47  ;;  %v2829_v2 = vsel %vm20218_vm13, %v13021_v62, %v13025_v38  ;;  %v13041_v27 = vunpack.i.h.bf16 %v16026_v50 }
 0xc31   :  { %2461 = vmatpush.msrb.mxu2 %v2383_v9  ;;  %v13034_v9 = vpop.permute.xlu2 %13033 }
 0xc32   :  { %v13036_v21 = vunpack.i.h.bf16 %v13034_v9  ;;  %v13035_v42 = vunpack.i.l.bf16 %v13034_v9 }
 0xc33   :  { %13223 = vrot.lane.b32.xlu1 %v15745_v59, %s20212_s15 }
 0xc35   :  { %12271 = vmatmul.msk.f32.gmra.mxu3 %vm1577_vm12, %v15832_v32  ;;  %12272 = vmatmul.msk.f32.vlgmr.msrb.gmra.mxu0 %vm1577_vm12, %v15815_v14  ;;  %v2617_v14 = vsel %vm2610_vm2, %v13010_v33, %v13011_v13 }
 0xc36   :  { %12276 = vmatmul.msk.f32.vlgmr.msrb.gmra.mxu1 %vm1577_vm12, %v12274_v47  ;;  %2415 = vmatpush.msrb.mxu0 %v2381_v48 }
 0xc37   :  { %2438 = vmatpush.msrb.mxu1 %v2382_v43  ;;  %13233 = vrot.lane.b32.xlu0 %v15753_v46, %s20212_s15  ;;  %v16041_v43 = vld [vmem:[%s20093_s4 + $0x60] sm:$0xff] }
 0xc38   :  { %13228 = vrot.lane.b32.xlu2 %v15761_v8, %s20212_s15  ;;  %12279 = vmatmul.msk.f32.gmra.mxu2 %vm1577_vm12, %v12275_v37 }
 0xc3b   :  { %5563 = vrot.lane.b32.xlu1 %v15650_v7, %s20212_s15 }
 0xc3d   :  { %12273 = vmatmul.msk.f32.gmra.mxu0 %vm1577_vm12, %v15832_v32  ;;  %12280 = vmatmul.msk.f32.vlgmr.msrb.gmra.mxu3 %vm1577_vm12, %v12274_v47 }
 0xc3e   :  { %12277 = vmatmul.msk.f32.gmra.mxu1 %vm1577_vm12, %v12275_v37  ;;  %2484 = vmatpush.msrb.mxu3 %v2384_v60 }
 0xc3f   :  { %13243 = vrot.lane.b32.xlu0 %v15761_v8, %s14279_s26 }
 0xc40   :  { %13238 = vrot.lane.b32.xlu2 %v15745_v59, %s14279_s26  ;;  %12286 = vmatmul.msk.f32.vlgmr.msra.gmra.mxu2 %vm1577_vm12, %v12274_v47 }
 0xc41   :  { %2553 = vmatpush.msra.mxu2 %v2379_v54 }
 0xc43   :  { %13248 = vrot.lane.b32.xlu1 %v15753_v46, %s14279_s26 }
 0xc45   :  { %12281 = vmatmul.msk.f32.gmra.mxu3 %vm1577_vm12, %v12275_v37  ;;  %12282 = vmatmul.msk.f32.vlgmr.msra.gmra.mxu0 %vm1577_vm12, %v12274_v47 }
 0xc46   :  { %12284 = vmatmul.msk.f32.vlgmr.msra.gmra.mxu1 %vm1577_vm12, %v12274_v47  ;;  %2507 = vmatpush.msra.mxu0 %v2385_v4 }
 0xc47   :  { %2530 = vmatpush.msra.mxu1 %v2386_v39  ;;  %13253 = vrot.lane.b32.xlu0 %v15745_v59, %s14280_s29 }
 0xc48   :  { %5774 = vrot.lane.b32.xlu2 %v15650_v7, %s14279_s26  ;;  %12287 = vmatmul.msk.f32.gmra.mxu2 %vm1577_vm12, %v12275_v37 }
 0xc4b   :  { %13258 = vrot.lane.b32.xlu1 %v15761_v8, %s14280_s29 }
 0xc4d   :  { %12283 = vmatmul.msk.f32.gmra.mxu0 %vm1577_vm12, %v12275_v37  ;;  %12288 = vmatmul.msk.f32.vlgmr.msra.gmra.mxu3 %vm1577_vm12, %v12274_v47 }
 0xc4e   :  { %12285 = vmatmul.msk.f32.gmra.mxu1 %vm1577_vm12, %v12275_v37  ;;  %2646 = vmatpush.msra.mxu3 %v2611_v24  ;;  %v3041_v24 = vsel %vm20220_vm15, %v13035_v42, %v13036_v21 }
 0xc4f   :  { %5986 = vrot.lane.b32.xlu0 %v15650_v7, %s14280_s29 }
 0xc50   :  { %13263 = vrot.lane.b32.xlu2 %v15753_v46, %s14280_s29  ;;  %12296 = vmatmul.msk.f32.vlgmr.msrb.gmra.mxu2 %vm1577_vm12, %v12290_v28 }
 0xc51   :  { %2715 = vmatpush.msrb.mxu2 %v2614_v23 }
 0xc53   :  { %13268 = vrot.lane.b32.xlu1 %v15745_v59, %s14236_s18 }
 0xc55   :  { %12289 = vmatmul.msk.f32.gmra.mxu3 %vm1577_vm12, %v12275_v37  ;;  %12292 = vmatmul.msk.f32.vlgmr.msrb.gmra.mxu0 %vm1577_vm12, %v12290_v28  ;;  %v13040_v37 = vunpack.i.l.bf16 %v16026_v50 }
 0xc56   :  { %12294 = vmatmul.msk.f32.vlgmr.msrb.gmra.mxu1 %vm1577_vm12, %v12290_v28  ;;  %2669 = vmatpush.msrb.mxu0 %v2612_v51  ;;  %v13049_v51 = vpop.permute.xlu2 %13048 }
 0xc57   :  { %2692 = vmatpush.msrb.mxu1 %v2613_v0  ;;  %13278 = vrot.lane.b32.xlu0 %v15753_v46, %s14236_s18  ;;  %v15968_v35 = vpop.f32.mrf.mxu2  ;;  %v3042_v54 = vsel %vm20220_vm15, %v13036_v21, %v13040_v37  ;;  %v3043_v1 = vsel %vm20220_vm15, %v13040_v37, %v13041_v27 }
 0xc58   :  { %13273 = vrot.lane.b32.xlu2 %v15761_v8, %s14236_s18  ;;  %12297 = vmatmul.msk.f32.gmra.mxu2 %vm1577_vm12, %v12291_v53 }
 0xc5b   :  { %6198 = vrot.lane.b32.xlu1 %v15650_v7, %s14236_s18 }
 0xc5d   :  { %12293 = vmatmul.msk.f32.gmra.mxu0 %vm1577_vm12, %v12291_v53  ;;  %12298 = vmatmul.msk.f32.vlgmr.msrb.gmra.mxu3 %vm1577_vm12, %v12290_v28 }
 0xc5e   :  { %12295 = vmatmul.msk.f32.gmra.mxu1 %vm1577_vm12, %v12291_v53  ;;  %2738 = vmatpush.msrb.mxu3 %v2615_v30  ;;  %v13050_v30 = vunpack.i.l.bf16 %v13049_v51 }
 0xc5f   :  { %13288 = vrot.lane.b32.xlu0 %v15761_v8, %s20228_s19  ;;  %v15992_v32 = vpop.f32.mrf.mxu2 }
 0xc60   :  { %13283 = vrot.lane.b32.xlu2 %v15745_v59, %s20228_s19  ;;  %12304 = vmatmul.msk.f32.vlgmr.msra.gmra.mxu2 %vm1577_vm12, %v12290_v28  ;;  %v15974_v22 = vpop.f32.mrf.mxu0 }
 0xc61   :  { %2861 = vmatpush.msra.mxu2 %v2826_v61  ;;  %v15976_v45 = vpop.f32.mrf.mxu1 }
 0xc63   :  { %13293 = vrot.lane.b32.xlu1 %v15753_v46, %s20228_s19 }
 0xc65   :  { %12299 = vmatmul.msk.f32.gmra.mxu3 %vm1577_vm12, %v12291_v53  ;;  %12300 = vmatmul.msk.f32.vlgmr.msra.gmra.mxu0 %vm1577_vm12, %v12290_v28 }
 0xc66   :  { %12302 = vmatmul.msk.f32.vlgmr.msra.gmra.mxu1 %vm1577_vm12, %v12290_v28  ;;  %2761 = vmatpush.msra.mxu0 %v2616_v11 }
 0xc67   :  { %2784 = vmatpush.msra.mxu1 %v2617_v14  ;;  %13298 = vrot.lane.b32.xlu0 %v15745_v59, %s20226_s22  ;;  %v13026_v59 = vunpack.i.h.bf16 %v13024_v31 }
 0xc68   :  { %6409 = vrot.lane.b32.xlu2 %v15650_v7, %s20228_s19  ;;  %12305 = vmatmul.msk.f32.gmra.mxu2 %vm1577_vm12, %v12291_v53 }
 0xc69   :  { %v15990_v17 = vpop.f32.mrf.mxu1 }
 0xc6a   :  { %v15994_v56 = vpop.f32.mrf.mxu0 }
 0xc6b   :  { %13303 = vrot.lane.b32.xlu1 %v15761_v8, %s20226_s22  ;;  %v2830_v8 = vsel %vm20218_vm13, %v13025_v38, %v13026_v59 }
 0xc6d   :  { %12301 = vmatmul.msk.f32.gmra.mxu0 %vm1577_vm12, %v12291_v53  ;;  %12308 = vmatmul.msk.f32.vlgmr.msra.gmra.mxu3 %vm1577_vm12, %v12306_v15 }
 0xc6e   :  { %12303 = vmatmul.msk.f32.gmra.mxu1 %vm1577_vm12, %v12291_v53  ;;  %2884 = vmatpush.msra.mxu3 %v2827_v52 }
 0xc6f   :  { %6620 = vrot.lane.b32.xlu0 %v15650_v7, %s20226_s22  ;;  %v2828_v7 = vsel %vm20218_vm13, %v13020_v29, %v13021_v62  ;;  %v13051_v29 = vunpack.i.h.bf16 %v13049_v51 }
 0xc70   :  { %13308 = vrot.lane.b32.xlu2 %v15753_v46, %s20226_s22  ;;  %v1670_v5 = vpop.f32.mrf.mxu3  ;;  %12314 = vmatmul.msk.f32.vlgmr.msrb.gmra.mxu2 %vm1577_vm12, %v12306_v15  ;;  %v13029_v46 = vpop.permute.xlu1 %13028 }
 0xc71   :  { %2953 = vmatpush.msrb.mxu2 %v2830_v8  ;;  %v13030_v47 = vunpack.i.l.bf16 %v13029_v46  ;;  %v13031_v19 = vunpack.i.h.bf16 %v13029_v46  ;;  %v16114_v46 = vld [vmem:[%s20093_s4 + $0x70] sm:$0xff] }
 0xc72   :  { %v16011_v10 = vpop.f32.mrf.mxu0 }
 0xc73   :  { %v16016_v16 = vpop.f32.mrf.mxu1  ;;  %v16018_v49 = vpop.f32.mrf.mxu2  ;;  %v2831_v3 = vsel %vm20218_vm13, %v13026_v59, %v13030_v47  ;;  %v2832_v34 = vsel %vm20218_vm13, %v13030_v47, %v13031_v19  ;;  %vm20219_vm13 = vcmask 154624   ;;  %v16137_v19 = vld [vmem:[%s20093_s4 + $0x78] sm:$0xff] }
 0xc75   :  { %12309 = vmatmul.msk.f32.gmra.mxu3 %vm1577_vm12, %v12307_v41  ;;  %12310 = vmatmul.msk.f32.vlgmr.msrb.gmra.mxu0 %vm1577_vm12, %v12306_v15 }
 0xc76   :  { %12312 = vmatmul.msk.f32.vlgmr.msrb.gmra.mxu1 %vm1577_vm12, %v12306_v15  ;;  %2907 = vmatpush.msrb.mxu0 %v2828_v7  ;;  %v3047_v7 = vsel %vm20220_vm15, %v13050_v30, %v13051_v29 }
 0xc77   :  { %2930 = vmatpush.msrb.mxu1 %v2829_v2  ;;  %v13054_v2 = vpop.permute.xlu0 %13053 }
 0xc78   :  { %v1673_v20 = vpop.f32.mrf.mxu3  ;;  %12315 = vmatmul.msk.f32.gmra.mxu2 %vm1577_vm12, %v12307_v41  ;;  %v13044_v23 = vpop.permute.xlu1 %13043  ;;  %v13056_v9 = vunpack.i.h.bf16 %v13054_v2 }
 0xc79   :  { %v13046_v58 = vunpack.i.h.bf16 %v13044_v23 }
 0xc7a   :  { %v16028_v18 = vpop.f32.mrf.mxu0 }
 0xc7b   :  { %v16030_v6 = vpop.f32.mrf.mxu1  ;;  %v16032_v48 = vpop.f32.mrf.mxu2  ;;  %v3046_v61 = vsel %vm20220_vm15, %v13046_v58, %v13050_v30 }
 0xc7d   :  { %12311 = vmatmul.msk.f32.gmra.mxu0 %vm1577_vm12, %v12307_v41  ;;  %12316 = vmatmul.msk.f32.vlgmr.msrb.gmra.mxu3 %vm1577_vm12, %v12306_v15 }
 0xc7e   :  { %12313 = vmatmul.msk.f32.gmra.mxu1 %vm1577_vm12, %v12307_v41  ;;  %2976 = vmatpush.msrb.mxu3 %v2831_v3 }
 0xc80   :  { %v1795_v60 = vpop.f32.mrf.mxu3  ;;  %12324 = vmatmul.msk.f32.vlgmr.msra.gmra.mxu2 %vm1577_vm12, %v16041_v43  ;;  %v13059_v59 = vpop.permute.xlu1 %13058 }
 0xc81   :  { %v1796_v4 = vadd.f32 %v1795_v60, %v15974_v22  ;;  %3099 = vmatpush.msra.mxu2 %v3042_v54  ;;  %v13045_v22 = vunpack.i.l.bf16 %v13044_v23  ;;  %v13061_v62 = vunpack.i.h.bf16 %v13059_v59 }
 0xc82   :  { %v16048_v39 = vpop.f32.mrf.mxu0 }
 0xc83   :  { %v16050_v55 = vpop.f32.mrf.mxu1  ;;  %v1864_v26 = vpop.f32.mrf.mxu2  ;;  %v3044_v31 = vsel %vm20220_vm15, %v13041_v27, %v13045_v22 }
 0xc84   :  { %v16052_v63 = vadd.f32 %v1864_v26, %v1670_v5 }
 0xc85   :  { %12317 = vmatmul.msk.f32.gmra.mxu3 %vm1577_vm12, %v12307_v41  ;;  %12318 = vmatmul.msk.f32.vlgmr.msra.gmra.mxu0 %vm1577_vm12, %v12306_v15 }
 0xc86   :  { %12320 = vmatmul.msk.f32.vlgmr.msra.gmra.mxu1 %vm1577_vm12, %v12306_v15  ;;  %2999 = vmatpush.msra.mxu0 %v2832_v34 }
 0xc87   :  { %3076 = vmatpush.msra.mxu1 %v3041_v24 }
 0xc88   :  { %v1798_v28 = vpop.f32.mrf.mxu3  ;;  %12325 = vmatmul.msk.f32.gmra.mxu2 %vm1577_vm12, %v16060_v12 }
 0xc89   :  { %v1799_v25 = vadd.f32 %v1798_v28, %v15994_v56  ;;  %v3045_v56 = vsel %vm20220_vm15, %v13045_v22, %v13046_v58  ;;  %vm3685_vm15 = vcmask 15360  }
 0xc8a   :  { %v16068_v53 = vpop.f32.mrf.mxu0 }
 0xc8b   :  { %v16070_v0 = vpop.f32.mrf.mxu1  ;;  %v1867_v40 = vpop.f32.mrf.mxu2  ;;  %v1822_v42 = vadd.f32 %v16068_v53, %v15990_v17 }
 0xc8c   :  { %v16072_v44 = vadd.f32 %v1867_v40, %v1673_v20  ;;  %v1819_v20 = vadd.f32 %v16048_v39, %v15976_v45  ;;  %v13064_v39 = vpop.permute.xlu2 %13063 }
 0xc8d   :  { %12319 = vmatmul.msk.f32.gmra.mxu0 %vm1577_vm12, %v12307_v41  ;;  %12326 = vmatmul.msk.f32.vlgmr.msra.gmra.mxu3 %vm1577_vm12, %v16041_v43  ;;  %v13065_v28 = vunpack.i.l.bf16 %v13064_v39  ;;  %v13066_v30 = vunpack.i.h.bf16 %v13064_v39  ;;  %v16218_v39 = vld [vmem:[%s20093_s4 + $0x88] sm:$0xff] }
 0xc8e   :  { %12321 = vmatmul.msk.f32.gmra.mxu1 %vm1577_vm12, %v12307_v41  ;;  %3122 = vmatpush.msra.mxu3 %v3043_v1 }
 0xc8f   :  { %v3259_v17 = vsel %vm20219_vm13, %v13061_v62, %v13065_v28 }
 0xc90   :  { %v1887_v36 = vpop.f32.mrf.mxu3  ;;  %12332 = vmatmul.msk.f32.vlgmr.msrb.gmra.mxu2 %vm1577_vm12, %v16041_v43 }
 0xc91   :  { %v1888_v33 = vadd.f32 %v1887_v36, %v16011_v10  ;;  %3191 = vmatpush.msrb.mxu2 %v3046_v61  ;;  %v13060_v10 = vunpack.i.l.bf16 %v13059_v59 }
 0xc92   :  { %v16083_v13 = vpop.f32.mrf.mxu0 }
 0xc93   :  { %v16085_v11 = vpop.f32.mrf.mxu1  ;;  %v1993_v14 = vpop.f32.mrf.mxu2  ;;  %v3258_v50 = vsel %vm20219_vm13, %v13060_v10, %v13061_v62  ;;  %v1911_v53 = vadd.f32 %v16083_v13, %v16016_v16  ;;  %v3260_v16 = vsel %vm20219_vm13, %v13065_v28, %v13066_v30 }
 0xc94   :  { %v16087_v57 = vadd.f32 %v1993_v14, %v1796_v4  ;;  %v3257_v4 = vsel %vm20219_vm13, %v13056_v9, %v13060_v10  ;;  %v13074_v13 = vpop.permute.xlu1 %13073 }
 0xc95   :  { %12327 = vmatmul.msk.f32.gmra.mxu3 %vm1577_vm12, %v16060_v12  ;;  %12328 = vmatmul.msk.f32.vlgmr.msrb.gmra.mxu0 %vm1577_vm12, %v16041_v43  ;;  %v13075_v29 = vunpack.i.l.bf16 %v13074_v13 }
 0xc96   :  { %12330 = vmatmul.msk.f32.vlgmr.msrb.gmra.mxu1 %vm1577_vm12, %v16041_v43  ;;  %3145 = vmatpush.msrb.mxu0 %v3044_v31 }
 0xc97   :  { %3168 = vmatpush.msrb.mxu1 %v3045_v56 }
 0xc98   :  { %v1890_v15 = vpop.f32.mrf.mxu3  ;;  %12333 = vmatmul.msk.f32.gmra.mxu2 %vm1577_vm12, %v16060_v12 }
 0xc99   :  { %v1891_v38 = vadd.f32 %v1890_v15, %v16028_v18  ;;  %v13055_v18 = vunpack.i.l.bf16 %v13054_v2  ;;  %v13076_v15 = vunpack.i.h.bf16 %v13074_v13 }
 0xc9a   :  { %v16100_v52 = vpop.f32.mrf.mxu0 }
 0xc9b   :  { %v16102_v5 = vpop.f32.mrf.mxu1  ;;  %v1996_v8 = vpop.f32.mrf.mxu2  ;;  %v3256_v45 = vsel %vm20219_vm13, %v13055_v18, %v13056_v9  ;;  %v1914_v31 = vadd.f32 %v16100_v52, %v16030_v6  ;;  %v12354_v52 = vld [vmem:[%s20093_s4 + $0x80] sm:$0xff] }
 0xc9c   :  { %v16104_v41 = vadd.f32 %v1996_v8, %v1799_v25  ;;  %v13079_v8 = vpop.permute.xlu2 %13078 }
 0xc9d   :  { %12329 = vmatmul.msk.f32.gmra.mxu0 %vm1577_vm12, %v16060_v12  ;;  %12334 = vmatmul.msk.f32.vlgmr.msrb.gmra.mxu3 %vm1577_vm12, %v16041_v43  ;;  %v13080_v18 = vunpack.i.l.bf16 %v13079_v8 }
 0xc9e   :  { %12331 = vmatmul.msk.f32.gmra.mxu1 %vm1577_vm12, %v16060_v12  ;;  %3214 = vmatpush.msrb.mxu3 %v3047_v7 }
 0xca0   :  { %v2016_v47 = vpop.f32.mrf.mxu3  ;;  %12342 = vmatmul.msk.f32.vlgmr.msra.gmra.mxu2 %vm1577_vm12, %v16114_v46 }
 0xca1   :  { %v2138_v37 = vadd.f32 %v2016_v47, %v1819_v20  ;;  %3337 = vmatpush.msra.mxu2 %v3258_v50  ;;  %v13081_v47 = vunpack.i.h.bf16 %v13079_v8 }
 0xca2   :  { %v16123_v3 = vpop.f32.mrf.mxu0 }
 0xca3   :  { %v16125_v21 = vpop.f32.mrf.mxu1  ;;  %v2085_v60 = vpop.f32.mrf.mxu2 }
 0xca4   :  { %v16127_v54 = vadd.f32 %v2085_v60, %v1888_v33 }
 0xca5   :  { %12335 = vmatmul.msk.f32.gmra.mxu3 %vm1577_vm12, %v16060_v12  ;;  %12336 = vmatmul.msk.f32.vlgmr.msra.gmra.mxu0 %vm1577_vm12, %v16041_v43  ;;  %v13069_v43 = vpop.permute.xlu0 %13068 }
 0xca6   :  { %12340 = vmatmul.msk.f32.vlgmr.msra.gmra.mxu1 %vm1577_vm12, %v16114_v46  ;;  %3291 = vmatpush.msra.mxu0 %v3256_v45  ;;  %v13071_v25 = vunpack.i.h.bf16 %v13069_v43  ;;  %v13070_v51 = vunpack.i.l.bf16 %v13069_v43 }
 0xca7   :  { %3314 = vmatpush.msra.mxu1 %v3257_v4  ;;  %v1845_v4 = vadd.f32 %v16070_v0, %v15992_v32  ;;  %v13094_v0 = vpop.permute.xlu2 %13093 }
 0xca8   :  { %v2019_v26 = vpop.f32.mrf.mxu3  ;;  %12343 = vmatmul.msk.f32.gmra.mxu2 %vm1577_vm12, %v16137_v19  ;;  %v3262_v1 = vsel %vm20219_vm13, %v13070_v51, %v13071_v25  ;;  %v3261_v14 = vsel %vm20219_vm13, %v13066_v30, %v13070_v51  ;;  %vm20221_vm13 = vcmask 146432   ;;  %v13096_v51 = vunpack.i.h.bf16 %v13094_v0 }
 0xca9   :  { %v2145_v34 = vadd.f32 %v2019_v26, %v1822_v42  ;;  %v3471_v6 = vsel %vm20221_vm13, %v13075_v29, %v13076_v15  ;;  %v3472_v42 = vsel %vm20221_vm13, %v13076_v15, %v13080_v18  ;;  %v3473_v26 = vsel %vm20221_vm13, %v13080_v18, %v13081_v47 }
 0xcaa   :  { %v16146_v24 = vpop.f32.mrf.mxu0  ;;  %v1842_v30 = vadd.f32 %v16050_v55, %v15968_v35  ;;  %v2140_v18 = vadd.f32 %v16125_v21, %v16052_v63 }
 0xcab   :  { %v16148_v27 = vpop.f32.mrf.mxu1  ;;  %v2088_v23 = vpop.f32.mrf.mxu2  ;;  %v2146_v43 = vadd.f32 %v16146_v24, %v1845_v4  ;;  %v1934_v24 = vadd.f32 %v16085_v11, %v16018_v49 }
 0xcac   :  { %v16150_v40 = vadd.f32 %v2088_v23, %v1891_v38  ;;  %v2139_v49 = vadd.f32 %v16123_v3, %v1842_v30  ;;  %v1937_v3 = vadd.f32 %v16102_v5, %v16032_v48 }
 0xcad   :  { %12337 = vmatmul.msk.f32.gmra.mxu0 %vm1577_vm12, %v16060_v12  ;;  %12344 = vmatmul.msk.f32.vlgmr.msra.gmra.mxu3 %vm1577_vm12, %v16114_v46  ;;  %v16182_v59 = vpop.permute.xlu0 %13083 }
 0xcae   :  { %12341 = vmatmul.msk.f32.gmra.mxu1 %vm1577_vm12, %v16137_v19  ;;  %3360 = vmatpush.msra.mxu3 %v3259_v17  ;;  %v13085_v2 = vunpack.i.l.bf16 %v16182_v59  ;;  %v13095_v17 = vunpack.i.l.bf16 %v13094_v0 }
 0xcb0   :  { %v2108_v58 = vpop.f32.mrf.mxu3  ;;  %12350 = vmatmul.msk.f32.vlgmr.msrb.gmra.mxu2 %vm1577_vm12, %v16114_v46  ;;  %v3474_v9 = vsel %vm20221_vm13, %v13081_v47, %v13085_v2 }
 0xcb1   :  { %v2142_v12 = vadd.f32 %v2108_v58, %v1911_v53  ;;  %3429 = vmatpush.msrb.mxu2 %v3262_v1  ;;  %v13089_v1 = vpop.permute.xlu1 %13088 }
 0xcb2   :  { %v16164_v36 = vpop.f32.mrf.mxu0 }
 0xcb3   :  { %v16166_v61 = vpop.f32.mrf.mxu1  ;;  %v2228_v22 = vpop.f32.mrf.mxu2 }
 0xcb4   :  { %v16168_v33 = vadd.f32 %v2228_v22, %v2138_v37  ;;  %v3686_v22 = vsel %vm3685_vm15, %v13095_v17, %v13096_v51  ;;  %v13109_v17 = vpop.permute.xlu2 %13108 }
 0xcb5   :  { %12345 = vmatmul.msk.f32.gmra.mxu3 %vm1577_vm12, %v16137_v19  ;;  %12346 = vmatmul.msk.f32.vlgmr.msrb.gmra.mxu0 %vm1577_vm12, %v16114_v46  ;;  %v13099_v29 = vpop.permute.xlu0 %13098  ;;  %v13110_v30 = vunpack.i.l.bf16 %v13109_v17 }
 0xcb6   :  { %12348 = vmatmul.msk.f32.vlgmr.msrb.gmra.mxu1 %vm1577_vm12, %v16114_v46  ;;  %3383 = vmatpush.msrb.mxu0 %v3260_v16  ;;  %v13090_v16 = vunpack.i.l.bf16 %v13089_v1  ;;  %v13100_v48 = vunpack.i.l.bf16 %v13099_v29  ;;  %v13101_v21 = vunpack.i.h.bf16 %v13099_v29 }
 0xcb7   :  { %3406 = vmatpush.msrb.mxu1 %v3261_v14  ;;  %v13091_v14 = vunpack.i.h.bf16 %v13089_v1 }
 0xcb8   :  { %v2111_v56 = vpop.f32.mrf.mxu3  ;;  %12351 = vmatmul.msk.f32.gmra.mxu2 %vm1577_vm12, %v16137_v19 }
 0xcb9   :  { %v2149_v38 = vadd.f32 %v2111_v56, %v1914_v31  ;;  %v13104_v5 = vpop.permute.xlu1 %13103 }
 0xcba   :  { %v16184_v62 = vpop.f32.mrf.mxu0 }
 0xcbb   :  { %v16186_v10 = vpop.f32.mrf.mxu1  ;;  %v2231_v7 = vpop.f32.mrf.mxu2 }
 0xcbc   :  { %v16189_v20 = vadd.f32 %v2231_v7, %v2145_v34 }
 0xcbd   :  { %12347 = vmatmul.msk.f32.gmra.mxu0 %vm1577_vm12, %v16137_v19  ;;  %12352 = vmatmul.msk.f32.vlgmr.msrb.gmra.mxu3 %vm1577_vm12, %v16114_v46 }
 0xcbe   :  { %12349 = vmatmul.msk.f32.gmra.mxu1 %vm1577_vm12, %v16137_v19  ;;  %3506 = vmatpush.msrb.mxu3 %v3471_v6  ;;  %v16268_v6 = vld [vmem:[%s20093_s4 + $0x90] sm:$0xff] }
 0xcc0   :  { %v2251_v50 = vpop.f32.mrf.mxu3  ;;  %12360 = vmatmul.msk.f32.vlgmr.msra.gmra.mxu2 %vm1577_vm12, %v12354_v52 }
 0xcc1   :  { %3575 = vmatpush.msra.mxu2 %v3474_v9  ;;  %v2351_v31 = vadd.f32 %v2251_v50, %v2139_v49  ;;  %v13106_v50 = vunpack.i.h.bf16 %v13104_v5 }
 0xcc2   :  { %v16203_v37 = vpop.f32.mrf.mxu0 }
 0xcc3   :  { %v16205_v46 = vpop.f32.mrf.mxu1  ;;  %v2320_v60 = vpop.f32.mrf.mxu2  ;;  %v2352_v4 = vadd.f32 %v16203_v37, %v2140_v18 }
 0xcc4   :  { %v16207_v45 = vadd.f32 %v2320_v60, %v2142_v12  ;;  %v2143_v12 = vadd.f32 %v16164_v36, %v1934_v24  ;;  %v3687_v60 = vsel %vm3685_vm15, %v13096_v51, %v13100_v48  ;;  %v13124_v18 = vpop.permute.xlu2 %13123 }
 0xcc5   :  { %12353 = vmatmul.msk.f32.gmra.mxu3 %vm1577_vm12, %v16137_v19  ;;  %12356 = vmatmul.msk.f32.vlgmr.msra.gmra.mxu0 %vm1577_vm12, %v12354_v52  ;;  %v13086_v19 = vunpack.i.h.bf16 %v16182_v59  ;;  %v3477_v59 = vsel %vm20221_vm13, %v13090_v16, %v13091_v14 }
 0xcc6   :  { %12358 = vmatmul.msk.f32.vlgmr.msra.gmra.mxu1 %vm1577_vm12, %v12354_v52  ;;  %3529 = vmatpush.msra.mxu0 %v3472_v42 }
 0xcc7   :  { %3552 = vmatpush.msra.mxu1 %v3473_v26  ;;  %v3475_v58 = vsel %vm20221_vm13, %v13085_v2, %v13086_v19  ;;  %v3476_v36 = vsel %vm20221_vm13, %v13086_v19, %v13090_v16  ;;  %v2147_v19 = vadd.f32 %v16148_v27, %v16072_v44  ;;  %v16311_v44 = vpop.permute.xlu1 %13118  ;;  %v3691_v16 = vsel %vm3685_vm15, %v13106_v50, %v13110_v30 }
 0xcc8   :  { %v2254_v32 = vpop.f32.mrf.mxu3  ;;  %12361 = vmatmul.msk.f32.gmra.mxu2 %vm1577_vm12, %v16218_v39  ;;  %vm20222_vm13 = vcmask 7168  }
 0xcc9   :  { %v2358_v34 = vadd.f32 %v2254_v32, %v2146_v43  ;;  %v16292_v32 = vld [vmem:[%s20093_s4 + $0x98] sm:$0xff] }
 0xcca   :  { %v16226_v28 = vpop.f32.mrf.mxu0 }
 0xccb   :  { %v16228_v23 = vpop.f32.mrf.mxu1  ;;  %v2323_v25 = vpop.f32.mrf.mxu2  ;;  %v2359_v51 = vadd.f32 %v16226_v28, %v2147_v19  ;;  %v2349_v28 = vadd.f32 %v16166_v61, %v16087_v57 }
 0xccc   :  { %v16230_v53 = vadd.f32 %v2323_v25, %v2149_v38  ;;  %v2150_v38 = vadd.f32 %v16184_v62, %v1937_v3  ;;  %v13105_v62 = vunpack.i.l.bf16 %v13104_v5  ;;  %v16354_v5 = vld [vmem:[%s20093_s4 + $0xa8] sm:$0xff] }
 0xccd   :  { %12357 = vmatmul.msk.f32.gmra.mxu0 %vm1577_vm12, %v16218_v39  ;;  %12362 = vmatmul.msk.f32.vlgmr.msra.gmra.mxu3 %vm1577_vm12, %v12354_v52 }
 0xcce   :  { %12359 = vmatmul.msk.f32.gmra.mxu1 %vm1577_vm12, %v16218_v39  ;;  %3598 = vmatpush.msra.mxu3 %v3475_v58  ;;  %v3690_v63 = vsel %vm3685_vm15, %v13105_v62, %v13106_v50  ;;  %v3689_v25 = vsel %vm3685_vm15, %v13101_v21, %v13105_v62  ;;  %v13114_v58 = vpop.permute.xlu0 %13113 }
 0xccf   :  { %v13116_v14 = vunpack.i.h.bf16 %v13114_v58 }
 0xcd0   :  { %v2343_v11 = vpop.f32.mrf.mxu3  ;;  %12368 = vmatmul.msk.f32.vlgmr.msrb.gmra.mxu2 %vm1577_vm12, %v12354_v52 }
 0xcd1   :  { %v2355_v13 = vadd.f32 %v2343_v11, %v2143_v12  ;;  %3721 = vmatpush.msrb.mxu2 %v3686_v22  ;;  %v13120_v11 = vunpack.i.l.bf16 %v16311_v44 }
 0xcd2   :  { %v16246_v56 = vpop.f32.mrf.mxu0 }
 0xcd3   :  { %v16248_v35 = vpop.f32.mrf.mxu1  ;;  %v2463_v55 = vpop.f32.mrf.mxu2  ;;  %v2561_v57 = vadd.f32 %v16246_v56, %v2349_v28  ;;  %v2356_v56 = vadd.f32 %v16186_v10, %v16104_v41 }
 0xcd4   :  { %v16250_v15 = vadd.f32 %v2463_v55, %v2351_v31  ;;  %v3902_v31 = vsel %vm20222_vm13, %v13116_v14, %v13120_v11  ;;  %v13111_v55 = vunpack.i.h.bf16 %v13109_v17 }
 0xcd5   :  { %12363 = vmatmul.msk.f32.gmra.mxu3 %vm1577_vm12, %v16218_v39  ;;  %12364 = vmatmul.msk.f32.vlgmr.msrb.gmra.mxu0 %vm1577_vm12, %v12354_v52 }
 0xcd6   :  { %12366 = vmatmul.msk.f32.vlgmr.msrb.gmra.mxu1 %vm1577_vm12, %v12354_v52  ;;  %3621 = vmatpush.msrb.mxu0 %v3476_v36  ;;  %v13115_v36 = vunpack.i.l.bf16 %v13114_v58  ;;  %v13129_v50 = vpop.permute.xlu0 %13128 }
 0xcd7   :  { %3644 = vmatpush.msrb.mxu1 %v3477_v59 }
 0xcd8   :  { %v2346_v8 = vpop.f32.mrf.mxu3  ;;  %12369 = vmatmul.msk.f32.gmra.mxu2 %vm1577_vm12, %v16218_v39 }
 0xcd9   :  { %v2362_v7 = vadd.f32 %v2346_v8, %v2150_v38 }
 0xcda   :  { %v16263_v2 = vpop.f32.mrf.mxu0 }
 0xcdb   :  { %v16270_v52 = vpop.f32.mrf.mxu1  ;;  %v2466_v47 = vpop.f32.mrf.mxu2  ;;  %v2568_v41 = vadd.f32 %v16263_v2, %v2356_v56  ;;  %v2353_v2 = vadd.f32 %v16205_v46, %v16127_v54  ;;  %v14191_v56 = vld [vmem:[#allocation2 + $0x8] sm:$0xff] }
 0xcdc   :  { %v16272_v9 = vadd.f32 %v2466_v47, %v2358_v34  ;;  %v3688_v34 = vsel %vm3685_vm15, %v13100_v48, %v13101_v21  ;;  %v3692_v48 = vsel %vm3685_vm15, %v13110_v30, %v13111_v55  ;;  %v13121_v47 = vunpack.i.h.bf16 %v16311_v44 }
 0xcdd   :  { %12365 = vmatmul.msk.f32.gmra.mxu0 %vm1577_vm12, %v16218_v39  ;;  %12372 = vmatmul.msk.f32.vlgmr.msrb.gmra.mxu3 %vm1577_vm12, %v16268_v6 }
 0xcde   :  { %12367 = vmatmul.msk.f32.gmra.mxu1 %vm1577_vm12, %v16218_v39  ;;  %3744 = vmatpush.msrb.mxu3 %v3687_v60  ;;  %v3903_v21 = vsel %vm20222_vm13, %v13120_v11, %v13121_v47 }
 0xce0   :  { %v2486_v42 = vpop.f32.mrf.mxu3  ;;  %12378 = vmatmul.msk.f32.vlgmr.msra.gmra.mxu2 %vm1577_vm12, %v16268_v6 }
 0xce1   :  { %v2564_v26 = vadd.f32 %v2486_v42, %v2352_v4  ;;  %3813 = vmatpush.msra.mxu2 %v3690_v63  ;;  %v13130_v42 = vunpack.i.l.bf16 %v13129_v50 }
 0xce2   :  { %v16287_v43 = vpop.f32.mrf.mxu0 }
 0xce3   :  { %v16294_v39 = vpop.f32.mrf.mxu1  ;;  %v2555_v0 = vpop.f32.mrf.mxu2 }
 0xce4   :  { %v16296_v37 = vadd.f32 %v2555_v0, %v2355_v13  ;;  %v16330_v13 = vld [vmem:[%s20093_s4 + $0xa0] sm:$0xff]  ;;  %v2565_v0 = vadd.f32 %v16287_v43, %v2353_v2 }
 0xce5   :  { %12373 = vmatmul.msk.f32.gmra.mxu3 %vm1577_vm12, %v16292_v32  ;;  %12374 = vmatmul.msk.f32.vlgmr.msra.gmra.mxu0 %vm1577_vm12, %v16268_v6 }
 0xce6   :  { %12376 = vmatmul.msk.f32.vlgmr.msra.gmra.mxu1 %vm1577_vm12, %v16268_v6  ;;  %3767 = vmatpush.msra.mxu0 %v3688_v34  ;;  %v13125_v34 = vunpack.i.l.bf16 %v13124_v18 }
 0xce7   :  { %3790 = vmatpush.msra.mxu1 %v3689_v25 }
 0xce8   :  { %v2489_v24 = vpop.f32.mrf.mxu3  ;;  %12379 = vmatmul.msk.f32.gmra.mxu2 %vm1577_vm12, %v16292_v32  ;;  %v3904_v43 = vsel %vm20222_vm13, %v13121_v47, %v13125_v34 }
 0xce9   :  { %v2571_v27 = vadd.f32 %v2489_v24, %v2359_v51 }
 0xcea   :  { %v16313_v1 = vpop.f32.mrf.mxu0 }
 0xceb   :  { %v16315_v12 = vpop.f32.mrf.mxu1  ;;  %v2558_v49 = vpop.f32.mrf.mxu2 }
 0xcec   :  { %v16318_v22 = vadd.f32 %v2558_v49, %v2362_v7  ;;  %v3901_v7 = vsel %vm20222_vm13, %v13115_v36, %v13116_v14  ;;  %v16413_v14 = vld [vmem:[%s20093_s4 + $0xb0] sm:$0xff] }
 0xced   :  { %12375 = vmatmul.msk.f32.gmra.mxu0 %vm1577_vm12, %v16292_v32  ;;  %12380 = vmatmul.msk.f32.vlgmr.msra.gmra.mxu3 %vm1577_vm12, %v16268_v6 }
 0xcee   :  { %12377 = vmatmul.msk.f32.gmra.mxu1 %vm1577_vm12, %v16292_v32  ;;  %3836 = vmatpush.msra.mxu3 %v3691_v16  ;;  %v2562_v16 = vadd.f32 %v16248_v35, %v16168_v33 }
 0xcf0   :  { %v2648_v61 = vpop.f32.mrf.mxu3  ;;  %12388 = vmatmul.msk.f32.vlgmr.msrb.gmra.mxu2 %vm1577_vm12, %v16330_v13 }
 0xcf1   :  { %v2792_v3 = vadd.f32 %v2648_v61, %v2561_v57  ;;  %3959 = vmatpush.msrb.mxu2 %v3902_v31  ;;  %v14190_v61 = vld [vmem:[#allocation2 + $0x18] sm:$0xff] }
 0xcf2   :  { %v16338_v29 = vpop.f32.mrf.mxu0 }
 0xcf3   :  { %v16340_v59 = vpop.f32.mrf.mxu1  ;;  %v2717_v38 = vpop.f32.mrf.mxu2  ;;  %v2793_v57 = vadd.f32 %v16338_v29, %v2562_v16  ;;  %v16435_v29 = vld [vmem:[%s20093_s4 + $0xb8] sm:$0xff] }
 0xcf4   :  { %v16342_v8 = vadd.f32 %v2717_v38, %v2564_v26  ;;  %v13126_v26 = vunpack.i.h.bf16 %v13124_v18  ;;  %v2569_v38 = vadd.f32 %v16270_v52, %v16189_v20 }
 0xcf5   :  { %12381 = vmatmul.msk.f32.gmra.mxu3 %vm1577_vm12, %v16292_v32  ;;  %12382 = vmatmul.msk.f32.vlgmr.msrb.gmra.mxu0 %vm1577_vm12, %v16268_v6 }
 0xcf6   :  { %12384 = vmatmul.msk.f32.vlgmr.msrb.gmra.mxu1 %vm1577_vm12, %v16268_v6  ;;  %3859 = vmatpush.msrb.mxu0 %v3692_v48  ;;  %v3906_v54 = vsel %vm20222_vm13, %v13126_v26, %v13130_v42  ;;  %v3905_v44 = vsel %vm20222_vm13, %v13125_v34, %v13126_v26  ;;  %v13134_v26 = vpop.permute.xlu1 %13133  ;;  %v16474_v34 = vpop.permute.xlu0 %13143 }
 0xcf7   :  { %3936 = vmatpush.msrb.mxu1 %v3901_v7  ;;  %v14192_v7 = vld [vmem:[#allocation2 + $0x10] sm:$0xff] }
 0xcf8   :  { %v2651_v10 = vpop.f32.mrf.mxu3  ;;  %12389 = vmatmul.msk.f32.gmra.mxu2 %vm1577_vm12, %v16354_v5 }
 0xcf9   :  { %v2799_v62 = vadd.f32 %v2651_v10, %v2568_v41 }
 0xcfa   :  { %v16363_v60 = vpop.f32.mrf.mxu0 }
 0xcfb   :  { %v16365_v4 = vpop.f32.mrf.mxu1  ;;  %v2720_v6 = vpop.f32.mrf.mxu2  ;;  %v2800_v48 = vadd.f32 %v16363_v60, %v2569_v38  ;;  %v12419_v38 = vld [vmem:[%s20093_s4 + $0xc8] sm:$0xff] }
 0xcfc   :  { %v16367_v63 = vadd.f32 %v2720_v6, %v2571_v27 }
 0xcfd   :  { %12383 = vmatmul.msk.f32.gmra.mxu0 %vm1577_vm12, %v16292_v32  ;;  %12390 = vmatmul.msk.f32.vlgmr.msrb.gmra.mxu3 %vm1577_vm12, %v16330_v13 }
 0xcfe   :  { %12385 = vmatmul.msk.f32.gmra.mxu1 %vm1577_vm12, %v16292_v32  ;;  %3982 = vmatpush.msrb.mxu3 %v3903_v21  ;;  %v2360_v32 = vadd.f32 %v16228_v23, %v16150_v40  ;;  %v13131_v40 = vunpack.i.h.bf16 %v13129_v50  ;;  %v2566_v50 = vadd.f32 %v16294_v39, %v16207_v45  ;;  %v2573_v21 = vadd.f32 %v16315_v12, %v16230_v53 }
 0xcff   :  { %v13136_v53 = vunpack.i.h.bf16 %v13134_v26  ;;  %v13135_v12 = vunpack.i.l.bf16 %v13134_v26 }
 0xd00   :  { %v2740_v19 = vpop.f32.mrf.mxu3  ;;  %12396 = vmatmul.msk.f32.vlgmr.msra.gmra.mxu2 %vm1577_vm12, %v16330_v13  ;;  %v2572_v27 = vadd.f32 %v16313_v1, %v2360_v32  ;;  %v3907_v1 = vsel %vm20222_vm13, %v13130_v42, %v13131_v40  ;;  %v14194_v42 = vld [vmem:[#allocation2 + $0x38] sm:$0xff]  ;;  %v2794_v40 = vadd.f32 %v16340_v59, %v16250_v15  ;;  %vm20223_vm13 = vcmask 900096  }
 0xd01   :  { %v2796_v46 = vadd.f32 %v2740_v19, %v2565_v0  ;;  %4051 = vmatpush.msra.mxu2 %v3906_v54  ;;  %v14195_v0 = vld [vmem:[#allocation2 + $0x28] sm:$0xff]  ;;  %v14196_v54 = vld [vmem:[#allocation2 + $0x30] sm:$0xff] }
 0xd02   :  { %v2763_v25 = vpop.f32.mrf.mxu0 }
 0xd03   :  { %v16382_v51 = vpop.f32.mrf.mxu1  ;;  %v2863_v17 = vpop.f32.mrf.mxu2  ;;  %v2797_v18 = vadd.f32 %v2763_v25, %v2566_v50 }
 0xd04   :  { %v16384_v24 = vadd.f32 %v2863_v17, %v2792_v3  ;;  %v13139_v17 = vpop.permute.xlu2 %13138 }
 0xd05   :  { %12391 = vmatmul.msk.f32.gmra.mxu3 %vm1577_vm12, %v16354_v5  ;;  %12392 = vmatmul.msk.f32.vlgmr.msra.gmra.mxu0 %vm1577_vm12, %v16330_v13 }
 0xd06   :  { %12394 = vmatmul.msk.f32.vlgmr.msra.gmra.mxu1 %vm1577_vm12, %v16330_v13  ;;  %4005 = vmatpush.msra.mxu0 %v3904_v43 }
 0xd07   :  { %4028 = vmatpush.msra.mxu1 %v3905_v44 }
 0xd08   :  { %v2743_v58 = vpop.f32.mrf.mxu3  ;;  %12397 = vmatmul.msk.f32.gmra.mxu2 %vm1577_vm12, %v16354_v5 }
 0xd09   :  { %v2803_v23 = vadd.f32 %v2743_v58, %v2572_v27  ;;  %v13145_v27 = vunpack.i.l.bf16 %v16474_v34 }
 0xd0a   :  { %v2766_v30 = vpop.f32.mrf.mxu0 }
 0xd0b   :  { %v16399_v49 = vpop.f32.mrf.mxu1  ;;  %v2866_v11 = vpop.f32.mrf.mxu2  ;;  %v2804_v19 = vadd.f32 %v2766_v30, %v2573_v21  ;;  %v12418_v30 = vld [vmem:[%s20093_s4 + $0xc0] sm:$0xff] }
 0xd0c   :  { %v16401_v28 = vadd.f32 %v2866_v11, %v2799_v62  ;;  %v14193_v62 = vld [vmem:[#allocation2 + $0x20] sm:$0xff]  ;;  %v13141_v11 = vunpack.i.h.bf16 %v13139_v17 }
 0xd0d   :  { %12393 = vmatmul.msk.f32.gmra.mxu0 %vm1577_vm12, %v16354_v5  ;;  %12398 = vmatmul.msk.f32.vlgmr.msra.gmra.mxu3 %vm1577_vm12, %v16330_v13 }
 0xd0e   :  { %12395 = vmatmul.msk.f32.gmra.mxu1 %vm1577_vm12, %v16354_v5  ;;  %4074 = vmatpush.msra.mxu3 %v3907_v1  ;;  %v4300_v59 = vsel %vm117_vm0, %v13141_v11, %v13145_v27 }
 0xd10   :  { %v2886_v33 = vpop.f32.mrf.mxu3  ;;  %12406 = vmatmul.msk.f32.vlgmr.msrb.gmra.mxu2 %vm1577_vm12, %v16413_v14 }
 0xd11   :  { %v3008_v35 = vadd.f32 %v2886_v33, %v2793_v57  ;;  %4166 = vmatpush.msrb.mxu2 %v14190_v61 }
 0xd12   :  { %v16420_v31 = vpop.f32.mrf.mxu0 }
 0xd13   :  { %v16422_v55 = vpop.f32.mrf.mxu1  ;;  %v2955_v3 = vpop.f32.mrf.mxu2  ;;  %v3009_v16 = vadd.f32 %v16420_v31, %v2794_v40 }
 0xd14   :  { %v16424_v36 = vadd.f32 %v2955_v3, %v2796_v46  ;;  %v2801_v3 = vadd.f32 %v16365_v4, %v16272_v9  ;;  %v13149_v4 = vpop.permute.xlu2 %13148 }
 0xd15   :  { %12399 = vmatmul.msk.f32.gmra.mxu3 %vm1577_vm12, %v16354_v5  ;;  %12400 = vmatmul.msk.f32.vlgmr.msrb.gmra.mxu0 %vm1577_vm12, %v16330_v13  ;;  %v13151_v50 = vunpack.i.h.bf16 %v13149_v4 }
 0xd16   :  { %12404 = vmatmul.msk.f32.vlgmr.msrb.gmra.mxu1 %vm1577_vm12, %v16413_v14  ;;  %4120 = vmatpush.msrb.mxu0 %v14191_v56 }
 0xd17   :  { %4143 = vmatpush.msrb.mxu1 %v14192_v7 }
 0xd18   :  { %v2889_v20 = vpop.f32.mrf.mxu3  ;;  %12407 = vmatmul.msk.f32.gmra.mxu2 %vm1577_vm12, %v16435_v29 }
 0xd19   :  { %v3015_v52 = vadd.f32 %v2889_v20, %v2800_v48 }
 0xd1a   :  { %v16442_v13 = vpop.f32.mrf.mxu0 }
 0xd1b   :  { %v16444_v41 = vpop.f32.mrf.mxu1  ;;  %v2958_v10 = vpop.f32.mrf.mxu2  ;;  %v3016_v48 = vadd.f32 %v16442_v13, %v2801_v3  ;;  %v2798_v13 = vadd.f32 %v16382_v51, %v16296_v37 }
 0xd1c   :  { %v16446_v47 = vadd.f32 %v2958_v10, %v2803_v23  ;;  %v4297_v23 = vsel %vm117_vm0, %v13135_v12, %v13136_v53 }
 0xd1d   :  { %12401 = vmatmul.msk.f32.gmra.mxu0 %vm1577_vm12, %v16354_v5  ;;  %12408 = vmatmul.msk.f32.vlgmr.msrb.gmra.mxu3 %vm1577_vm12, %v16413_v14 }
 0xd1e   :  { %12405 = vmatmul.msk.f32.gmra.mxu1 %vm1577_vm12, %v16435_v29  ;;  %4189 = vmatpush.msrb.mxu3 %v14193_v62  ;;  %v13150_v62 = vunpack.i.l.bf16 %v13149_v4 }
 0xd20   :  { %v2978_v60 = vpop.f32.mrf.mxu3  ;;  %12414 = vmatmul.msk.f32.vlgmr.msra.gmra.mxu2 %vm1577_vm12, %v16413_v14  ;;  %v4508_v21 = vsel %vm170_vm1, %v13150_v62, %v13151_v50 }
 0xd21   :  { %v3012_v6 = vadd.f32 %v2978_v60, %v2797_v18  ;;  %4258 = vmatpush.msra.mxu2 %v14194_v42 }
 0xd22   :  { %v16458_v45 = vpop.f32.mrf.mxu0 }
 0xd23   :  { %v16460_v39 = vpop.f32.mrf.mxu1  ;;  %v3101_v5 = vpop.f32.mrf.mxu2  ;;  %v3013_v42 = vadd.f32 %v16458_v45, %v2798_v13 }
 0xd24   :  { %v16462_v2 = vadd.f32 %v3101_v5, %v3008_v35 }
 0xd25   :  { %12409 = vmatmul.msk.f32.gmra.mxu3 %vm1577_vm12, %v16435_v29  ;;  %12410 = vmatmul.msk.f32.vlgmr.msra.gmra.mxu0 %vm1577_vm12, %v16413_v14 }
 0xd26   :  { %12412 = vmatmul.msk.f32.vlgmr.msra.gmra.mxu1 %vm1577_vm12, %v16413_v14  ;;  %4212 = vmatpush.msra.mxu0 %v14195_v0 }
 0xd27   :  { %4235 = vmatpush.msra.mxu1 %v14196_v54  ;;  %v2805_v54 = vadd.f32 %v16399_v49, %v16318_v22  ;;  %v16552_v49 = vld [vmem:[%s20093_s4 + $0xd0] sm:$0xff] }
 0xd28   :  { %v2981_v46 = vpop.f32.mrf.mxu3  ;;  %12415 = vmatmul.msk.f32.gmra.mxu2 %vm1577_vm12, %v16435_v29 }
 0xd29   :  { %v3019_v25 = vadd.f32 %v2981_v46, %v2804_v19  ;;  %v13154_v46 = vpop.permute.xlu0 %13153 }
 0xd2a   :  { %v16476_v32 = vpop.f32.mrf.mxu0 }
 0xd2b   :  { %v16478_v43 = vpop.f32.mrf.mxu1  ;;  %v3104_v44 = vpop.f32.mrf.mxu2 }
 0xd2c   :  { %v16481_v58 = vadd.f32 %v3104_v44, %v3015_v52 }
 0xd2d   :  { %12411 = vmatmul.msk.f32.gmra.mxu0 %vm1577_vm12, %v16435_v29  ;;  %12416 = vmatmul.msk.f32.vlgmr.msra.gmra.mxu3 %vm1577_vm12, %v16413_v14  ;;  %v13140_v14 = vunpack.i.l.bf16 %v13139_v17 }
 0xd2e   :  { %12413 = vmatmul.msk.f32.gmra.mxu1 %vm1577_vm12, %v16435_v29  ;;  %4331 = vmatpush.msra.mxu3 %v4297_v23 }
 0xd2f   :  { %v4298_v31 = vsel %vm117_vm0, %v13136_v53, %v13140_v14  ;;  %v4299_v56 = vsel %vm117_vm0, %v13140_v14, %v13141_v11  ;;  %v3020_v53 = vadd.f32 %v16476_v32, %v2805_v54  ;;  %v16574_v14 = vld [vmem:[%s20093_s4 + $0xd8] sm:$0xff] }
 0xd30   :  { %v3124_v15 = vpop.f32.mrf.mxu3  ;;  %12424 = vmatmul.msk.f32.vlgmr.msrb.gmra.mxu2 %vm1577_vm12, %v12418_v30 }
 0xd31   :  { %v3224_v1 = vadd.f32 %v3124_v15, %v3009_v16  ;;  %4400 = vmatpush.msrb.mxu2 %v4300_v59  ;;  %v13164_v4 = vpop.permute.xlu0 %13163 }
 0xd32   :  { %v16498_v57 = vpop.f32.mrf.mxu0 }
 0xd33   :  { %v16500_v33 = vpop.f32.mrf.mxu1  ;;  %v3193_v35 = vpop.f32.mrf.mxu2 }
 0xd34   :  { %v16502_v61 = vadd.f32 %v3193_v35, %v3012_v6  ;;  %v4296_v6 = vpop.permute.xlu1 %4295 }
 0xd35   :  { %12417 = vmatmul.msk.f32.gmra.mxu3 %vm1577_vm12, %v16435_v29  ;;  %12420 = vmatmul.msk.f32.vlgmr.msrb.gmra.mxu0 %vm1577_vm12, %v12418_v30  ;;  %v13146_v29 = vunpack.i.h.bf16 %v16474_v34  ;;  %v13155_v34 = vunpack.i.l.bf16 %v13154_v46 }
 0xd36   :  { %12422 = vmatmul.msk.f32.vlgmr.msrb.gmra.mxu1 %vm1577_vm12, %v12418_v30  ;;  %4354 = vmatpush.msrb.mxu0 %v4298_v31  ;;  %v3017_v31 = vadd.f32 %v16444_v41, %v16367_v63 }
 0xd37   :  { %4377 = vmatpush.msrb.mxu1 %v4299_v56  ;;  %v4301_v60 = vsel %vm117_vm0, %v13145_v27, %v13146_v29  ;;  %v4302_v45 = vsel %vm117_vm0, %v13146_v29, %v4296_v6  ;;  %v4509_v11 = vsel %vm170_vm1, %v13151_v50, %v13155_v34  ;;  %v4507_v50 = vpop.permute.xlu2 %4506 }
 0xd38   :  { %v3127_v9 = vpop.f32.mrf.mxu3  ;;  %12425 = vmatmul.msk.f32.gmra.mxu2 %vm1577_vm12, %v12419_v38 }
 0xd39   :  { %v3231_v7 = vadd.f32 %v3127_v9, %v3016_v48 }
 0xd3a   :  { %v16518_v20 = vpop.f32.mrf.mxu0 }
 0xd3b   :  { %v16520_v52 = vpop.f32.mrf.mxu1  ;;  %v3196_v10 = vpop.f32.mrf.mxu2  ;;  %v3232_v48 = vadd.f32 %v16518_v20, %v3017_v31  ;;  %v3222_v20 = vadd.f32 %v16460_v39, %v16384_v24 }
 0xd3c   :  { %v16522_v18 = vadd.f32 %v3196_v10, %v3019_v25  ;;  %v13159_v25 = vpop.permute.xlu1 %13158 }
 0xd3d   :  { %12421 = vmatmul.msk.f32.gmra.mxu0 %vm1577_vm12, %v12419_v38  ;;  %12426 = vmatmul.msk.f32.vlgmr.msrb.gmra.mxu3 %vm1577_vm12, %v12418_v30  ;;  %v13161_v40 = vunpack.i.h.bf16 %v13159_v25  ;;  %v13160_v23 = vunpack.i.l.bf16 %v13159_v25 }
 0xd3e   :  { %12423 = vmatmul.msk.f32.gmra.mxu1 %vm1577_vm12, %v12419_v38  ;;  %4423 = vmatpush.msrb.mxu3 %v4301_v60 }
 0xd3f   :  { %v4512_v59 = vsel %vm170_vm1, %v13160_v23, %v13161_v40  ;;  %v4513_v60 = vsel %vm170_vm1, %v13161_v40, %v4507_v50 }
 0xd40   :  { %v3216_v5 = vpop.f32.mrf.mxu3  ;;  %12432 = vmatmul.msk.f32.vlgmr.msra.gmra.mxu2 %vm1577_vm12, %v12418_v30 }
 0xd41   :  { %v3228_v26 = vadd.f32 %v3216_v5, %v3013_v42  ;;  %4542 = vmatpush.msra.mxu2 %v4508_v21  ;;  %v13166_v42 = vunpack.i.h.bf16 %v13164_v4 }
 0xd42   :  { %v16533_v37 = vpop.f32.mrf.mxu0 }
 0xd43   :  { %v16535_v51 = vpop.f32.mrf.mxu1  ;;  %v3339_v0 = vpop.f32.mrf.mxu2  ;;  %v3437_v24 = vadd.f32 %v16533_v37, %v3222_v20  ;;  %v3229_v37 = vadd.f32 %v16478_v43, %v16401_v28 }
 0xd44   :  { %v16537_v19 = vadd.f32 %v3339_v0, %v3224_v1  ;;  %v13156_v1 = vunpack.i.h.bf16 %v13154_v46  ;;  %v16593_v63 = vpop.permute.xlu1 %13168  ;;  %v3438_v20 = vadd.f32 %v16535_v51, %v16462_v2 }
 0xd45   :  { %12427 = vmatmul.msk.f32.gmra.mxu3 %vm1577_vm12, %v12419_v38  ;;  %12428 = vmatmul.msk.f32.vlgmr.msra.gmra.mxu0 %vm1577_vm12, %v12418_v30  ;;  %v13170_v62 = vunpack.i.l.bf16 %v16593_v63  ;;  %v13171_v43 = vunpack.i.h.bf16 %v16593_v63 }
 0xd46   :  { %12430 = vmatmul.msk.f32.vlgmr.msra.gmra.mxu1 %vm1577_vm12, %v12418_v30  ;;  %4446 = vmatpush.msra.mxu0 %v4302_v45  ;;  %v3010_v30 = vadd.f32 %v16422_v55, %v16342_v8  ;;  %v4511_v56 = vsel %vm170_vm1, %v13156_v1, %v13160_v23 }
 0xd47   :  { %4469 = vmatpush.msra.mxu1 %v4296_v6  ;;  %v16612_v6 = vld [vmem:[%s20093_s4 + $0xe0] sm:$0xff]  ;;  %v4721_v5 = vsel %vm20223_vm13, %v13166_v42, %v13170_v62 }
 0xd48   :  { %v3219_v12 = vpop.f32.mrf.mxu3  ;;  %12433 = vmatmul.msk.f32.gmra.mxu2 %vm1577_vm12, %v12419_v38  ;;  %v3225_v16 = vadd.f32 %v16498_v57, %v3010_v30  ;;  %v4718_v30 = vpop.permute.xlu0 %4717 }
 0xd49   :  { %v3235_v17 = vadd.f32 %v3219_v12, %v3020_v53  ;;  %v16635_v53 = vld [vmem:[%s20093_s4 + $0xe8] sm:$0xff] }
 0xd4a   :  { %v16547_v22 = vpop.f32.mrf.mxu0 }
 0xd4b   :  { %v16554_v44 = vpop.f32.mrf.mxu1  ;;  %v3342_v27 = vpop.f32.mrf.mxu2 }
 0xd4c   :  { %v16556_v32 = vadd.f32 %v3342_v27, %v3231_v7 }
 0xd4d   :  { %12429 = vmatmul.msk.f32.gmra.mxu0 %vm1577_vm12, %v12419_v38  ;;  %12436 = vmatmul.msk.f32.vlgmr.msra.gmra.mxu3 %vm1577_vm12, %v16552_v49 }
 0xd4e   :  { %12431 = vmatmul.msk.f32.gmra.mxu1 %vm1577_vm12, %v12419_v38  ;;  %4565 = vmatpush.msra.mxu3 %v4509_v11  ;;  %v4510_v38 = vsel %vm170_vm1, %v13155_v34, %v13156_v1  ;;  %v3444_v34 = vadd.f32 %v16547_v22, %v3229_v37  ;;  %v3226_v22 = vadd.f32 %v16500_v33, %v16424_v36 }
 0xd4f   :  { %v4722_v11 = vsel %vm20223_vm13, %v13170_v62, %v13171_v43 }
 0xd50   :  { %v3362_v15 = vpop.f32.mrf.mxu3  ;;  %12442 = vmatmul.msk.f32.vlgmr.msrb.gmra.mxu2 %vm1577_vm12, %v16552_v49 }
 0xd51   :  { %v3440_v8 = vadd.f32 %v3362_v15, %v3225_v16  ;;  %4634 = vmatpush.msrb.mxu2 %v4512_v59 }
 0xd52   :  { %v16569_v55 = vpop.f32.mrf.mxu0 }
 0xd53   :  { %v16576_v35 = vpop.f32.mrf.mxu1  ;;  %v3431_v3 = vpop.f32.mrf.mxu2  ;;  %v3441_v15 = vadd.f32 %v16569_v55, %v3226_v22 }
 0xd54   :  { %v16578_v57 = vadd.f32 %v3431_v3, %v3228_v26  ;;  %v13165_v26 = vunpack.i.l.bf16 %v13164_v4 }
 0xd55   :  { %12437 = vmatmul.msk.f32.gmra.mxu3 %vm1577_vm12, %v16574_v14  ;;  %12438 = vmatmul.msk.f32.vlgmr.msrb.gmra.mxu0 %vm1577_vm12, %v16552_v49 }
 0xd56   :  { %12440 = vmatmul.msk.f32.vlgmr.msrb.gmra.mxu1 %vm1577_vm12, %v16552_v49  ;;  %4588 = vmatpush.msrb.mxu0 %v4510_v38  ;;  %v4720_v12 = vsel %vm20223_vm13, %v13165_v26, %v13166_v42 }
 0xd57   :  { %4611 = vmatpush.msrb.mxu1 %v4511_v56 }
 0xd58   :  { %v3365_v9 = vpop.f32.mrf.mxu3  ;;  %12443 = vmatmul.msk.f32.gmra.mxu2 %vm1577_vm12, %v16574_v14 }
 0xd59   :  { %v3447_v41 = vadd.f32 %v3365_v9, %v3232_v48 }
 0xd5a   :  { %v16595_v29 = vpop.f32.mrf.mxu0 }
 0xd5b   :  { %v16597_v7 = vpop.f32.mrf.mxu1  ;;  %v3434_v10 = vpop.f32.mrf.mxu2 }
 0xd5c   :  { %v16600_v13 = vadd.f32 %v3434_v10, %v3235_v17  ;;  %v13174_v17 = vpop.permute.xlu2 %13173 }
 0xd5d   :  { %12439 = vmatmul.msk.f32.gmra.mxu0 %vm1577_vm12, %v16574_v14  ;;  %12444 = vmatmul.msk.f32.vlgmr.msrb.gmra.mxu3 %vm1577_vm12, %v16552_v49  ;;  %v13176_v16 = vunpack.i.h.bf16 %v13174_v17  ;;  %v13175_v1 = vunpack.i.l.bf16 %v13174_v17 }
 0xd5e   :  { %12441 = vmatmul.msk.f32.gmra.mxu1 %vm1577_vm12, %v16574_v14  ;;  %4657 = vmatpush.msrb.mxu3 %v4513_v60  ;;  %v13179_v60 = vpop.permute.xlu1 %13178 }
 0xd5f   :  { %v4725_v36 = vsel %vm20223_vm13, %v13176_v16, %v4718_v30  ;;  %v4723_v55 = vsel %vm20223_vm13, %v13171_v43, %v13175_v1  ;;  %v4724_v56 = vsel %vm20223_vm13, %v13175_v1, %v13176_v16  ;;  %vm4931_vm13 = vcmask 891904  }
 0xd60   :  { %v3508_v39 = vpop.f32.mrf.mxu3  ;;  %12452 = vmatmul.msk.f32.vlgmr.msra.gmra.mxu2 %vm1577_vm12, %v16612_v6 }
 0xd61   :  { %v3652_v21 = vadd.f32 %v3508_v39, %v3437_v24  ;;  %4777 = vmatpush.msra.mxu2 %v4721_v5  ;;  %v13181_v24 = vunpack.i.h.bf16 %v13179_v60  ;;  %v13180_v39 = vunpack.i.l.bf16 %v13179_v60 }
 0xd62   :  { %v16620_v0 = vpop.f32.mrf.mxu0 }
 0xd63   :  { %v16622_v54 = vpop.f32.mrf.mxu1  ;;  %v3577_v45 = vpop.f32.mrf.mxu2  ;;  %v3653_v42 = vadd.f32 %v16620_v0, %v3438_v20  ;;  %v3445_v0 = vadd.f32 %v16554_v44, %v16481_v58 }
 0xd64   :  { %v16624_v46 = vadd.f32 %v3577_v45, %v3440_v8 }
 0xd65   :  { %12445 = vmatmul.msk.f32.gmra.mxu3 %vm1577_vm12, %v16574_v14  ;;  %12446 = vmatmul.msk.f32.vlgmr.msra.gmra.mxu0 %vm1577_vm12, %v16552_v49 }
 0xd66   :  { %12448 = vmatmul.msk.f32.vlgmr.msra.gmra.mxu1 %vm1577_vm12, %v16552_v49  ;;  %4680 = vmatpush.msra.mxu0 %v4507_v50  ;;  %v4930_v16 = vpop.permute.xlu1 %4929 }
 0xd67   :  { %4754 = vmatpush.msra.mxu1 %v4720_v12  ;;  %v4932_v12 = vsel %vm4931_vm13, %v13180_v39, %v13181_v24 }
 0xd68   :  { %v3511_v28 = vpop.f32.mrf.mxu3  ;;  %12453 = vmatmul.msk.f32.gmra.mxu2 %vm1577_vm12, %v16635_v53 }
 0xd69   :  { %v3659_v25 = vadd.f32 %v3511_v28, %v3444_v34  ;;  %v16721_v34 = vld [vmem:[%s20093_s4 + $0xf8] sm:$0xff]  ;;  %v13189_v28 = vpop.permute.xlu0 %13188 }
 0xd6a   :  { %v16644_v27 = vpop.f32.mrf.mxu0 }
 0xd6b   :  { %v16646_v40 = vpop.f32.mrf.mxu1  ;;  %v3580_v23 = vpop.f32.mrf.mxu2  ;;  %v3660_v44 = vadd.f32 %v16644_v27, %v3445_v0 }
 0xd6c   :  { %v16648_v49 = vadd.f32 %v3580_v23, %v3447_v41 }
 0xd6d   :  { %12447 = vmatmul.msk.f32.gmra.mxu0 %vm1577_vm12, %v16574_v14  ;;  %12454 = vmatmul.msk.f32.vlgmr.msra.gmra.mxu3 %vm1577_vm12, %v16612_v6 }
 0xd6e   :  { %12449 = vmatmul.msk.f32.gmra.mxu1 %vm1577_vm12, %v16574_v14  ;;  %4800 = vmatpush.msra.mxu3 %v4722_v11  ;;  %v3233_v14 = vadd.f32 %v16520_v52, %v16446_v47  ;;  %v13184_v47 = vpop.permute.xlu2 %13183  ;;  %v3442_v11 = vadd.f32 %v16576_v35, %v16502_v61  ;;  %v13191_v61 = vunpack.i.h.bf16 %v13189_v28 }
 0xd6f   :  { %v13186_v10 = vunpack.i.h.bf16 %v13184_v47  ;;  %v13185_v50 = vunpack.i.l.bf16 %v13184_v47 }
 0xd70   :  { %v3600_v59 = vpop.f32.mrf.mxu3  ;;  %12460 = vmatmul.msk.f32.vlgmr.msrb.gmra.mxu2 %vm1577_vm12, %v16612_v6  ;;  %v3448_v48 = vadd.f32 %v16595_v29, %v3233_v14  ;;  %v16697_v29 = vld [vmem:[%s20093_s4 + $0xf0] sm:$0xff] }
 0xd71   :  { %v3656_v33 = vadd.f32 %v3600_v59, %v3441_v15  ;;  %4869 = vmatpush.msrb.mxu2 %v4725_v36  ;;  %v4934_v51 = vsel %vm4931_vm13, %v13185_v50, %v13186_v10  ;;  %v4933_v58 = vsel %vm4931_vm13, %v13181_v24, %v13185_v50 }
 0xd72   :  { %v16663_v8 = vpop.f32.mrf.mxu0 }
 0xd73   :  { %v16665_v3 = vpop.f32.mrf.mxu1  ;;  %v3723_v31 = vpop.f32.mrf.mxu2  ;;  %v3657_v15 = vadd.f32 %v16663_v8, %v3442_v11 }
 0xd74   :  { %v16667_v38 = vadd.f32 %v3723_v31, %v3652_v21  ;;  %v3449_v31 = vadd.f32 %v16597_v7, %v16522_v18 }
 0xd75   :  { %12455 = vmatmul.msk.f32.gmra.mxu3 %vm1577_vm12, %v16635_v53  ;;  %12456 = vmatmul.msk.f32.vlgmr.msrb.gmra.mxu0 %vm1577_vm12, %v16612_v6 }
 0xd76   :  { %12458 = vmatmul.msk.f32.vlgmr.msrb.gmra.mxu1 %vm1577_vm12, %v16612_v6  ;;  %4823 = vmatpush.msrb.mxu0 %v4723_v55  ;;  %v13194_v14 = vpop.permute.xlu2 %13193  ;;  %v4937_v55 = vsel %vm4931_vm13, %v13191_v61, %v4930_v16 }
 0xd77   :  { %4846 = vmatpush.msrb.mxu1 %v4724_v56  ;;  %v13196_v18 = vunpack.i.h.bf16 %v13194_v14  ;;  %v13195_v7 = vunpack.i.l.bf16 %v13194_v14 }
 0xd78   :  { %v3603_v9 = vpop.f32.mrf.mxu3  ;;  %12461 = vmatmul.msk.f32.gmra.mxu2 %vm1577_vm12, %v16635_v53 }
 0xd79   :  { %v3663_v52 = vadd.f32 %v3603_v9, %v3448_v48  ;;  %v16766_v9 = vpop.permute.xlu1 %13203 }
 0xd7a   :  { %v16682_v63 = vpop.f32.mrf.mxu0  ;;  %v13205_v20 = vunpack.i.l.bf16 %v16766_v9 }
 0xd7b   :  { %v16684_v41 = vpop.f32.mrf.mxu1  ;;  %v3726_v4 = vpop.f32.mrf.mxu2  ;;  %v3664_v56 = vadd.f32 %v16682_v63, %v3449_v31  ;;  %v3654_v63 = vadd.f32 %v16622_v54, %v16537_v19 }
 0xd7c   :  { %v16686_v62 = vadd.f32 %v3726_v4, %v3659_v25 }
 0xd7d   :  { %12457 = vmatmul.msk.f32.gmra.mxu0 %vm1577_vm12, %v16635_v53  ;;  %12462 = vmatmul.msk.f32.vlgmr.msrb.gmra.mxu3 %vm1577_vm12, %v16612_v6 }
 0xd7e   :  { %12459 = vmatmul.msk.f32.gmra.mxu1 %vm1577_vm12, %v16635_v53  ;;  %4892 = vmatpush.msrb.mxu3 %v4718_v30 }
 0xd80   :  { %v3746_v2 = vpop.f32.mrf.mxu3  ;;  %12470 = vmatmul.msk.f32.vlgmr.msra.gmra.mxu2 %vm1577_vm12, %v16697_v29 }
 0xd81   :  { %v3868_v5 = vadd.f32 %v3746_v2, %v3653_v42  ;;  %5012 = vmatpush.msra.mxu2 %v4934_v51  ;;  %v5143_v42 = vsel %vm351_vm4, %v13195_v7, %v13196_v18  ;;  %v12482_v2 = vld [vmem:[%s20093_s4 + $0x100] sm:$0xff] }
 0xd82   :  { %v16705_v21 = vpop.f32.mrf.mxu0 }
 0xd83   :  { %v16707_v26 = vpop.f32.mrf.mxu1  ;;  %v3815_v45 = vpop.f32.mrf.mxu2  ;;  %v3869_v24 = vadd.f32 %v16705_v21, %v3654_v63 }
 0xd84   :  { %v16709_v37 = vadd.f32 %v3815_v45, %v3656_v33 }
 0xd85   :  { %12463 = vmatmul.msk.f32.gmra.mxu3 %vm1577_vm12, %v16635_v53  ;;  %12464 = vmatmul.msk.f32.vlgmr.msra.gmra.mxu0 %vm1577_vm12, %v16612_v6  ;;  %v13190_v6 = vunpack.i.l.bf16 %v13189_v28  ;;  %v3661_v28 = vadd.f32 %v16646_v40, %v16556_v32  ;;  %v13206_v40 = vunpack.i.h.bf16 %v16766_v9 }
 0xd86   :  { %12468 = vmatmul.msk.f32.vlgmr.msra.gmra.mxu1 %vm1577_vm12, %v16697_v29  ;;  %4966 = vmatpush.msra.mxu0 %v4932_v12 }
 0xd87   :  { %4989 = vmatpush.msra.mxu1 %v4933_v58  ;;  %v4935_v27 = vsel %vm4931_vm13, %v13186_v10, %v13190_v6  ;;  %v4936_v8 = vsel %vm4931_vm13, %v13190_v6, %v13191_v61  ;;  %v12483_v58 = vld [vmem:[%s20093_s4 + $0x108] sm:$0xff]  ;;  %v5142_v61 = vpop.permute.xlu2 %5141 }
 0xd88   :  { %v3749_v43 = vpop.f32.mrf.mxu3  ;;  %12471 = vmatmul.msk.f32.gmra.mxu2 %vm1577_vm12, %v16721_v34 }
 0xd89   :  { %v3875_v25 = vadd.f32 %v3749_v43, %v3660_v44 }
 0xd8a   :  { %v16729_v17 = vpop.f32.mrf.mxu0 }
 0xd8b   :  { %v16731_v23 = vpop.f32.mrf.mxu1  ;;  %v3818_v30 = vpop.f32.mrf.mxu2  ;;  %v3876_v43 = vadd.f32 %v16729_v17, %v3661_v28  ;;  %v3658_v17 = vadd.f32 %v16665_v3, %v16578_v57 }
 0xd8c   :  { %v16733_v22 = vadd.f32 %v3818_v30, %v3663_v52  ;;  %v13199_v52 = vpop.permute.xlu0 %13198 }
 0xd8d   :  { %12465 = vmatmul.msk.f32.gmra.mxu0 %vm1577_vm12, %v16635_v53  ;;  %12472 = vmatmul.msk.f32.vlgmr.msra.gmra.mxu3 %vm1577_vm12, %v16697_v29  ;;  %v13201_v51 = vunpack.i.h.bf16 %v13199_v52  ;;  %v13200_v39 = vunpack.i.l.bf16 %v13199_v52 }
 0xd8e   :  { %12469 = vmatmul.msk.f32.gmra.mxu1 %vm1577_vm12, %v16721_v34  ;;  %5035 = vmatpush.msra.mxu3 %v4935_v27 }
 0xd8f   :  { %v5146_v54 = vsel %vm351_vm4, %v13201_v51, %v13205_v20  ;;  %v5144_v21 = vsel %vm351_vm4, %v13196_v18, %v13200_v39  ;;  %v5145_v44 = vsel %vm351_vm4, %v13200_v39, %v13201_v51  ;;  %v13219_v9 = vpop.permute.xlu2 %13218 }
 0xd90   :  { %v3838_v59 = vpop.f32.mrf.mxu3  ;;  %12478 = vmatmul.msk.f32.vlgmr.msrb.gmra.mxu2 %vm1577_vm12, %v16697_v29  ;;  %v13221_v63 = vunpack.i.h.bf16 %v13219_v9 }
 0xd91   :  { %v3872_v35 = vadd.f32 %v3838_v59, %v3657_v15  ;;  %5104 = vmatpush.msrb.mxu2 %v4930_v16  ;;  %v5147_v59 = vsel %vm351_vm4, %v13205_v20, %v13206_v40 }
 0xd92   :  { %v16747_v53 = vpop.f32.mrf.mxu0 }
 0xd93   :  { %v16749_v36 = vpop.f32.mrf.mxu1  ;;  %v3961_v33 = vpop.f32.mrf.mxu2 }
 0xd94   :  { %v16751_v1 = vadd.f32 %v3961_v33, %v3868_v5 }
 0xd95   :  { %12473 = vmatmul.msk.f32.gmra.mxu3 %vm1577_vm12, %v16721_v34  ;;  %12474 = vmatmul.msk.f32.vlgmr.msrb.gmra.mxu0 %vm1577_vm12, %v16697_v29 }
 0xd96   :  { %12476 = vmatmul.msk.f32.vlgmr.msrb.gmra.mxu1 %vm1577_vm12, %v16697_v29  ;;  %5058 = vmatpush.msrb.mxu0 %v4936_v8 }
 0xd97   :  { %5081 = vmatpush.msrb.mxu1 %v4937_v55 }
 0xd98   :  { %v3841_v48 = vpop.f32.mrf.mxu3  ;;  %12479 = vmatmul.msk.f32.gmra.mxu2 %vm1577_vm12, %v16721_v34 }
 0xd99   :  { %v3879_v47 = vadd.f32 %v3841_v48, %v3664_v56  ;;  %v3665_v56 = vadd.f32 %v16684_v41, %v16600_v13  ;;  %v13214_v48 = vpop.permute.xlu1 %13213  ;;  %v16844_v41 = vld [vmem:[%s20093_s4 + $0x110] sm:$0xff] }
 0xd9a   :  { %v16768_v4 = vpop.f32.mrf.mxu0  ;;  %v13216_v39 = vunpack.i.h.bf16 %v13214_v48 }
 0xd9b   :  { %v16770_v10 = vpop.f32.mrf.mxu1  ;;  %v3964_v50 = vpop.f32.mrf.mxu2  ;;  %v3880_v18 = vadd.f32 %v16768_v4, %v3665_v56 }
 0xd9c   :  { %v16773_v60 = vadd.f32 %v3964_v50, %v3875_v25 }
 0xd9d   :  { %12475 = vmatmul.msk.f32.gmra.mxu0 %vm1577_vm12, %v16721_v34  ;;  %12480 = vmatmul.msk.f32.vlgmr.msrb.gmra.mxu3 %vm1577_vm12, %v16697_v29 }
 0xd9e   :  { %12477 = vmatmul.msk.f32.gmra.mxu1 %vm1577_vm12, %v16721_v34  ;;  %5177 = vmatpush.msrb.mxu3 %v5143_v42  ;;  %v13220_v42 = vunpack.i.l.bf16 %v13219_v9 }
 0xda0   :  { %v3984_v19 = vpop.f32.mrf.mxu3  ;;  %12488 = vmatmul.msk.f32.vlgmr.msra.gmra.mxu2 %vm1577_vm12, %v12482_v2 }
 0xda1   :  { %v4084_v29 = vadd.f32 %v3984_v19, %v3869_v24  ;;  %5246 = vmatpush.msra.mxu2 %v5146_v54  ;;  %v5358_v54 = vsel %vm409_vm5, %v13220_v42, %v13221_v63 }
 0xda2   :  { %v16790_v5 = vpop.f32.mrf.mxu0 }
 0xda3   :  { %v16792_v45 = vpop.f32.mrf.mxu1  ;;  %v4053_v0 = vpop.f32.mrf.mxu2 }
 0xda4   :  { %v16794_v12 = vadd.f32 %v4053_v0, %v3872_v35  ;;  %v3873_v35 = vadd.f32 %v16747_v53, %v3658_v17  ;;  %v5148_v53 = vsel %vm351_vm4, %v13206_v40, %v5142_v61 }
 0xda5   :  { %12481 = vmatmul.msk.f32.gmra.mxu3 %vm1577_vm12, %v16721_v34  ;;  %12484 = vmatmul.msk.f32.vlgmr.msra.gmra.mxu0 %vm1577_vm12, %v12482_v2  ;;  %v13209_v34 = vpop.permute.xlu0 %13208 }
 0xda6   :  { %12486 = vmatmul.msk.f32.vlgmr.msra.gmra.mxu1 %vm1577_vm12, %v12482_v2  ;;  %5200 = vmatpush.msra.mxu0 %v5144_v21  ;;  %v13211_v27 = vunpack.i.h.bf16 %v13209_v34  ;;  %v13210_v16 = vunpack.i.l.bf16 %v13209_v34  ;;  %v3877_v21 = vadd.f32 %v16731_v23, %v16648_v49  ;;  %v16885_v49 = vpop.permute.xlu2 %13228  ;;  %v13224_v23 = vpop.permute.xlu1 %13223 }
 0xda7   :  { %5223 = vmatpush.msra.mxu1 %v5145_v44  ;;  %v5357_v44 = vsel %vm409_vm5, %v13216_v39, %v13220_v42 }
 0xda8   :  { %v3987_v32 = vpop.f32.mrf.mxu3  ;;  %12489 = vmatmul.msk.f32.gmra.mxu2 %vm1577_vm12, %v12483_v58  ;;  %v5354_v31 = vsel %vm409_vm5, %v13210_v16, %v13211_v27  ;;  %v13226_v16 = vunpack.i.h.bf16 %v13224_v23 }
 0xda9   :  { %v4091_v6 = vadd.f32 %v3987_v32, %v3876_v43 }
 0xdaa   :  { %v16810_v25 = vpop.f32.mrf.mxu0 }
 0xdab   :  { %v16812_v30 = vpop.f32.mrf.mxu1  ;;  %v4056_v11 = vpop.f32.mrf.mxu2  ;;  %v4092_v43 = vadd.f32 %v16810_v25, %v3877_v21  ;;  %v4082_v25 = vadd.f32 %v16749_v36, %v16667_v38 }
 0xdac   :  { %v16814_v15 = vadd.f32 %v4056_v11, %v3879_v47  ;;  %v13215_v47 = vunpack.i.l.bf16 %v13214_v48 }
 0xdad   :  { %12485 = vmatmul.msk.f32.gmra.mxu0 %vm1577_vm12, %v12483_v58  ;;  %12490 = vmatmul.msk.f32.vlgmr.msra.gmra.mxu3 %vm1577_vm12, %v12482_v2  ;;  %v5353_v34 = vpop.permute.xlu0 %5352 }
 0xdae   :  { %12487 = vmatmul.msk.f32.gmra.mxu1 %vm1577_vm12, %v12483_v58  ;;  %5269 = vmatpush.msra.mxu3 %v5147_v59  ;;  %v5355_v51 = vsel %vm409_vm5, %v13211_v27, %v13215_v47  ;;  %v5359_v59 = vsel %vm409_vm5, %v13221_v63, %v5353_v34 }
 0xdb0   :  { %v4076_v33 = vpop.f32.mrf.mxu3  ;;  %12496 = vmatmul.msk.f32.vlgmr.msrb.gmra.mxu2 %vm1577_vm12, %v12482_v2 }
 0xdb1   :  { %v4088_v8 = vadd.f32 %v4076_v33, %v3873_v35  ;;  %5388 = vmatpush.msrb.mxu2 %v5354_v31  ;;  %v13230_v35 = vunpack.i.l.bf16 %v16885_v49 }
 0xdb2   :  { %v16825_v57 = vpop.f32.mrf.mxu0 }
 0xdb3   :  { %v16827_v3 = vpop.f32.mrf.mxu1  ;;  %v4168_v14 = vpop.f32.mrf.mxu2  ;;  %v4266_v38 = vadd.f32 %v16825_v57, %v4082_v25  ;;  %v5566_v33 = vsel %vm20224_vm6, %v13226_v16, %v13230_v35  ;;  %v16927_v57 = vld [vmem:[%s20093_s4 + $0x128] sm:$0xff] }
 0xdb4   :  { %v16829_v55 = vadd.f32 %v4168_v14, %v4084_v29  ;;  %v16866_v29 = vld [vmem:[%s20093_s4 + $0x118] sm:$0xff]  ;;  %v4267_v25 = vadd.f32 %v16827_v3, %v16751_v1 }
 0xdb5   :  { %12491 = vmatmul.msk.f32.gmra.mxu3 %vm1577_vm12, %v12483_v58  ;;  %12492 = vmatmul.msk.f32.vlgmr.msrb.gmra.mxu0 %vm1577_vm12, %v12482_v2 }
 0xdb6   :  { %12494 = vmatmul.msk.f32.vlgmr.msrb.gmra.mxu1 %vm1577_vm12, %v12482_v2  ;;  %5292 = vmatpush.msrb.mxu0 %v5148_v53  ;;  %v3870_v2 = vadd.f32 %v16707_v26, %v16624_v46 }
 0xdb7   :  { %5315 = vmatpush.msrb.mxu1 %v5142_v61  ;;  %v16903_v61 = vld [vmem:[%s20093_s4 + $0x120] sm:$0xff] }
 0xdb8   :  { %v4079_v7 = vpop.f32.mrf.mxu3  ;;  %12497 = vmatmul.msk.f32.gmra.mxu2 %vm1577_vm12, %v12483_v58  ;;  %v4085_v24 = vadd.f32 %v16790_v5, %v3870_v2  ;;  %v5564_v2 = vpop.permute.xlu1 %5563 }
 0xdb9   :  { %v4095_v52 = vadd.f32 %v4079_v7, %v3880_v18  ;;  %v4089_v18 = vadd.f32 %v16770_v10, %v16686_v62  ;;  %v13231_v10 = vunpack.i.h.bf16 %v16885_v49 }
 0xdba   :  { %v16839_v13 = vpop.f32.mrf.mxu0 }
 0xdbb   :  { %v16846_v50 = vpop.f32.mrf.mxu1  ;;  %v4171_v20 = vpop.f32.mrf.mxu2  ;;  %v4273_v9 = vadd.f32 %v16839_v13, %v4089_v18  ;;  %v4086_v13 = vadd.f32 %v16792_v45, %v16709_v37 }
 0xdbc   :  { %v16848_v4 = vadd.f32 %v4171_v20, %v4091_v6 }
 0xdbd   :  { %12493 = vmatmul.msk.f32.gmra.mxu0 %vm1577_vm12, %v12483_v58  ;;  %12500 = vmatmul.msk.f32.vlgmr.msrb.gmra.mxu3 %vm1577_vm12, %v16844_v41 }
 0xdbe   :  { %12495 = vmatmul.msk.f32.gmra.mxu1 %vm1577_vm12, %v12483_v58  ;;  %5411 = vmatpush.msrb.mxu3 %v5355_v51  ;;  %v5356_v58 = vsel %vm409_vm5, %v13215_v47, %v13216_v39  ;;  %v5567_v51 = vsel %vm20224_vm6, %v13230_v35, %v13231_v10 }
 0xdc0   :  { %v4191_v19 = vpop.f32.mrf.mxu3  ;;  %12506 = vmatmul.msk.f32.vlgmr.msra.gmra.mxu2 %vm1577_vm12, %v16844_v41 }
 0xdc1   :  { %v4269_v46 = vadd.f32 %v4191_v19, %v4085_v24  ;;  %5480 = vmatpush.msra.mxu2 %v5358_v54 }
 0xdc2   :  { %v16861_v26 = vpop.f32.mrf.mxu0 }
 0xdc3   :  { %v16868_v0 = vpop.f32.mrf.mxu1  ;;  %v4260_v28 = vpop.f32.mrf.mxu2  ;;  %v4270_v19 = vadd.f32 %v16861_v26, %v4086_v13 }
 0xdc4   :  { %v16870_v5 = vadd.f32 %v4260_v28, %v4088_v8  ;;  %v13225_v8 = vunpack.i.l.bf16 %v13224_v23 }
 0xdc5   :  { %12501 = vmatmul.msk.f32.gmra.mxu3 %vm1577_vm12, %v16866_v29  ;;  %12502 = vmatmul.msk.f32.vlgmr.msra.gmra.mxu0 %vm1577_vm12, %v16844_v41 }
 0xdc6   :  { %12504 = vmatmul.msk.f32.vlgmr.msra.gmra.mxu1 %vm1577_vm12, %v16844_v41  ;;  %5434 = vmatpush.msra.mxu0 %v5356_v58  ;;  %v5565_v7 = vsel %vm20224_vm6, %v13225_v8, %v13226_v16 }
 0xdc7   :  { %5457 = vmatpush.msra.mxu1 %v5357_v44 }
 0xdc8   :  { %v4194_v32 = vpop.f32.mrf.mxu3  ;;  %12507 = vmatmul.msk.f32.gmra.mxu2 %vm1577_vm12, %v16866_v29 }
 0xdc9   :  { %v4276_v40 = vadd.f32 %v4194_v32, %v4092_v43 }
 0xdca   :  { %v16887_v6 = vpop.f32.mrf.mxu0 }
 0xdcb   :  { %v16889_v11 = vpop.f32.mrf.mxu1  ;;  %v4263_v27 = vpop.f32.mrf.mxu2 }
 0xdcc   :  { %v16891_v17 = vadd.f32 %v4263_v27, %v4095_v52  ;;  %v13234_v52 = vpop.permute.xlu0 %13233 }
 0xdcd   :  { %12503 = vmatmul.msk.f32.gmra.mxu0 %vm1577_vm12, %v16866_v29  ;;  %12508 = vmatmul.msk.f32.vlgmr.msra.gmra.mxu3 %vm1577_vm12, %v16844_v41  ;;  %v13236_v24 = vunpack.i.h.bf16 %v13234_v52  ;;  %v13235_v45 = vunpack.i.l.bf16 %v13234_v52 }
 0xdce   :  { %12505 = vmatmul.msk.f32.gmra.mxu1 %vm1577_vm12, %v16866_v29  ;;  %5503 = vmatpush.msra.mxu3 %v5359_v59  ;;  %v13239_v59 = vpop.permute.xlu2 %13238 }
 0xdcf   :  { %v5570_v37 = vsel %vm20224_vm6, %v13236_v24, %v5564_v2  ;;  %v5568_v26 = vsel %vm20224_vm6, %v13231_v10, %v13235_v45  ;;  %v5569_v44 = vsel %vm20224_vm6, %v13235_v45, %v13236_v24  ;;  %vm20225_vm6 = vcmask 736256  }
 0xdd0   :  { %v4333_v36 = vpop.f32.mrf.mxu3  ;;  %12516 = vmatmul.msk.f32.vlgmr.msrb.gmra.mxu2 %vm1577_vm12, %v16903_v61 }
 0xdd1   :  { %v4477_v31 = vadd.f32 %v4333_v36, %v4266_v38  ;;  %5622 = vmatpush.msrb.mxu2 %v5566_v33  ;;  %v13241_v38 = vunpack.i.h.bf16 %v13239_v59  ;;  %v13240_v36 = vunpack.i.l.bf16 %v13239_v59 }
 0xdd2   :  { %v16912_v14 = vpop.f32.mrf.mxu0 }
 0xdd3   :  { %v16914_v56 = vpop.f32.mrf.mxu1  ;;  %v4402_v53 = vpop.f32.mrf.mxu2  ;;  %v4478_v35 = vadd.f32 %v16912_v14, %v4267_v25  ;;  %v4274_v14 = vadd.f32 %v16846_v50, %v16773_v60 }
 0xdd4   :  { %v16916_v48 = vadd.f32 %v4402_v53, %v4269_v46 }
 0xdd5   :  { %12509 = vmatmul.msk.f32.gmra.mxu3 %vm1577_vm12, %v16866_v29  ;;  %12510 = vmatmul.msk.f32.vlgmr.msrb.gmra.mxu0 %vm1577_vm12, %v16844_v41 }
 0xdd6   :  { %12512 = vmatmul.msk.f32.vlgmr.msrb.gmra.mxu1 %vm1577_vm12, %v16844_v41  ;;  %5526 = vmatpush.msrb.mxu0 %v5353_v34 }
 0xdd7   :  { %5599 = vmatpush.msrb.mxu1 %v5565_v7  ;;  %v5777_v7 = vsel %vm20225_vm6, %v13240_v36, %v13241_v38 }
 0xdd8   :  { %v4336_v62 = vpop.f32.mrf.mxu3  ;;  %12517 = vmatmul.msk.f32.gmra.mxu2 %vm1577_vm12, %v16927_v57 }
 0xdd9   :  { %v4484_v47 = vadd.f32 %v4336_v62, %v4273_v9  ;;  %v17013_v9 = vld [vmem:[%s20093_s4 + $0x138] sm:$0xff]  ;;  %v13249_v62 = vpop.permute.xlu1 %13248 }
 0xdda   :  { %v16936_v20 = vpop.f32.mrf.mxu0 }
 0xddb   :  { %v16938_v63 = vpop.f32.mrf.mxu1  ;;  %v4405_v42 = vpop.f32.mrf.mxu2  ;;  %v4485_v50 = vadd.f32 %v16936_v20, %v4274_v14 }
 0xddc   :  { %v16940_v41 = vadd.f32 %v4405_v42, %v4276_v40 }
 0xddd   :  { %12511 = vmatmul.msk.f32.gmra.mxu0 %vm1577_vm12, %v16866_v29  ;;  %12518 = vmatmul.msk.f32.vlgmr.msrb.gmra.mxu3 %vm1577_vm12, %v16903_v61 }
 0xdde   :  { %12513 = vmatmul.msk.f32.gmra.mxu1 %vm1577_vm12, %v16866_v29  ;;  %5645 = vmatpush.msrb.mxu3 %v5567_v51  ;;  %v4093_v29 = vadd.f32 %v16812_v30, %v16733_v22  ;;  %v13244_v22 = vpop.permute.xlu0 %13243  ;;  %v4271_v51 = vadd.f32 %v16868_v0, %v16794_v12  ;;  %v13251_v12 = vunpack.i.h.bf16 %v13249_v62 }
 0xddf   :  { %v13246_v34 = vunpack.i.h.bf16 %v13244_v22  ;;  %v13245_v27 = vunpack.i.l.bf16 %v13244_v22 }
 0xde0   :  { %v4425_v54 = vpop.f32.mrf.mxu3  ;;  %12524 = vmatmul.msk.f32.vlgmr.msra.gmra.mxu2 %vm1577_vm12, %v16903_v61  ;;  %v4277_v43 = vadd.f32 %v16887_v6, %v4093_v29  ;;  %v16989_v6 = vld [vmem:[%s20093_s4 + $0x130] sm:$0xff] }
 0xde1   :  { %v4481_v39 = vadd.f32 %v4425_v54, %v4270_v19  ;;  %5714 = vmatpush.msra.mxu2 %v5570_v37  ;;  %v5779_v3 = vsel %vm20225_vm6, %v13245_v27, %v13246_v34  ;;  %v5778_v60 = vsel %vm20225_vm6, %v13241_v38, %v13245_v27  ;;  %v5775_v19 = vpop.permute.xlu2 %5774 }
 0xde2   :  { %v16955_v46 = vpop.f32.mrf.mxu0 }
 0xde3   :  { %v16957_v28 = vpop.f32.mrf.mxu1  ;;  %v4544_v21 = vpop.f32.mrf.mxu2  ;;  %v4482_v24 = vadd.f32 %v16955_v46, %v4271_v51 }
 0xde4   :  { %v16959_v58 = vadd.f32 %v4544_v21, %v4477_v31  ;;  %v4278_v21 = vadd.f32 %v16889_v11, %v16814_v15 }
 0xde5   :  { %12519 = vmatmul.msk.f32.gmra.mxu3 %vm1577_vm12, %v16927_v57  ;;  %12520 = vmatmul.msk.f32.vlgmr.msra.gmra.mxu0 %vm1577_vm12, %v16903_v61 }
 0xde6   :  { %12522 = vmatmul.msk.f32.vlgmr.msra.gmra.mxu1 %vm1577_vm12, %v16903_v61  ;;  %5668 = vmatpush.msra.mxu0 %v5568_v26  ;;  %v13254_v29 = vpop.permute.xlu0 %13253  ;;  %v5782_v26 = vsel %vm20225_vm6, %v13251_v12, %v5775_v19 }
 0xde7   :  { %5691 = vmatpush.msra.mxu1 %v5569_v44  ;;  %v13256_v15 = vunpack.i.h.bf16 %v13254_v29  ;;  %v13255_v11 = vunpack.i.l.bf16 %v13254_v29 }
 0xde8   :  { %v4428_v32 = vpop.f32.mrf.mxu3  ;;  %12525 = vmatmul.msk.f32.gmra.mxu2 %vm1577_vm12, %v16927_v57 }
 0xde9   :  { %v4488_v30 = vadd.f32 %v4428_v32, %v4277_v43  ;;  %v13259_v32 = vpop.permute.xlu1 %13258 }
 0xdea   :  { %v16974_v49 = vpop.f32.mrf.mxu0  ;;  %v13261_v25 = vunpack.i.h.bf16 %v13259_v32 }
 0xdeb   :  { %v16976_v23 = vpop.f32.mrf.mxu1  ;;  %v4547_v40 = vpop.f32.mrf.mxu2  ;;  %v4489_v44 = vadd.f32 %v16974_v49, %v4278_v21  ;;  %v4479_v49 = vadd.f32 %v16914_v56, %v16829_v55 }
 0xdec   :  { %v16978_v16 = vadd.f32 %v4547_v40, %v4484_v47 }
 0xded   :  { %12521 = vmatmul.msk.f32.gmra.mxu0 %vm1577_vm12, %v16927_v57  ;;  %12526 = vmatmul.msk.f32.vlgmr.msra.gmra.mxu3 %vm1577_vm12, %v16903_v61 }
 0xdee   :  { %12523 = vmatmul.msk.f32.gmra.mxu1 %vm1577_vm12, %v16927_v57  ;;  %5737 = vmatpush.msra.mxu3 %v5564_v2 }
 0xdf0   :  { %v4567_v1 = vpop.f32.mrf.mxu3  ;;  %12534 = vmatmul.msk.f32.vlgmr.msrb.gmra.mxu2 %vm1577_vm12, %v16989_v6 }
 0xdf1   :  { %v4689_v33 = vadd.f32 %v4567_v1, %v4478_v35  ;;  %5857 = vmatpush.msrb.mxu2 %v5779_v3  ;;  %v12546_v1 = vld [vmem:[%s20093_s4 + $0x140] sm:$0xff] }
 0xdf2   :  { %v16997_v31 = vpop.f32.mrf.mxu0 }
 0xdf3   :  { %v16999_v8 = vpop.f32.mrf.mxu1  ;;  %v4636_v53 = vpop.f32.mrf.mxu2  ;;  %v4690_v55 = vadd.f32 %v16997_v31, %v4479_v49 }
 0xdf4   :  { %v17001_v18 = vadd.f32 %v4636_v53, %v4481_v39 }
 0xdf5   :  { %12527 = vmatmul.msk.f32.gmra.mxu3 %vm1577_vm12, %v16927_v57  ;;  %12528 = vmatmul.msk.f32.vlgmr.msrb.gmra.mxu0 %vm1577_vm12, %v16903_v61  ;;  %v13250_v61 = vunpack.i.l.bf16 %v13249_v62  ;;  %v4486_v62 = vadd.f32 %v16938_v63, %v16848_v4 }
 0xdf6   :  { %12532 = vmatmul.msk.f32.vlgmr.msrb.gmra.mxu1 %vm1577_vm12, %v16989_v6  ;;  %5811 = vmatpush.msrb.mxu0 %v5777_v7 }
 0xdf7   :  { %5834 = vmatpush.msrb.mxu1 %v5778_v60  ;;  %v5780_v20 = vsel %vm20225_vm6, %v13246_v34, %v13250_v61  ;;  %v5781_v46 = vsel %vm20225_vm6, %v13250_v61, %v13251_v12  ;;  %vm5988_vm6 = vcmask 728064   ;;  %v12547_v60 = vld [vmem:[%s20093_s4 + $0x148] sm:$0xff]  ;;  %v5987_v12 = vpop.permute.xlu0 %5986 }
 0xdf8   :  { %v4570_v10 = vpop.f32.mrf.mxu3  ;;  %12535 = vmatmul.msk.f32.gmra.mxu2 %vm1577_vm12, %v17013_v9  ;;  %v5989_v35 = vsel %vm5988_vm6, %v13255_v11, %v13256_v15 }
 0xdf9   :  { %v4696_v47 = vadd.f32 %v4570_v10, %v4485_v50 }
 0xdfa   :  { %v17021_v52 = vpop.f32.mrf.mxu0 }
 0xdfb   :  { %v17023_v42 = vpop.f32.mrf.mxu1  ;;  %v4639_v2 = vpop.f32.mrf.mxu2  ;;  %v4697_v10 = vadd.f32 %v17021_v52, %v4486_v62  ;;  %v4483_v52 = vadd.f32 %v16957_v28, %v16870_v5 }
 0xdfc   :  { %v17025_v13 = vadd.f32 %v4639_v2, %v4488_v30  ;;  %v17058_v30 = vpop.permute.xlu2 %13263 }
 0xdfd   :  { %12529 = vmatmul.msk.f32.gmra.mxu0 %vm1577_vm12, %v16927_v57  ;;  %12536 = vmatmul.msk.f32.vlgmr.msrb.gmra.mxu3 %vm1577_vm12, %v16989_v6  ;;  %v13265_v3 = vunpack.i.l.bf16 %v17058_v30  ;;  %v13266_v63 = vunpack.i.h.bf16 %v17058_v30 }
 0xdfe   :  { %12533 = vmatmul.msk.f32.gmra.mxu1 %vm1577_vm12, %v17013_v9  ;;  %5880 = vmatpush.msrb.mxu3 %v5780_v20 }
 0xdff   :  { %v5992_v38 = vsel %vm5988_vm6, %v13261_v25, %v13265_v3 }
 0xe00   :  { %v4659_v54 = vpop.f32.mrf.mxu3  ;;  %12542 = vmatmul.msk.f32.vlgmr.msra.gmra.mxu2 %vm1577_vm12, %v16989_v6 }
 0xe01   :  { %v4693_v0 = vadd.f32 %v4659_v54, %v4482_v24  ;;  %5949 = vmatpush.msra.mxu2 %v5775_v19  ;;  %v5993_v54 = vsel %vm5988_vm6, %v13265_v3, %v13266_v63 }
 0xe02   :  { %v17039_v57 = vpop.f32.mrf.mxu0 }
 0xe03   :  { %v17041_v37 = vpop.f32.mrf.mxu1  ;;  %v4779_v45 = vpop.f32.mrf.mxu2 }
 0xe04   :  { %v17043_v39 = vadd.f32 %v4779_v45, %v4689_v33 }
 0xe05   :  { %12537 = vmatmul.msk.f32.gmra.mxu3 %vm1577_vm12, %v17013_v9  ;;  %12538 = vmatmul.msk.f32.vlgmr.msra.gmra.mxu0 %vm1577_vm12, %v16989_v6 }
 0xe06   :  { %12540 = vmatmul.msk.f32.vlgmr.msra.gmra.mxu1 %vm1577_vm12, %v16989_v6  ;;  %5903 = vmatpush.msra.mxu0 %v5781_v46 }
 0xe07   :  { %5926 = vmatpush.msra.mxu1 %v5782_v26 }
 0xe08   :  { %v4662_v43 = vpop.f32.mrf.mxu3  ;;  %12543 = vmatmul.msk.f32.gmra.mxu2 %vm1577_vm12, %v17013_v9 }
 0xe09   :  { %v4700_v22 = vadd.f32 %v4662_v43, %v4489_v44  ;;  %v4490_v44 = vadd.f32 %v16976_v23, %v16891_v17  ;;  %v17136_v17 = vld [vmem:[%s20093_s4 + $0x150] sm:$0xff] }
 0xe0a   :  { %v17060_v40 = vpop.f32.mrf.mxu0 }
 0xe0b   :  { %v17062_v34 = vpop.f32.mrf.mxu1  ;;  %v4782_v27 = vpop.f32.mrf.mxu2  ;;  %v4701_v43 = vadd.f32 %v17060_v40, %v4490_v44 }
 0xe0c   :  { %v17064_v59 = vadd.f32 %v4782_v27, %v4696_v47 }
 0xe0d   :  { %12539 = vmatmul.msk.f32.gmra.mxu0 %vm1577_vm12, %v17013_v9  ;;  %12544 = vmatmul.msk.f32.vlgmr.msra.gmra.mxu3 %vm1577_vm12, %v16989_v6  ;;  %v13260_v6 = vunpack.i.l.bf16 %v13259_v32  ;;  %v13279_v32 = vpop.permute.xlu0 %13278 }
 0xe0e   :  { %12541 = vmatmul.msk.f32.gmra.mxu1 %vm1577_vm12, %v17013_v9  ;;  %6023 = vmatpush.msra.mxu3 %v5989_v35  ;;  %v13281_v49 = vunpack.i.h.bf16 %v13279_v32  ;;  %v13280_v40 = vunpack.i.l.bf16 %v13279_v32 }
 0xe0f   :  { %v5990_v31 = vsel %vm5988_vm6, %v13256_v15, %v13260_v6  ;;  %v5991_v50 = vsel %vm5988_vm6, %v13260_v6, %v13261_v25  ;;  %v13274_v15 = vpop.permute.xlu2 %13273 }
 0xe10   :  { %v4802_v56 = vpop.f32.mrf.mxu3  ;;  %12552 = vmatmul.msk.f32.vlgmr.msrb.gmra.mxu2 %vm1577_vm12, %v12546_v1  ;;  %v13275_v23 = vunpack.i.l.bf16 %v13274_v15  ;;  %v13276_v6 = vunpack.i.h.bf16 %v13274_v15  ;;  %v4907_v15 = vadd.f32 %v17062_v34, %v16978_v16 }
 0xe11   :  { %v4902_v36 = vadd.f32 %v4802_v56, %v4690_v55  ;;  %6092 = vmatpush.msrb.mxu2 %v5992_v38  ;;  %v6204_v38 = vsel %vm641_vm9, %v13280_v40, %v13281_v49 }
 0xe12   :  { %v17082_v33 = vpop.f32.mrf.mxu0 }
 0xe13   :  { %v17084_v53 = vpop.f32.mrf.mxu1  ;;  %v4871_v14 = vpop.f32.mrf.mxu2 }
 0xe14   :  { %v17086_v7 = vadd.f32 %v4871_v14, %v4693_v0  ;;  %v4694_v0 = vadd.f32 %v17039_v57, %v4483_v52  ;;  %v5994_v57 = vsel %vm5988_vm6, %v13266_v63, %v5987_v12 }
 0xe15   :  { %12545 = vmatmul.msk.f32.gmra.mxu3 %vm1577_vm12, %v17013_v9  ;;  %12548 = vmatmul.msk.f32.vlgmr.msrb.gmra.mxu0 %vm1577_vm12, %v12546_v1  ;;  %v13269_v9 = vpop.permute.xlu1 %13268 }
 0xe16   :  { %12550 = vmatmul.msk.f32.vlgmr.msrb.gmra.mxu1 %vm1577_vm12, %v12546_v1  ;;  %6046 = vmatpush.msrb.mxu0 %v5990_v31  ;;  %v13271_v20 = vunpack.i.h.bf16 %v13269_v9  ;;  %v13270_v24 = vunpack.i.l.bf16 %v13269_v9  ;;  %v4698_v31 = vadd.f32 %v17023_v42, %v16940_v41  ;;  %v17177_v42 = vpop.permute.xlu0 %13288 }
 0xe17   :  { %6069 = vmatpush.msrb.mxu1 %v5991_v50  ;;  %v6203_v50 = vsel %vm641_vm9, %v13276_v6, %v13280_v40  ;;  %v13284_v41 = vpop.permute.xlu2 %13283  ;;  %v13291_v34 = vunpack.i.h.bf16 %v17177_v42 }
 0xe18   :  { %v4805_v4 = vpop.f32.mrf.mxu3  ;;  %12553 = vmatmul.msk.f32.gmra.mxu2 %vm1577_vm12, %v12547_v60  ;;  %v6200_v21 = vsel %vm641_vm9, %v13270_v24, %v13271_v20  ;;  %v6201_v3 = vsel %vm641_vm9, %v13271_v20, %v13275_v23  ;;  %v13290_v24 = vunpack.i.l.bf16 %v17177_v42 }
 0xe19   :  { %v4909_v61 = vadd.f32 %v4805_v4, %v4697_v10 }
 0xe1a   :  { %v17102_v47 = vpop.f32.mrf.mxu0 }
 0xe1b   :  { %v17104_v2 = vpop.f32.mrf.mxu1  ;;  %v4874_v51 = vpop.f32.mrf.mxu2  ;;  %v4910_v10 = vadd.f32 %v17102_v47, %v4698_v31  ;;  %v4900_v47 = vadd.f32 %v17041_v37, %v16959_v58 }
 0xe1c   :  { %v17106_v19 = vadd.f32 %v4874_v51, %v4700_v22 }
 0xe1d   :  { %12549 = vmatmul.msk.f32.gmra.mxu0 %vm1577_vm12, %v12547_v60  ;;  %12554 = vmatmul.msk.f32.vlgmr.msrb.gmra.mxu3 %vm1577_vm12, %v12546_v1  ;;  %v6199_v9 = vpop.permute.xlu1 %6198 }
 0xe1e   :  { %12551 = vmatmul.msk.f32.gmra.mxu1 %vm1577_vm12, %v12547_v60  ;;  %6115 = vmatpush.msrb.mxu3 %v5993_v54  ;;  %v6205_v54 = vsel %vm641_vm9, %v13281_v49, %v6199_v9 }
 0xe20   :  { %v4894_v45 = vpop.f32.mrf.mxu3  ;;  %12560 = vmatmul.msk.f32.vlgmr.msra.gmra.mxu2 %vm1577_vm12, %v12546_v1 }
 0xe21   :  { %v4906_v46 = vadd.f32 %v4894_v45, %v4694_v0  ;;  %6234 = vmatpush.msra.mxu2 %v6200_v21  ;;  %v13286_v0 = vunpack.i.h.bf16 %v13284_v41 }
 0xe22   :  { %v17117_v5 = vpop.f32.mrf.mxu0 }
 0xe23   :  { %v17119_v28 = vpop.f32.mrf.mxu1  ;;  %v5014_v29 = vpop.f32.mrf.mxu2  ;;  %v5112_v58 = vadd.f32 %v17117_v5, %v4900_v47  ;;  %v6412_v45 = vsel %vm20274_vm10, %v13286_v0, %v13290_v24  ;;  %v17219_v5 = vld [vmem:[%s20093_s4 + $0x168] sm:$0xff] }
 0xe24   :  { %v17121_v26 = vadd.f32 %v5014_v29, %v4902_v36  ;;  %v17158_v36 = vld [vmem:[%s20093_s4 + $0x158] sm:$0xff]  ;;  %v13299_v47 = vpop.permute.xlu0 %13298 }
 0xe25   :  { %12555 = vmatmul.msk.f32.gmra.mxu3 %vm1577_vm12, %v12547_v60  ;;  %12556 = vmatmul.msk.f32.vlgmr.msra.gmra.mxu0 %vm1577_vm12, %v12546_v1 }
 0xe26   :  { %12558 = vmatmul.msk.f32.vlgmr.msra.gmra.mxu1 %vm1577_vm12, %v12546_v1  ;;  %6138 = vmatpush.msra.mxu0 %v5994_v57  ;;  %v4691_v1 = vadd.f32 %v16999_v8, %v16916_v48 }
 0xe27   :  { %6161 = vmatpush.msra.mxu1 %v5987_v12  ;;  %v17196_v12 = vld [vmem:[%s20093_s4 + $0x160] sm:$0xff] }
 0xe28   :  { %v4897_v11 = vpop.f32.mrf.mxu3  ;;  %12561 = vmatmul.msk.f32.gmra.mxu2 %vm1577_vm12, %v12547_v60  ;;  %v4903_v55 = vadd.f32 %v17082_v33, %v4691_v1 }
 0xe29   :  { %v4913_v22 = vadd.f32 %v4897_v11, %v4701_v43 }
 0xe2a   :  { %v17131_v30 = vpop.f32.mrf.mxu0 }
 0xe2b   :  { %v17138_v27 = vpop.f32.mrf.mxu1  ;;  %v5017_v25 = vpop.f32.mrf.mxu2  ;;  %v5119_v32 = vadd.f32 %v17131_v30, %v4907_v15  ;;  %v4904_v30 = vadd.f32 %v17084_v53, %v17001_v18  ;;  %v12595_v15 = vld [vmem:[%s20093_s4 + $0x178] sm:$0xff] }
 0xe2c   :  { %v17140_v35 = vadd.f32 %v5017_v25, %v4909_v61 }
 0xe2d   :  { %12557 = vmatmul.msk.f32.gmra.mxu0 %vm1577_vm12, %v12547_v60  ;;  %12564 = vmatmul.msk.f32.vlgmr.msra.gmra.mxu3 %vm1577_vm12, %v17136_v17 }
 0xe2e   :  { %12559 = vmatmul.msk.f32.gmra.mxu1 %vm1577_vm12, %v12547_v60  ;;  %6257 = vmatpush.msra.mxu3 %v6201_v3  ;;  %v6202_v60 = vsel %vm641_vm9, %v13275_v23, %v13276_v6  ;;  %v6413_v3 = vsel %vm20274_vm10, %v13290_v24, %v13291_v34 }
 0xe30   :  { %v5037_v56 = vpop.f32.mrf.mxu3  ;;  %12570 = vmatmul.msk.f32.vlgmr.msrb.gmra.mxu2 %vm1577_vm12, %v17136_v17 }
 0xe31   :  { %v5115_v48 = vadd.f32 %v5037_v56, %v4903_v55  ;;  %6326 = vmatpush.msrb.mxu2 %v6204_v38  ;;  %v6410_v55 = vpop.permute.xlu2 %6409 }
 0xe32   :  { %v17153_v8 = vpop.f32.mrf.mxu0 }
 0xe33   :  { %v17160_v14 = vpop.f32.mrf.mxu1  ;;  %v5106_v62 = vpop.f32.mrf.mxu2  ;;  %v5116_v56 = vadd.f32 %v17153_v8, %v4904_v30  ;;  %v4911_v8 = vadd.f32 %v17104_v2, %v17025_v13 }
 0xe34   :  { %v17162_v33 = vadd.f32 %v5106_v62, %v4906_v46  ;;  %v13285_v46 = vunpack.i.l.bf16 %v13284_v41 }
 0xe35   :  { %12565 = vmatmul.msk.f32.gmra.mxu3 %vm1577_vm12, %v17158_v36  ;;  %12566 = vmatmul.msk.f32.vlgmr.msrb.gmra.mxu0 %vm1577_vm12, %v17136_v17 }
 0xe36   :  { %12568 = vmatmul.msk.f32.vlgmr.msrb.gmra.mxu1 %vm1577_vm12, %v17136_v17  ;;  %6280 = vmatpush.msrb.mxu0 %v6202_v60  ;;  %v6411_v11 = vsel %vm20274_vm10, %v13285_v46, %v13286_v0 }
 0xe37   :  { %6303 = vmatpush.msrb.mxu1 %v6203_v50 }
 0xe38   :  { %v5040_v4 = vpop.f32.mrf.mxu3  ;;  %12571 = vmatmul.msk.f32.gmra.mxu2 %vm1577_vm12, %v17158_v36 }
 0xe39   :  { %v5122_v63 = vadd.f32 %v5040_v4, %v4910_v10 }
 0xe3a   :  { %v17179_v61 = vpop.f32.mrf.mxu0 }
 0xe3b   :  { %v17181_v51 = vpop.f32.mrf.mxu1  ;;  %v5109_v20 = vpop.f32.mrf.mxu2  ;;  %v5123_v10 = vadd.f32 %v17179_v61, %v4911_v8  ;;  %v12594_v61 = vld [vmem:[%s20093_s4 + $0x170] sm:$0xff] }
 0xe3c   :  { %v17184_v52 = vadd.f32 %v5109_v20, %v4913_v22  ;;  %v13294_v22 = vpop.permute.xlu1 %13293 }
 0xe3d   :  { %12567 = vmatmul.msk.f32.gmra.mxu0 %vm1577_vm12, %v17158_v36  ;;  %12572 = vmatmul.msk.f32.vlgmr.msrb.gmra.mxu3 %vm1577_vm12, %v17136_v17  ;;  %v13295_v53 = vunpack.i.l.bf16 %v13294_v22 }
 0xe3e   :  { %12569 = vmatmul.msk.f32.gmra.mxu1 %vm1577_vm12, %v17158_v36  ;;  %6349 = vmatpush.msrb.mxu3 %v6205_v54 }
 0xe3f   :  { %v6414_v60 = vsel %vm20274_vm10, %v13291_v34, %v13295_v53 }
 0xe40   :  { %v5179_v37 = vpop.f32.mrf.mxu3  ;;  %12580 = vmatmul.msk.f32.vlgmr.msra.gmra.mxu2 %vm1577_vm12, %v17196_v12 }
 0xe41   :  { %v5323_v21 = vadd.f32 %v5179_v37, %v5112_v58  ;;  %6468 = vmatpush.msra.mxu2 %v6412_v45  ;;  %v13301_v58 = vunpack.i.h.bf16 %v13299_v47  ;;  %v13300_v37 = vunpack.i.l.bf16 %v13299_v47 }
 0xe42   :  { %v17204_v29 = vpop.f32.mrf.mxu0 }
 0xe43   :  { %v17206_v44 = vpop.f32.mrf.mxu1  ;;  %v5248_v57 = vpop.f32.mrf.mxu2 }
 0xe44   :  { %v17208_v43 = vadd.f32 %v5248_v57, %v5115_v48  ;;  %v13304_v13 = vpop.permute.xlu1 %13303  ;;  %v6622_v57 = vsel %vm20270_vm11, %v13300_v37, %v13301_v58 }
 0xe45   :  { %12573 = vmatmul.msk.f32.gmra.mxu3 %vm1577_vm12, %v17158_v36  ;;  %12574 = vmatmul.msk.f32.vlgmr.msra.gmra.mxu0 %vm1577_vm12, %v17136_v17  ;;  %v13305_v20 = vunpack.i.l.bf16 %v13304_v13 }
 0xe46   :  { %12576 = vmatmul.msk.f32.vlgmr.msra.gmra.mxu1 %vm1577_vm12, %v17136_v17  ;;  %6372 = vmatpush.msra.mxu0 %v6199_v9  ;;  %v13296_v17 = vunpack.i.h.bf16 %v13294_v22  ;;  %v13306_v9 = vunpack.i.h.bf16 %v13304_v13 }
 0xe47   :  { %6445 = vmatpush.msra.mxu1 %v6411_v11  ;;  %v6623_v11 = vsel %vm20270_vm11, %v13301_v58, %v13305_v20 }
 0xe48   :  { %v5182_v16 = vpop.f32.mrf.mxu3  ;;  %12581 = vmatmul.msk.f32.gmra.mxu2 %vm1577_vm12, %v17219_v5  ;;  %v6416_v18 = vsel %vm20274_vm10, %v13296_v17, %v6410_v55  ;;  %v6415_v50 = vsel %vm20274_vm10, %v13295_v53, %v13296_v17  ;;  %v6624_v0 = vsel %vm20270_vm11, %v13305_v20, %v13306_v9  ;;  %v6621_v17 = vpop.permute.xlu0 %6620  ;;  %v12611_v20 = vld [vmem:[%s20093_s4 + $0x188] sm:$0xff] }
 0xe49   :  { %v5330_v23 = vadd.f32 %v5182_v16, %v5119_v32  ;;  %v13309_v32 = vpop.permute.xlu2 %13308 }
 0xe4a   :  { %v17228_v25 = vpop.f32.mrf.mxu0 }
 0xe4b   :  { %v17230_v49 = vpop.f32.mrf.mxu1  ;;  %v5251_v40 = vpop.f32.mrf.mxu2 }
 0xe4c   :  { %v17232_v1 = vadd.f32 %v5251_v40, %v5122_v63 }
 0xe4d   :  { %12575 = vmatmul.msk.f32.gmra.mxu0 %vm1577_vm12, %v17158_v36  ;;  %12582 = vmatmul.msk.f32.vlgmr.msra.gmra.mxu3 %vm1577_vm12, %v17196_v12 }
 0xe4e   :  { %12577 = vmatmul.msk.f32.gmra.mxu1 %vm1577_vm12, %v17158_v36  ;;  %6491 = vmatpush.msra.mxu3 %v6413_v3  ;;  %v13311_v3 = vunpack.i.h.bf16 %v13309_v32 }
 0xe50   :  { %v5271_v38 = vpop.f32.mrf.mxu3  ;;  %12588 = vmatmul.msk.f32.vlgmr.msrb.gmra.mxu2 %vm1577_vm12, %v17196_v12  ;;  %v6627_v53 = vsel %vm20270_vm11, %v13311_v3, %v6621_v17 }
 0xe51   :  { %v17247_v6 = vadd.f32 %v5271_v38, %v5116_v56  ;;  %6560 = vmatpush.msrb.mxu2 %v6416_v18 }
 0xe52   :  { %v17249_v48 = vpop.f32.mrf.mxu0 }
 0xe53   :  { %v17251_v62 = vpop.f32.mrf.mxu1  ;;  %v5390_v31 = vpop.f32.mrf.mxu2 }
 0xe54   :  { %v17253_v36 = vadd.f32 %v5390_v31, %v5323_v21 }
 0xe55   :  { %12583 = vmatmul.msk.f32.gmra.mxu3 %vm1577_vm12, %v17219_v5  ;;  %12584 = vmatmul.msk.f32.vlgmr.msrb.gmra.mxu0 %vm1577_vm12, %v17196_v12 }
 0xe56   :  { %12586 = vmatmul.msk.f32.vlgmr.msrb.gmra.mxu1 %vm1577_vm12, %v17196_v12  ;;  %6514 = vmatpush.msrb.mxu0 %v6414_v60 }
 0xe57   :  { %6537 = vmatpush.msrb.mxu1 %v6415_v50 }
 0xe58   :  { %v5274_v4 = vpop.f32.mrf.mxu3  ;;  %12589 = vmatmul.msk.f32.gmra.mxu2 %vm1577_vm12, %v17219_v5 }
 0xe59   :  { %v17268_v2 = vadd.f32 %v5274_v4, %v5123_v10  ;;  %v12610_v10 = vld [vmem:[%s20093_s4 + $0x180] sm:$0xff]  ;;  %s20746_s4 = smov 107  }
 0xe5a   :  { %v17270_v41 = vpop.f32.mrf.mxu0 }
 0xe5b   :  { %v17272_v42 = vpop.f32.mrf.mxu1  ;;  %v5393_v63 = vpop.f32.mrf.mxu2 }
 0xe5c   :  { %v17274_v24 = vadd.f32 %v5393_v63, %v5330_v23 }
 0xe5d   :  { %12585 = vmatmul.msk.f32.gmra.mxu0 %vm1577_vm12, %v17219_v5  ;;  %12590 = vmatmul.msk.f32.vlgmr.msrb.gmra.mxu3 %vm1577_vm12, %v17196_v12 }
 0xe5e   :  { %12587 = vmatmul.msk.f32.gmra.mxu1 %vm1577_vm12, %v17219_v5  ;;  %6583 = vmatpush.msrb.mxu3 %v6410_v55  ;;  %v6816_v55 = vld [vmem:[%s20094_s5] sm:$0xff] }
 0xe5f   :  { %6820 = vperm.xlu1 %13312, %v6816_v55  }
 0xe60   :  { %v17285_v54 = vpop.f32.mrf.mxu3  ;;  %12598 = vmatmul.msk.f32.vlgmr.msra.gmra.mxu2 %vm1577_vm12, %v12594_v61 }
 0xe61   :  { %6702 = vmatpush.msra.mxu2 %v6624_v0 }
 0xe62   :  { %v17289_v45 = vpop.f32.mrf.mxu0 }
 0xe63   :  { %v17291_v21 = vpop.f32.mrf.mxu1  ;;  %v17293_v46 = vpop.f32.mrf.mxu2 }
 0xe65   :  { %12591 = vmatmul.msk.f32.gmra.mxu3 %vm1577_vm12, %v17219_v5  ;;  %12592 = vmatmul.msk.f32.vlgmr.msra.gmra.mxu0 %vm1577_vm12, %v17196_v12  ;;  %v13310_v12 = vunpack.i.l.bf16 %v13309_v32 }
 0xe66   :  { %12596 = vmatmul.msk.f32.vlgmr.msra.gmra.mxu1 %vm1577_vm12, %v12594_v61  ;;  %6656 = vmatpush.msra.mxu0 %v6622_v57  ;;  %v6817_v57 = vld [vmem:[%s20094_s5 + $0x8] sm:$0xff] }
 0xe67   :  { %6679 = vmatpush.msra.mxu1 %v6623_v11  ;;  %v6625_v40 = vsel %vm20270_vm11, %v13306_v9, %v13310_v12  ;;  %v6626_v18 = vsel %vm20270_vm11, %v13310_v12, %v13311_v3  ;;  %6825 = vperm.xlu2 %13313, %v6817_v57   ;;  %vm20680_vm11 = vcmask 154624  }
 0xe68   :  { %v17305_v16 = vpop.f32.mrf.mxu3  ;;  %12599 = vmatmul.msk.f32.gmra.mxu2 %vm1577_vm12, %v12595_v15 }
 0xe6a   :  { %v17308_v34 = vpop.f32.mrf.mxu0 }
 0xe6b   :  { %v17310_v22 = vpop.f32.mrf.mxu1  ;;  %v17312_v23 = vpop.f32.mrf.mxu2 }
 0xe6d   :  { %12593 = vmatmul.msk.f32.gmra.mxu0 %vm1577_vm12, %v17219_v5  ;;  %12600 = vmatmul.msk.f32.vlgmr.msra.gmra.mxu3 %vm1577_vm12, %v12594_v61 }
 0xe6e   :  { %12597 = vmatmul.msk.f32.gmra.mxu1 %vm1577_vm12, %v12595_v15  ;;  %6725 = vmatpush.msra.mxu3 %v6625_v40 }
 0xe70   :  { %v17319_v30 = vpop.f32.mrf.mxu3  ;;  %12606 = vmatmul.msk.f32.vlgmr.msrb.gmra.mxu2 %vm1577_vm12, %v12594_v61 }
 0xe71   :  { %6794 = vmatpush.msrb.mxu2 %v6621_v17 }
 0xe72   :  { %v17325_v56 = vpop.f32.mrf.mxu0 }
 0xe73   :  { %v17327_v5 = vpop.f32.mrf.mxu1  ;;  %v17329_v38 = vpop.f32.mrf.mxu2 }
 0xe75   :  { %12601 = vmatmul.msk.f32.gmra.mxu3 %vm1577_vm12, %v12595_v15  ;;  %12602 = vmatmul.msk.f32.vlgmr.msrb.gmra.mxu0 %vm1577_vm12, %v12594_v61 }
 0xe76   :  { %12604 = vmatmul.msk.f32.vlgmr.msrb.gmra.mxu1 %vm1577_vm12, %v12594_v61  ;;  %6748 = vmatpush.msrb.mxu0 %v6626_v18 }
 0xe77   :  { %6771 = vmatpush.msrb.mxu1 %v6627_v53 }
 0xe78   :  { %v17336_v31 = vpop.f32.mrf.mxu3  ;;  %12607 = vmatmul.msk.f32.gmra.mxu2 %vm1577_vm12, %v12595_v15 }
 0xe7a   :  { %v17339_v8 = vpop.f32.mrf.mxu0 }
 0xe7b   :  { %v17341_v60 = vpop.f32.mrf.mxu1  ;;  %v17343_v50 = vpop.f32.mrf.mxu2 }
 0xe7d   :  { %12603 = vmatmul.msk.f32.gmra.mxu0 %vm1577_vm12, %v12595_v15  ;;  %12608 = vmatmul.msk.f32.vlgmr.msrb.gmra.mxu3 %vm1577_vm12, %v12594_v61 }
 0xe7e   :  { %12605 = vmatmul.msk.f32.gmra.mxu1 %vm1577_vm12, %v12595_v15 }
 0xe80   :  { %v17351_v4 = vpop.f32.mrf.mxu3  ;;  %12616 = vmatmul.msk.f32.vlgmr.msra.gmra.mxu2 %vm1577_vm12, %v12610_v10 }
 0xe82   :  { %v17354_v13 = vpop.f32.mrf.mxu0 }
 0xe83   :  { %20531 = vst [vmem:[#allocation47_spill] sm:$0xff] %v17354_v13  ;;  %v17356_v63 = vpop.f32.mrf.mxu1  ;;  %v17358_v9 = vpop.f32.mrf.mxu2 }
 0xe84   :  { %20532 = vst [vmem:[#allocation7_spill] sm:$0xff] %v17356_v63 }
 0xe85   :  { %20533 = vst [vmem:[#allocation17_spill] sm:$0xff] %v17358_v9  ;;  %12609 = vmatmul.msk.f32.gmra.mxu3 %vm1577_vm12, %v12595_v15  ;;  %12612 = vmatmul.msk.f32.vlgmr.msra.gmra.mxu0 %vm1577_vm12, %v12610_v10 }
 0xe86   :  { %12614 = vmatmul.msk.f32.vlgmr.msra.gmra.mxu1 %vm1577_vm12, %v12610_v10 }
 0xe88   :  { %v17366_v61 = vpop.f32.mrf.mxu3  ;;  %12617 = vmatmul.msk.f32.gmra.mxu2 %vm1577_vm12, %v12611_v20 }
 0xe89   :  { %20534 = vst [vmem:[#allocation46_spill] sm:$0xff] %v17366_v61 }
 0xe8a   :  { %v17369_v47 = vpop.f32.mrf.mxu0 }
 0xe8b   :  { %20535 = vst [vmem:[#allocation49_spill] sm:$0xff] %v17369_v47  ;;  %v17371_v0 = vpop.f32.mrf.mxu1  ;;  %v17373_v58 = vpop.f32.mrf.mxu2 }
 0xe8c   :  { %20536 = vst [vmem:[#allocation8_spill] sm:$0xff] %v17371_v0 }
 0xe8d   :  { %20537 = vst [vmem:[#allocation18_spill] sm:$0xff] %v17373_v58  ;;  %12613 = vmatmul.msk.f32.gmra.mxu0 %vm1577_vm12, %v12611_v20  ;;  %12618 = vmatmul.msk.f32.vlgmr.msra.gmra.mxu3 %vm1577_vm12, %v12610_v10 }
 0xe8e   :  { %12615 = vmatmul.msk.f32.gmra.mxu1 %vm1577_vm12, %v12611_v20 }
 0xe90   :  { %v17378_v37 = vpop.f32.mrf.mxu3  ;;  %12624 = vmatmul.msk.f32.vlgmr.msrb.gmra.mxu2 %vm1577_vm12, %v12610_v10 }
 0xe91   :  { %20538 = vst [vmem:[#allocation19_spill] sm:$0xff] %v17378_v37 }
 0xe92   :  { %v17384_v15 = vpop.f32.mrf.mxu0 }
 0xe93   :  { %v17386_v11 = vpop.f32.mrf.mxu1  ;;  %v17388_v32 = vpop.f32.mrf.mxu2 }
 0xe95   :  { %12619 = vmatmul.msk.f32.gmra.mxu3 %vm1577_vm12, %v12611_v20  ;;  %12620 = vmatmul.msk.f32.vlgmr.msrb.gmra.mxu0 %vm1577_vm12, %v12610_v10 }
 0xe96   :  { %12622 = vmatmul.msk.f32.vlgmr.msrb.gmra.mxu1 %vm1577_vm12, %v12610_v10 }
 0xe98   :  { %v17393_v12 = vpop.f32.mrf.mxu3  ;;  %12625 = vmatmul.msk.f32.gmra.mxu2 %vm1577_vm12, %v12611_v20 }
 0xe99   :  { %20539 = vst [vmem:[#allocation51_spill] sm:$0xff] %v17393_v12 }
 0xe9a   :  { %v17396_v40 = vpop.f32.mrf.mxu0 }
 0xe9b   :  { %20540 = vst [vmem:[#allocation9_spill] sm:$0xff] %v17396_v40  ;;  %v17398_v17 = vpop.f32.mrf.mxu1  ;;  %v17400_v3 = vpop.f32.mrf.mxu2 }
 0xe9c   :  { %20541 = vst [vmem:[#allocation20_spill] sm:$0xff] %v17398_v17 }
 0xe9d   :  { %20542 = vst [vmem:[#allocation50_spill] sm:$0xff] %v17400_v3  ;;  %12621 = vmatmul.msk.f32.gmra.mxu0 %vm1577_vm12, %v12611_v20 }
 0xe9e   :  { %12623 = vmatmul.msk.f32.gmra.mxu1 %vm1577_vm12, %v12611_v20  ;;  %vm20639_vm12 = vcmask 310272  }
 0xea0   :  { %v17404_v55 = vpop.f32.mrf.mxu3 }
 0xea1   :  { %20543 = vst [vmem:[#allocation52_spill] sm:$0xff] %v17404_v55 }
 0xea2   :  { %v17406_v18 = vpop.f32.mrf.mxu0 }
 0xea3   :  { %20544 = vst [vmem:[#allocation10_spill] sm:$0xff] %v17406_v18  ;;  %v17408_v53 = vpop.f32.mrf.mxu1  ;;  %v17410_v10 = vpop.f32.mrf.mxu2 }
 0xea4   :  { %20545 = vst [vmem:[#allocation22_spill] sm:$0xff] %v17408_v53 }
 0xea5   :  { %20546 = vst [vmem:[#allocation24_spill] sm:$0xff] %v17410_v10 }
 0xea8   :  { %v17412_v57 = vpop.f32.mrf.mxu3 }
 0xea9   :  { %20547 = vst [vmem:[#allocation54_spill] sm:$0xff] %v17412_v57 }
 0xeaa   :  { %v17414_v12 = vpop.f32.mrf.mxu0 }
 0xeab   :  { %20548 = vst [vmem:[#allocation11_spill] sm:$0xff] %v17414_v12  ;;  %v17416_v37 = vpop.f32.mrf.mxu1  ;;  %v17418_v58 = vpop.f32.mrf.mxu2 }
 0xeac   :  { %20549 = vst [vmem:[#allocation25_spill] sm:$0xff] %v17416_v37 }
 0xead   :  { %20550 = vst [vmem:[#allocation53_spill] sm:$0xff] %v17418_v58 }
 0xeb0   :  { %v6025_v0 = vpop.f32.mrf.mxu3 }
 0xeb2   :  { %v17420_v47 = vpop.f32.mrf.mxu0 }
 0xeb3   :  { %v17422_v20 = vpop.f32.mrf.mxu1  ;;  %v17424_v55 = vpop.f32.mrf.mxu2 }
 0xeb4   :  { %20551 = vst [vmem:[#allocation55_spill] sm:$0xff] %v17424_v55 }
 0xeb8   :  { %v17426_v18 = vpop.f32.mrf.mxu3 }
 0xeb9   :  { %20552 = vst [vmem:[#allocation12_spill] sm:$0xff] %v17426_v18 }
 0xeba   :  { %v17428_v53 = vpop.f32.mrf.mxu0 }
 0xebb   :  { %20553 = vst [vmem:[#allocation26_spill] sm:$0xff] %v17428_v53  ;;  %v17430_v10 = vpop.f32.mrf.mxu1  ;;  %v17432_v57 = vpop.f32.mrf.mxu2 }
 0xebc   :  { %20554 = vst [vmem:[#allocation27_spill] sm:$0xff] %v17430_v10 }
 0xebd   :  { %20555 = vst [vmem:[#allocation57_spill] sm:$0xff] %v17432_v57 }
 0xec0   :  { %v17434_v12 = vpop.f32.mrf.mxu3 }
 0xec1   :  { %20556 = vst [vmem:[#allocation13_spill] sm:$0xff] %v17434_v12 }
 0xec2   :  { %v17436_v37 = vpop.f32.mrf.mxu0 }
 0xec3   :  { %20557 = vst [vmem:[#allocation28_spill] sm:$0xff] %v17436_v37  ;;  %v17438_v58 = vpop.f32.mrf.mxu1  ;;  %v6236_v3 = vpop.f32.mrf.mxu2 }
 0xec4   :  { %20558 = vst [vmem:[#allocation56_spill] sm:$0xff] %v17438_v58 }
 0xec8   :  { %v17440_v17 = vpop.f32.mrf.mxu3 }
 0xec9   :  { %20559 = vst [vmem:[#allocation58_spill] sm:$0xff] %v17440_v17 }
 0xeca   :  { %v17442_v40 = vpop.f32.mrf.mxu0 }
 0xecb   :  { %20560 = vst [vmem:[#allocation14_spill] sm:$0xff] %v17442_v40  ;;  %v17444_v55 = vpop.f32.mrf.mxu1  ;;  %v17446_v18 = vpop.f32.mrf.mxu2 }
 0xecc   :  { %20561 = vst [vmem:[#allocation29_spill] sm:$0xff] %v17444_v55 }
 0xecd   :  { %20562 = vst [vmem:[#allocation30_spill] sm:$0xff] %v17446_v18 }
 0xed0   :  { %v6259_v53 = vpop.f32.mrf.mxu3 }
 0xed2   :  { %v6282_v9 = vpop.f32.mrf.mxu0 }
 0xed3   :  { %v17448_v10 = vpop.f32.mrf.mxu1  ;;  %v17450_v57 = vpop.f32.mrf.mxu2 }
 0xed4   :  { %20563 = vst [vmem:[#allocation60_spill] sm:$0xff] %v17448_v10 }
 0xed5   :  { %20564 = vst [vmem:[#allocation15_spill] sm:$0xff] %v17450_v57 }
 0xed8   :  { %v17452_v12 = vpop.f32.mrf.mxu3 }
 0xed9   :  { %20565 = vst [vmem:[#allocation31_spill] sm:$0xff] %v17452_v12 }
 0xeda   :  { %v17454_v37 = vpop.f32.mrf.mxu0 }
 0xedb   :  { %20566 = vst [vmem:[#allocation59_spill] sm:$0xff] %v17454_v37  ;;  %v17456_v58 = vpop.f32.mrf.mxu1  ;;  %v17458_v63 = vpop.f32.mrf.mxu2 }
 0xedc   :  { %20567 = vst [vmem:[#allocation61_spill] sm:$0xff] %v17456_v58 }
 0xedd   :  { %20568 = vst [vmem:[#allocation16_spill] sm:$0xff] %v17458_v63 }
 0xee0   :  { %v17460_v17 = vpop.f32.mrf.mxu3 }
 0xee1   :  { %20569 = vst [vmem:[#allocation32_spill] sm:$0xff] %v17460_v17 }
 0xee2   :  { %v17462_v40 = vpop.f32.mrf.mxu0 }
 0xee3   :  { %20570 = vst [vmem:[#allocation33_spill] sm:$0xff] %v17462_v40  ;;  %v6447_v55 = vpop.f32.mrf.mxu1  ;;  %v6470_v18 = vpop.f32.mrf.mxu2  ;;  %v5113_v40 = vadd.f32 %v17119_v28, %v17043_v39  ;;  %v5745_v39 = vadd.f32 %v17327_v5, %v17253_v36  ;;  %v5124_v28 = vadd.f32 %v17181_v51, %v17106_v19  ;;  %v5329_v19 = vadd.f32 %v17251_v62, %v17162_v33 }
 0xee5   :  { %v5324_v17 = vadd.f32 %v17204_v29, %v5113_v40  ;;  %v5335_v51 = vadd.f32 %v17270_v41, %v5124_v28  ;;  %v20586_v28 = vld [vmem:[#allocation12_spill] sm:$0xff] }
 0xee8   :  { %v17464_v61 = vpop.f32.mrf.mxu3 }
 0xee9   :  { %20571 = vst [vmem:[#allocation64_spill] sm:$0xff] %v17464_v61  ;;  %v5325_v61 = vadd.f32 %v17206_v44, %v17121_v26 }
 0xeea   :  { %v17466_v13 = vpop.f32.mrf.mxu0 }
 0xeeb   :  { %20572 = vst [vmem:[#allocation21_spill] sm:$0xff] %v17466_v13  ;;  %v17468_v10 = vpop.f32.mrf.mxu1  ;;  %v17470_v57 = vpop.f32.mrf.mxu2  ;;  %v5535_v13 = vadd.f32 %v17285_v54, %v5324_v17 }
 0xeec   :  { %20573 = vst [vmem:[#allocation34_spill] sm:$0xff] %v17468_v10  ;;  %v5536_v10 = vadd.f32 %v17289_v45, %v5325_v61 }
 0xeed   :  { %20574 = vst [vmem:[#allocation62_spill] sm:$0xff] %v17470_v57  ;;  %v5746_v26 = vadd.f32 %v17329_v38, %v5535_v13 }
 0xeee   :  { %v5747_v29 = vadd.f32 %v17351_v4, %v5536_v10  ;;  %v5544_v4 = vadd.f32 %v17310_v22, %v17232_v1 }
 0xeef   :  { %v5958_v45 = vadd.f32 %v17386_v11, %v5746_v26 }
 0xef0   :  { %v6493_v12 = vpop.f32.mrf.mxu3 }
 0xef1   :  { %v6170_v62 = vadd.f32 %v17420_v47, %v5958_v45  ;;  %v20589_v45 = vld [vmem:[#allocation18_spill] sm:$0xff] }
 0xef2   :  { %v17472_v37 = vpop.f32.mrf.mxu0 }
 0xef3   :  { %20575 = vst [vmem:[#allocation65_spill] sm:$0xff] %v17472_v37  ;;  %v17474_v58 = vpop.f32.mrf.mxu1  ;;  %v17476_v63 = vpop.f32.mrf.mxu2  ;;  %v5120_v37 = vadd.f32 %v17138_v27, %v17064_v59  ;;  %v5332_v59 = vadd.f32 %v17230_v49, %v17140_v35  ;;  %v5336_v35 = vadd.f32 %v17272_v42, %v17184_v52  ;;  %v5537_v49 = vadd.f32 %v17291_v21, %v17208_v43 }
 0xef4   :  { %20576 = vst [vmem:[#allocation23_spill] sm:$0xff] %v17476_v63  ;;  %v5117_v63 = vadd.f32 %v17160_v14, %v17086_v7  ;;  %v5957_v7 = vadd.f32 %v17384_v15, %v5745_v39  ;;  %v5545_v52 = vadd.f32 %v17312_v23, %v17268_v2  ;;  %v5546_v21 = vadd.f32 %v17336_v31, %v5335_v51  ;;  %v20577_v2 = vld [vmem:[#allocation47_spill] sm:$0xff]  ;;  %v17538_v31 = vpop.permute.xlu1 %6820  ;;  %v20580_v15 = vld [vmem:[#allocation17_spill] sm:$0xff] }
 0xef5   :  { %v5331_v54 = vadd.f32 %v17228_v25, %v5120_v37  ;;  %v5959_v25 = vadd.f32 %v17388_v32, %v5747_v29  ;;  %v5543_v33 = vadd.f32 %v17308_v34, %v5332_v59  ;;  %v5547_v13 = vadd.f32 %v17339_v8, %v5336_v35  ;;  %v20581_v8 = vld [vmem:[#allocation9_spill] sm:$0xff]  ;;  %v20590_v35 = vld [vmem:[#allocation19_spill] sm:$0xff] }
 0xef6   :  { %v5328_v27 = vadd.f32 %v17249_v48, %v5117_v63  ;;  %v5538_v48 = vadd.f32 %v17293_v46, %v17247_v6  ;;  %v6169_v5 = vadd.f32 %v6025_v0, %v5957_v7  ;;  %v5540_v6 = vadd.f32 %v17325_v56, %v5329_v19 }
 0xef7   :  { %v5542_v38 = vadd.f32 %v17305_v16, %v5331_v54  ;;  %v6171_v41 = vadd.f32 %v17422_v20, %v5959_v25  ;;  %v6381_v46 = vadd.f32 %v6259_v53, %v6170_v62  ;;  %v5752_v63 = vadd.f32 %v17341_v60, %v17274_v24  ;;  %v20585_v20 = vld [vmem:[#allocation8_spill] sm:$0xff]  ;;  %v20587_v54 = vld [vmem:[#allocation26_spill] sm:$0xff] }
 0xef8   :  { %v17485_v57 = vpop.f32.mrf.mxu3  ;;  %v5539_v43 = vadd.f32 %v17319_v30, %v5328_v27  ;;  %v6380_v42 = vadd.f32 %v6236_v3, %v6169_v5  ;;  %v5748_v23 = vadd.f32 %v20577_v2, %v5537_v49  ;;  %v20578_v30 = vld [vmem:[#allocation46_spill] sm:$0xff]  ;;  %v5756_v39 = vadd.f32 %v20585_v20, %v5545_v52  ;;  %v20588_v27 = vld [vmem:[#allocation27_spill] sm:$0xff] }
 0xef9   :  { %v6382_v16 = vadd.f32 %v6282_v9, %v6171_v41  ;;  %v5753_v1 = vadd.f32 %v17343_v50, %v5542_v38  ;;  %v5754_v61 = vadd.f32 %v20578_v30, %v5543_v33  ;;  %v6592_v47 = vadd.f32 %v6470_v18, %v6381_v46  ;;  %v20579_v9 = vld [vmem:[#allocation7_spill] sm:$0xff]  ;;  %v20582_v50 = vld [vmem:[#allocation20_spill] sm:$0xff]  ;;  %v20583_v3 = vld [vmem:[#allocation50_spill] sm:$0xff] }
 0xefa   :  { %v17497_v44 = vpop.f32.mrf.mxu0  ;;  %v6591_v22 = vadd.f32 %v6447_v55, %v6380_v42  ;;  %v5749_v37 = vadd.f32 %v20579_v9, %v5538_v48  ;;  %v5750_v11 = vadd.f32 %v20580_v15, %v5539_v43  ;;  %v5964_v32 = vadd.f32 %v20581_v8, %v5752_v63  ;;  %v20584_v18 = vld [vmem:[#allocation49_spill] sm:$0xff]  ;;  %v20591_v48 = vld [vmem:[#allocation30_spill] sm:$0xff]  ;;  %v20592_v33 = vld [vmem:[#allocation31_spill] sm:$0xff] }
 0xefb   :  { %v17504_v14 = vpop.f32.mrf.mxu1  ;;  %v17506_v36 = vpop.f32.mrf.mxu2  ;;  %v6593_v56 = vadd.f32 %v6493_v12, %v6382_v16  ;;  %v5965_v17 = vadd.f32 %v20582_v50, %v5753_v1  ;;  %v5966_v55 = vadd.f32 %v20583_v3, %v5754_v61  ;;  %v5755_v12 = vadd.f32 %v20584_v18, %v5544_v4  ;;  %v20593_v41 = vld [vmem:[#allocation59_spill] sm:$0xff]  ;;  %v20595_v63 = vld [vmem:[#allocation52_spill] sm:$0xff]  ;;  %v20600_v9 = vld [vmem:[#allocation118_spill] sm:$0xff] }
 0xefc   :  { %v6176_v26 = vadd.f32 %v20586_v28, %v5964_v32  ;;  %v5757_v25 = vadd.f32 %v20589_v45, %v5546_v21  ;;  %v5751_v49 = vadd.f32 %v20590_v35, %v5540_v6  ;;  %v20594_v46 = vld [vmem:[#allocation51_spill] sm:$0xff]  ;;  %v5960_v1 = vadd.f32 %v20595_v63, %v5748_v23  ;;  %v20598_v6 = vld [vmem:[#allocation62_spill] sm:$0xff]  ;;  %v17574_v32 = vpop.permute.xlu2 %6825  ;;  %v17579_v3 = vld [vmem:[#allocation2] sm:$0xff] }
 0xefd   :  { %v6177_v59 = vadd.f32 %v20587_v54, %v5965_v17  ;;  %v6178_v7 = vadd.f32 %v20588_v27, %v5966_v55  ;;  %v5758_v16 = vadd.f32 %v20594_v46, %v5547_v13  ;;  %v20597_v21 = vld [vmem:[#allocation115_spill] sm:$0xff]  ;;  %v20601_v13 = vld [vmem:[#allocation10_spill] sm:$0xff]  ;;  %v20605_v28 = vld [vmem:[#allocation13_spill] sm:$0xff] }
 0xefe   :  { %v6387_v5 = vadd.f32 %v20591_v48, %v6176_v26  ;;  %v5961_v23 = vadd.f32 %v20601_v13, %v5749_v37  ;;  %v20603_v55 = vld [vmem:[#allocation22_spill] sm:$0xff]  ;;  %v20610_v48 = vld [vmem:[#allocation15_spill] sm:$0xff] }
 0xeff   :  { %v6388_v62 = vadd.f32 %v20592_v33, %v6177_v59  ;;  %v6389_v4 = vadd.f32 %v20593_v41, %v6178_v7  ;;  %v20608_v7 = vld [vmem:[#allocation56_spill] sm:$0xff]  ;;  %v20609_v35 = vld [vmem:[#allocation54_spill] sm:$0xff] }
 0xf00   :  { %v17530_v34 = vpop.f32.mrf.mxu3  ;;  %v6173_v26 = vadd.f32 %v20605_v28, %v5961_v23  ;;  %v20612_v41 = vld [vmem:[#allocation32_spill] sm:$0xff] }
 0xf01   :  { %v6599_v61 = vadd.f32 %v20598_v6, %v6388_v62 }
 0xf02   :  { %v6658_v0 = vpop.f32.mrf.mxu0 }
 0xf03   :  { %v6802_v40 = vadd.f32 %v6658_v0, %v6591_v22  ;;  %v6681_v24 = vpop.f32.mrf.mxu1  ;;  %v6704_v60 = vpop.f32.mrf.mxu2  ;;  %v20596_v22 = vld [vmem:[#allocation34_spill] sm:$0xff] }
 0xf04   :  { %v6803_v53 = vadd.f32 %v6681_v24, %v6592_v47  ;;  %v6804_v10 = vadd.f32 %v6704_v60, %v6593_v56  ;;  %v6598_v2 = vadd.f32 %v20596_v22, %v6387_v5  ;;  %v6600_v47 = vadd.f32 %v17485_v57, %v6389_v4  ;;  %v20599_v56 = vld [vmem:[#allocation116_spill] sm:$0xff]  ;;  %v20614_v22 = vld [vmem:[#allocation11_spill] sm:$0xff] }
 0xf05   :  { %v6828_v29 = vadd.f32 %v17538_v31, %v6802_v40  ;;  %v20602_v40 = vld [vmem:[#allocation55_spill] sm:$0xff]  ;;  %v6384_v5 = vadd.f32 %v20610_v48, %v6173_v26  ;;  %v20625_v48 = vld [vmem:[#allocation64_spill] sm:$0xff] }
 0xf06   :  { %v6829_v19 = vadd.f32 %v17538_v31, %v6803_v53  ;;  %v6830_v51 = vadd.f32 %v17538_v31, %v6804_v10  ;;  %v6172_v24 = vadd.f32 %v20602_v40, %v5960_v1  ;;  %v5962_v53 = vadd.f32 %v20603_v55, %v5750_v11  ;;  %v20604_v10 = vld [vmem:[#allocation24_spill] sm:$0xff] }
 0xf07   :  { %v6842_v38 = vmax.f32 %v6828_v29, 0.0  ;;  %v5963_v18 = vadd.f32 %v20604_v10, %v5751_v49  ;;  %v20606_v29 = vld [vmem:[#allocation60_spill] sm:$0xff]  ;;  %v5967_v49 = vadd.f32 %v20609_v35, %v5755_v12  ;;  %v6595_v6 = vadd.f32 %v17474_v58, %v6384_v5  ;;  %v20618_v10 = vld [vmem:[#allocation53_spill] sm:$0xff] }
 0xf08   :  { %v6843_v52 = vmax.f32 %v6829_v19, 0.0  ;;  %v6844_v43 = vmax.f32 %v6830_v51, 0.0  ;;  %v17558_v42 = vpop.f32.mrf.mxu3  ;;  %v6383_v54 = vadd.f32 %v20606_v29, %v6172_v24  ;;  %v20607_v11 = vld [vmem:[#allocation28_spill] sm:$0xff] }
 0xf09   :  { %v17564_v30 = vmul.f32 %v6842_v38, %v20597_v21  ;;  %v6174_v27 = vadd.f32 %v20607_v11, %v5962_v53  ;;  %v6175_v19 = vadd.f32 %v20608_v7, %v5963_v18  ;;  %v20611_v38 = vld [vmem:[#allocation65_spill] sm:$0xff]  ;;  %v20619_v18 = vld [vmem:[#allocation58_spill] sm:$0xff]  ;;  %v20623_v7 = vld [vmem:[#allocation16_spill] sm:$0xff] }
 0xf0a   :  { %v17569_v0 = vmul.f32 %v6843_v52, %v20599_v56  ;;  %v17572_v15 = vmul.f32 %v6844_v43, %v20600_v9  ;;  %v6661_v8 = vpop.f32.mrf.mxu0  ;;  %v6594_v33 = vadd.f32 %v20611_v38, %v6383_v54  ;;  %v20613_v52 = vld [vmem:[#allocation33_spill] sm:$0xff] }
 0xf0b   :  { %6877 = vst [vmem:[#allocation3 + $0x8] sm:$0xff] %v17564_v30  ;;  %v6809_v60 = vadd.f32 %v6661_v8, %v6598_v2  ;;  %v6684_v50 = vpop.f32.mrf.mxu1  ;;  %v6707_v17 = vpop.f32.mrf.mxu2  ;;  %v17583_v57 = vpack.i.bf16 %v17564_v30, %v17579_v3  ;;  %v6385_v4 = vadd.f32 %v20612_v41, %v6174_v27  ;;  %v6386_v43 = vadd.f32 %v20613_v52, %v6175_v19  ;;  %v20622_v54 = vld [vmem:[#allocation29_spill] sm:$0xff]  ;;  %v20627_v52 = vld [vmem:[#allocation114_spill] sm:$0xff] }
 0xf0c   :  { %6878 = vst [vmem:[#allocation3 + $0x10] sm:$0xff] %v17569_v0  ;;  %v6810_v37 = vadd.f32 %v6684_v50, %v6599_v61  ;;  %v6811_v20 = vadd.f32 %v6707_v17, %v6600_v47  ;;  %v5968_v2 = vadd.f32 %v20614_v22, %v5756_v39  ;;  %v20615_v47 = vld [vmem:[#allocation23_spill] sm:$0xff]  ;;  %v20617_v39 = vld [vmem:[#allocation57_spill] sm:$0xff] }
 0xf0d   :  { %6879 = vst [vmem:[#allocation3 + $0x18] sm:$0xff] %v17572_v15  ;;  %v6835_v59 = vadd.f32 %v17574_v32, %v6809_v60  ;;  %13325 = vrot.lane.b32.xlu2 %v17583_v57, %s14267_s30  ;;  %13320 = vrot.lane.b32.xlu1 %v17583_v57, %s14264_s1  ;;  %v6596_v8 = vadd.f32 %v20615_v47, %v6385_v4  ;;  %v20616_v60 = vld [vmem:[#allocation25_spill] sm:$0xff] }
 0xf0e   :  { %v6836_v51 = vadd.f32 %v17574_v32, %v6810_v37  ;;  %v6837_v45 = vadd.f32 %v17574_v32, %v6811_v20  ;;  %13315 = vrot.lane.b32.xlu0 %v17583_v57, %s14266_s3  ;;  %v6597_v13 = vadd.f32 %v17530_v34, %v6386_v43  ;;  %v5969_v50 = vadd.f32 %v20616_v60, %v5757_v25  ;;  %v20620_v20 = vld [vmem:[#allocation61_spill] sm:$0xff] }
 0xf0f   :  { %v6849_v62 = vmax.f32 %v6835_v59, 0.0  ;;  %v6179_v17 = vadd.f32 %v20617_v39, %v5967_v49  ;;  %v5970_v34 = vadd.f32 %v20618_v10, %v5758_v16  ;;  %v20621_v16 = vld [vmem:[#allocation14_spill] sm:$0xff]  ;;  %v20626_v38 = vld [vmem:[#allocation21_spill] sm:$0xff] }
 0xf10   :  { %v6850_v46 = vmax.f32 %v6836_v51, 0.0  ;;  %v6851_v63 = vmax.f32 %v6837_v45, 0.0  ;;  %v6727_v1 = vpop.f32.mrf.mxu3  ;;  %v6181_v29 = vadd.f32 %v20621_v16, %v5969_v50  ;;  %v20624_v45 = vld [vmem:[#allocation119_spill] sm:$0xff] }
 0xf11   :  { %v17610_v61 = vmul.f32 %v6849_v62, %v20597_v21  ;;  %v6805_v12 = vadd.f32 %v6727_v1, %v6594_v33  ;;  %v6390_v28 = vadd.f32 %v20620_v20, %v6179_v17  ;;  %v6182_v59 = vadd.f32 %v20622_v54, %v5970_v34  ;;  %v20628_v1 = vld [vmem:[#allocation121_spill] sm:$0xff] }
 0xf12   :  { %v17615_v23 = vmul.f32 %v6850_v46, %v20599_v56  ;;  %v17618_v40 = vmul.f32 %v6851_v63, %v20600_v9  ;;  %v6750_v24 = vpop.f32.mrf.mxu0  ;;  %v6180_v56 = vadd.f32 %v20619_v18, %v5968_v2  ;;  %v6392_v5 = vadd.f32 %v20625_v48, %v6181_v29  ;;  %v20629_v2 = vld [vmem:[#allocation122_spill] sm:$0xff] }
 0xf13   :  { %6884 = vst [vmem:[#allocation3 + $0x50] sm:$0xff] %v17610_v61  ;;  %v6831_v58 = vadd.f32 %v17538_v31, %v6805_v12  ;;  %v6806_v21 = vadd.f32 %v6750_v24, %v6595_v6  ;;  %v6773_v55 = vpop.f32.mrf.mxu1  ;;  %v6796_v53 = vpop.f32.mrf.mxu2  ;;  %v6601_v51 = vadd.f32 %v17497_v44, %v6390_v28  ;;  %v6393_v33 = vadd.f32 %v20626_v38, %v6182_v59 }
 0xf14   :  { %6885 = vst [vmem:[#allocation3 + $0x58] sm:$0xff] %v17615_v23  ;;  %v6807_v9 = vadd.f32 %v6773_v55, %v6596_v8  ;;  %v6808_v37 = vadd.f32 %v6796_v53, %v6597_v13  ;;  %v6391_v19 = vadd.f32 %v20623_v7, %v6180_v56  ;;  %v6603_v44 = vadd.f32 %v17506_v36, %v6392_v5 }
 0xf15   :  { %6886 = vst [vmem:[#allocation3 + $0x60] sm:$0xff] %v17618_v40  ;;  %v6845_v25 = vmax.f32 %v6831_v58, 0.0  ;;  %v6832_v26 = vadd.f32 %v17538_v31, %v6806_v21  ;;  %13340 = vrot.lane.b32.xlu2 %v17583_v57, %s14270_s20  ;;  %13335 = vrot.lane.b32.xlu1 %v17583_v57, %s14269_s17  ;;  %v6604_v63 = vadd.f32 %v17558_v42, %v6393_v33 }
 0xf16   :  { %v6833_v11 = vadd.f32 %v17538_v31, %v6807_v9  ;;  %v6834_v27 = vadd.f32 %v17538_v31, %v6808_v37  ;;  %13330 = vrot.lane.b32.xlu0 %v17583_v57, %s14268_s16  ;;  %v6602_v31 = vadd.f32 %v17504_v14, %v6391_v19  ;;  %v17662_v24 = vpack.i.bf16 %v17572_v15, %v17569_v0 }
 0xf17   :  { %v17643_v35 = vmul.f32 %v6845_v25, %v20624_v45  ;;  %v6846_v49 = vmax.f32 %v6832_v26, 0.0  ;;  %v17709_v56 = vpack.i.bf16 %v17610_v61, %v17579_v3  ;;  %v17726_v37 = vpack.i.bf16 %v17618_v40, %v17615_v23 }
 0xf18   :  { %v6847_v62 = vmax.f32 %v6833_v11, 0.0  ;;  %v6848_v41 = vmax.f32 %v6834_v27, 0.0  ;;  %v6730_v4 = vpop.f32.mrf.mxu3 }
 0xf19   :  { %6880 = vst [vmem:[#allocation3 + $0x20] sm:$0xff] %v17643_v35  ;;  %v17650_v43 = vmul.f32 %v6846_v49, %v20627_v52  ;;  %v6812_v46 = vadd.f32 %v6730_v4, %v6601_v51 }
 0xf1a   :  { %v17655_v22 = vmul.f32 %v6847_v62, %v20628_v1  ;;  %v6869_v6 = vmul.f32 %v6848_v41, %v20629_v2  ;;  %v6753_v12 = vpop.f32.mrf.mxu0 }
 0xf1b   :  { %6881 = vst [vmem:[#allocation3 + $0x28] sm:$0xff] %v17650_v43  ;;  %v6838_v14 = vadd.f32 %v17574_v32, %v6812_v46  ;;  %v6813_v47 = vadd.f32 %v6753_v12, %v6602_v31  ;;  %v6776_v8 = vpop.f32.mrf.mxu1  ;;  %v6799_v13 = vpop.f32.mrf.mxu2  ;;  %v17735_v20 = vpack.i.bf16 %v17650_v43, %v17643_v35 }
 0xf1c   :  { %6882 = vst [vmem:[#allocation3 + $0x30] sm:$0xff] %v17655_v22  ;;  %v6814_v36 = vadd.f32 %v6776_v8, %v6603_v44  ;;  %v6815_v42 = vadd.f32 %v6799_v13, %v6604_v63  ;;  %v13479_v28 = vpack.i.bf16 %v17579_v3, %v17655_v22 }
 0xf1d   :  { %6883 = vst.msk [vmem:[#allocation3 + $0x38] sm:$0xff] %vm48_vm3, %v6869_v6  ;;  %v6852_v60 = vmax.f32 %v6838_v14, 0.0  ;;  %v6839_v50 = vadd.f32 %v17574_v32, %v6813_v47  ;;  %13360 = vrot.lane.b32.xlu2 %v17662_v24, %s14264_s1  ;;  %13345 = vrot.lane.b32.xlu1 %v17583_v57, %s14271_s21 }
 0xf1e   :  { %v6840_v39 = vadd.f32 %v17574_v32, %v6814_v36  ;;  %v6841_v17 = vadd.f32 %v17574_v32, %v6815_v42  ;;  %13350 = vrot.lane.b32.xlu0 %v17583_v57, %s14272_s2  ;;  %v13399_v32 = vpack.i.bf16 %v17615_v23, %v17610_v61 }
 0xf1f   :  { %v17676_v58 = vmul.f32 %v6852_v60, %v20624_v45  ;;  %v6853_v21 = vmax.f32 %v6839_v50, 0.0 }
 0xf20   :  { %v6854_v55 = vmax.f32 %v6840_v39, 0.0  ;;  %v6855_v53 = vmax.f32 %v6841_v17, 0.0 }
 0xf21   :  { %6887 = vst [vmem:[#allocation3 + $0x68] sm:$0xff] %v17676_v58  ;;  %v17680_v10 = vmul.f32 %v6853_v21, %v20627_v52  ;;  %v13434_v9 = vpack.i.bf16 %v17676_v58, %v17618_v40 }
 0xf22   :  { %v17683_v34 = vmul.f32 %v6854_v55, %v20628_v1  ;;  %v6876_v18 = vmul.f32 %v6855_v53, %v20629_v2 }
 0xf23   :  { %6888 = vst [vmem:[#allocation3 + $0x70] sm:$0xff] %v17680_v10  ;;  %v17888_v21 = vpack.i.bf16 %v17680_v10, %v17676_v58 }
 0xf24   :  { %6889 = vst [vmem:[#allocation3 + $0x78] sm:$0xff] %v17683_v34  ;;  %v17764_v25 = vld [vmem:[#allocation3 + $0x38] sm:$0xff]  ;;  %v13539_v59 = vpack.i.bf16 %v17683_v34, %v17680_v10 }
 0xf25   :  { %6890 = vst.msk [vmem:[#allocation3 + $0x80] sm:$0xff] %vm48_vm3, %v6876_v18  ;;  %13375 = vrot.lane.b32.xlu2 %v17662_v24, %s14269_s17  ;;  %13355 = vrot.lane.b32.xlu1 %v17662_v24, %s14266_s3  ;;  %v17768_v26 = vpack.i.bf16 %v17764_v25, %v17655_v22  ;;  %vm6976_vm3 = vcmask 130048  }
 0xf26   :  { %13365 = vrot.lane.b32.xlu0 %v17662_v24, %s14267_s30 }
 0xf2d   :  { %13385 = vrot.lane.b32.xlu2 %v17662_v24, %s14271_s21  ;;  %13370 = vrot.lane.b32.xlu1 %v17662_v24, %s14268_s16 }
 0xf2e   :  { %13380 = vrot.lane.b32.xlu0 %v17662_v24, %s14270_s20 }
 0xf35   :  { %13400 = vrot.lane.b32.xlu2 %v13399_v32, %s14264_s1  ;;  %13390 = vrot.lane.b32.xlu1 %v17662_v24, %s14272_s2 }
 0xf36   :  { %13405 = vrot.lane.b32.xlu0 %v13399_v32, %s14267_s30 }
 0xf3d   :  { %13415 = vrot.lane.b32.xlu2 %v13399_v32, %s14269_s17  ;;  %13395 = vrot.lane.b32.xlu1 %v13399_v32, %s14266_s3 }
 0xf3e   :  { %13420 = vrot.lane.b32.xlu0 %v17709_v56, %s14270_s20 }
 0xf45   :  { %13425 = vrot.lane.b32.xlu2 %v17709_v56, %s14271_s21  ;;  %13410 = vrot.lane.b32.xlu1 %v13399_v32, %s14268_s16 }
 0xf46   :  { %13435 = vrot.lane.b32.xlu0 %v13434_v9, %s14264_s1 }
 0xf4d   :  { %13430 = vrot.lane.b32.xlu2 %v13434_v9, %s14266_s3  ;;  %13440 = vrot.lane.b32.xlu1 %v13434_v9, %s14267_s30 }
 0xf4e   :  { %13450 = vrot.lane.b32.xlu0 %v13434_v9, %s14269_s17 }
 0xf55   :  { %13445 = vrot.lane.b32.xlu2 %v13434_v9, %s14268_s16  ;;  %13455 = vrot.lane.b32.xlu1 %v17726_v37, %s14270_s20  ;;  %v7952_v9 = vld [vmem:[#allocation3 + $0x80] sm:$0xff] }
 0xf56   :  { %13460 = vrot.lane.b32.xlu0 %v17726_v37, %s14271_s21 }
 0xf5d   :  { %13465 = vrot.lane.b32.xlu2 %v17735_v20, %s14266_s3  ;;  %13480 = vrot.lane.b32.xlu1 %v13479_v28, %s14264_s1 }
 0xf5e   :  { %13470 = vrot.lane.b32.xlu0 %v13479_v28, %s14266_s3 }
 0xf65   :  { %13490 = vrot.lane.b32.xlu2 %v13479_v28, %s14267_s30  ;;  %13485 = vrot.lane.b32.xlu1 %v17735_v20, %s14267_s30 }
 0xf66   :  { %13475 = vrot.lane.b32.xlu0 %v17735_v20, %s14264_s1 }
 0xf67   :  { %v17748_v23 = vpop.permute.xlu2 %13325 }
 0xf6d   :  { %13495 = vrot.lane.b32.xlu2 %v17735_v20, %s14268_s16  ;;  %13510 = vrot.lane.b32.xlu1 %v13479_v28, %s14269_s17 }
 0xf6e   :  { %13500 = vrot.lane.b32.xlu0 %v13479_v28, %s14268_s16  ;;  %v17914_v28 = vpack.i.bf16 %v7952_v9, %v17683_v34 }
 0xf6f   :  { %v17754_v3 = vpop.permute.xlu2 %13340 }
 0xf75   :  { %13525 = vrot.lane.b32.xlu2 %v17735_v20, %s14272_s2  ;;  %13515 = vrot.lane.b32.xlu1 %v17735_v20, %s14270_s20 }
 0xf76   :  { %13505 = vrot.lane.b32.xlu0 %v17735_v20, %s14269_s17 }
 0xf77   :  { %v17762_v40 = vpop.permute.xlu2 %13360 }
 0xf7d   :  { %13530 = vrot.lane.b32.xlu2 %v17768_v26, %s14270_s20  ;;  %13535 = vrot.lane.b32.xlu1 %v17768_v26, %s14271_s21 }
 0xf7e   :  { %13520 = vrot.lane.b32.xlu0 %v17735_v20, %s14271_s21 }
 0xf7f   :  { %v17776_v16 = vpop.permute.xlu2 %13375  ;;  %v17778_v29 = vpop.permute.xlu1 %13320 }
 0xf80   :  { %v17780_v54 = vpop.permute.xlu0 %13315 }
 0xf85   :  { %13555 = vrot.lane.b32.xlu2 %v17726_v37, %s14272_s2  ;;  %13550 = vrot.lane.b32.xlu1 %v17709_v56, %s14272_s2 }
 0xf86   :  { %13540 = vrot.lane.b32.xlu0 %v13539_v59, %s14266_s3 }
 0xf87   :  { %v17789_v11 = vpop.permute.xlu2 %13385  ;;  %v17791_v27 = vpop.permute.xlu1 %13335 }
 0xf88   :  { %20630 = vst [vmem:[#allocation35_spill] sm:$0xff] %v17789_v11  ;;  %v17793_v7 = vpop.permute.xlu0 %13330 }
 0xf8d   :  { %13560 = vrot.lane.b32.xlu2 %v17583_v57, %s14273_s0  ;;  %13570 = vrot.lane.b32.xlu1 %v17735_v20, %s14273_s0 }
 0xf8e   :  { %13545 = vrot.lane.b32.xlu0 %v17768_v26, %s14272_s2 }
 0xf8f   :  { %v17801_v19 = vpop.permute.xlu2 %13400  ;;  %v17803_v51 = vpop.permute.xlu1 %13345 }
 0xf90   :  { %20631 = vst [vmem:[#allocation36_spill] sm:$0xff] %v17803_v51  ;;  %v17805_v45 = vpop.permute.xlu0 %13350  ;;  %v20235_v34 = vunpack.i.l.bf16 %v17801_v19 }
 0xf91   :  { %20632 = vst [vmem:[#allocation68_spill] sm:$0xff] %v17805_v45 }
 0xf95   :  { %13575 = vrot.lane.b32.xlu2 %v17768_v26, %s14273_s0  ;;  %13585 = vrot.lane.b32.xlu1 %v13539_v59, %s14264_s1 }
 0xf96   :  { %13565 = vrot.lane.b32.xlu0 %v17662_v24, %s14273_s0 }
 0xf97   :  { %v17812_v49 = vpop.permute.xlu2 %13415  ;;  %v17814_v48 = vpop.permute.xlu1 %13355 }
 0xf98   :  { %v17816_v5 = vpop.permute.xlu0 %13365  ;;  %v13358_v12 = vunpack.i.h.bf16 %v17814_v48  ;;  %v20232_v14 = vunpack.i.l.bf16 %v17814_v48 }
 0xf9a   :  { %v6952_v8 = vsel %vm1563_vm8, %v20232_v14, %v13358_v12 }
 0xf9d   :  { %13600 = vrot.lane.b32.xlu2 %v13539_v59, %s14267_s30  ;;  %13590 = vrot.lane.b32.xlu1 %v17726_v37, %s14273_s0  ;;  %s20645_s30 = smov 127  }
 0xf9e   :  { %13580 = vrot.lane.b32.xlu0 %v17709_v56, %s14273_s0 }
 0xf9f   :  { %v17823_v38 = vpop.permute.xlu2 %13425  ;;  %v17825_v33 = vpop.permute.xlu1 %13370 }
 0xfa0   :  { %v17827_v62 = vpop.permute.xlu0 %13380 }
 0xfa5   :  { %13605 = vrot.lane.b32.xlu2 %v17662_v24, %s14274_s27  ;;  %13595 = vrot.lane.b32.xlu1 %v17583_v57, %s14274_s27 }
 0xfa6   :  { %13610 = vrot.lane.b32.xlu0 %v17735_v20, %s14274_s27 }
 0xfa7   :  { %v17835_v41 = vpop.permute.xlu2 %13430  ;;  %v17837_v4 = vpop.permute.xlu1 %13390 }
 0xfa8   :  { %20633 = vst [vmem:[#allocation37_spill] sm:$0xff] %v17837_v4  ;;  %v20231_v31 = vunpack.i.h.bf16 %v17835_v41  ;;  %v13432_v52 = vunpack.i.l.bf16 %v17835_v41  ;;  %v17841_v46 = vpop.permute.xlu0 %13405 }
 0xfaa   :  { %v6959_v44 = vsel %vm1563_vm8, %v13432_v52, %v20231_v31  ;;  %v13317_v31 = vunpack.i.l.bf16 %v17780_v54 }
 0xfab   :  { %7054 = vmatpush.msra.mxu1 %v6959_v44 }
 0xfad   :  { %13620 = vrot.lane.b32.xlu2 %v17709_v56, %s14274_s27  ;;  %13615 = vrot.lane.b32.xlu1 %v17768_v26, %s14274_s27 }
 0xfae   :  { %13625 = vrot.lane.b32.xlu0 %v13539_v59, %s14268_s16  ;;  %s20660_s16 = smov 126  }
 0xfaf   :  { %v17851_v63 = vpop.permute.xlu2 %13445  ;;  %v17853_v1 = vpop.permute.xlu1 %13395 }
 0xfb0   :  { %v20233_v2 = vunpack.i.h.bf16 %v17853_v1  ;;  %v17856_v6 = vpop.permute.xlu0 %13420 }
 0xfb2   :  { %v6958_v47 = vsel %vm1563_vm8, %v20233_v2, %v13432_v52 }
 0xfb3   :  { %7034 = vmatpush.msra.mxu0 %v6958_v47 }
 0xfb5   :  { %13645 = vrot.lane.b32.xlu2 %v17735_v20, %s14275_s23  ;;  %13640 = vrot.lane.b32.xlu1 %v17662_v24, %s14275_s23 }
 0xfb6   :  { %7035 = vmatpush.msra.mxu0 %v6952_v8  ;;  %13630 = vrot.lane.b32.xlu0 %v17726_v37, %s14274_s27  ;;  %v20238_v8 = vunpack.i.h.bf16 %v17778_v29 }
 0xfb7   :  { %v17872_v13 = vpop.permute.xlu2 %13465  ;;  %v17874_v36 = vpop.permute.xlu1 %13410 }
 0xfb8   :  { %v20230_v42 = vunpack.i.h.bf16 %v17872_v13  ;;  %v13467_v60 = vunpack.i.l.bf16 %v17872_v13  ;;  %v17878_v50 = vpop.permute.xlu0 %13435 }
 0xfb9   :  { %v20257_v51 = vunpack.i.h.bf16 %v17878_v50 }
 0xfba   :  { %v6953_v39 = vsel %vm1563_vm8, %v13358_v12, %v13467_v60  ;;  %v17884_v17 = vsel %vm1563_vm8, %v13467_v60, %v20230_v42  ;;  %v13322_v60 = vunpack.i.l.bf16 %v17778_v29  ;;  %v13318_v42 = vunpack.i.h.bf16 %v17780_v54 }
 0xfbb   :  { %7055 = vmatpush.msra.mxu1 %v6953_v39  ;;  %v13397_v39 = vunpack.i.l.bf16 %v17853_v1 }
 0xfbc   :  { %v7148_v45 = vsel %vm1509_vm7, %v13322_v60, %v20238_v8  ;;  %v6950_v54 = vsel %vm1563_vm8, %v13317_v31, %v13318_v42  ;;  %v20637_v60 = vunpack.i.l.bf16 %v17814_v48  ;;  %v17982_v31 = vld [vmem:[%s20095_s6] sm:$0x3f] }
 0xfbd   :  { %13655 = vrot.lane.b32.xlu2 %v17888_v21, %s14270_s20  ;;  %13650 = vrot.lane.b32.xlu1 %v13539_v59, %s14269_s17  ;;  %v17925_v59 = vld [vmem:[%s20095_s6 + $0x8] sm:$0x3f] }
 0xfbe   :  { %13635 = vrot.lane.b32.xlu0 %v17583_v57, %s14275_s23  ;;  %12629 = vmatmul.msk.f32.vlgmr.msra.gmra.mxu0 %vm6976_vm3, %v17925_v59 }
 0xfbf   :  { %v17895_v55 = vpop.permute.xlu2 %13490  ;;  %v17897_v53 = vpop.permute.xlu1 %13440  ;;  %12630 = vmatmul.msk.f32.vlgmr.msra.gmra.mxu1 %vm6976_vm3, %v17925_v59 }
 0xfc0   :  { %v17899_v18 = vpop.permute.xlu0 %13450 }
 0xfc5   :  { %13670 = vrot.lane.b32.xlu2 %v17888_v21, %s14273_s0  ;;  %13660 = vrot.lane.b32.xlu1 %v17888_v21, %s14271_s21 }
 0xfc6   :  { %13665 = vrot.lane.b32.xlu0 %v17888_v21, %s14272_s2 }
 0xfc7   :  { %v17907_v58 = vpop.permute.xlu2 %13495  ;;  %v17909_v10 = vpop.permute.xlu1 %13455 }
 0xfc8   :  { %v17911_v32 = vpop.permute.xlu0 %13460 }
 0xfc9   :  { %20634 = vst [vmem:[#allocation66_spill] sm:$0xff] %v17911_v32 }
 0xfcd   :  { %13695 = vrot.lane.b32.xlu2 %v17726_v37, %s14275_s23  ;;  %13675 = vrot.lane.b32.xlu1 %v17888_v21, %s14274_s27 }
 0xfce   :  { %13680 = vrot.lane.b32.xlu0 %v17914_v28, %s14270_s20 }
 0xfcf   :  { %v17927_v52 = vpop.permute.xlu2 %13525  ;;  %v17929_v44 = vpop.permute.xlu1 %13480 }
 0xfd0   :  { %v13483_v12 = vunpack.i.h.bf16 %v17929_v44  ;;  %v17937_v47 = vpop.permute.xlu0 %13470 }
 0xfd1   :  { %v13473_v9 = vunpack.i.h.bf16 %v17937_v47 }
 0xfd2   :  { %v7154_v14 = vsel %vm1509_vm7, %v13483_v12, %v20235_v34 }
 0xfd3   :  { %v6956_v2 = vsel %vm1563_vm8, %v13473_v9, %v13397_v39  ;;  %7191 = vmatpush.msrb.mxu1 %v7154_v14  ;;  %v20635_v14 = vunpack.i.h.bf16 %v17853_v1 }
 0xfd4   :  { %6994 = vmatpush.msrb.mxu3 %v6956_v2 }
 0xfd5   :  { %13705 = vrot.lane.b32.xlu2 %v17914_v28, %s14271_s21  ;;  %13690 = vrot.lane.b32.xlu1 %v17709_v56, %s14275_s23  ;;  %v6957_v2 = vsel %vm1563_vm8, %v13397_v39, %v20635_v14 }
 0xfd6   :  { %7192 = vmatpush.msrb.mxu1 %v7148_v45  ;;  %13685 = vrot.lane.b32.xlu0 %v17768_v26, %s14275_s23  ;;  %v6951_v45 = vsel %vm1563_vm8, %v13318_v42, %v20637_v60 }
 0xfd7   :  { %6995 = vmatpush.msrb.mxu3 %v6950_v54  ;;  %v17962_v12 = vpop.permute.xlu2 %13530  ;;  %v17964_v9 = vpop.permute.xlu1 %13485  ;;  %12634 = vmatmul.msk.f32.vlgmr.msrb.gmra.mxu1 %vm6976_vm3, %v17982_v31 }
 0xfd8   :  { %20636 = vst [vmem:[#allocation38_spill] sm:$0xff] %v17962_v12  ;;  %v17966_v34 = vpop.permute.xlu0 %13475  ;;  %12627 = vmatmul.msk.f32.vlgmr.msrb.gmra.mxu3 %vm6976_vm3, %v17925_v59 }
 0xfd9   :  { %7014 = vmatpush.msra.mxu3 %v6957_v2  ;;  %v20239_v2 = vunpack.i.l.bf16 %v17962_v12 }
 0xfdb   :  { %7015 = vmatpush.msra.mxu3 %v6951_v45 }
 0xfdd   :  { %13710 = vrot.lane.b32.xlu2 %v17583_v57, %s14276_s24  ;;  %13720 = vrot.lane.b32.xlu1 %v17735_v20, %s14276_s24  ;;  %v20236_v57 = vunpack.i.h.bf16 %v17907_v58 }
 0xfde   :  { %13700 = vrot.lane.b32.xlu0 %v17888_v21, %s14275_s23 }
 0xfdf   :  { %v17984_v48 = vpop.permute.xlu2 %13555  ;;  %v17986_v1 = vpop.permute.xlu1 %13510 }
 0xfe0   :  { %v17990_v42 = vpop.permute.xlu0 %13500  ;;  %12628 = vmatmul.msk.f32.vlgmr.msra.gmra.mxu3 %vm6976_vm3, %v17925_v59 }
 0xfe1   :  { %v20237_v20 = vunpack.i.l.bf16 %v17990_v42 }
 0xfe3   :  { %v18001_v39 = vsel %vm2168_vm14, %v20236_v57, %v20237_v20  ;;  %v20243_v57 = vunpack.i.l.bf16 %v17986_v1 }
 0xfe5   :  { %13725 = vrot.lane.b32.xlu2 %v17768_v26, %s14276_s24  ;;  %13735 = vrot.lane.b32.xlu1 %v17914_v28, %s14272_s2  ;;  %s20843_s2 = smov 87  }
 0xfe6   :  { %13715 = vrot.lane.b32.xlu0 %v17662_v24, %s14276_s24 }
 0xfe7   :  { %v18009_v54 = vpop.permute.xlu2 %13560  ;;  %v18011_v14 = vpop.permute.xlu1 %13515 }
 0xfe8   :  { %v20240_v60 = vunpack.i.h.bf16 %v18011_v14  ;;  %v18015_v45 = vpop.permute.xlu0 %13505 }
 0xfe9   :  { %v20242_v26 = vunpack.i.h.bf16 %v18015_v45 }
 0xfea   :  { %v18024_v24 = vsel %vm2610_vm2, %v20240_v60, %v20239_v2 }
 0xfeb   :  { %20638 = vst [vmem:[#allocation67_spill] sm:$0xff] %v18024_v24  ;;  %v18031_v20 = vsel %vm20639_vm12, %v20242_v26, %v20243_v57  ;;  %v18049_v57 = vpack.i.bf16 %v17643_v35, %v17572_v15  ;;  %v18053_v24 = vpack.i.bf16 %v17569_v0, %v17564_v30  ;;  %vm20643_vm12 = vcmask 171008  }
 0xfec   :  { %v20255_v0 = vunpack.i.l.bf16 %v17984_v48 }
 0xfed   :  { %13745 = vrot.lane.b32.xlu2 %v17888_v21, %s14276_s24  ;;  %13740 = vrot.lane.b32.xlu1 %v17726_v37, %s14276_s24 }
 0xfee   :  { %13730 = vrot.lane.b32.xlu0 %v17709_v56, %s14276_s24 }
 0xfef   :  { %v18039_v8 = vpop.permute.xlu2 %13575  ;;  %v18041_v2 = vpop.permute.xlu1 %13535 }
 0xff0   :  { %20640 = vst [vmem:[#allocation70_spill] sm:$0xff] %v18039_v8  ;;  %v20246_v60 = vunpack.i.l.bf16 %v18041_v2  ;;  %v18044_v4 = vpop.permute.xlu0 %13520 }
 0xff1   :  { %20641 = vst [vmem:[#allocation39_spill] sm:$0xff] %v18041_v2  ;;  %v20247_v26 = vunpack.i.h.bf16 %v18044_v4 }
 0xff2   :  { %20642 = vst [vmem:[#allocation71_spill] sm:$0xff] %v18044_v4  ;;  %v20647_v4 = vunpack.i.h.bf16 %v17835_v41  ;;  %v13403_v41 = vunpack.i.h.bf16 %v17801_v19 }
 0xff3   :  { %v18060_v56 = vsel %vm20643_vm12, %v20247_v26, %v20246_v60  ;;  %vm20646_vm12 = vcmask 162816  }
 0xff4   :  { %20644 = vst [vmem:[#allocation69_spill] sm:$0xff] %v18060_v56  ;;  %v13472_v56 = vunpack.i.l.bf16 %v17937_v47  ;;  %v18090_v47 = vpack.i.bf16 %v17610_v61, %v17764_v25  ;;  %v20648_v61 = vunpack.i.h.bf16 %v17872_v13 }
 0xff5   :  { %13755 = vrot.lane.b32.xlu2 %v18049_v57, %s20645_s30  ;;  %13750 = vrot.lane.b32.xlu1 %v18053_v24, %s20645_s30 }
 0xff6   :  { %13760 = vrot.lane.b32.xlu0 %v17914_v28, %s14273_s0  ;;  %v6955_v25 = vsel %vm1563_vm8, %v20648_v61, %v13472_v56  ;;  %v20650_v61 = vunpack.i.l.bf16 %v17801_v19 }
 0xff7   :  { %v18068_v15 = vpop.permute.xlu2 %13600  ;;  %v18070_v30 = vpop.permute.xlu1 %13550 }
 0xff8   :  { %v20256_v35 = vunpack.i.h.bf16 %v18070_v30  ;;  %v13541_v2 = vpop.permute.xlu0 %13540 }
 0xff9   :  { %v13543_v60 = vunpack.i.h.bf16 %v13541_v2  ;;  %v13542_v26 = vunpack.i.l.bf16 %v13541_v2  ;;  %v13437_v2 = vunpack.i.l.bf16 %v17878_v50 }
 0xffa   :  { %v18080_v12 = vsel %vm20646_vm12, %v20256_v35, %v20255_v0  ;;  %v18094_v0 = vpack.i.bf16 %v17655_v22, %v17650_v43  ;;  %v13363_v22 = vunpack.i.h.bf16 %v17762_v40  ;;  %v13327_v35 = vunpack.i.l.bf16 %v17748_v23 }
 0xffb   :  { %7114 = vmatpush.msrb.mxu0 %v13543_v60  ;;  %v6960_v11 = vsel %vm1563_vm8, %v20647_v4, %v13542_v26  ;;  %v6961_v32 = vsel %vm1563_vm8, %v13542_v26, %v13543_v60  ;;  %v20260_v4 = vunpack.i.l.bf16 %v17966_v34  ;;  %v13493_v26 = vunpack.i.h.bf16 %v17895_v55 }
 0xffc   :  { %7074 = vmatpush.msra.mxu2 %v6960_v11  ;;  %7094 = vmatpush.msrb.mxu3 %v6961_v32  ;;  %v13362_v11 = vunpack.i.l.bf16 %v17762_v40  ;;  %v7157_v13 = vsel %vm1509_vm7, %v13437_v2, %v20257_v51  ;;  %v7156_v43 = vsel %vm1509_vm7, %v13403_v41, %v13437_v2  ;;  %vm20653_vm8 = vcmask 154624  }
 0xffd   :  { %7115 = vmatpush.msrb.mxu0 %v13472_v56  ;;  %13775 = vrot.lane.b32.xlu2 %v17914_v28, %s14274_s27  ;;  %v20259_v56 = vunpack.i.h.bf16 %v17927_v52  ;;  %v20655_v2 = vunpack.i.h.bf16 %v17778_v29  ;;  %v13443_v29 = vunpack.i.h.bf16 %v17897_v53 }
 0xffe   :  { %13770 = vrot.lane.b32.xlu1 %v18090_v47, %s20645_s30  ;;  %13765 = vrot.lane.b32.xlu0 %v18094_v0, %s20645_s30  ;;  %v7150_v40 = vsel %vm1509_vm7, %v13362_v11, %v13363_v22 }
 0xfff   :  { %7075 = vmatpush.msra.mxu2 %v17884_v17  ;;  %7095 = vmatpush.msrb.mxu3 %v6955_v25  ;;  %v18111_v32 = vpop.permute.xlu2 %13605  ;;  %v18113_v60 = vpop.permute.xlu1 %13570  ;;  %v7155_v25 = vsel %vm1509_vm7, %v20650_v61, %v13403_v41  ;;  %v7149_v41 = vsel %vm1509_vm7, %v20655_v2, %v13362_v11  ;;  %v20263_v11 = vunpack.i.l.bf16 %v17964_v9 }
0x1000   :  { %20649 = vst [vmem:[#allocation72_spill] sm:$0xff] %v18113_v60  ;;  %12633 = vmatmul.msk.f32.vlgmr.msrb.gmra.mxu0 %vm6976_vm3, %v17925_v59  ;;  %12631 = vmatmul.msk.f32.vlgmr.msra.gmra.mxu2 %vm6976_vm3, %v17925_v59  ;;  %v18125_v17 = vpop.permute.xlu0 %13545  ;;  %v20652_v19 = vunpack.i.h.bf16 %v18113_v60 }
0x1001   :  { %7251 = vmatpush.msra.mxu0 %v7157_v13  ;;  %12632 = vmatmul.msk.f32.vlgmr.msrb.gmra.mxu3 %vm6976_vm3, %v17925_v59  ;;  %v20258_v51 = vunpack.i.l.bf16 %v18125_v17  ;;  %v7151_v13 = vsel %vm1509_vm7, %v13363_v22, %v20260_v4  ;;  %v20651_v59 = vunpack.i.l.bf16 %v18039_v8  ;;  %v20262_v22 = vunpack.i.h.bf16 %v17964_v9 }
0x1002   :  { %7211 = vmatpush.msrb.mxu2 %v7155_v25  ;;  %7231 = vmatpush.msra.mxu3 %v7156_v43  ;;  %v20261_v25 = vunpack.i.l.bf16 %v18068_v15  ;;  %v13332_v8 = vunpack.i.l.bf16 %v17793_v7 }
0x1003   :  { %v18145_v61 = vsel %vm20653_vm8, %v20652_v19, %v20651_v59  ;;  %7252 = vmatpush.msra.mxu0 %v7151_v13  ;;  %v18156_v43 = vsel %vm20646_vm12, %v20259_v56, %v20258_v51  ;;  %v20656_v59 = vunpack.i.l.bf16 %v17841_v46  ;;  %vm20657_vm8 = vcmask 326656  }
0x1004   :  { %20654 = vst [vmem:[#allocation74_spill] sm:$0xff] %v18145_v61  ;;  %7212 = vmatpush.msrb.mxu2 %v7149_v41  ;;  %7232 = vmatpush.msra.mxu3 %v7150_v40  ;;  %v20658_v19 = vunpack.i.h.bf16 %v17748_v23  ;;  %vm20659_vm12 = vmmov %vm20657_vm8  ;;  %v20663_v56 = vunpack.i.h.bf16 %v18009_v54  ;;  %v20665_v61 = vunpack.i.l.bf16 %v18113_v60  ;;  %v20674_v60 = vunpack.i.l.bf16 %v17964_v9 }
0x1005   :  { %v7353_v13 = vsel %vm20657_vm8, %v13493_v26, %v20656_v59  ;;  %13780 = vrot.lane.b32.xlu2 %v17726_v37, %s20645_s30  ;;  %v13442_v26 = vunpack.i.l.bf16 %v17897_v53  ;;  %v13478_v59 = vunpack.i.h.bf16 %v17966_v34  ;;  %v20662_v53 = vunpack.i.h.bf16 %v17878_v50 }
0x1006   :  { %7390 = vmatpush.msrb.mxu0 %v7353_v13  ;;  %v7347_v2 = vsel %vm20659_vm12, %v13327_v35, %v20658_v19  ;;  %13800 = vrot.lane.b32.xlu1 %v18094_v0, %s20660_s16  ;;  %v7357_v35 = vsel %vm20657_vm8, %v13443_v29, %v20261_v25  ;;  %v13482_v25 = vunpack.i.l.bf16 %v17929_v44  ;;  %vm20661_vm12 = vmmov %vm20657_vm8  ;;  %vm20664_vm8 = vcmask 154624  }
0x1007   :  { %13785 = vrot.lane.b32.xlu0 %v17888_v21, %s20645_s30  ;;  %v18175_v40 = vpop.permute.xlu2 %13620  ;;  %v13586_v41 = vpop.permute.xlu1 %13585  ;;  %v20265_v50 = vunpack.i.h.bf16 %v17874_v36 }
0x1008   :  { %7391 = vmatpush.msrb.mxu0 %v7347_v2  ;;  %12635 = vmatmul.msk.f32.vlgmr.msrb.gmra.mxu2 %vm6976_vm3, %v17982_v31  ;;  %v13588_v13 = vunpack.i.h.bf16 %v13586_v41  ;;  %v13587_v19 = vunpack.i.l.bf16 %v13586_v41  ;;  %v18185_v51 = vpop.permute.xlu0 %13565  ;;  %v7351_v41 = vsel %vm20661_vm12, %v20263_v11, %v20262_v22  ;;  %vm20667_vm12 = vmmov %vm20664_vm8 }
0x1009   :  { %12637 = vmatmul.msk.f32.vlgmr.msra.gmra.mxu0 %vm6976_vm3, %v17982_v31  ;;  %12636 = vmatmul.msk.f32.vlgmr.msra.gmra.mxu3 %vm6976_vm3, %v17982_v31  ;;  %v20264_v4 = vunpack.i.l.bf16 %v18185_v51  ;;  %v20666_v22 = vunpack.i.h.bf16 %v18185_v51 }
0x100a   :  { %7470 = vmatpush.msra.mxu0 %v7357_v35  ;;  %7311 = vmatpush.msrb.mxu3 %v13588_v13  ;;  %v7158_v35 = vsel %vm1509_vm7, %v20662_v53, %v13587_v19  ;;  %v7159_v2 = vsel %vm1509_vm7, %v13587_v19, %v13588_v13  ;;  %v13412_v13 = vunpack.i.l.bf16 %v17874_v36  ;;  %v20669_v19 = vunpack.i.l.bf16 %v17966_v34 }
0x100b   :  { %7271 = vmatpush.msra.mxu1 %v7158_v35  ;;  %v18208_v44 = vsel %vm20664_vm8, %v20663_v56, %v20264_v4  ;;  %v18215_v11 = vsel %vm20667_vm12, %v20666_v22, %v20665_v61  ;;  %7291 = vmatpush.msra.mxu2 %v7159_v2  ;;  %v13408_v56 = vunpack.i.h.bf16 %v17841_v46  ;;  %v18228_v61 = vld [vmem:[%s20095_s6 + $0x10] sm:$0x3f]  ;;  %v7153_v34 = vsel %vm1509_vm7, %v13478_v59, %v13482_v25 }
0x100c   :  { %7471 = vmatpush.msra.mxu0 %v7351_v41  ;;  %20668 = vst [vmem:[#allocation76_spill] sm:$0xff] %v18215_v11  ;;  %7312 = vmatpush.msrb.mxu3 %v13482_v25  ;;  %v7152_v53 = vsel %vm1509_vm7, %v20669_v19, %v13478_v59  ;;  %vm20670_vm8 = vcmask 326656   ;;  %v13367_v2 = vunpack.i.l.bf16 %v17816_v5  ;;  %v13503_v4 = vunpack.i.h.bf16 %v17990_v42 }
0x100d   :  { %13790 = vrot.lane.b32.xlu2 %v18053_v24, %s20660_s16  ;;  %7272 = vmatpush.msra.mxu1 %v7152_v53  ;;  %v7356_v22 = vsel %vm20670_vm8, %v13442_v26, %v13443_v29  ;;  %v13368_v53 = vunpack.i.h.bf16 %v17816_v5  ;;  %v7560_v25 = vsel %vm2168_vm14, %v13412_v13, %v20265_v50  ;;  %v13603_v5 = vunpack.i.h.bf16 %v18068_v15  ;;  %vm20672_vm7 = vmmov %vm20670_vm8 }
0x100e   :  { %13815 = vrot.lane.b32.xlu1 %v17888_v21, %s20660_s16  ;;  %7292 = vmatpush.msra.mxu2 %v7153_v34  ;;  %v13333_v34 = vunpack.i.h.bf16 %v17793_v7  ;;  %vm20673_vm12 = vmmov %vm20672_vm7  ;;  %v20677_v50 = vunpack.i.h.bf16 %v17748_v23  ;;  %v20682_v23 = vunpack.i.l.bf16 %v18068_v15 }
0x100f   :  { %13795 = vrot.lane.b32.xlu0 %v18049_v57, %s20660_s16  ;;  %7450 = vmatpush.msra.mxu3 %v7356_v22  ;;  %v18238_v35 = vpop.permute.xlu2 %13645  ;;  %v18240_v19 = vpop.permute.xlu1 %13590  ;;  %v20671_v22 = vunpack.i.l.bf16 %v17841_v46  ;;  %v7355_v29 = vsel %vm20673_vm12, %v13408_v56, %v13442_v26  ;;  %vm20675_vm8 = vmmov %vm20672_vm7  ;;  %v20676_v46 = vunpack.i.l.bf16 %v17825_v33 }
0x1010   :  { %12638 = vmatmul.msk.f32.vlgmr.msra.gmra.mxu1 %vm6976_vm3, %v17982_v31  ;;  %v18252_v59 = vpop.permute.xlu0 %13580  ;;  %12639 = vmatmul.msk.f32.vlgmr.msra.gmra.mxu2 %vm6976_vm3, %v17982_v31  ;;  %v7348_v7 = vsel %vm20672_vm7, %v20677_v50, %v13367_v2  ;;  %v20678_v11 = vunpack.i.l.bf16 %v18240_v19  ;;  %vm20681_vm12 = vmmov %vm20672_vm7 }
0x1011   :  { %12642 = vmatmul.msk.f32.vlgmr.msrb.gmra.mxu0 %vm6976_vm3, %v18228_v61  ;;  %v7354_v41 = vsel %vm20672_vm7, %v20671_v22, %v13408_v56  ;;  %12640 = vmatmul.msk.f32.vlgmr.msrb.gmra.mxu3 %vm6976_vm3, %v17982_v31  ;;  %v7554_v22 = vsel %vm2168_vm14, %v13333_v34, %v20676_v46  ;;  %v20679_v31 = vunpack.i.h.bf16 %v18252_v59  ;;  %v7559_v56 = vsel %vm2168_vm14, %v13503_v4, %v13412_v13 }
0x1012   :  { %7616 = vmatpush.msrb.mxu0 %v7560_v25  ;;  %7410 = vmatpush.msrb.mxu1 %v7354_v41  ;;  %v7350_v25 = vsel %vm20675_vm8, %v13368_v53, %v20674_v60  ;;  %v7349_v60 = vsel %vm20681_vm12, %v13367_v2, %v13368_v53  ;;  %v13492_v41 = vunpack.i.l.bf16 %v17895_v55  ;;  %vm20683_vm8 = vmmov %vm20672_vm7  ;;  %v20684_v2 = vunpack.i.h.bf16 %v17964_v9 }
0x1013   :  { %7430 = vmatpush.msrb.mxu2 %v7355_v29  ;;  %7451 = vmatpush.msra.mxu3 %v7350_v25  ;;  %v18280_v26 = vsel %vm20680_vm11, %v20679_v31, %v20678_v11  ;;  %v7358_v50 = vsel %vm20683_vm8, %v20682_v23, %v13603_v5  ;;  %v13448_v29 = vunpack.i.h.bf16 %v17851_v63  ;;  %v13447_v25 = vunpack.i.l.bf16 %v17851_v63  ;;  %vm20685_vm11 = vmmov %vm20672_vm7 }
0x1014   :  { %7617 = vmatpush.msrb.mxu0 %v7554_v22  ;;  %7411 = vmatpush.msrb.mxu1 %v7348_v7  ;;  %v7553_v11 = vsel %vm2168_vm14, %v13332_v8, %v13333_v34  ;;  %v7352_v4 = vsel %vm20685_vm11, %v20684_v2, %v13492_v41  ;;  %v13373_v13 = vunpack.i.h.bf16 %v17825_v33  ;;  %v13497_v8 = vunpack.i.l.bf16 %v17907_v58 }
0x1015   :  { %7431 = vmatpush.msrb.mxu2 %v7349_v60  ;;  %7596 = vmatpush.msrb.mxu3 %v7559_v56  ;;  %v20278_v9 = vunpack.i.h.bf16 %v18111_v32  ;;  %v20272_v34 = vunpack.i.l.bf16 %v18111_v32  ;;  %v7562_v46 = vsel %vm2168_vm14, %v13447_v25, %v13448_v29  ;;  %v20686_v22 = vunpack.i.h.bf16 %v17874_v36 }
0x1016   :  { %7490 = vmatpush.msra.mxu1 %v7358_v50  ;;  %13805 = vrot.lane.b32.xlu2 %v18090_v47, %s20660_s16  ;;  %vm20687_vm7 = vcmask 146432   ;;  %v20689_v36 = vunpack.i.l.bf16 %v17825_v33  ;;  %v13513_v23 = vunpack.i.h.bf16 %v17986_v1  ;;  %v18348_v50 = vld [vmem:[%s20095_s6 + $0x18] sm:$0x3f]  ;;  %v13338_v33 = vunpack.i.h.bf16 %v17791_v27 }
0x1017   :  { %7510 = vmatpush.msra.mxu2 %v13603_v5  ;;  %7597 = vmatpush.msrb.mxu3 %v7553_v11  ;;  %v18296_v55 = vpop.permute.xlu2 %13655  ;;  %v18298_v15 = vpop.permute.xlu1 %13595  ;;  %v7561_v7 = vsel %vm2168_vm14, %v20686_v22, %v13447_v25  ;;  %vm20688_vm12 = vmmov %vm20687_vm7  ;;  %v13417_v22 = vunpack.i.l.bf16 %v17812_v49  ;;  %vm20691_vm11 = vcmask 310272  }
0x1018   :  { %7491 = vmatpush.msra.mxu1 %v7352_v4  ;;  %v20282_v63 = vunpack.i.h.bf16 %v18298_v15  ;;  %v18302_v53 = vpop.permute.xlu0 %13610  ;;  %13825 = vrot.lane.b32.xlu1 %v17914_v28, %s14275_s23  ;;  %v7555_v56 = vsel %vm2168_vm14, %v20689_v36, %v13373_v13  ;;  %vm20690_vm8 = vmmov %vm20687_vm7 }
0x1019   :  { %7511 = vmatpush.msra.mxu2 %v13492_v41  ;;  %13810 = vrot.lane.b32.xlu0 %v17726_v37, %s20660_s16  ;;  %v20271_v5 = vunpack.i.l.bf16 %v18302_v53  ;;  %v7556_v41 = vsel %vm2168_vm14, %v13373_v13, %v13497_v8  ;;  %v20277_v2 = vunpack.i.h.bf16 %v18302_v53 }
0x101a   :  { %12646 = vmatmul.msk.f32.vlgmr.msra.gmra.mxu0 %vm6976_vm3, %v18228_v61  ;;  %12643 = vmatmul.msk.f32.vlgmr.msrb.gmra.mxu1 %vm6976_vm3, %v18228_v61  ;;  %v18329_v31 = vsel %vm20687_vm7, %v20282_v63, %v20272_v34  ;;  %vm20692_vm7 = vmmov %vm20691_vm11 }
0x101b   :  { %12644 = vmatmul.msk.f32.vlgmr.msrb.gmra.mxu2 %vm6976_vm3, %v18228_v61  ;;  %12645 = vmatmul.msk.f32.vlgmr.msra.gmra.mxu3 %vm6976_vm3, %v18228_v61  ;;  %v18336_v60 = vsel %vm20688_vm12, %v20278_v9, %v20271_v5  ;;  %vm20695_vm12 = vmmov %vm20692_vm7  ;;  %v18477_v9 = vld [vmem:[#allocation3 + $0x60] sm:$0xff] }
0x101c   :  { %7636 = vmatpush.msrb.mxu1 %v7561_v7  ;;  %7656 = vmatpush.msrb.mxu2 %v7562_v46  ;;  %v13337_v46 = vunpack.i.l.bf16 %v17791_v27  ;;  %vm20700_vm10 = vmmov %vm20692_vm7 }
0x101e   :  { %7637 = vmatpush.msrb.mxu1 %v7555_v56  ;;  %7657 = vmatpush.msrb.mxu2 %v7556_v41  ;;  %v13418_v56 = vunpack.i.h.bf16 %v17812_v49  ;;  %v7765_v41 = vsel %vm20691_vm11, %v13513_v23, %v13417_v22  ;;  %v7759_v34 = vsel %vm20692_vm7, %v13337_v46, %v13338_v33  ;;  %v20693_v49 = vunpack.i.l.bf16 %v17990_v42 }
0x101f   :  { %13835 = vrot.lane.b32.xlu2 %v18094_v0, %s14277_s25  ;;  %v18350_v25 = vpop.permute.xlu2 %13670  ;;  %v18352_v11 = vpop.permute.xlu1 %13615  ;;  %v13453_v23 = vunpack.i.h.bf16 %v17899_v18  ;;  %v13378_v42 = vunpack.i.h.bf16 %v17776_v16  ;;  %vm20698_vm11 = vcmask 146432  }
0x1020   :  { %v20273_v4 = vunpack.i.l.bf16 %v18352_v11  ;;  %v13626_v13 = vpop.permute.xlu0 %13625  ;;  %13830 = vrot.lane.b32.xlu1 %v18049_v57, %s14277_s25  ;;  %v7766_v46 = vsel %vm20695_vm12, %v13417_v22, %v13418_v56  ;;  %v20283_v22 = vunpack.i.h.bf16 %v18175_v40  ;;  %vm20699_vm12 = vmmov %vm20692_vm7 }
0x1021   :  { %13820 = vrot.lane.b32.xlu0 %v18053_v24, %s14277_s25  ;;  %v13628_v7 = vunpack.i.h.bf16 %v13626_v13  ;;  %v13627_v36 = vunpack.i.l.bf16 %v13626_v13 }
0x1022   :  { %12651 = vmatmul.msk.f32.vlgmr.msrb.gmra.mxu0 %vm6976_vm3, %v18348_v50  ;;  %12647 = vmatmul.msk.f32.vlgmr.msra.gmra.mxu1 %vm6976_vm3, %v18228_v61  ;;  %v18372_v27 = vsel %vm20690_vm8, %v20277_v2, %v20273_v4  ;;  %vm20697_vm8 = vmmov %vm20692_vm7  ;;  %v18475_v2 = vld [vmem:[#allocation3 + $0x58] sm:$0xff] }
0x1023   :  { %12648 = vmatmul.msk.f32.vlgmr.msra.gmra.mxu2 %vm6976_vm3, %v18228_v61  ;;  %12650 = vmatmul.msk.f32.vlgmr.msrb.gmra.mxu3 %vm6976_vm3, %v18348_v50  ;;  %v7563_v13 = vsel %vm2168_vm14, %v13448_v29, %v13627_v36  ;;  %v7564_v5 = vsel %vm2168_vm14, %v13627_v36, %v13628_v7  ;;  %v20694_v61 = vunpack.i.h.bf16 %v17907_v58  ;;  %v13452_v29 = vunpack.i.l.bf16 %v17899_v18 }
0x1024   :  { %7802 = vmatpush.msra.mxu2 %v7765_v41  ;;  %7716 = vmatpush.msra.mxu1 %v13628_v7  ;;  %v20275_v58 = vunpack.i.l.bf16 %v18238_v35 }
0x1025   :  { %7676 = vmatpush.msra.mxu3 %v7563_v13  ;;  %7696 = vmatpush.msra.mxu0 %v7564_v5  ;;  %v7557_v4 = vsel %vm2168_vm14, %v13497_v8, %v20694_v61  ;;  %v13377_v5 = vunpack.i.l.bf16 %v17776_v16  ;;  %vm20696_vm14 = vmmov %vm20692_vm7 }
0x1026   :  { %7803 = vmatpush.msra.mxu2 %v7759_v34  ;;  %7717 = vmatpush.msra.mxu1 %v20693_v49 }
0x1027   :  { %13855 = vrot.lane.b32.xlu2 %v17888_v21, %s14277_s25  ;;  %7677 = vmatpush.msra.mxu3 %v7557_v4  ;;  %v18393_v7 = vpop.permute.xlu2 %13695  ;;  %v18395_v34 = vpop.permute.xlu1 %13640  ;;  %v13507_v4 = vunpack.i.l.bf16 %v18015_v45  ;;  %v7760_v13 = vsel %vm20692_vm7, %v13338_v33, %v13377_v5  ;;  %v7761_v49 = vsel %vm20699_vm12, %v13377_v5, %v13378_v42 }
0x1028   :  { %7697 = vmatpush.msra.mxu0 %v18001_v39  ;;  %v20276_v8 = vunpack.i.h.bf16 %v18395_v34  ;;  %v18401_v18 = vpop.permute.xlu0 %13630  ;;  %13850 = vrot.lane.b32.xlu1 %v17726_v37, %s14277_s25  ;;  %v7767_v37 = vsel %vm20696_vm14, %v13418_v56, %v13452_v29  ;;  %v7768_v39 = vsel %vm20697_vm8, %v13452_v29, %v13453_v23  ;;  %v13423_v56 = vunpack.i.h.bf16 %v17856_v6  ;;  %vm20702_vm14 = vmmov %vm20692_vm7 }
0x1029   :  { %7822 = vmatpush.msrb.mxu3 %v7766_v46  ;;  %13840 = vrot.lane.b32.xlu0 %v17914_v28, %s14276_s24  ;;  %v20281_v36 = vunpack.i.l.bf16 %v18401_v18  ;;  %v7762_v61 = vsel %vm20700_vm10, %v13378_v42, %v13507_v4  ;;  %v13422_v29 = vunpack.i.l.bf16 %v17856_v6  ;;  %v12657_v46 = vld [vmem:[%s20095_s6 + $0x20] sm:$0x3f]  ;;  %v13343_v42 = vunpack.i.h.bf16 %v17754_v3  ;;  %vm20701_vm10 = vmmov %vm20692_vm7  ;;  %s20858_s24 = smov 86  }
0x102a   :  { %12652 = vmatmul.msk.f32.vlgmr.msrb.gmra.mxu1 %vm6976_vm3, %v18348_v50  ;;  %12655 = vmatmul.msk.f32.vlgmr.msra.gmra.mxu0 %vm6976_vm3, %v18348_v50  ;;  %v18420_v16 = vsel %vm3685_vm15, %v20276_v8, %v20275_v58  ;;  %v20279_v6 = vunpack.i.l.bf16 %v18395_v34  ;;  %vm20705_vm8 = vmmov %vm20692_vm7 }
0x102b   :  { %12653 = vmatmul.msk.f32.vlgmr.msrb.gmra.mxu2 %vm6976_vm3, %v18348_v50  ;;  %12654 = vmatmul.msk.f32.vlgmr.msra.gmra.mxu3 %vm6976_vm3, %v18348_v50  ;;  %v18433_v41 = vsel %vm20698_vm11, %v20283_v22, %v20281_v36  ;;  %v8008_v8 = vsel %vm2610_vm2, %v13422_v29, %v13423_v56  ;;  %v18481_v29 = vpack.i.bf16 %v18477_v9, %v18475_v2  ;;  %vm20709_vm11 = vcmask 171008  }
0x102c   :  { %7842 = vmatpush.msrb.mxu0 %v7767_v37  ;;  %7862 = vmatpush.msrb.mxu1 %v7768_v39  ;;  %vm20712_vm7 = vmmov %vm20709_vm11 }
0x102d   :  { %7823 = vmatpush.msrb.mxu3 %v7760_v13  ;;  %vm20716_vm12 = vmmov %vm20712_vm7 }
0x102e   :  { %7843 = vmatpush.msrb.mxu0 %v7761_v49  ;;  %7863 = vmatpush.msrb.mxu1 %v7762_v61  ;;  %v13342_v49 = vunpack.i.l.bf16 %v17754_v3  ;;  %v13657_v3 = vunpack.i.l.bf16 %v18296_v55 }
0x102f   :  { %13865 = vrot.lane.b32.xlu2 %v18049_v57, %s14278_s28  ;;  %v18445_v37 = vpop.permute.xlu2 %13705  ;;  %v13651_v33 = vpop.permute.xlu1 %13650 }
0x1030   :  { %v13653_v39 = vunpack.i.h.bf16 %v13651_v33  ;;  %v13652_v5 = vunpack.i.l.bf16 %v13651_v33  ;;  %v18447_v13 = vpop.permute.xlu0 %13635  ;;  %13860 = vrot.lane.b32.xlu1 %v18053_v24, %s14278_s28 }
0x1031   :  { %13845 = vrot.lane.b32.xlu0 %v18090_v47, %s14277_s25  ;;  %v20280_v61 = vunpack.i.h.bf16 %v18447_v13 }
0x1032   :  { %12656 = vmatmul.msk.f32.vlgmr.msra.gmra.mxu1 %vm6976_vm3, %v18348_v50  ;;  %12660 = vmatmul.msk.f32.vlgmr.msrb.gmra.mxu0 %vm6976_vm3, %v12657_v46  ;;  %v7769_v33 = vsel %vm20701_vm10, %v13453_v23, %v13652_v5  ;;  %v7770_v58 = vsel %vm20702_vm14, %v13652_v5, %v13653_v39  ;;  %v13458_v23 = vunpack.i.h.bf16 %v17909_v10  ;;  %v8001_v5 = vsel %vm2610_vm2, %v13342_v49, %v13343_v42  ;;  %vm20717_vm10 = vmmov %vm20712_vm7 }
0x1033   :  { %12658 = vmatmul.msk.f32.vlgmr.msra.gmra.mxu2 %vm6976_vm3, %v12657_v46  ;;  %12659 = vmatmul.msk.f32.vlgmr.msrb.gmra.mxu3 %vm6976_vm3, %v12657_v46  ;;  %v18471_v50 = vsel %vm3685_vm15, %v20280_v61, %v20279_v6  ;;  %v20703_v6 = vunpack.i.l.bf16 %v17986_v1  ;;  %v13457_v49 = vunpack.i.l.bf16 %v17909_v10  ;;  %v13658_v1 = vunpack.i.h.bf16 %v18296_v55  ;;  %v20707_v55 = vld [vmem:[#allocation36_spill] sm:$0xff]  ;;  %vm20718_vm14 = vmmov %vm20712_vm7 }
0x1034   :  { %8046 = vmatpush.msra.mxu1 %v8008_v8  ;;  %7922 = vmatpush.msra.mxu0 %v13653_v39  ;;  %v20704_v8 = vunpack.i.h.bf16 %v18015_v45  ;;  %v13383_v10 = vunpack.i.h.bf16 %v17827_v62 }
0x1035   :  { %7882 = vmatpush.msrb.mxu2 %v7769_v33  ;;  %7902 = vmatpush.msra.mxu3 %v7770_v58  ;;  %v8011_v58 = vsel %vm2610_vm2, %v13458_v23, %v13657_v3 }
0x1036   :  { %8047 = vmatpush.msra.mxu1 %v8001_v5  ;;  %7923 = vmatpush.msra.mxu0 %v20703_v6  ;;  %v7763_v39 = vsel %vm20705_vm8, %v13507_v4, %v20704_v8  ;;  %v13517_v5 = vunpack.i.l.bf16 %v18011_v14  ;;  %v13382_v4 = vunpack.i.l.bf16 %v17827_v62  ;;  %v13428_v6 = vunpack.i.h.bf16 %v17823_v38  ;;  %vm20720_vm8 = vmmov %vm20712_vm7 }
0x1037   :  { %13880 = vrot.lane.b32.xlu2 %v18481_v29, %s14278_s28  ;;  %7883 = vmatpush.msrb.mxu2 %v7763_v39  ;;  %v18492_v33 = vpop.permute.xlu2 %13710  ;;  %v18494_v61 = vpop.permute.xlu1 %13660  ;;  %v13427_v8 = vunpack.i.l.bf16 %v17823_v38  ;;  %v8009_v62 = vsel %vm2610_vm2, %v13423_v56, %v13457_v49  ;;  %v13348_v39 = vunpack.i.h.bf16 %v20707_v55  ;;  %v8012_v38 = vsel %vm2610_vm2, %v13657_v3, %v13658_v1 }
0x1038   :  { %20706 = vst [vmem:[#allocation73_spill] sm:$0xff] %v18492_v33  ;;  %7903 = vmatpush.msra.mxu3 %v18031_v20  ;;  %8106 = vmatpush.msrb.mxu0 %v8011_v58  ;;  %v18499_v45 = vpop.permute.xlu0 %13665  ;;  %v8010_v20 = vsel %vm2610_vm2, %v13457_v49, %v13458_v23  ;;  %v13347_v58 = vunpack.i.l.bf16 %v20707_v55  ;;  %v8004_v36 = vsel %vm2610_vm2, %v13383_v10, %v13517_v5  ;;  %v20708_v56 = vunpack.i.h.bf16 %v18011_v14  ;;  %v20713_v55 = vld [vmem:[#allocation35_spill] sm:$0xff] }
0x1039   :  { %13875 = vrot.lane.b32.xlu1 %v18090_v47, %s14278_s28  ;;  %13870 = vrot.lane.b32.xlu0 %v18094_v0, %s14278_s28  ;;  %v8002_v63 = vsel %vm2610_vm2, %v13343_v42, %v13382_v4  ;;  %v8220_v49 = vsel %vm20709_vm11, %v13427_v8, %v13428_v6  ;;  %v13662_v14 = vunpack.i.l.bf16 %v18494_v61  ;;  %vm20723_vm11 = vmmov %vm20712_vm7 }
0x103a   :  { %12661 = vmatmul.msk.f32.vlgmr.msrb.gmra.mxu1 %vm6976_vm3, %v12657_v46  ;;  %12664 = vmatmul.msk.f32.vlgmr.msra.gmra.mxu0 %vm6976_vm3, %v12657_v46  ;;  %v8005_v23 = vsel %vm2610_vm2, %v13517_v5, %v20708_v56  ;;  %v8213_v5 = vsel %vm20712_vm7, %v13347_v58, %v13348_v39 }
0x103b   :  { %12662 = vmatmul.msk.f32.vlgmr.msrb.gmra.mxu2 %vm6976_vm3, %v12657_v46  ;;  %12663 = vmatmul.msk.f32.vlgmr.msra.gmra.mxu3 %vm6976_vm3, %v12657_v46  ;;  %v8003_v46 = vsel %vm2610_vm2, %v13382_v4, %v13383_v10 }
0x103c   :  { %8066 = vmatpush.msra.mxu2 %v8009_v62  ;;  %8086 = vmatpush.msrb.mxu3 %v8010_v20  ;;  %v20710_v62 = vld [vmem:[#allocation66_spill] sm:$0xff] }
0x103d   :  { %8126 = vmatpush.msrb.mxu1 %v8012_v38  ;;  %8107 = vmatpush.msrb.mxu0 %v8004_v36  ;;  %v13462_v20 = vunpack.i.l.bf16 %v20710_v62  ;;  %v12665_v36 = vld [vmem:[%s20095_s6 + $0x28] sm:$0x3f]  ;;  %v13387_v38 = vunpack.i.l.bf16 %v20713_v55 }
0x103e   :  { %8067 = vmatpush.msra.mxu2 %v8002_v63  ;;  %8087 = vmatpush.msrb.mxu3 %v8003_v46  ;;  %v13663_v63 = vunpack.i.h.bf16 %v18494_v61  ;;  %v20714_v46 = vld [vmem:[#allocation71_spill] sm:$0xff]  ;;  %v20715_v61 = vld [vmem:[#allocation38_spill] sm:$0xff] }
0x103f   :  { %8127 = vmatpush.msrb.mxu1 %v8005_v23  ;;  %8258 = vmatpush.msra.mxu0 %v8220_v49  ;;  %v18529_v3 = vpop.permute.xlu2 %13725  ;;  %v18531_v42 = vpop.permute.xlu1 %13675  ;;  %v13522_v56 = vunpack.i.l.bf16 %v20714_v46  ;;  %v13533_v58 = vunpack.i.h.bf16 %v20715_v61  ;;  %v8221_v23 = vsel %vm20716_vm12, %v13428_v6, %v13462_v20  ;;  %v20719_v33 = vunpack.i.h.bf16 %v20714_v46  ;;  %v18578_v46 = vld [vmem:[%s20095_s6 + $0x30] sm:$0x3f] }
0x1040   :  { %20711 = vst [vmem:[#allocation40_spill] sm:$0xff] %v18529_v3  ;;  %13890 = vrot.lane.b32.xlu2 %v18053_v24, %s14225_s13  ;;  %v13681_v10 = vpop.permute.xlu0 %13680  ;;  %v8224_v22 = vsel %vm20717_vm10, %v13662_v14, %v13663_v63  ;;  %v8214_v3 = vsel %vm20718_vm14, %v13348_v39, %v13387_v38  ;;  %vm20731_vm14 = vcmask 162816  }
0x1041   :  { %8259 = vmatpush.msra.mxu0 %v8213_v5  ;;  %13900 = vrot.lane.b32.xlu1 %v17914_v28, %s20645_s30  ;;  %v13683_v4 = vunpack.i.h.bf16 %v13681_v10  ;;  %v13682_v8 = vunpack.i.l.bf16 %v13681_v10  ;;  %v13463_v10 = vunpack.i.h.bf16 %v20710_v62  ;;  %v8217_v6 = vsel %vm20720_vm8, %v13522_v56, %v20719_v33 }
0x1042   :  { %13885 = vrot.lane.b32.xlu0 %v17888_v21, %s14278_s28  ;;  %12666 = vmatmul.msk.f32.vlgmr.msra.gmra.mxu1 %vm6976_vm3, %v12665_v36  ;;  %v20722_v62 = vunpack.i.l.bf16 %v20715_v61  ;;  %v13388_v33 = vunpack.i.h.bf16 %v20713_v55  ;;  %v13552_v55 = vunpack.i.l.bf16 %v18070_v30 }
0x1043   :  { %12667 = vmatmul.msk.f32.vlgmr.msra.gmra.mxu2 %vm6976_vm3, %v12665_v36  ;;  %12668 = vmatmul.msk.f32.vlgmr.msrb.gmra.mxu3 %vm6976_vm3, %v12665_v36  ;;  %v8013_v49 = vsel %vm2610_vm2, %v13658_v1, %v13682_v8  ;;  %v8014_v5 = vsel %vm2610_vm2, %v13682_v8, %v13683_v4  ;;  %v20721_v1 = vld [vmem:[#allocation67_spill] sm:$0xff] }
0x1044   :  { %12669 = vmatmul.msk.f32.vlgmr.msrb.gmra.mxu0 %vm6976_vm3, %v12665_v36  ;;  %8278 = vmatpush.msra.mxu1 %v8221_v23  ;;  %v8007_v4 = vsel %vm2610_vm2, %v20722_v62, %v13533_v58  ;;  %v20724_v58 = vld [vmem:[#allocation37_spill] sm:$0xff]  ;;  %vm20725_vm2 = vmmov %vm20712_vm7 }
0x1045   :  { %8338 = vmatpush.msrb.mxu0 %v8224_v22  ;;  %8146 = vmatpush.msrb.mxu2 %v8013_v49  ;;  %v8222_v22 = vsel %vm20723_vm11, %v13462_v20, %v13463_v10  ;;  %v13392_v49 = vunpack.i.l.bf16 %v20724_v58  ;;  %v13707_v20 = vunpack.i.l.bf16 %v18445_v37  ;;  %vm20727_vm7 = vmmov %vm20725_vm2 }
0x1046   :  { %8279 = vmatpush.msra.mxu1 %v8214_v3  ;;  %8166 = vmatpush.msra.mxu3 %v8014_v5  ;;  %v20287_v3 = vunpack.i.h.bf16 %v18238_v35  ;;  %v8223_v5 = vsel %vm20725_vm2, %v13463_v10, %v13662_v14  ;;  %vm20729_vm12 = vmmov %vm20725_vm2 }
0x1047   :  { %8339 = vmatpush.msrb.mxu0 %v8217_v6  ;;  %8147 = vmatpush.msrb.mxu2 %v20721_v1  ;;  %v18562_v8 = vpop.permute.xlu2 %13745  ;;  %v18564_v23 = vpop.permute.xlu1 %13690  ;;  %v8215_v14 = vsel %vm20729_vm12, %v13387_v38, %v13388_v33  ;;  %vm20730_vm10 = vmmov %vm20725_vm2  ;;  %v13558_v38 = vunpack.i.h.bf16 %v17984_v48 }
0x1048   :  { %13910 = vrot.lane.b32.xlu2 %v17914_v28, %s20660_s16  ;;  %8167 = vmatpush.msra.mxu3 %v8007_v4  ;;  %v18569_v39 = vpop.permute.xlu0 %13685  ;;  %v8216_v10 = vsel %vm20730_vm10, %v13388_v33, %v13522_v56  ;;  %vm20733_vm8 = vmmov %vm20725_vm2  ;;  %v13668_v33 = vunpack.i.h.bf16 %v18499_v45 }
0x1049   :  { %13905 = vrot.lane.b32.xlu1 %v18094_v0, %s14225_s13  ;;  %8298 = vmatpush.msra.mxu2 %v8222_v22  ;;  %v20286_v61 = vunpack.i.l.bf16 %v18569_v39  ;;  %v13708_v0 = vunpack.i.h.bf16 %v18445_v37  ;;  %v8225_v37 = vsel %vm20727_vm7, %v13663_v63, %v13707_v20  ;;  %vm20735_vm11 = vmmov %vm20731_vm14 }
0x104a   :  { %13895 = vrot.lane.b32.xlu0 %v18049_v57, %s14225_s13  ;;  %12670 = vmatmul.msk.f32.vlgmr.msrb.gmra.mxu1 %vm6976_vm3, %v12665_v36  ;;  %v20726_v57 = vld [vmem:[#allocation68_spill] sm:$0xff]  ;;  %vm20737_vm7 = vmmov %vm20735_vm11 }
0x104b   :  { %12671 = vmatmul.msk.f32.vlgmr.msrb.gmra.mxu2 %vm6976_vm3, %v12665_v36  ;;  %12672 = vmatmul.msk.f32.vlgmr.msra.gmra.mxu3 %vm6976_vm3, %v12665_v36  ;;  %v18596_v6 = vsel %vm3685_vm15, %v20287_v3, %v20286_v61  ;;  %v13353_v1 = vunpack.i.h.bf16 %v20726_v57  ;;  %v13352_v62 = vunpack.i.l.bf16 %v20726_v57  ;;  %v20728_v36 = vld [vmem:[#allocation39_spill] sm:$0xff]  ;;  %v20732_v61 = vld [vmem:[#allocation69_spill] sm:$0xff]  ;;  %v8226_v63 = vsel %vm20733_vm8, %v13707_v20, %v13708_v0  ;;  %vm20739_vm12 = vmmov %vm20737_vm7 }
0x104c   :  { %12674 = vmatmul.msk.f32.vlgmr.msra.gmra.mxu0 %vm6976_vm3, %v18578_v46  ;;  %8318 = vmatpush.msrb.mxu3 %v8223_v5  ;;  %v13538_v4 = vunpack.i.h.bf16 %v20728_v36  ;;  %v20734_v5 = vunpack.i.h.bf16 %v18070_v30  ;;  %v20736_v20 = vunpack.i.l.bf16 %v20728_v36  ;;  %v13393_v0 = vunpack.i.h.bf16 %v20724_v58  ;;  %vm20740_vm10 = vmmov %vm20737_vm7 }
0x104d   :  { %8358 = vmatpush.msrb.mxu1 %v8225_v37  ;;  %8490 = vmatpush.msra.mxu0 %v18080_v12  ;;  %v8426_v22 = vsel %vm20731_vm14, %v13353_v1, %v13392_v49  ;;  %vm20741_vm14 = vmmov %vm20737_vm7  ;;  %v20744_v36 = vunpack.i.h.bf16 %v17927_v52  ;;  %v20786_v3 = vunpack.i.l.bf16 %v18111_v32 }
0x104e   :  { %8299 = vmatpush.msra.mxu2 %v8215_v14  ;;  %8319 = vmatpush.msrb.mxu3 %v8216_v10  ;;  %v8432_v57 = vsel %vm20735_vm11, %v13552_v55, %v20734_v5  ;;  %v8219_v30 = vsel %vm20725_vm2, %v20736_v20, %v13538_v4  ;;  %v8425_v55 = vsel %vm20737_vm7, %v13352_v62, %v13353_v1  ;;  %v13527_v14 = vunpack.i.l.bf16 %v17927_v52  ;;  %vm20742_vm8 = vmmov %vm20737_vm7  ;;  %v18652_v4 = vld [vmem:[#allocation3 + $0x18] sm:$0xff]  ;;  %v18654_v10 = vld [vmem:[#allocation3 + $0x50] sm:$0xff] }
0x104f   :  { %8359 = vmatpush.msrb.mxu1 %v20732_v61  ;;  %8491 = vmatpush.msra.mxu0 %v8426_v22  ;;  %v18613_v37 = vpop.permute.xlu2 %13755  ;;  %v18615_v12 = vpop.permute.xlu1 %13720  ;;  %v13667_v61 = vunpack.i.l.bf16 %v18499_v45  ;;  %v8427_v1 = vsel %vm20742_vm8, %v13392_v49, %v13393_v0  ;;  %vm20743_vm11 = vmmov %vm20737_vm7  ;;  %v13939_v22 = vpack.i.bf16 %v18654_v10, %v18652_v4  ;;  %v18669_v52 = vld [vmem:[%s20095_s6 + $0x38] sm:$0x3f]  ;;  %v13562_v20 = vunpack.i.l.bf16 %v18009_v54 }
0x1050   :  { %8378 = vmatpush.msrb.mxu2 %v8226_v63  ;;  %8470 = vmatpush.msra.mxu3 %v8432_v57  ;;  %v18618_v56 = vpop.permute.xlu0 %13700  ;;  %v8428_v62 = vsel %vm20743_vm11, %v13393_v0, %v13527_v14  ;;  %vm20745_vm2 = vmmov %vm20737_vm7  ;;  %v13582_v57 = vunpack.i.l.bf16 %v18252_v59 }
0x1051   :  { %13915 = vrot.lane.b32.xlu2 %v18090_v47, %s14225_s13  ;;  %13925 = vrot.lane.b32.xlu1 %v17888_v21, %s14225_s13  ;;  %v20738_v21 = vunpack.i.l.bf16 %v17984_v48  ;;  %v8435_v45 = vsel %vm20740_vm10, %v13558_v38, %v13667_v61  ;;  %v8436_v58 = vsel %vm20741_vm14, %v13667_v61, %v13668_v33  ;;  %v8429_v48 = vsel %vm20745_vm2, %v13527_v14, %v20744_v36  ;;  %vm20747_vm7 = vmmov %vm20745_vm2 }
0x1052   :  { %8379 = vmatpush.msrb.mxu2 %v8219_v30  ;;  %8471 = vmatpush.msra.mxu3 %v8425_v55  ;;  %v20748_v55 = vunpack.i.h.bf16 %v18252_v59  ;;  %vm20750_vm10 = vmmov %vm20745_vm2  ;;  %v18693_v59 = vld [vmem:[#allocation3 + $0x30] sm:$0xff]  ;;  %v13672_v36 = vunpack.i.l.bf16 %v18350_v25 }
0x1053   :  { %13920 = vrot.lane.b32.xlu0 %v18481_v29, %s14225_s13  ;;  %12675 = vmatmul.msk.f32.vlgmr.msra.gmra.mxu1 %vm6976_vm3, %v18578_v46  ;;  %v8434_v47 = vsel %vm20739_vm12, %v20738_v21, %v13558_v38  ;;  %vm20749_vm12 = vcmask 154624   ;;  %v13548_v21 = vunpack.i.h.bf16 %v18125_v17  ;;  %vm20754_vm8 = vmmov %vm20745_vm2 }
0x1054   :  { %12676 = vmatmul.msk.f32.vlgmr.msra.gmra.mxu2 %vm6976_vm3, %v18578_v46  ;;  %12677 = vmatmul.msk.f32.vlgmr.msrb.gmra.mxu3 %vm6976_vm3, %v18578_v46  ;;  %v8644_v0 = vsel %vm20749_vm12, %v13582_v57, %v20748_v55  ;;  %vm20752_vm14 = vmmov %vm20749_vm12 }
0x1055   :  { %12678 = vmatmul.msk.f32.vlgmr.msrb.gmra.mxu0 %vm6976_vm3, %v18578_v46  ;;  %8510 = vmatpush.msra.mxu1 %v8434_v47  ;;  %v18695_v47 = vld [vmem:[#allocation3 + $0x78] sm:$0xff]  ;;  %vm20756_vm11 = vmmov %vm20749_vm12 }
0x1056   :  { %8530 = vmatpush.msra.mxu2 %v8435_v45  ;;  %8550 = vmatpush.msrb.mxu3 %v8436_v58  ;;  %v18699_v45 = vpack.i.bf16 %v18693_v59, %v18695_v47  ;;  %v18701_v58 = vld [vmem:[#allocation3 + $0x20] sm:$0xff]  ;;  %vm20757_vm2 = vmmov %vm20756_vm11 }
0x1057   :  { %8511 = vmatpush.msra.mxu1 %v8427_v1  ;;  %v18658_v63 = vpop.permute.xlu2 %13775  ;;  %v13736_v5 = vpop.permute.xlu1 %13735  ;;  %v18703_v1 = vld [vmem:[#allocation3 + $0x28] sm:$0xff]  ;;  %vm20761_vm12 = vmmov %vm20757_vm2 }
0x1058   :  { %8531 = vmatpush.msra.mxu2 %v8428_v62  ;;  %8551 = vmatpush.msrb.mxu3 %v8429_v48  ;;  %v13738_v49 = vunpack.i.h.bf16 %v13736_v5  ;;  %v13737_v38 = vunpack.i.l.bf16 %v13736_v5  ;;  %v18661_v61 = vpop.permute.xlu0 %13715  ;;  %v20753_v5 = vunpack.i.l.bf16 %v18125_v17 }
0x1059   :  { %13945 = vrot.lane.b32.xlu2 %v18481_v29, %s20746_s4  ;;  %13940 = vrot.lane.b32.xlu1 %v13939_v22, %s20746_s4  ;;  %v13673_v22 = vunpack.i.h.bf16 %v18350_v25  ;;  %v20760_v25 = vunpack.i.l.bf16 %v18185_v51 }
0x105a   :  { %v8437_v30 = vsel %vm20747_vm7, %v13668_v33, %v13737_v38  ;;  %v8438_v14 = vsel %vm20750_vm10, %v13737_v38, %v13738_v49  ;;  %v8431_v57 = vsel %vm20754_vm8, %v20753_v5, %v13548_v21  ;;  %v20755_v49 = vunpack.i.l.bf16 %v18240_v19  ;;  %vm20758_vm7 = vmmov %vm20757_vm2  ;;  %v18752_v21 = vld [vmem:[#allocation3 + $0x80] sm:$0xff]  ;;  %v18767_v5 = vld [vmem:[#allocation3 + $0x68] sm:$0xff] }
0x105b   :  { %13930 = vrot.lane.b32.xlu0 %v17914_v28, %s14277_s25  ;;  %12679 = vmatmul.msk.f32.vlgmr.msrb.gmra.mxu1 %vm6976_vm3, %v18578_v46  ;;  %v13593_v28 = vunpack.i.h.bf16 %v18240_v19  ;;  %v20759_v19 = vunpack.i.h.bf16 %v18185_v51  ;;  %vm20766_vm10 = vmmov %vm20757_vm2  ;;  %s20767_s25 = smov 106   ;;  %vm20772_vm8 = vcmask 146432  }
0x105c   :  { %12680 = vmatmul.msk.f32.vlgmr.msrb.gmra.mxu2 %vm6976_vm3, %v18578_v46  ;;  %12682 = vmatmul.msk.f32.vlgmr.msra.gmra.mxu3 %vm6976_vm3, %v18669_v52  ;;  %v20751_v46 = vunpack.i.h.bf16 %v18009_v54  ;;  %v18707_v54 = vpack.i.bf16 %v18703_v1, %v18701_v58 }
0x105d   :  { %12683 = vmatmul.msk.f32.vlgmr.msra.gmra.mxu0 %vm6976_vm3, %v18669_v52  ;;  %8682 = vmatpush.msrb.mxu2 %v8644_v0  ;;  %v8647_v17 = vsel %vm20757_vm2, %v13593_v28, %v13672_v36  ;;  %v8639_v38 = vsel %vm20761_vm12, %v20760_v25, %v20759_v19  ;;  %v13597_v19 = vunpack.i.l.bf16 %v18298_v15  ;;  %v20770_v25 = vld [vmem:[#allocation70_spill] sm:$0xff] }
0x105e   :  { %8702 = vmatpush.msra.mxu3 %v18280_v26  ;;  %v8637_v33 = vsel %vm20752_vm14, %v13562_v20, %v20751_v46  ;;  %8570 = vmatpush.msrb.mxu0 %v8437_v30  ;;  %v20762_v20 = vld [vmem:[#allocation76_spill] sm:$0xff]  ;;  %vm20769_vm14 = vmmov %vm20757_vm2 }
0x105f   :  { %8683 = vmatpush.msrb.mxu2 %v8637_v33  ;;  %8590 = vmatpush.msrb.mxu1 %v8438_v14  ;;  %v18709_v26 = vpop.permute.xlu2 %13780  ;;  %v18711_v62 = vpop.permute.xlu1 %13740  ;;  %v20763_v30 = vld [vmem:[#allocation72_spill] sm:$0xff]  ;;  %v13622_v33 = vunpack.i.l.bf16 %v18175_v40 }
0x1060   :  { %8703 = vmatpush.msra.mxu3 %v18208_v44  ;;  %8571 = vmatpush.msrb.mxu0 %v18156_v43  ;;  %v18716_v48 = vpop.permute.xlu0 %13730  ;;  %v8646_v44 = vsel %vm20756_vm11, %v20755_v49, %v13593_v28  ;;  %v8648_v43 = vsel %vm20758_vm7, %v13672_v36, %v13673_v22  ;;  %v20764_v55 = vunpack.i.h.bf16 %v20763_v30  ;;  %v20765_v0 = vunpack.i.l.bf16 %v20763_v30  ;;  %vm20773_vm11 = vmmov %vm20757_vm2 }
0x1061   :  { %13960 = vrot.lane.b32.xlu2 %v18699_v45, %s20746_s4  ;;  %13955 = vrot.lane.b32.xlu1 %v18707_v54, %s20746_s4  ;;  %v18756_v28 = vpack.i.bf16 %v18752_v21, %v18695_v47  ;;  %vm20775_vm2 = vmmov %vm20772_vm8 }
0x1062   :  { %8591 = vmatpush.msrb.mxu1 %v8431_v57  ;;  %8722 = vmatpush.msra.mxu0 %v8646_v44  ;;  %v8641_v14 = vsel %vm20766_vm10, %v20765_v0, %v20764_v55  ;;  %v18769_v57 = vld [vmem:[#allocation3 + $0x70] sm:$0xff]  ;;  %v12689_v44 = vld [vmem:[%s20095_s6 + $0x40] sm:$0x3f]  ;;  %v13633_v0 = vunpack.i.h.bf16 %v18401_v18  ;;  %vm20780_vm12 = vmmov %vm20775_vm2 }
0x1063   :  { %13935 = vrot.lane.b32.xlu0 %v18053_v24, %s20746_s4  ;;  %12684 = vmatmul.msk.f32.vlgmr.msra.gmra.mxu1 %vm6976_vm3, %v18669_v52  ;;  %v18773_v49 = vpack.i.bf16 %v18769_v57, %v18767_v5  ;;  %vm20781_vm10 = vmmov %vm20775_vm2 }
0x1064   :  { %12685 = vmatmul.msk.f32.vlgmr.msra.gmra.mxu2 %vm6976_vm3, %v18669_v52  ;;  %12686 = vmatmul.msk.f32.vlgmr.msrb.gmra.mxu3 %vm6976_vm3, %v18669_v52 }
0x1065   :  { %12687 = vmatmul.msk.f32.vlgmr.msrb.gmra.mxu0 %vm6976_vm3, %v18669_v52  ;;  %8742 = vmatpush.msra.mxu1 %v8647_v17  ;;  %20768 = vst [vmem:[#allocation77_spill] sm:$0xff] %v18773_v49 }
0x1066   :  { %8762 = vmatpush.msra.mxu2 %v8648_v43  ;;  %8723 = vmatpush.msra.mxu0 %v8639_v38  ;;  %v13578_v38 = vunpack.i.h.bf16 %v20770_v25 }
0x1067   :  { %8743 = vmatpush.msra.mxu1 %v20762_v20  ;;  %v18758_v46 = vpop.permute.xlu2 %13790  ;;  %v18760_v51 = vpop.permute.xlu1 %13750  ;;  %v20771_v20 = vunpack.i.h.bf16 %v18175_v40  ;;  %v13677_v40 = vunpack.i.l.bf16 %v18531_v42 }
0x1068   :  { %8763 = vmatpush.msra.mxu2 %v8641_v14  ;;  %v13761_v36 = vpop.permute.xlu0 %13760  ;;  %v13678_v14 = vunpack.i.h.bf16 %v18531_v42 }
0x1069   :  { %13970 = vrot.lane.b32.xlu2 %v18053_v24, %s20767_s25  ;;  %13980 = vrot.lane.b32.xlu1 %v18756_v28, %s14278_s28  ;;  %v13763_v17 = vunpack.i.h.bf16 %v13761_v36  ;;  %v13762_v43 = vunpack.i.l.bf16 %v13761_v36  ;;  %v8856_v30 = vsel %vm20772_vm8, %v13622_v33, %v20771_v20  ;;  %v18801_v33 = vpack.i.bf16 %v18695_v47, %v18769_v57  ;;  %v18803_v36 = vpop.f32.mrf.mxu3  ;;  %vm20784_vm8 = vmmov %vm20775_vm2 }
0x106a   :  { %20776 = vst [vmem:[#allocation75_spill] sm:$0xff] %v18803_v36  ;;  %v20789_v36 = vunpack.i.l.bf16 %v18302_v53 }
0x106b   :  { %13950 = vrot.lane.b32.xlu0 %v18773_v49, %s20746_s4  ;;  %12688 = vmatmul.msk.f32.vlgmr.msrb.gmra.mxu1 %vm6976_vm3, %v18669_v52  ;;  %v8649_v24 = vsel %vm20769_vm14, %v13673_v22, %v13762_v43  ;;  %v8650_v55 = vsel %vm20773_vm11, %v13762_v43, %v13763_v17  ;;  %v20774_v52 = vunpack.i.h.bf16 %v18298_v15  ;;  %v18808_v15 = vpack.i.bf16 %v18475_v2, %v18654_v10  ;;  %vm20783_vm14 = vmmov %vm20775_vm2 }
0x106c   :  { %12690 = vmatmul.msk.f32.vlgmr.msrb.gmra.mxu2 %vm6976_vm3, %v12689_v44  ;;  %12691 = vmatmul.msk.f32.vlgmr.msra.gmra.mxu3 %vm6976_vm3, %v12689_v44  ;;  %v20778_v17 = vunpack.i.l.bf16 %v20770_v25  ;;  %vm20787_vm11 = vmmov %vm20775_vm2 }
0x106d   :  { %12692 = vmatmul.msk.f32.vlgmr.msra.gmra.mxu0 %vm6976_vm3, %v12689_v44  ;;  %8894 = vmatpush.msrb.mxu1 %v8856_v30  ;;  %v8849_v22 = vsel %vm20775_vm2, %v13597_v19, %v20774_v52  ;;  %v18834_v52 = vpop.f32.mrf.mxu0 }
0x106e   :  { %8914 = vmatpush.msrb.mxu2 %v18433_v41  ;;  %8782 = vmatpush.msrb.mxu3 %v8649_v24  ;;  %v20777_v41 = vld [vmem:[#allocation74_spill] sm:$0xff]  ;;  %v8643_v42 = vsel %vm20758_vm7, %v20778_v17, %v13578_v38  ;;  %v13777_v24 = vunpack.i.l.bf16 %v18658_v63  ;;  %20782 = vst [vmem:[#allocation78_spill] sm:$0xff] %v18834_v52  ;;  %vm20790_vm7 = vmmov %vm20775_vm2  ;;  %v20812_v52 = vunpack.i.h.bf16 %v18562_v8 }
0x106f   :  { %8895 = vmatpush.msrb.mxu1 %v8849_v22  ;;  %8802 = vmatpush.msrb.mxu0 %v8650_v55  ;;  %v8860_v55 = vsel %vm20781_vm10, %v13677_v40, %v13678_v14  ;;  %v13692_v22 = vunpack.i.l.bf16 %v18564_v23  ;;  %vm20805_vm10 = vcmask 7168  }
0x1070   :  { %8915 = vmatpush.msrb.mxu2 %v18329_v31  ;;  %8783 = vmatpush.msrb.mxu3 %v20777_v41  ;;  %v18814_v43 = vpop.permute.xlu1 %13770  ;;  %v18816_v19 = vpop.permute.xlu0 %13765  ;;  %v20779_v31 = vunpack.i.l.bf16 %v18401_v18  ;;  %v13693_v18 = vunpack.i.h.bf16 %v18564_v23  ;;  %v13778_v41 = vunpack.i.h.bf16 %v18658_v63  ;;  %v8861_v23 = vsel %vm20784_vm8, %v13678_v14, %v13777_v24  ;;  %vm20808_vm8 = vmmov %vm20805_vm10 }
0x1071   :  { %13990 = vrot.lane.b32.xlu2 %v18756_v28, %s14225_s13  ;;  %13985 = vrot.lane.b32.xlu1 %v18801_v33, %s20767_s25  ;;  %v18826_v30 = vpop.permute.xlu2 %13805  ;;  %v20289_v25 = vunpack.i.l.bf16 %v18814_v43  ;;  %v20288_v38 = vunpack.i.h.bf16 %v18816_v19  ;;  %v13637_v63 = vunpack.i.l.bf16 %v18447_v13 }
0x1072   :  { %v8858_v20 = vsel %vm20780_vm12, %v20779_v31, %v13633_v0  ;;  %8803 = vmatpush.msrb.mxu0 %v8643_v42  ;;  %v13618_v42 = vunpack.i.h.bf16 %v18352_v11  ;;  %v8859_v31 = vsel %vm20783_vm14, %v13633_v0, %v13677_v40  ;;  %v18863_v0 = vld [vmem:[#allocation3 + $0x10] sm:$0xff]  ;;  %vm20792_vm12 = vmmov %vm20775_vm2 }
0x1073   :  { %8934 = vmatpush.msra.mxu3 %v8858_v20  ;;  %13965 = vrot.lane.b32.xlu0 %v18808_v15, %s20767_s25  ;;  %v18846_v17 = vsel %vm117_vm0, %v20288_v38, %v20289_v25  ;;  %v20785_v20 = vunpack.i.h.bf16 %v18111_v32  ;;  %v20788_v25 = vunpack.i.h.bf16 %v18302_v53  ;;  %v18867_v14 = vpack.i.bf16 %v18652_v4, %v18863_v0  ;;  %vm20807_vm14 = vmmov %vm20805_vm10 }
0x1074   :  { %12693 = vmatmul.msk.f32.vlgmr.msra.gmra.mxu1 %vm6976_vm3, %v12689_v44  ;;  %12694 = vmatmul.msk.f32.vlgmr.msra.gmra.mxu2 %vm6976_vm3, %v12689_v44  ;;  %v8862_v32 = vsel %vm20790_vm7, %v13777_v24, %v13778_v41  ;;  %v18875_v53 = vpack.i.bf16 %v18701_v58, %v18652_v4  ;;  %v12697_v24 = vld [vmem:[%s20095_s6 + $0x48] sm:$0x3f]  ;;  %v13702_v41 = vunpack.i.l.bf16 %v18618_v56 }
0x1075   :  { %12695 = vmatmul.msk.f32.vlgmr.msrb.gmra.mxu3 %vm6976_vm3, %v12689_v44  ;;  %12696 = vmatmul.msk.f32.vlgmr.msrb.gmra.mxu0 %vm6976_vm3, %v12689_v44  ;;  %v8851_v38 = vsel %vm20787_vm11, %v20786_v3, %v20785_v20  ;;  %v8853_v44 = vsel %vm20775_vm2, %v20789_v36, %v20788_v25  ;;  %v9068_v3 = vsel %vm3685_vm15, %v13692_v22, %v13693_v18  ;;  %v20791_v25 = vunpack.i.l.bf16 %v18352_v11  ;;  %v18906_v20 = vpop.f32.mrf.mxu1  ;;  %vm20809_vm11 = vmmov %vm20808_vm8 }
0x1076   :  { %8974 = vmatpush.msra.mxu1 %v8860_v55  ;;  %8954 = vmatpush.msra.mxu0 %v8859_v31  ;;  %v13698_v55 = vunpack.i.h.bf16 %v18393_v7  ;;  %v13697_v22 = vunpack.i.l.bf16 %v18393_v7  ;;  %v20793_v11 = vunpack.i.h.bf16 %v18447_v13  ;;  %v18903_v31 = vpop.f32.mrf.mxu3  ;;  %20795 = vst [vmem:[#allocation82_spill] sm:$0xff] %v18906_v20  ;;  %vm20813_vm2 = vmmov %vm20808_vm8 }
0x1077   :  { %8994 = vmatpush.msra.mxu2 %v8861_v23  ;;  %8935 = vmatpush.msra.mxu3 %v8851_v38  ;;  %20794 = vst [vmem:[#allocation80_spill] sm:$0xff] %v18903_v31  ;;  %v20290_v23 = vunpack.i.h.bf16 %v18618_v56  ;;  %vm20818_vm7 = vmmov %vm20813_vm2 }
0x1078   :  { %8975 = vmatpush.msra.mxu1 %v8853_v44  ;;  %8955 = vmatpush.msra.mxu0 %v18336_v60  ;;  %v18877_v40 = vpop.permute.xlu1 %13800  ;;  %v8855_v60 = vsel %vm20792_vm12, %v20791_v25, %v13618_v42  ;;  %v9061_v42 = vsel %vm3685_vm15, %v13637_v63, %v20793_v11  ;;  %v9069_v7 = vsel %vm3685_vm15, %v13693_v18, %v13697_v22  ;;  %v20797_v18 = vunpack.i.h.bf16 %v18395_v34  ;;  %vm20821_vm12 = vmmov %vm20813_vm2 }
0x1079   :  { %8995 = vmatpush.msra.mxu2 %v18372_v27  ;;  %v18879_v36 = vpop.permute.xlu0 %13785  ;;  %9014 = vmatpush.msrb.mxu3 %v8862_v32  ;;  %v18886_v27 = vpack.i.bf16 %v18767_v5, %v18477_v9  ;;  %v18891_v38 = vpop.permute.xlu2 %13835  ;;  %v9070_v63 = vsel %vm3685_vm15, %v13697_v22, %v13698_v55  ;;  %v9071_v44 = vsel %vm3685_vm15, %v13698_v55, %v13702_v41  ;;  %v13733_v22 = vunpack.i.h.bf16 %v18716_v48 }
0x107a   :  { %9106 = vmatpush.msrb.mxu0 %v9068_v3  ;;  %13995 = vrot.lane.b32.xlu2 %v18875_v53, %s20767_s25  ;;  %v9072_v32 = vsel %vm3685_vm15, %v13702_v41, %v20290_v23  ;;  %v20798_v3 = vunpack.i.l.bf16 %v18395_v34  ;;  %v13732_v55 = vunpack.i.l.bf16 %v18716_v48  ;;  %v20799_v41 = vunpack.i.h.bf16 %v18238_v35 }
0x107b   :  { %14015 = vrot.lane.b32.xlu1 %v18867_v14, %s14279_s26  ;;  %9015 = vmatpush.msrb.mxu3 %v8855_v60  ;;  %v20800_v11 = vunpack.i.l.bf16 %v18238_v35  ;;  %v18947_v48 = vpack.i.bf16 %v18693_v59, %v18703_v1  ;;  %v13747_v23 = vunpack.i.l.bf16 %v18562_v8 }
0x107c   :  { %9107 = vmatpush.msrb.mxu0 %v9061_v42  ;;  %13975 = vrot.lane.b32.xlu0 %v18886_v27, %s20767_s25  ;;  %v9063_v25 = vsel %vm3685_vm15, %v20798_v3, %v20797_v18  ;;  %v20291_v18 = vunpack.i.l.bf16 %v18661_v61 }
0x107d   :  { %12698 = vmatmul.msk.f32.vlgmr.msrb.gmra.mxu1 %vm6976_vm3, %v12697_v24  ;;  %12699 = vmatmul.msk.f32.vlgmr.msrb.gmra.mxu2 %vm6976_vm3, %v12697_v24  ;;  %v18914_v13 = vpop.f32.mrf.mxu0  ;;  %v9284_v31 = vsel %vm20813_vm2, %v13747_v23, %v20812_v52 }
0x107e   :  { %12700 = vmatmul.msk.f32.vlgmr.msra.gmra.mxu3 %vm6976_vm3, %v12697_v24  ;;  %20796 = vst [vmem:[#allocation79_spill] sm:$0xff] %v18914_v13  ;;  %12701 = vmatmul.msk.f32.vlgmr.msra.gmra.mxu0 %vm6976_vm3, %v12697_v24 }
0x107f   :  { %9126 = vmatpush.msrb.mxu1 %v9069_v7  ;;  %9146 = vmatpush.msrb.mxu2 %v9070_v63  ;;  %v20292_v7 = vunpack.i.l.bf16 %v18711_v62 }
0x1080   :  { %9166 = vmatpush.msra.mxu3 %v9071_v44  ;;  %9186 = vmatpush.msra.mxu0 %v9072_v32  ;;  %v18928_v60 = vpop.permute.xlu1 %13815  ;;  %v18956_v44 = vld [vmem:[%s20095_s6 + $0x50] sm:$0x3f] }
0x1081   :  { %9127 = vmatpush.msrb.mxu1 %v18471_v50  ;;  %9147 = vmatpush.msrb.mxu2 %v9063_v25  ;;  %v9065_v50 = vsel %vm3685_vm15, %v20800_v11, %v20799_v41  ;;  %v18938_v42 = vpop.permute.xlu2 %13855  ;;  %v18940_v34 = vpop.permute.xlu0 %13795  ;;  %v9280_v41 = vsel %vm20805_vm10, %v13732_v55, %v13733_v22  ;;  %vm20824_vm10 = vmmov %vm20813_vm2 }
0x1082   :  { %9167 = vmatpush.msra.mxu3 %v18420_v16  ;;  %9187 = vmatpush.msra.mxu0 %v9065_v50  ;;  %v20801_v16 = vld [vmem:[#allocation73_spill] sm:$0xff]  ;;  %v18966_v25 = vpop.f32.mrf.mxu1  ;;  %v9281_v50 = vsel %vm20807_vm14, %v13733_v22, %v20292_v7  ;;  %vm20825_vm14 = vmmov %vm20813_vm2 }
0x1083   :  { %14005 = vrot.lane.b32.xlu2 %v18808_v15, %s14279_s26  ;;  %v13713_v63 = vunpack.i.h.bf16 %v20801_v16  ;;  %v13712_v35 = vunpack.i.l.bf16 %v20801_v16  ;;  %14025 = vrot.lane.b32.xlu1 %v18707_v54, %s14279_s26  ;;  %v18958_v32 = vpop.f32.mrf.mxu2  ;;  %20804 = vst [vmem:[#allocation81_spill] sm:$0xff] %v18966_v25  ;;  %v18984_v25 = vld [vmem:[#allocation3 + $0x38] sm:$0xff] }
0x1084   :  { %20802 = vst [vmem:[#allocation41_spill] sm:$0xff] %v18958_v32  ;;  %14000 = vrot.lane.b32.xlu0 %v18947_v48, %s20767_s25  ;;  %v18964_v3 = vpop.f32.mrf.mxu3  ;;  %v20817_v32 = vunpack.i.h.bf16 %v18615_v12 }
0x1085   :  { %12702 = vmatmul.msk.f32.vlgmr.msra.gmra.mxu1 %vm6976_vm3, %v12697_v24  ;;  %20803 = vst [vmem:[#allocation83_spill] sm:$0xff] %v18964_v3  ;;  %12703 = vmatmul.msk.f32.vlgmr.msra.gmra.mxu2 %vm6976_vm3, %v12697_v24  ;;  %v9273_v16 = vsel %vm20808_vm8, %v13712_v35, %v13713_v63  ;;  %v18994_v35 = vld [vmem:[#allocation3 + $0x8] sm:$0xff]  ;;  %vm20829_vm8 = vmmov %vm20813_vm2 }
0x1086   :  { %12704 = vmatmul.msk.f32.vlgmr.msrb.gmra.mxu3 %vm6976_vm3, %v12697_v24  ;;  %v18971_v11 = vpop.f32.mrf.mxu0  ;;  %12706 = vmatmul.msk.f32.vlgmr.msrb.gmra.mxu0 %vm6976_vm3, %v18956_v44  ;;  %v9274_v24 = vsel %vm20809_vm11, %v13713_v63, %v20291_v18  ;;  %v18998_v63 = vpack.i.bf16 %v18994_v35, %v18477_v9  ;;  %vm20830_vm11 = vmmov %vm20813_vm2 }
0x1087   :  { %20806 = vst [vmem:[#allocation84_spill] sm:$0xff] %v18971_v11  ;;  %9318 = vmatpush.msrb.mxu3 %v9280_v41  ;;  %9338 = vmatpush.msrb.mxu0 %v9281_v50  ;;  %v18988_v41 = vpack.i.bf16 %v18984_v25, %v18752_v21  ;;  %v13688_v50 = vunpack.i.h.bf16 %v18569_v39 }
0x1089   :  { %9319 = vmatpush.msrb.mxu3 %v9273_v16  ;;  %9339 = vmatpush.msrb.mxu0 %v9274_v24  ;;  %v18990_v22 = vpop.permute.xlu2 %13865  ;;  %v13722_v16 = vunpack.i.l.bf16 %v18615_v12 }
0x108a   :  { %v13826_v24 = vpop.permute.xlu1 %13825 }
0x108b   :  { %14020 = vrot.lane.b32.xlu2 %v18773_v49, %s14279_s26  ;;  %14040 = vrot.lane.b32.xlu1 %v18988_v41, %s20746_s4  ;;  %v19004_v18 = vpop.permute.xlu0 %13810  ;;  %v13828_v7 = vunpack.i.h.bf16 %v13826_v24  ;;  %v13827_v55 = vunpack.i.l.bf16 %v13826_v24  ;;  %v19010_v13 = vpop.f32.mrf.mxu2  ;;  %v13743_v24 = vunpack.i.h.bf16 %v18711_v62  ;;  %v9277_v49 = vsel %vm20818_vm7, %v13722_v16, %v20817_v32  ;;  %vm20833_vm7 = vmmov %vm20813_vm2 }
0x108c   :  { %14010 = vrot.lane.b32.xlu0 %v18998_v63, %s14279_s26  ;;  %20810 = vst [vmem:[#allocation87_spill] sm:$0xff] %v19010_v13  ;;  %v19012_v3 = vpop.f32.mrf.mxu3 }
0x108d   :  { %12707 = vmatmul.msk.f32.vlgmr.msrb.gmra.mxu1 %vm6976_vm3, %v18956_v44  ;;  %20811 = vst [vmem:[#allocation89_spill] sm:$0xff] %v19012_v3  ;;  %12708 = vmatmul.msk.f32.vlgmr.msrb.gmra.mxu2 %vm6976_vm3, %v18956_v44  ;;  %v19024_v20 = vpop.f32.mrf.mxu1  ;;  %v20816_v3 = vunpack.i.h.bf16 %v18618_v56  ;;  %v9074_v52 = vsel %vm3685_vm15, %v13827_v55, %v13828_v7 }
0x108e   :  { %12709 = vmatmul.msk.f32.vlgmr.msra.gmra.mxu3 %vm6976_vm3, %v18956_v44  ;;  %v19022_v11 = vpop.f32.mrf.mxu0  ;;  %20815 = vst [vmem:[#allocation42_spill] sm:$0xff] %v19024_v20  ;;  %12710 = vmatmul.msk.f32.vlgmr.msra.gmra.mxu0 %vm6976_vm3, %v18956_v44  ;;  %v13718_v20 = vunpack.i.h.bf16 %v18661_v61 }
0x108f   :  { %20814 = vst [vmem:[#allocation86_spill] sm:$0xff] %v19022_v11  ;;  %9398 = vmatpush.msra.mxu3 %v9284_v31  ;;  %v9073_v13 = vsel %vm3685_vm15, %v20816_v3, %v13827_v55  ;;  %9226 = vmatpush.msra.mxu2 %v9074_v52  ;;  %v19038_v11 = vpack.i.bf16 %v18984_v25, %v18693_v59  ;;  %v20819_v31 = vunpack.i.l.bf16 %v18569_v39 }
0x1090   :  { %9206 = vmatpush.msra.mxu1 %v9073_v13  ;;  %v20820_v13 = vunpack.i.l.bf16 %v18711_v62 }
0x1091   :  { %9399 = vmatpush.msra.mxu3 %v9277_v49  ;;  %v9067_v56 = vsel %vm3685_vm15, %v20819_v31, %v13688_v50  ;;  %v19044_v3 = vpop.permute.xlu2 %13880  ;;  %v19052_v49 = vld [vmem:[%s20095_s6 + $0x58] sm:$0x3f]  ;;  %vm20822_vm15 = vmmov %vm20813_vm2 }
0x1092   :  { %9207 = vmatpush.msra.mxu1 %v18596_v6  ;;  %9227 = vmatpush.msra.mxu2 %v9067_v56  ;;  %v9282_v6 = vsel %vm20821_vm12, %v20820_v13, %v13743_v24  ;;  %v19059_v39 = vpop.permute.xlu1 %13830  ;;  %v9283_v62 = vsel %vm20822_vm15, %v13743_v24, %v13747_v23  ;;  %v14049_v23 = vpack.i.bf16 %v18863_v0, %v18767_v5  ;;  %v20826_v24 = vld [vmem:[#allocation40_spill] sm:$0xff] }
0x1093   :  { %14030 = vrot.lane.b32.xlu2 %v19038_v11, %s14279_s26  ;;  %14045 = vrot.lane.b32.xlu1 %v18988_v41, %s20767_s25  ;;  %v19061_v7 = vpop.permute.xlu0 %13820  ;;  %v19067_v32 = vpop.f32.mrf.mxu2  ;;  %v13728_v56 = vunpack.i.h.bf16 %v20826_v24  ;;  %v13727_v13 = vunpack.i.l.bf16 %v20826_v24  ;;  %v20832_v24 = vunpack.i.h.bf16 %v18615_v12  ;;  %v19142_v12 = vld [vmem:[%s20095_s6 + $0x60] sm:$0x3f] }
0x1094   :  { %9358 = vmatpush.msrb.mxu1 %v9282_v6  ;;  %14035 = vrot.lane.b32.xlu0 %v18481_v29, %s14280_s29  ;;  %v19074_v55 = vpop.f32.mrf.mxu3  ;;  %v20823_v29 = vunpack.i.l.bf16 %v18661_v61 }
0x1095   :  { %12711 = vmatmul.msk.f32.vlgmr.msra.gmra.mxu1 %vm6976_vm3, %v18956_v44  ;;  %12712 = vmatmul.msk.f32.vlgmr.msra.gmra.mxu2 %vm6976_vm3, %v18956_v44  ;;  %v9276_v44 = vsel %vm20825_vm14, %v13718_v20, %v13722_v16 }
0x1096   :  { %12714 = vmatmul.msk.f32.vlgmr.msrb.gmra.mxu3 %vm6976_vm3, %v19052_v49  ;;  %12715 = vmatmul.msk.f32.vlgmr.msrb.gmra.mxu0 %vm6976_vm3, %v19052_v49  ;;  %v9275_v50 = vsel %vm20824_vm10, %v20823_v29, %v13718_v20 }
0x1097   :  { %9378 = vmatpush.msrb.mxu2 %v9283_v62  ;;  %9490 = vmatpush.msrb.mxu3 %v18475_v2  ;;  %v19083_v52 = vpop.f32.mrf.mxu0  ;;  %v19085_v31 = vpop.f32.mrf.mxu1  ;;  %v14059_v2 = vpack.i.bf16 %v18769_v57, %v18654_v10 }
0x1098   :  { %9359 = vmatpush.msrb.mxu1 %v9275_v50  ;;  %v20828_v50 = vunpack.i.h.bf16 %v18562_v8  ;;  %v9279_v8 = vsel %vm20833_vm7, %v13727_v13, %v13728_v56 }
0x1099   :  { %9379 = vmatpush.msrb.mxu2 %v9276_v44  ;;  %9491 = vmatpush.msrb.mxu3 %v18863_v0 }
0x109a   :  { %v19095_v61 = vpop.permute.xlu2 %13890  ;;  %v19099_v20 = vpop.permute.xlu1 %13850 }
0x109b   :  { %9470 = vmatpush.msra.mxu2 %v18654_v10  ;;  %14055 = vrot.lane.b32.xlu2 %v18875_v53, %s14280_s29  ;;  %v13841_v16 = vpop.permute.xlu0 %13840 }
0x109c   :  { %14050 = vrot.lane.b32.xlu1 %v14049_v23, %s14280_s29  ;;  %14060 = vrot.lane.b32.xlu0 %v14059_v2, %s14280_s29  ;;  %v13843_v6 = vunpack.i.h.bf16 %v13841_v16  ;;  %v13842_v10 = vunpack.i.l.bf16 %v13841_v16 }
0x109d   :  { %9471 = vmatpush.msra.mxu2 %v18994_v35  ;;  %12716 = vmatmul.msk.f32.vlgmr.msrb.gmra.mxu1 %vm6976_vm3, %v19052_v49 }
0x109e   :  { %12717 = vmatmul.msk.f32.vlgmr.msrb.gmra.mxu2 %vm6976_vm3, %v19052_v49  ;;  %12718 = vmatmul.msk.f32.vlgmr.msra.gmra.mxu3 %vm6976_vm3, %v19052_v49  ;;  %v19112_v62 = vpop.f32.mrf.mxu2  ;;  %v19114_v29 = vpop.f32.mrf.mxu3  ;;  %v9285_v44 = vsel %vm20829_vm8, %v20828_v50, %v13842_v10  ;;  %v9286_v23 = vsel %vm20830_vm11, %v13842_v10, %v13843_v6  ;;  %v13783_v50 = vunpack.i.h.bf16 %v18709_v26  ;;  %v13782_v6 = vunpack.i.l.bf16 %v18709_v26 }
0x109f   :  { %9550 = vmatpush.msrb.mxu2 %v18769_v57  ;;  %9570 = vmatpush.msra.mxu3 %v18695_v47  ;;  %20827 = vst [vmem:[#allocation90_spill] sm:$0xff] %v19114_v29  ;;  %v19120_v2 = vpop.f32.mrf.mxu0  ;;  %v19122_v16 = vpop.f32.mrf.mxu1  ;;  %v9278_v29 = vsel %vm20813_vm2, %v20832_v24, %v13727_v13  ;;  %v14064_v10 = vpack.i.bf16 %v18695_v47, %v18994_v35  ;;  %v13753_v26 = vunpack.i.h.bf16 %v18760_v51  ;;  %v13758_v13 = vunpack.i.h.bf16 %v18613_v37 }
0x10a0   :  { %20831 = vst [vmem:[#allocation88_spill] sm:$0xff] %v19122_v16  ;;  %9418 = vmatpush.msra.mxu0 %v9285_v44  ;;  %9438 = vmatpush.msra.mxu1 %v9286_v23  ;;  %v13787_v44 = vunpack.i.l.bf16 %v18879_v36  ;;  %v13773_v23 = vunpack.i.h.bf16 %v18814_v43 }
0x10a1   :  { %9551 = vmatpush.msrb.mxu2 %v18703_v1  ;;  %9571 = vmatpush.msra.mxu3 %v18693_v59 }
0x10a2   :  { %9419 = vmatpush.msra.mxu0 %v9278_v29  ;;  %9439 = vmatpush.msra.mxu1 %v9279_v8  ;;  %v19144_v59 = vpop.permute.xlu2 %13910  ;;  %v19149_v47 = vpop.permute.xlu1 %13860  ;;  %v13757_v29 = vunpack.i.l.bf16 %v18613_v37  ;;  %v9641_v37 = vsel %vm117_vm0, %v13783_v50, %v13787_v44 }
0x10a3   :  { %14085 = vrot.lane.b32.xlu2 %v18886_v27, %s14236_s18  ;;  %12719 = vmatmul.msk.f32.vlgmr.msra.gmra.mxu0 %vm6976_vm3, %v19052_v49  ;;  %v19151_v56 = vpop.permute.xlu0 %13845 }
0x10a4   :  { %14065 = vrot.lane.b32.xlu1 %v14064_v10, %s14280_s29  ;;  %9510 = vmatpush.msrb.mxu0 %v18477_v9  ;;  %v9640_v9 = vsel %vm117_vm0, %v13782_v6, %v13783_v50  ;;  %v9634_v8 = vsel %vm117_vm0, %v13753_v26, %v13757_v29  ;;  %v14099_v50 = vpack.i.bf16 %v18703_v1, %v18752_v21 }
0x10a5   :  { %14070 = vrot.lane.b32.xlu0 %v18756_v28, %s14279_s26  ;;  %12720 = vmatmul.msk.f32.vlgmr.msra.gmra.mxu1 %vm6976_vm3, %v19052_v49  ;;  %v13752_v49 = vunpack.i.l.bf16 %v18760_v51  ;;  %v9639_v51 = vsel %vm117_vm0, %v13773_v23, %v13782_v6 }
0x10a6   :  { %12722 = vmatmul.msk.f32.vlgmr.msra.gmra.mxu2 %vm6976_vm3, %v19142_v12  ;;  %12723 = vmatmul.msk.f32.vlgmr.msrb.gmra.mxu3 %vm6976_vm3, %v19142_v12  ;;  %v19167_v24 = vpop.f32.mrf.mxu2  ;;  %v19169_v28 = vpop.f32.mrf.mxu3 }
0x10a7   :  { %9530 = vmatpush.msrb.mxu1 %v18767_v5  ;;  %9696 = vmatpush.msra.mxu2 %v9640_v9  ;;  %20834 = vst [vmem:[#allocation91_spill] sm:$0xff] %v19167_v24  ;;  %v19174_v10 = vpop.f32.mrf.mxu1  ;;  %v19176_v16 = vpop.f32.mrf.mxu0  ;;  %v9635_v5 = vsel %vm117_vm0, %v13757_v29, %v13758_v13  ;;  %v13767_v9 = vunpack.i.l.bf16 %v18816_v19 }
0x10a8   :  { %20835 = vst [vmem:[#allocation94_spill] sm:$0xff] %v19169_v28  ;;  %9716 = vmatpush.msrb.mxu3 %v9641_v37  ;;  %9511 = vmatpush.msrb.mxu0 %v18652_v4  ;;  %v13788_v4 = vunpack.i.h.bf16 %v18879_v36 }
0x10a9   :  { %20836 = vst [vmem:[#allocation92_spill] sm:$0xff] %v19176_v16  ;;  %9531 = vmatpush.msrb.mxu1 %v18701_v58  ;;  %9697 = vmatpush.msra.mxu2 %v9634_v8  ;;  %v9633_v58 = vsel %vm117_vm0, %v13752_v49, %v13753_v26  ;;  %v9636_v49 = vsel %vm117_vm0, %v13758_v13, %v13767_v9  ;;  %v13812_v8 = vunpack.i.l.bf16 %v19004_v18 }
0x10aa   :  { %9717 = vmatpush.msrb.mxu3 %v9635_v5  ;;  %9590 = vmatpush.msra.mxu0 %v18752_v21  ;;  %v12729_v5 = vld [vmem:[%s20095_s6 + $0x68] sm:$0x3f] }
0x10ab   :  { %9676 = vmatpush.msra.mxu1 %v9639_v51  ;;  %14100 = vrot.lane.b32.xlu2 %v14099_v50, %s14280_s29  ;;  %v19190_v29 = vpop.permute.xlu2 %13915  ;;  %v19192_v1 = vpop.permute.xlu1 %13875 }
0x10ac   :  { %9591 = vmatpush.msra.mxu0 %v18984_v25  ;;  %14080 = vrot.lane.b32.xlu1 %v18808_v15, %s14236_s18  ;;  %v19197_v36 = vpop.permute.xlu0 %13870  ;;  %v9642_v25 = vsel %vm117_vm0, %v13787_v44, %v13788_v4  ;;  %v14089_v44 = vpack.i.bf16 %v18994_v35, %v18769_v57 }
0x10ad   :  { %9677 = vmatpush.msra.mxu1 %v9633_v58  ;;  %14075 = vrot.lane.b32.xlu0 %v19038_v11, %s14280_s29  ;;  %v13792_v58 = vunpack.i.l.bf16 %v18758_v46 }
0x10ae   :  { %12724 = vmatmul.msk.f32.vlgmr.msrb.gmra.mxu0 %vm6976_vm3, %v19142_v12  ;;  %12725 = vmatmul.msk.f32.vlgmr.msrb.gmra.mxu1 %vm6976_vm3, %v19142_v12  ;;  %v19208_v6 = vpop.f32.mrf.mxu2  ;;  %v19210_v26 = vpop.f32.mrf.mxu3 }
0x10af   :  { %12726 = vmatmul.msk.f32.vlgmr.msrb.gmra.mxu2 %vm6976_vm3, %v19142_v12  ;;  %12727 = vmatmul.msk.f32.vlgmr.msra.gmra.mxu3 %vm6976_vm3, %v19142_v12  ;;  %20837 = vst [vmem:[#allocation43_spill] sm:$0xff] %v19208_v6  ;;  %v19212_v23 = vpop.f32.mrf.mxu1  ;;  %v19214_v37 = vpop.f32.mrf.mxu0  ;;  %v13818_v6 = vunpack.i.h.bf16 %v18928_v60 }
0x10b0   :  { %9736 = vmatpush.msrb.mxu0 %v9642_v25  ;;  %20838 = vst [vmem:[#allocation95_spill] sm:$0xff] %v19212_v23  ;;  %v13808_v25 = vunpack.i.h.bf16 %v18826_v30 }
0x10b2   :  { %9737 = vmatpush.msrb.mxu0 %v9636_v49  ;;  %v9845_v50 = vsel %vm170_vm1, %v13808_v25, %v13812_v8  ;;  %v20840_v25 = vunpack.i.h.bf16 %v18758_v46 }
0x10b3   :  { %14105 = vrot.lane.b32.xlu2 %v18707_v54, %s14236_s18  ;;  %v19228_v51 = vpop.permute.xlu2 %13945  ;;  %v13901_v13 = vpop.permute.xlu1 %13900 }
0x10b4   :  { %14095 = vrot.lane.b32.xlu1 %v18867_v14, %s14236_s18  ;;  %v13903_v54 = vunpack.i.h.bf16 %v13901_v13  ;;  %v13902_v57 = vunpack.i.l.bf16 %v13901_v13  ;;  %v19233_v49 = vpop.permute.xlu0 %13885 }
0x10b5   :  { %14090 = vrot.lane.b32.xlu0 %v14089_v44, %s14236_s18 }
0x10b6   :  { %12728 = vmatmul.msk.f32.vlgmr.msra.gmra.mxu0 %vm6976_vm3, %v19142_v12  ;;  %12730 = vmatmul.msk.f32.vlgmr.msra.gmra.mxu1 %vm6976_vm3, %v12729_v5  ;;  %v19241_v28 = vpop.f32.mrf.mxu2  ;;  %v19243_v23 = vpop.f32.mrf.mxu3  ;;  %v9643_v44 = vsel %vm117_vm0, %v13788_v4, %v13902_v57  ;;  %v9644_v13 = vsel %vm117_vm0, %v13902_v57, %v13903_v54  ;;  %v13817_v12 = vunpack.i.l.bf16 %v18928_v60  ;;  %v20841_v4 = vunpack.i.l.bf16 %v18814_v43 }
0x10b7   :  { %12731 = vmatmul.msk.f32.vlgmr.msra.gmra.mxu2 %vm6976_vm3, %v12729_v5  ;;  %12732 = vmatmul.msk.f32.vlgmr.msrb.gmra.mxu3 %vm6976_vm3, %v12729_v5  ;;  %20839 = vst [vmem:[#allocation93_spill] sm:$0xff] %v19241_v28  ;;  %v19249_v16 = vpop.f32.mrf.mxu1  ;;  %v19251_v24 = vpop.f32.mrf.mxu0  ;;  %v9839_v28 = vsel %vm170_vm1, %v13792_v58, %v20840_v25  ;;  %v20842_v57 = vunpack.i.h.bf16 %v18816_v19  ;;  %v13912_v58 = vunpack.i.l.bf16 %v19144_v59 }
0x10b8   :  { %9882 = vmatpush.msra.mxu0 %v9845_v50  ;;  %9796 = vmatpush.msra.mxu3 %v13903_v54  ;;  %v13798_v50 = vunpack.i.h.bf16 %v18940_v34  ;;  %v13813_v54 = vunpack.i.h.bf16 %v19004_v18  ;;  %v9848_v43 = vsel %vm170_vm1, %v13817_v12, %v13818_v6  ;;  %v13797_v18 = vunpack.i.l.bf16 %v18940_v34 }
0x10b9   :  { %9756 = vmatpush.msrb.mxu1 %v9643_v44  ;;  %9776 = vmatpush.msrb.mxu2 %v9644_v13  ;;  %v9637_v60 = vsel %vm117_vm0, %v13767_v9, %v20842_v57  ;;  %v13802_v9 = vunpack.i.l.bf16 %v18877_v40  ;;  %v13803_v44 = vunpack.i.h.bf16 %v18877_v40  ;;  %v13913_v13 = vunpack.i.h.bf16 %v19144_v59 }
0x10ba   :  { %9883 = vmatpush.msra.mxu0 %v9839_v28  ;;  %9797 = vmatpush.msra.mxu3 %v20841_v4  ;;  %v9846_v34 = vsel %vm170_vm1, %v13812_v8, %v13813_v54  ;;  %v13823_v57 = vunpack.i.h.bf16 %v19061_v7  ;;  %v13852_v59 = vunpack.i.l.bf16 %v19099_v20  ;;  %v20846_v8 = vunpack.i.h.bf16 %v18758_v46 }
0x10bb   :  { %14130 = vrot.lane.b32.xlu2 %v18801_v33, %s20843_s2  ;;  %9757 = vmatpush.msrb.mxu1 %v9637_v60  ;;  %v19270_v19 = vpop.permute.xlu2 %13960  ;;  %v19272_v28 = vpop.permute.xlu1 %13905  ;;  %v9842_v25 = vsel %vm170_vm1, %v13798_v50, %v13802_v9  ;;  %v13822_v60 = vunpack.i.l.bf16 %v19061_v7  ;;  %v9843_v7 = vsel %vm170_vm1, %v13802_v9, %v13803_v44  ;;  %vm20847_vm0 = vcmask 900096  }
0x10bc   :  { %14115 = vrot.lane.b32.xlu1 %v18808_v15, %s20843_s2  ;;  %9777 = vmatpush.msrb.mxu2 %v18846_v17  ;;  %v19278_v33 = vpop.permute.xlu0 %13895  ;;  %v13848_v17 = vunpack.i.h.bf16 %v19151_v56  ;;  %vm20848_vm12 = vmmov %vm20847_vm0  ;;  %v13853_v9 = vunpack.i.h.bf16 %v19099_v20 }
0x10bd   :  { %14110 = vrot.lane.b32.xlu0 %v18699_v45, %s14236_s18  ;;  %9942 = vmatpush.msrb.mxu3 %v9848_v43  ;;  %v9847_v45 = vsel %vm170_vm1, %v13813_v54, %v13817_v12  ;;  %v9840_v12 = vsel %vm170_vm1, %v20846_v8, %v13797_v18  ;;  %v9841_v54 = vsel %vm170_vm1, %v13797_v18, %v13798_v50  ;;  %vm20850_vm15 = vmmov %vm20847_vm0 }
0x10be   :  { %12733 = vmatmul.msk.f32.vlgmr.msrb.gmra.mxu0 %vm6976_vm3, %v12729_v5  ;;  %12734 = vmatmul.msk.f32.vlgmr.msrb.gmra.mxu1 %vm6976_vm3, %v12729_v5  ;;  %v19290_v4 = vpop.f32.mrf.mxu2  ;;  %v19292_v40 = vpop.f32.mrf.mxu3  ;;  %v10045_v46 = vsel %vm20848_vm12, %v13822_v60, %v13823_v57  ;;  %v13837_v60 = vunpack.i.l.bf16 %v18891_v38  ;;  %vm20851_vm10 = vmmov %vm20847_vm0 }
0x10bf   :  { %12735 = vmatmul.msk.f32.vlgmr.msrb.gmra.mxu2 %vm6976_vm3, %v12729_v5  ;;  %12736 = vmatmul.msk.f32.vlgmr.msra.gmra.mxu3 %vm6976_vm3, %v12729_v5  ;;  %20844 = vst [vmem:[#allocation96_spill] sm:$0xff] %v19292_v40  ;;  %v9849_v5 = vsel %vm170_vm1, %v13818_v6, %v13912_v58  ;;  %v19298_v43 = vpop.f32.mrf.mxu1  ;;  %v10051_v40 = vsel %vm20847_vm0, %v13848_v17, %v13852_v59  ;;  %v13807_v6 = vunpack.i.l.bf16 %v18826_v30  ;;  %v13858_v17 = vunpack.i.h.bf16 %v18938_v42  ;;  %vm20853_vm14 = vmmov %vm20847_vm0 }
0x10c0   :  { %9902 = vmatpush.msra.mxu1 %v9846_v34  ;;  %9922 = vmatpush.msra.mxu2 %v9847_v45  ;;  %20845 = vst [vmem:[#allocation98_spill] sm:$0xff] %v19298_v43  ;;  %v9850_v45 = vsel %vm170_vm1, %v13912_v58, %v13913_v13  ;;  %v14119_v30 = vpack.i.bf16 %v18863_v0, %v18994_v35  ;;  %v12737_v58 = vld [vmem:[%s20095_s6 + $0x70] sm:$0x3f]  ;;  %vm20854_vm8 = vmmov %vm20847_vm0 }
0x10c1   :  { %9962 = vmatpush.msrb.mxu0 %v9849_v5  ;;  %9943 = vmatpush.msrb.mxu3 %v9842_v25  ;;  %v19306_v34 = vpop.f32.mrf.mxu0  ;;  %v9844_v18 = vsel %vm170_vm1, %v13803_v44, %v13807_v6  ;;  %v13833_v44 = vunpack.i.h.bf16 %v19059_v39  ;;  %vm20849_vm1 = vmmov %vm20847_vm0 }
0x10c2   :  { %9903 = vmatpush.msra.mxu1 %v9840_v12  ;;  %9923 = vmatpush.msra.mxu2 %v9841_v54  ;;  %vm20855_vm11 = vmmov %vm20847_vm0 }
0x10c3   :  { %9963 = vmatpush.msrb.mxu0 %v9843_v7  ;;  %10088 = vmatpush.msra.mxu3 %v10051_v40  ;;  %v19311_v25 = vpop.permute.xlu2 %13970  ;;  %v19313_v50 = vpop.permute.xlu1 %13925  ;;  %v13832_v40 = vunpack.i.l.bf16 %v19059_v39  ;;  %v10052_v39 = vsel %vm20849_vm1, %v13852_v59, %v13853_v9  ;;  %v10048_v7 = vsel %vm20855_vm11, %v13833_v44, %v13837_v60  ;;  %vm20856_vm2 = vmmov %vm20847_vm0 }
0x10c4   :  { %9982 = vmatpush.msrb.mxu1 %v9850_v45  ;;  %10002 = vmatpush.msrb.mxu2 %v13913_v13  ;;  %v13857_v13 = vunpack.i.l.bf16 %v18938_v42  ;;  %v13878_v45 = vunpack.i.h.bf16 %v19192_v1  ;;  %vm20857_vm7 = vmmov %vm20847_vm0 }
0x10c5   :  { %10089 = vmatpush.msra.mxu3 %v10045_v46  ;;  %14155 = vrot.lane.b32.xlu2 %v18988_v41, %s14236_s18  ;;  %v19326_v20 = vpop.permute.xlu0 %13920  ;;  %v10046_v12 = vsel %vm20853_vm14, %v13823_v57, %v13832_v40  ;;  %v10047_v54 = vsel %vm20854_vm8, %v13832_v40, %v13833_v44  ;;  %v13882_v46 = vunpack.i.l.bf16 %v19044_v3  ;;  %v19363_v57 = vld [vmem:[%s20095_s6 + $0x78] sm:$0x3f]  ;;  %vm20859_vm12 = vmmov %vm20847_vm0 }
0x10c6   :  { %9983 = vmatpush.msrb.mxu1 %v9844_v18  ;;  %10003 = vmatpush.msrb.mxu2 %v13807_v6  ;;  %v19333_v0 = vpop.f32.mrf.mxu2  ;;  %v19335_v35 = vpop.f32.mrf.mxu3  ;;  %v10054_v5 = vsel %vm20851_vm10, %v13857_v13, %v13858_v17  ;;  %v13863_v18 = vunpack.i.h.bf16 %v19149_v47 }
0x10c7   :  { %14125 = vrot.lane.b32.xlu1 %v18886_v27, %s20843_s2  ;;  %14120 = vrot.lane.b32.xlu0 %v14119_v30, %s20843_s2  ;;  %v19339_v42 = vpop.f32.mrf.mxu1  ;;  %v10053_v27 = vsel %vm20850_vm15, %v13853_v9, %v13857_v13  ;;  %v13862_v30 = vunpack.i.l.bf16 %v19149_v47  ;;  %v13847_v47 = vunpack.i.l.bf16 %v19151_v56 }
0x10c8   :  { %12738 = vmatmul.msk.f32.vlgmr.msra.gmra.mxu0 %vm6976_vm3, %v12737_v58  ;;  %12739 = vmatmul.msk.f32.vlgmr.msra.gmra.mxu1 %vm6976_vm3, %v12737_v58 }
0x10c9   :  { %12740 = vmatmul.msk.f32.vlgmr.msra.gmra.mxu2 %vm6976_vm3, %v12737_v58  ;;  %12741 = vmatmul.msk.f32.vlgmr.msrb.gmra.mxu3 %vm6976_vm3, %v12737_v58  ;;  %v19347_v8 = vpop.f32.mrf.mxu0 }
0x10ca   :  { %10108 = vmatpush.msra.mxu0 %v10052_v39  ;;  %10128 = vmatpush.msra.mxu1 %v10053_v27  ;;  %20852 = vst [vmem:[#allocation100_spill] sm:$0xff] %v19347_v8  ;;  %v13838_v39 = vunpack.i.h.bf16 %v18891_v38  ;;  %v13883_v27 = vunpack.i.h.bf16 %v19044_v3  ;;  %v10251_v3 = vsel %vm4931_vm13, %v13862_v30, %v13863_v18 }
0x10cb   :  { %10148 = vmatpush.msra.mxu2 %v10054_v5  ;;  %v19352_v59 = vpop.permute.xlu2 %13990  ;;  %v19354_v6 = vpop.permute.xlu1 %13940 }
0x10cc   :  { %10109 = vmatpush.msra.mxu0 %v10046_v12  ;;  %10129 = vmatpush.msra.mxu1 %v10047_v54  ;;  %v10049_v56 = vsel %vm20847_vm0, %v13837_v60, %v13838_v39  ;;  %v13888_v54 = vunpack.i.h.bf16 %v19233_v49  ;;  %v13868_v60 = vunpack.i.h.bf16 %v18990_v22 }
0x10cd   :  { %10149 = vmatpush.msra.mxu2 %v10048_v7  ;;  %14160 = vrot.lane.b32.xlu2 %v18988_v41, %s20843_s2  ;;  %v13931_v9 = vpop.permute.xlu0 %13930  ;;  %v10050_v7 = vsel %vm20859_vm12, %v13838_v39, %v13847_v47 }
0x10ce   :  { %v13933_v13 = vunpack.i.h.bf16 %v13931_v9  ;;  %v13932_v41 = vunpack.i.l.bf16 %v13931_v9  ;;  %v19371_v44 = vpop.f32.mrf.mxu2  ;;  %v19373_v40 = vpop.f32.mrf.mxu3 }
0x10cf   :  { %14140 = vrot.lane.b32.xlu1 %v18947_v48, %s20843_s2  ;;  %14135 = vrot.lane.b32.xlu0 %v18875_v53, %s20843_s2  ;;  %v10257_v53 = vsel %vm4931_vm13, %v13878_v45, %v13882_v46  ;;  %v10258_v45 = vsel %vm4931_vm13, %v13882_v46, %v13883_v27 }
0x10d0   :  { %12742 = vmatmul.msk.f32.vlgmr.msrb.gmra.mxu0 %vm6976_vm3, %v12737_v58  ;;  %12743 = vmatmul.msk.f32.vlgmr.msrb.gmra.mxu1 %vm6976_vm3, %v12737_v58  ;;  %v19384_v48 = vpop.f32.mrf.mxu1  ;;  %v10055_v5 = vsel %vm20856_vm2, %v13858_v17, %v13932_v41  ;;  %v10056_v38 = vsel %vm20857_vm7, %v13932_v41, %v13933_v13  ;;  %v13887_v17 = vunpack.i.l.bf16 %v19233_v49  ;;  %v13872_v49 = vunpack.i.l.bf16 %v19197_v36 }
0x10d1   :  { %12744 = vmatmul.msk.f32.vlgmr.msrb.gmra.mxu2 %vm6976_vm3, %v12737_v58  ;;  %12746 = vmatmul.msk.f32.vlgmr.msra.gmra.mxu3 %vm6976_vm3, %v19363_v57  ;;  %vm20895_vm7 = vcmask 736256  }
0x10d2   :  { %10294 = vmatpush.msrb.mxu2 %v10257_v53  ;;  %10208 = vmatpush.msrb.mxu1 %v13933_v13  ;;  %v19389_v12 = vpop.f32.mrf.mxu0  ;;  %v13867_v13 = vunpack.i.l.bf16 %v18990_v22  ;;  %v10259_v22 = vsel %vm4931_vm13, %v13883_v27, %v13887_v17  ;;  %vm20897_vm12 = vmmov %vm20895_vm7 }
0x10d3   :  { %10168 = vmatpush.msrb.mxu3 %v10055_v5  ;;  %10188 = vmatpush.msrb.mxu0 %v10056_v38  ;;  %v19392_v58 = vpop.permute.xlu1 %13955  ;;  %v14212_v5 = vld [vmem:[#allocation3 + $0x20] sm:$0xff]  ;;  %v14213_v38 = vld [vmem:[#allocation3 + $0x28] sm:$0xff] }
0x10d4   :  { %10295 = vmatpush.msrb.mxu2 %v10251_v3  ;;  %10209 = vmatpush.msrb.mxu1 %v13847_v47  ;;  %v19400_v9 = vpop.permute.xlu2 %13995  ;;  %v10252_v41 = vsel %vm4931_vm13, %v13863_v18, %v13867_v13  ;;  %v10253_v39 = vsel %vm4931_vm13, %v13867_v13, %v13868_v60  ;;  %v10254_v47 = vsel %vm4931_vm13, %v13868_v60, %v13872_v49  ;;  %v14214_v18 = vld [vmem:[#allocation3 + $0x78] sm:$0xff] }
0x10d5   :  { %14165 = vrot.lane.b32.xlu2 %v18867_v14, %s20858_s24  ;;  %10169 = vmatpush.msrb.mxu3 %v10049_v56  ;;  %v19402_v30 = vpop.permute.xlu0 %13935  ;;  %v14179_v27 = vpack.i.bf16 %v14213_v38, %v14212_v5  ;;  %v13922_v56 = vunpack.i.l.bf16 %v19326_v20  ;;  %v19442_v60 = vld [vmem:[%s20095_s6 + $0x80] sm:$0x3f] }
0x10d6   :  { %10189 = vmatpush.msrb.mxu0 %v10050_v7 }
0x10d7   :  { %10314 = vmatpush.msra.mxu3 %v10258_v45  ;;  %14150 = vrot.lane.b32.xlu1 %v18998_v63, %s20858_s24  ;;  %v19415_v14 = vpop.f32.mrf.mxu2  ;;  %v19417_v46 = vpop.f32.mrf.mxu3 }
0x10d8   :  { %14145 = vrot.lane.b32.xlu0 %v18808_v15, %s20858_s24  ;;  %12747 = vmatmul.msk.f32.vlgmr.msra.gmra.mxu0 %vm6976_vm3, %v19363_v57  ;;  %v10260_v15 = vsel %vm4931_vm13, %v13887_v17, %v13888_v54  ;;  %v19425_v63 = vpop.f32.mrf.mxu1  ;;  %v14174_v17 = vpack.i.bf16 %v18752_v21, %v14214_v18  ;;  %v20860_v21 = vld [vmem:[#allocation77_spill] sm:$0xff]  ;;  %v13877_v18 = vunpack.i.l.bf16 %v19192_v1 }
0x10d9   :  { %12748 = vmatmul.msk.f32.vlgmr.msra.gmra.mxu1 %vm6976_vm3, %v19363_v57  ;;  %12749 = vmatmul.msk.f32.vlgmr.msra.gmra.mxu2 %vm6976_vm3, %v19363_v57 }
0x10da   :  { %12750 = vmatmul.msk.f32.vlgmr.msrb.gmra.mxu3 %vm6976_vm3, %v19363_v57  ;;  %10334 = vmatpush.msra.mxu0 %v10259_v22  ;;  %v19432_v53 = vpop.f32.mrf.mxu0 }
0x10db   :  { %10354 = vmatpush.msra.mxu1 %v10260_v15  ;;  %10315 = vmatpush.msra.mxu3 %v10252_v41  ;;  %v13981_v3 = vpop.permute.xlu1 %13980  ;;  %v20294_v15 = vunpack.i.h.bf16 %v19095_v61  ;;  %v13892_v41 = vunpack.i.l.bf16 %v19095_v61 }
0x10dc   :  { %10335 = vmatpush.msra.mxu0 %v10253_v39  ;;  %v13983_v45 = vunpack.i.h.bf16 %v13981_v3  ;;  %v13982_v13 = vunpack.i.l.bf16 %v13981_v3  ;;  %v13918_v39 = vunpack.i.h.bf16 %v19190_v29 }
0x10dd   :  { %10355 = vmatpush.msra.mxu1 %v10254_v47  ;;  %14180 = vrot.lane.b32.xlu2 %v14179_v27, %s20858_s24  ;;  %v19437_v7 = vpop.permute.xlu2 %14005  ;;  %v19444_v22 = vpop.permute.xlu0 %13950  ;;  %v13873_v47 = vunpack.i.h.bf16 %v19197_v36  ;;  %v10457_v1 = vsel %vm351_vm4, %v13892_v41, %v20294_v15  ;;  %v13927_v41 = vunpack.i.l.bf16 %v19313_v50  ;;  %v13897_v15 = vunpack.i.l.bf16 %v19278_v33 }
0x10de   :  { %v10261_v27 = vsel %vm4931_vm13, %v13888_v54, %v13982_v13  ;;  %v10262_v3 = vsel %vm4931_vm13, %v13982_v13, %v13983_v45  ;;  %v12095_v54 = vld [vmem:[%s20096_s8] sm:$0x3f]  ;;  %v13992_v36 = vunpack.i.l.bf16 %v19352_v59 }
0x10df   :  { %14175 = vrot.lane.b32.xlu1 %v14174_v17, %s20858_s24  ;;  %v19457_v5 = vpop.f32.mrf.mxu2  ;;  %v19459_v38 = vpop.f32.mrf.mxu3  ;;  %v13923_v17 = vunpack.i.h.bf16 %v19326_v20  ;;  %10374 = vmatpush.msra.mxu2 %v10261_v27  ;;  %v12075_v13 = vld [vmem:[%s20097_s7] sm:$0x3f]  ;;  %v10256_v27 = vsel %vm4931_vm13, %v13873_v47, %v13877_v18 }
0x10e0   :  { %14170 = vrot.lane.b32.xlu0 %v20860_v21, %s20858_s24  ;;  %12751 = vmatmul.msk.f32.vlgmr.msrb.gmra.mxu0 %vm6976_vm3, %v19363_v57  ;;  %20861 = vst [vmem:[#allocation97_spill] sm:$0xff] %v19459_v38  ;;  %v19470_v21 = vpop.f32.mrf.mxu1  ;;  %v13907_v38 = vunpack.i.l.bf16 %v19272_v28 }
0x10e1   :  { %12752 = vmatmul.msk.f32.vlgmr.msrb.gmra.mxu1 %vm6976_vm3, %v19363_v57  ;;  %12754 = vmatmul.msk.f32.vlgmr.msrb.gmra.mxu2 %vm6976_vm3, %v19442_v60  ;;  %v10463_v57 = vsel %vm351_vm4, %v13918_v39, %v13922_v56 }
0x10e2   :  { %12755 = vmatmul.msk.f32.vlgmr.msra.gmra.mxu3 %vm6976_vm3, %v19442_v60  ;;  %10500 = vmatpush.msrb.mxu1 %v10463_v57  ;;  %v19478_v20 = vpop.f32.mrf.mxu0  ;;  %v13928_v57 = vunpack.i.h.bf16 %v19313_v50  ;;  %v13898_v50 = vunpack.i.h.bf16 %v19278_v33 }
0x10e3   :  { %10414 = vmatpush.msrb.mxu0 %v13983_v45  ;;  %10394 = vmatpush.msrb.mxu3 %v10262_v3  ;;  %v10255_v45 = vsel %vm4931_vm13, %v13872_v49, %v13873_v47  ;;  %v19486_v39 = vpop.permute.xlu1 %13985  ;;  %v10464_v3 = vsel %vm351_vm4, %v13922_v56, %v13923_v17  ;;  %v13908_v56 = vunpack.i.h.bf16 %v19272_v28  ;;  %v13993_v47 = vunpack.i.h.bf16 %v19352_v59 }
0x10e4   :  { %10501 = vmatpush.msrb.mxu1 %v10457_v1  ;;  %10375 = vmatpush.msra.mxu2 %v10255_v45  ;;  %v10466_v28 = vsel %vm351_vm4, %v13927_v41, %v13928_v57  ;;  %v10467_v59 = vsel %vm351_vm4, %v13928_v57, %v13992_v36  ;;  %v10459_v43 = vsel %vm351_vm4, %v13897_v15, %v13898_v50 }
0x10e5   :  { %10415 = vmatpush.msrb.mxu0 %v13877_v18  ;;  %12098 = vperm.xlu2 %13313, %v12095_v54   ;;  %v19492_v1 = vpop.permute.xlu2 %14020  ;;  %v19496_v49 = vpop.permute.xlu0 %13965  ;;  %v10461_v57 = vsel %vm351_vm4, %v13907_v38, %v13908_v56 }
0x10e6   :  { %20862 = vst [vmem:[#allocation44_spill] sm:$0xff] %v19492_v1  ;;  %10395 = vmatpush.msrb.mxu3 %v10256_v27  ;;  %10520 = vmatpush.msrb.mxu2 %v10464_v3  ;;  %v20865_v27 = vld [vmem:[#allocation41_spill] sm:$0xff]  ;;  %v20866_v3 = vld [vmem:[#allocation42_spill] sm:$0xff] }
0x10e7   :  { %12078 = vperm.xlu1 %13312, %v12075_v13   ;;  %v19508_v18 = vpop.f32.mrf.mxu2  ;;  %v19510_v54 = vpop.f32.mrf.mxu3  ;;  %v20864_v13 = vunpack.i.h.bf16 %v19095_v61  ;;  %v7275_v8 = vadd.f32 %v20866_v3, %v20865_v27  ;;  %v10468_v61 = vsel %vm351_vm4, %v13992_v36, %v13993_v47  ;;  %v13937_v36 = vunpack.i.l.bf16 %v19402_v30  ;;  %v20872_v1 = vld [vmem:[#allocation78_spill] sm:$0xff] }
0x10e8   :  { %14185 = vrot.lane.b32.xlu0 %v19038_v11, %s20858_s24  ;;  %12756 = vmatmul.msk.f32.vlgmr.msra.gmra.mxu0 %vm6976_vm3, %v19442_v60  ;;  %20863 = vst [vmem:[#allocation101_spill] sm:$0xff] %v19508_v18  ;;  %v10465_v11 = vsel %vm351_vm4, %v13923_v17, %v13927_v41  ;;  %v19518_v33 = vpop.f32.mrf.mxu1  ;;  %v10460_v17 = vsel %vm351_vm4, %v13898_v50, %v13907_v38  ;;  %v13947_v50 = vunpack.i.l.bf16 %v19228_v51  ;;  %v19544_v38 = vld [vmem:[%s20095_s6 + $0x88] sm:$0x3f] }
0x10e9   :  { %12757 = vmatmul.msk.f32.vlgmr.msra.gmra.mxu1 %vm6976_vm3, %v19442_v60  ;;  %12758 = vmatmul.msk.f32.vlgmr.msra.gmra.mxu2 %vm6976_vm3, %v19442_v60  ;;  %v10458_v45 = vsel %vm351_vm4, %v20864_v13, %v13897_v15  ;;  %v13943_v13 = vunpack.i.h.bf16 %v19354_v6  ;;  %v13948_v15 = vunpack.i.h.bf16 %v19228_v51  ;;  %v20873_v18 = vld [vmem:[#allocation89_spill] sm:$0xff] }
0x10ea   :  { %12759 = vmatmul.msk.f32.vlgmr.msrb.gmra.mxu3 %vm6976_vm3, %v19442_v60  ;;  %10560 = vmatpush.msra.mxu0 %v10466_v28  ;;  %v19528_v41 = vpop.f32.mrf.mxu0  ;;  %v7520_v28 = vadd.f32 %v19083_v52, %v7275_v8  ;;  %v13938_v8 = vunpack.i.h.bf16 %v19402_v30 }
0x10eb   :  { %10540 = vmatpush.msra.mxu3 %v10465_v11  ;;  %10580 = vmatpush.msra.mxu1 %v10467_v59  ;;  %v13917_v11 = vunpack.i.l.bf16 %v19190_v29  ;;  %v13952_v29 = vunpack.i.l.bf16 %v19444_v22 }
0x10ec   :  { %10521 = vmatpush.msrb.mxu2 %v10458_v45  ;;  %10561 = vmatpush.msra.mxu0 %v10460_v17  ;;  %v7726_v52 = vadd.f32 %v19210_v26, %v7520_v28  ;;  %v20870_v17 = vld [vmem:[#allocation80_spill] sm:$0xff]  ;;  %v7235_v26 = vadd.f32 %v20873_v18, %v20872_v1  ;;  %v13957_v28 = vunpack.i.l.bf16 %v19392_v58  ;;  %v20874_v45 = vld [vmem:[#allocation83_spill] sm:$0xff]  ;;  %v10669_v1 = vsel %vm409_vm5, %v13943_v13, %v13947_v50 }
0x10ed   :  { %10541 = vmatpush.msra.mxu3 %v10459_v43  ;;  %10581 = vmatpush.msra.mxu1 %v10461_v57  ;;  %v19535_v59 = vpop.permute.xlu1 %14015  ;;  %v10462_v43 = vsel %vm351_vm4, %v13908_v56, %v13917_v11  ;;  %v19550_v51 = vpop.permute.xlu2 %14030  ;;  %v20869_v56 = vld [vmem:[#allocation84_spill] sm:$0xff]  ;;  %v20871_v57 = vld [vmem:[#allocation87_spill] sm:$0xff]  ;;  %v20875_v13 = vunpack.i.h.bf16 %v19444_v22  ;;  %vm20881_vm4 = vcmask 867328  }
0x10ee   :  { %10600 = vmatpush.msra.mxu2 %v10468_v61  ;;  %20867 = vst [vmem:[#allocation99_spill] sm:$0xff] %v19550_v51  ;;  %v19552_v27 = vpop.permute.xlu0 %13975  ;;  %v7215_v61 = vadd.f32 %v20871_v57, %v20870_v17  ;;  %v7295_v51 = vadd.f32 %v19067_v32, %v20874_v45  ;;  %v10670_v32 = vsel %vm409_vm5, %v13947_v50, %v13948_v15  ;;  %v20876_v57 = vld [vmem:[#allocation79_spill] sm:$0xff]  ;;  %vm20885_vm13 = vmmov %vm20881_vm4 }
0x10ef   :  { %10620 = vmatpush.msrb.mxu3 %v13993_v47  ;;  %v20868_v47 = vld [vmem:[#allocation82_spill] sm:$0xff]  ;;  %v19563_v30 = vpop.f32.mrf.mxu2  ;;  %v10672_v45 = vsel %vm409_vm5, %v13952_v29, %v20875_v13  ;;  %vm20887_vm1 = vmmov %vm20881_vm4 }
0x10f0   :  { %10601 = vmatpush.msra.mxu2 %v10462_v43  ;;  %v7255_v3 = vadd.f32 %v20869_v56, %v20868_v47  ;;  %12760 = vmatmul.msk.f32.vlgmr.msrb.gmra.mxu0 %vm6976_vm3, %v19442_v60  ;;  %v19565_v43 = vpop.f32.mrf.mxu3  ;;  %v7932_v47 = vadd.f32 %v19290_v4, %v7726_v52  ;;  %v13958_v56 = vunpack.i.h.bf16 %v19392_v58  ;;  %v7517_v18 = vadd.f32 %v19085_v31, %v7215_v61  ;;  %vm20888_vm15 = vmmov %vm20887_vm1 }
0x10f1   :  { %10621 = vmatpush.msrb.mxu3 %v13917_v11  ;;  %12762 = vmatmul.msk.f32.vlgmr.msrb.gmra.mxu1 %vm6976_vm3, %v19544_v38  ;;  %v19576_v60 = vpop.f32.mrf.mxu1  ;;  %v13942_v11 = vunpack.i.l.bf16 %v19354_v6  ;;  %v10671_v4 = vsel %vm409_vm5, %v13948_v15, %v13952_v29  ;;  %v10663_v31 = vsel %vm409_vm5, %v13937_v36, %v13938_v8  ;;  %v7518_v6 = vadd.f32 %v19112_v62, %v7235_v26  ;;  %vm20889_vm10 = vmmov %vm20887_vm1 }
0x10f2   :  { %12763 = vmatmul.msk.f32.vlgmr.msrb.gmra.mxu2 %vm6976_vm3, %v19544_v38  ;;  %12764 = vmatmul.msk.f32.vlgmr.msra.gmra.mxu3 %vm6976_vm3, %v19544_v38  ;;  %v8176_v52 = vadd.f32 %v19339_v42, %v7932_v47  ;;  %v19589_v17 = vpop.f32.mrf.mxu0  ;;  %v7315_v42 = vadd.f32 %v19074_v55, %v20876_v57  ;;  %v10666_v29 = vsel %vm409_vm5, %v13957_v28, %v13958_v56  ;;  %v13968_v26 = vunpack.i.h.bf16 %v19496_v49  ;;  %v20877_v55 = vld [vmem:[#allocation90_spill] sm:$0xff]  ;;  %vm20890_vm14 = vmmov %vm20887_vm1 }
0x10f3   :  { %10706 = vmatpush.msrb.mxu0 %v10669_v1  ;;  %10726 = vmatpush.msrb.mxu1 %v10670_v32  ;;  %v10664_v50 = vsel %vm409_vm5, %v13938_v8, %v13942_v11  ;;  %v10665_v15 = vsel %vm409_vm5, %v13942_v11, %v13957_v28  ;;  %v7723_v36 = vadd.f32 %v19120_v2, %v7517_v18  ;;  %v13967_v8 = vunpack.i.l.bf16 %v19496_v49  ;;  %vm20891_vm8 = vmmov %vm20887_vm1 }
0x10f4   :  { %10746 = vmatpush.msrb.mxu2 %v10671_v4  ;;  %10766 = vmatpush.msra.mxu3 %v10672_v45  ;;  %v8388_v61 = vadd.f32 %v19389_v12, %v8176_v52  ;;  %v7724_v62 = vadd.f32 %v19174_v10, %v7518_v6  ;;  %v7519_v1 = vadd.f32 %v20877_v55, %v7255_v3  ;;  %v20878_v12 = vld [vmem:[#allocation88_spill] sm:$0xff]  ;;  %v13962_v32 = vunpack.i.l.bf16 %v19270_v19  ;;  %vm20892_vm11 = vmmov %vm20887_vm1 }
0x10f5   :  { %10707 = vmatpush.msrb.mxu0 %v10663_v31  ;;  %10727 = vmatpush.msrb.mxu1 %v10664_v50  ;;  %v19604_v47 = vpop.permute.xlu1 %14025  ;;  %v7521_v11 = vadd.f32 %v20878_v12, %v7295_v51  ;;  %v7929_v10 = vadd.f32 %v19243_v23, %v7723_v36  ;;  %v13973_v18 = vunpack.i.h.bf16 %v19311_v25  ;;  %v13972_v52 = vunpack.i.l.bf16 %v19311_v25  ;;  %v20879_v51 = vld [vmem:[#allocation91_spill] sm:$0xff]  ;;  %v19629_v31 = vpop.permute.xlu2 %14055  ;;  %vm20894_vm2 = vmmov %vm20887_vm1 }
0x10f6   :  { %10747 = vmatpush.msrb.mxu2 %v10665_v15  ;;  %10767 = vmatpush.msra.mxu3 %v10666_v29  ;;  %v8600_v4 = vadd.f32 %v19510_v54, %v8388_v61  ;;  %v19610_v28 = vpop.permute.xlu0 %14000  ;;  %v7930_v2 = vadd.f32 %v19214_v37, %v7724_v62  ;;  %v7522_v45 = vadd.f32 %v20879_v51, %v7315_v42  ;;  %v13963_v54 = vunpack.i.h.bf16 %v19270_v19  ;;  %v20883_v29 = vld [vmem:[#allocation43_spill] sm:$0xff]  ;;  %vm20896_vm0 = vmmov %vm20887_vm1 }
0x10f7   :  { %v8765_v3 = vpop.f32.mrf.mxu2  ;;  %v20880_v23 = vunpack.i.h.bf16 %v19444_v22  ;;  %v8173_v50 = vadd.f32 %v19333_v0, %v7929_v10  ;;  %v10875_v57 = vsel %vm20881_vm4, %v13967_v8, %v13968_v26  ;;  %v20882_v22 = vld [vmem:[#allocation92_spill] sm:$0xff]  ;;  %v7725_v36 = vadd.f32 %v20883_v29, %v7519_v1  ;;  %v20884_v62 = vld [vmem:[#allocation95_spill] sm:$0xff]  ;;  %vm20899_vm4 = vmmov %vm20895_vm7 }
0x10f8   :  { %12765 = vmatmul.msk.f32.vlgmr.msra.gmra.mxu0 %vm6976_vm3, %v19544_v38  ;;  %v19618_v13 = vpop.f32.mrf.mxu3  ;;  %v19631_v6 = vadd.f32 %v8765_v3, %v8600_v4  ;;  %v8174_v15 = vadd.f32 %v19335_v35, %v7930_v2  ;;  %v7727_v61 = vadd.f32 %v20882_v22, %v7521_v11  ;;  %v7728_v55 = vadd.f32 %v20884_v62, %v7522_v45  ;;  %v20886_v4 = vld [vmem:[#allocation96_spill] sm:$0xff]  ;;  %v19729_v19 = vld [vmem:[%s20095_s6 + $0x98] sm:$0x3f] }
0x10f9   :  { %12766 = vmatmul.msk.f32.vlgmr.msra.gmra.mxu1 %vm6976_vm3, %v19544_v38  ;;  %v10673_v37 = vsel %vm409_vm5, %v20880_v23, %v13962_v32  ;;  %v10667_v0 = vsel %vm409_vm5, %v13958_v56, %v13963_v54  ;;  %v8385_v35 = vadd.f32 %v19384_v48, %v8173_v50  ;;  %v10869_v8 = vsel %vm20885_vm13, %v13972_v52, %v13973_v18  ;;  %v19664_v48 = vld [vmem:[%s20095_s6 + $0x90] sm:$0x3f]  ;;  %vm20900_vm13 = vmmov %vm20899_vm4 }
0x10fa   :  { %12767 = vmatmul.msk.f32.vlgmr.msra.gmra.mxu2 %vm6976_vm3, %v19544_v38  ;;  %12768 = vmatmul.msk.f32.vlgmr.msrb.gmra.mxu3 %vm6976_vm3, %v19544_v38  ;;  %v19640_v42 = vpop.f32.mrf.mxu1  ;;  %v8386_v38 = vadd.f32 %v19415_v14, %v8174_v15  ;;  %v7931_v1 = vadd.f32 %v19249_v16, %v7725_v36  ;;  %v7934_v11 = vadd.f32 %v19251_v24, %v7728_v55  ;;  %v13977_v58 = vunpack.i.l.bf16 %v19552_v27 }
0x10fb   :  { %10786 = vmatpush.msra.mxu0 %v10673_v37  ;;  %10912 = vmatpush.msrb.mxu3 %v10875_v57  ;;  %v19655_v12 = vpop.f32.mrf.mxu0  ;;  %v7933_v2 = vadd.f32 %v20886_v4, %v7727_v61  ;;  %v8597_v14 = vadd.f32 %v19432_v53, %v8385_v35  ;;  %v13988_v10 = vunpack.i.h.bf16 %v19486_v39  ;;  %v13987_v16 = vunpack.i.l.bf16 %v19486_v39 }
0x10fc   :  { %v8598_v56 = vadd.f32 %v19470_v21, %v8386_v38  ;;  %v8178_v3 = vadd.f32 %v19373_v40, %v7934_v11  ;;  %v13997_v51 = vunpack.i.l.bf16 %v19400_v9  ;;  %v14003_v21 = vunpack.i.h.bf16 %v19610_v28 }
0x10fd   :  { %10787 = vmatpush.msra.mxu0 %v10667_v0  ;;  %10913 = vmatpush.msrb.mxu3 %v10869_v8  ;;  %v14041_v52 = vpop.permute.xlu1 %14040  ;;  %v8177_v24 = vadd.f32 %v19371_v44, %v7933_v2  ;;  %v8809_v53 = vadd.f32 %v19565_v43, %v8597_v14  ;;  %v14002_v50 = vunpack.i.l.bf16 %v19610_v28  ;;  %v13978_v44 = vunpack.i.h.bf16 %v19552_v27 }
0x10fe   :  { %v14042_v45 = vunpack.i.l.bf16 %v14041_v52  ;;  %v19673_v23 = vpop.permute.xlu0 %14010  ;;  %v8810_v37 = vadd.f32 %v19528_v41, %v8598_v56  ;;  %v10876_v40 = vsel %vm20887_vm1, %v13968_v26, %v13977_v58  ;;  %v14043_v41 = vunpack.i.h.bf16 %v14041_v52 }
0x10ff   :  { %v10879_v27 = vsel %vm20888_vm15, %v13987_v16, %v13988_v10  ;;  %v8175_v26 = vadd.f32 %v19306_v34, %v7931_v1  ;;  %v13998_v29 = vunpack.i.h.bf16 %v19400_v9  ;;  %v10870_v36 = vsel %vm20889_vm10, %v13973_v18, %v13997_v51  ;;  %vm20907_vm15 = vmmov %vm20899_vm4 }
0x1100   :  { %12770 = vmatmul.msk.f32.vlgmr.msrb.gmra.mxu0 %vm6976_vm3, %v19664_v48  ;;  %v8917_v43 = vpop.f32.mrf.mxu2  ;;  %v10674_v57 = vsel %vm409_vm5, %v13962_v32, %v14042_v45  ;;  %v19703_v32 = vpop.permute.xlu2 %14085  ;;  %10826 = vmatpush.msra.mxu2 %v14042_v45  ;;  %v8389_v62 = vadd.f32 %v19425_v63, %v8177_v24  ;;  %v8390_v55 = vadd.f32 %v19457_v5, %v8178_v3  ;;  %v14008_v9 = vunpack.i.h.bf16 %v19437_v7  ;;  %v20898_v45 = vld [vmem:[#allocation101_spill] sm:$0xff]  ;;  %vm20908_vm10 = vmmov %vm20899_vm4 }
0x1101   :  { %12771 = vmatmul.msk.f32.vlgmr.msrb.gmra.mxu1 %vm6976_vm3, %v19664_v48  ;;  %v8937_v15 = vpop.f32.mrf.mxu3  ;;  %10932 = vmatpush.msrb.mxu0 %v10876_v40  ;;  %v19695_v22 = vadd.f32 %v8917_v43, %v8809_v53  ;;  %v10873_v0 = vsel %vm20890_vm14, %v14002_v50, %v14003_v21  ;;  %v14007_v35 = vunpack.i.l.bf16 %v19437_v7  ;;  %v10668_v25 = vsel %vm409_vm5, %v13963_v54, %v14043_v41  ;;  %vm20893_vm5 = vmmov %vm20887_vm1  ;;  %v20902_v53 = vld [vmem:[#allocation81_spill] sm:$0xff] }
0x1102   :  { %12772 = vmatmul.msk.f32.vlgmr.msrb.gmra.mxu2 %vm6976_vm3, %v19664_v48  ;;  %12773 = vmatmul.msk.f32.vlgmr.msra.gmra.mxu3 %vm6976_vm3, %v19664_v48  ;;  %v19697_v61 = vadd.f32 %v8937_v15, %v8810_v37  ;;  %v19699_v49 = vpop.f32.mrf.mxu1  ;;  %v10878_v63 = vsel %vm20891_vm8, %v13978_v44, %v13987_v16  ;;  %v8601_v5 = vadd.f32 %v19478_v20, %v8389_v62  ;;  %v14012_v38 = vunpack.i.l.bf16 %v19673_v23  ;;  %v20901_v37 = vld [vmem:[#allocation75_spill] sm:$0xff]  ;;  %vm20903_vm1 = vmmov %vm20896_vm0 }
0x1103   :  { %10992 = vmatpush.msra.mxu3 %v10879_v27  ;;  %10933 = vmatpush.msrb.mxu0 %v10870_v36  ;;  %v19713_v34 = vpop.f32.mrf.mxu0  ;;  %v8602_v18 = vadd.f32 %v19518_v33, %v8390_v55  ;;  %v10877_v8 = vsel %vm20892_vm11, %v13977_v58, %v13978_v44  ;;  %v14018_v7 = vunpack.i.h.bf16 %v19535_v59  ;;  %v10872_v20 = vsel %vm20893_vm5, %v13998_v29, %v14002_v50  ;;  %vm20909_vm14 = vmmov %vm20899_vm4 }
0x1104   :  { %10806 = vmatpush.msra.mxu1 %v10674_v57  ;;  %10827 = vmatpush.msra.mxu2 %v14043_v41  ;;  %v10871_v33 = vsel %vm20894_vm2, %v13997_v51, %v13998_v29  ;;  %v14017_v4 = vunpack.i.l.bf16 %v19535_v59  ;;  %v8813_v58 = vadd.f32 %v19618_v13, %v8601_v5  ;;  %v14013_v14 = vunpack.i.h.bf16 %v19673_v23  ;;  %v20904_v41 = vld [vmem:[#allocation44_spill] sm:$0xff]  ;;  %v20905_v29 = vld [vmem:[#allocation86_spill] sm:$0xff]  ;;  %vm20911_vm8 = vmmov %vm20899_vm4 }
0x1105   :  { %10993 = vmatpush.msra.mxu3 %v10873_v0  ;;  %v14046_v1 = vpop.permute.xlu1 %14045  ;;  %v8814_v2 = vadd.f32 %v19589_v17, %v8602_v18  ;;  %v8387_v56 = vadd.f32 %v19417_v46, %v8175_v26  ;;  %v11081_v52 = vsel %vm20895_vm7, %v14007_v35, %v14008_v9  ;;  %v11082_v46 = vsel %vm20897_vm12, %v14008_v9, %v14012_v38  ;;  %vm20915_vm11 = vmmov %vm20899_vm4 }
0x1106   :  { %10807 = vmatpush.msra.mxu1 %v10668_v25  ;;  %10972 = vmatpush.msrb.mxu2 %v10878_v63  ;;  %v14047_v54 = vunpack.i.l.bf16 %v14046_v1  ;;  %v19731_v11 = vpop.permute.xlu0 %14035  ;;  %v14048_v16 = vunpack.i.h.bf16 %v14046_v1  ;;  %v11076_v39 = vsel %vm20899_vm4, %v14017_v4, %v14018_v7  ;;  %v7195_v50 = vadd.f32 %v20902_v53, %v20901_v37  ;;  %vm20917_vm5 = vmmov %vm20899_vm4 }
0x1107   :  { %v8599_v23 = vadd.f32 %v20898_v45, %v8387_v56  ;;  %v14023_v43 = vunpack.i.h.bf16 %v20904_v41  ;;  %v14022_v15 = vunpack.i.l.bf16 %v20904_v41  ;;  %v14027_v62 = vunpack.i.l.bf16 %v19604_v47  ;;  %vm20918_vm2 = vmmov %vm20899_vm4 }
0x1108   :  { %10952 = vmatpush.msrb.mxu1 %v10877_v8  ;;  %12774 = vmatmul.msk.f32.vlgmr.msra.gmra.mxu0 %vm6976_vm3, %v19664_v48  ;;  %v8997_v17 = vpop.f32.mrf.mxu2  ;;  %v10880_v13 = vsel %vm20896_vm0, %v13988_v10, %v14047_v54  ;;  %v11075_v10 = vsel %vm20900_vm13, %v14013_v14, %v14017_v4  ;;  %v19766_v44 = vpop.permute.xlu2 %14100  ;;  %v10874_v40 = vsel %vm20903_vm1, %v14003_v21, %v14048_v16  ;;  %v14028_v28 = vunpack.i.h.bf16 %v19604_v47  ;;  %v20910_v8 = vld [vmem:[#allocation93_spill] sm:$0xff]  ;;  %v20913_v14 = vld [vmem:[#allocation100_spill] sm:$0xff]  ;;  %vm20919_vm7 = vmmov %vm20918_vm2 }
0x1109   :  { %10973 = vmatpush.msrb.mxu2 %v10872_v20  ;;  %12775 = vmatmul.msk.f32.vlgmr.msra.gmra.mxu1 %vm6976_vm3, %v19664_v48  ;;  %v9017_v24 = vpop.f32.mrf.mxu3  ;;  %v19753_v3 = vadd.f32 %v8997_v17, %v8813_v58  ;;  %v8811_v57 = vadd.f32 %v19576_v60, %v8599_v23  ;;  %v7516_v36 = vadd.f32 %v20905_v29, %v7195_v50  ;;  %v20906_v60 = vld [vmem:[#allocation94_spill] sm:$0xff]  ;;  %v14037_v59 = vunpack.i.l.bf16 %v19731_v11 }
0x110a   :  { %12776 = vmatmul.msk.f32.vlgmr.msra.gmra.mxu2 %vm6976_vm3, %v19664_v48  ;;  %12778 = vmatmul.msk.f32.vlgmr.msrb.gmra.mxu3 %vm6976_vm3, %v19729_v19  ;;  %v19755_v51 = vadd.f32 %v9017_v24, %v8814_v2  ;;  %v19757_v48 = vpop.f32.mrf.mxu1  ;;  %v11083_v9 = vsel %vm20907_vm15, %v14012_v38, %v14022_v15  ;;  %v11084_v47 = vsel %vm20908_vm10, %v14022_v15, %v14023_v43  ;;  %v20912_v20 = vld [vmem:[#allocation98_spill] sm:$0xff]  ;;  %v14038_v23 = vunpack.i.h.bf16 %v19731_v11  ;;  %v20916_v15 = vld [vmem:[#allocation97_spill] sm:$0xff] }
0x110b   :  { %10953 = vmatpush.msrb.mxu1 %v10871_v33  ;;  %11138 = vmatpush.msrb.mxu3 %v11082_v46  ;;  %v19774_v27 = vpop.f32.mrf.mxu0  ;;  %v9023_v21 = vadd.f32 %v19655_v12, %v8811_v57  ;;  %v7722_v0 = vadd.f32 %v20906_v60, %v7516_v36  ;;  %v11077_v18 = vsel %vm20909_vm14, %v14018_v7, %v14027_v62  ;;  %v14058_v50 = vunpack.i.h.bf16 %v19629_v31 }
0x110c   :  { %11118 = vmatpush.msra.mxu2 %v11081_v52  ;;  %11012 = vmatpush.msra.mxu0 %v10880_v13  ;;  %v11078_v1 = vsel %vm20911_vm8, %v14027_v62, %v14028_v28  ;;  %v14103_v29 = vunpack.i.h.bf16 %v19766_v44 }
0x110d   :  { %11032 = vmatpush.msra.mxu1 %v14047_v54  ;;  %11139 = vmatpush.msrb.mxu3 %v11076_v39  ;;  %v7928_v38 = vadd.f32 %v20910_v8, %v7722_v0  ;;  %v11288_v0 = vsel %vm5988_vm6, %v14037_v59, %v14038_v23 }
0x110e   :  { %11119 = vmatpush.msra.mxu2 %v11075_v10  ;;  %11013 = vmatpush.msra.mxu0 %v10874_v40  ;;  %v19776_v26 = vpop.permute.xlu1 %14050  ;;  %v19780_v55 = vpop.permute.xlu0 %14060  ;;  %v14057_v40 = vunpack.i.l.bf16 %v19629_v31 }
0x110f   :  { %11033 = vmatpush.msra.mxu1 %v14048_v16  ;;  %v14062_v54 = vunpack.i.l.bf16 %v19780_v55  ;;  %v8172_v33 = vadd.f32 %v20912_v20, %v7928_v38  ;;  %v14053_v7 = vunpack.i.h.bf16 %v19776_v26  ;;  %v20914_v16 = vld [vmem:[#allocation99_spill] sm:$0xff]  ;;  %v14052_v41 = vunpack.i.l.bf16 %v19776_v26 }
0x1110   :  { %12779 = vmatmul.msk.f32.vlgmr.msrb.gmra.mxu0 %vm6976_vm3, %v19729_v19  ;;  %v9149_v35 = vpop.f32.mrf.mxu2  ;;  %v14033_v52 = vunpack.i.h.bf16 %v20914_v16  ;;  %v19817_v17 = vpop.permute.xlu2 %14105  ;;  %v14032_v45 = vunpack.i.l.bf16 %v20914_v16  ;;  %v14063_v31 = vunpack.i.h.bf16 %v19780_v55 }
0x1111   :  { %12780 = vmatmul.msk.f32.vlgmr.msrb.gmra.mxu1 %vm6976_vm3, %v19729_v19  ;;  %v9169_v25 = vpop.f32.mrf.mxu3  ;;  %11158 = vmatpush.msrb.mxu0 %v11083_v9  ;;  %v9234_v12 = vadd.f32 %v9149_v35, %v19697_v61  ;;  %v19808_v61 = vld [vmem:[%s20095_s6 + $0xa0] sm:$0x3f]  ;;  %v8384_v56 = vadd.f32 %v20913_v14, %v8172_v33  ;;  %v11287_v39 = vsel %vm5988_vm6, %v14062_v54, %v14037_v59  ;;  %v14102_v54 = vunpack.i.l.bf16 %v19766_v44 }
0x1112   :  { %12781 = vmatmul.msk.f32.vlgmr.msrb.gmra.mxu2 %vm6976_vm3, %v19729_v19  ;;  %12782 = vmatmul.msk.f32.vlgmr.msra.gmra.mxu3 %vm6976_vm3, %v19729_v19  ;;  %v19796_v63 = vadd.f32 %v9169_v25, %v9023_v21  ;;  %v9209_v5 = vpop.f32.mrf.mxu1  ;;  %v11079_v26 = vsel %vm20918_vm2, %v14028_v28, %v14032_v45  ;;  %v11080_v60 = vsel %vm20919_vm7, %v14032_v45, %v14033_v52  ;;  %v12793_v45 = vld [vmem:[%s20095_s6 + $0xa8] sm:$0x3f] }
0x1113   :  { %11178 = vmatpush.msrb.mxu1 %v11084_v47  ;;  %11159 = vmatpush.msrb.mxu0 %v11077_v18  ;;  %v19819_v24 = vpop.f32.mrf.mxu0  ;;  %v8596_v57 = vadd.f32 %v20916_v15, %v8384_v56  ;;  %v9024_v9 = vadd.f32 %v19699_v49, %v19631_v6  ;;  %v11289_v55 = vsel %vm5988_vm6, %v14038_v23, %v14052_v41 }
0x1114   :  { %v11283_v28 = vsel %vm5988_vm6, %v14057_v40, %v14058_v50  ;;  %v9237_v25 = vadd.f32 %v9209_v5, %v19753_v3  ;;  %v11284_v18 = vsel %vm5988_vm6, %v14058_v50, %v14103_v29  ;;  %v11290_v49 = vsel %vm5988_vm6, %v14052_v41, %v14063_v31 }
0x1115   :  { %11179 = vmatpush.msrb.mxu1 %v11078_v1  ;;  %v8808_v21 = vadd.f32 %v19563_v30, %v8596_v57  ;;  %v14088_v30 = vunpack.i.h.bf16 %v19703_v32  ;;  %v9236_v6 = vadd.f32 %v19774_v27, %v9024_v9 }
0x1116   :  { %v19810_v4 = vpop.permute.xlu1 %14065 }
0x1117   :  { %v14067_v2 = vunpack.i.l.bf16 %v19810_v4  ;;  %v14071_v58 = vpop.permute.xlu0 %14070  ;;  %v9020_v16 = vadd.f32 %v19640_v42, %v8808_v21 }
0x1118   :  { %12783 = vmatmul.msk.f32.vlgmr.msra.gmra.mxu0 %vm6976_vm3, %v19729_v19  ;;  %v14073_v13 = vunpack.i.h.bf16 %v14071_v58  ;;  %v14072_v46 = vunpack.i.l.bf16 %v14071_v58  ;;  %v9229_v10 = vpop.f32.mrf.mxu2 }
0x1119   :  { %12784 = vmatmul.msk.f32.vlgmr.msra.gmra.mxu1 %vm6976_vm3, %v19729_v19  ;;  %v19830_v37 = vpop.f32.mrf.mxu3  ;;  %v11281_v53 = vsel %vm5988_vm6, %v14067_v2, %v14053_v7  ;;  %v9238_v3 = vadd.f32 %v9229_v10, %v19755_v51  ;;  %v19880_v2 = vpop.permute.xlu2 %14130 }
0x111a   :  { %12786 = vmatmul.msk.f32.vlgmr.msra.gmra.mxu2 %vm6976_vm3, %v19808_v61  ;;  %12787 = vmatmul.msk.f32.vlgmr.msrb.gmra.mxu3 %vm6976_vm3, %v19808_v61  ;;  %v9361_v19 = vpop.f32.mrf.mxu1  ;;  %v11085_v11 = vsel %vm20915_vm11, %v14023_v43, %v14072_v46  ;;  %v11086_v62 = vsel %vm20917_vm5, %v14072_v46, %v14073_v13  ;;  %v14068_v43 = vunpack.i.h.bf16 %v19810_v4  ;;  %v14087_v4 = vunpack.i.l.bf16 %v19703_v32 }
0x111b   :  { %11324 = vmatpush.msra.mxu1 %v11287_v39  ;;  %11238 = vmatpush.msra.mxu0 %v14073_v13  ;;  %v19841_v36 = vadd.f32 %v9361_v19, %v9234_v12  ;;  %v11282_v12 = vsel %vm5988_vm6, %v14053_v7, %v14057_v40  ;;  %v9233_v13 = vadd.f32 %v19757_v48, %v19695_v22  ;;  %v14107_v39 = vunpack.i.l.bf16 %v19817_v17 }
0x111c   :  { %11198 = vmatpush.msrb.mxu2 %v11085_v11  ;;  %11218 = vmatpush.msra.mxu3 %v11086_v62  ;;  %v11291_v27 = vsel %vm5988_vm6, %v14063_v31, %v14068_v43  ;;  %v11292_v58 = vsel %vm5988_vm6, %v14068_v43, %v14102_v54  ;;  %v9232_v46 = vadd.f32 %v19713_v34, %v9020_v16  ;;  %v14108_v19 = vunpack.i.h.bf16 %v19817_v17 }
0x111d   :  { %11325 = vmatpush.msra.mxu1 %v11281_v53  ;;  %11239 = vmatpush.msra.mxu0 %v14033_v52  ;;  %v11495_v42 = vsel %vm641_vm9, %v14087_v4, %v14088_v30  ;;  %v9445_v10 = vadd.f32 %v19819_v24, %v9233_v13  ;;  %vm20932_vm5 = vcmask 703488  }
0x111e   :  { %11199 = vmatpush.msrb.mxu2 %v11079_v26  ;;  %11219 = vmatpush.msra.mxu3 %v11080_v60  ;;  %v19853_v35 = vpop.permute.xlu1 %14080  ;;  %v9444_v34 = vadd.f32 %v19830_v37, %v9232_v46  ;;  %vm20933_vm2 = vmmov %vm20932_vm5 }
0x111f   :  { %v14076_v47 = vpop.permute.xlu0 %14075  ;;  %v14083_v52 = vunpack.i.h.bf16 %v19853_v35  ;;  %vm20934_vm7 = vmmov %vm20933_vm2 }
0x1120   :  { %11344 = vmatpush.msra.mxu2 %v11288_v0  ;;  %11364 = vmatpush.msrb.mxu3 %v11289_v55  ;;  %v14078_v8 = vunpack.i.h.bf16 %v14076_v47  ;;  %v14077_v38 = vunpack.i.l.bf16 %v14076_v47  ;;  %v9421_v1 = vpop.f32.mrf.mxu0  ;;  %v11490_v0 = vsel %vm641_vm9, %v14107_v39, %v14108_v19 }
0x1121   :  { %12788 = vmatmul.msk.f32.vlgmr.msrb.gmra.mxu0 %vm6976_vm3, %v19808_v61  ;;  %12789 = vmatmul.msk.f32.vlgmr.msrb.gmra.mxu1 %vm6976_vm3, %v19808_v61  ;;  %v9381_v5 = vpop.f32.mrf.mxu2  ;;  %v9401_v20 = vpop.f32.mrf.mxu3  ;;  %v19871_v33 = vadd.f32 %v9421_v1, %v9237_v25  ;;  %v11494_v24 = vsel %vm641_vm9, %v14083_v52, %v14087_v4  ;;  %v12801_v4 = vld [vmem:[%s20095_s6 + $0xb0] sm:$0x3f] }
0x1122   :  { %11345 = vmatpush.msra.mxu2 %v11282_v12  ;;  %12791 = vmatmul.msk.f32.vlgmr.msra.gmra.mxu3 %vm6976_vm3, %v19808_v61  ;;  %v9447_v51 = vadd.f32 %v9381_v5, %v19796_v63  ;;  %v19877_v44 = vadd.f32 %v9401_v20, %v9236_v6  ;;  %v9441_v59 = vpop.f32.mrf.mxu1  ;;  %v11285_v7 = vsel %vm5988_vm6, %v14103_v29, %v14077_v38  ;;  %v14082_v63 = vunpack.i.l.bf16 %v19853_v35  ;;  %v14156_v60 = vpop.permute.xlu2 %14155 }
0x1123   :  { %12790 = vmatmul.msk.f32.vlgmr.msrb.gmra.mxu2 %vm6976_vm3, %v19808_v61  ;;  %11384 = vmatpush.msrb.mxu0 %v11290_v49  ;;  %v19883_v14 = vadd.f32 %v9441_v59, %v9238_v3  ;;  %v11286_v56 = vsel %vm5988_vm6, %v14077_v38, %v14078_v8  ;;  %v14157_v25 = vunpack.i.l.bf16 %v14156_v60  ;;  %vm20920_vm6 = vcmask 711680  }
0x1124   :  { %11404 = vmatpush.msrb.mxu1 %v11291_v27  ;;  %11365 = vmatpush.msrb.mxu3 %v11283_v28  ;;  %v11493_v50 = vsel %vm641_vm9, %v14082_v63, %v14083_v52  ;;  %v14158_v47 = vunpack.i.h.bf16 %v14156_v60  ;;  %vm20922_vm0 = vmmov %vm20920_vm6 }
0x1125   :  { %11385 = vmatpush.msrb.mxu0 %v11284_v18  ;;  %11424 = vmatpush.msrb.mxu2 %v11292_v58  ;;  %vm20923_vm12 = vmmov %vm20922_vm0 }
0x1126   :  { %11444 = vmatpush.msra.mxu3 %v14102_v54  ;;  %11405 = vmatpush.msrb.mxu1 %v11285_v7  ;;  %v14096_v23 = vpop.permute.xlu1 %14095  ;;  %vm20924_vm4 = vmmov %vm20922_vm0 }
0x1127   :  { %11425 = vmatpush.msrb.mxu2 %v11286_v56  ;;  %v14098_v22 = vunpack.i.h.bf16 %v14096_v23  ;;  %v14097_v48 = vunpack.i.l.bf16 %v14096_v23  ;;  %v14091_v53 = vpop.permute.xlu0 %14090  ;;  %vm20925_vm13 = vmmov %vm20922_vm0 }
0x1128   :  { %11445 = vmatpush.msra.mxu3 %v14078_v8  ;;  %v14093_v40 = vunpack.i.h.bf16 %v14091_v53  ;;  %v14092_v41 = vunpack.i.l.bf16 %v14091_v53  ;;  %vm20926_vm1 = vmmov %vm20922_vm0 }
0x1129   :  { %12792 = vmatmul.msk.f32.vlgmr.msra.gmra.mxu0 %vm6976_vm3, %v19808_v61  ;;  %12794 = vmatmul.msk.f32.vlgmr.msra.gmra.mxu1 %vm6976_vm3, %v12793_v45  ;;  %v9473_v11 = vpop.f32.mrf.mxu2  ;;  %v9493_v15 = vpop.f32.mrf.mxu3  ;;  %v11488_v57 = vsel %vm641_vm9, %v14097_v48, %v14098_v22  ;;  %v11489_v37 = vsel %vm641_vm9, %v14098_v22, %v14107_v39  ;;  %vm20927_vm15 = vmmov %vm20922_vm0 }
0x112a   :  { %12796 = vmatmul.msk.f32.vlgmr.msrb.gmra.mxu3 %vm6976_vm3, %v12793_v45  ;;  %11530 = vmatpush.msra.mxu0 %v11493_v50  ;;  %v9596_v61 = vadd.f32 %v9473_v11, %v9444_v34  ;;  %v19911_v29 = vadd.f32 %v9493_v15, %v9445_v10  ;;  %v11487_v17 = vsel %vm641_vm9, %v14093_v40, %v14097_v48  ;;  %v19957_v34 = vld [vmem:[%s20095_s6 + $0xb8] sm:$0x3f]  ;;  %vm20928_vm10 = vmmov %vm20922_vm0 }
0x112b   :  { %12795 = vmatmul.msk.f32.vlgmr.msra.gmra.mxu2 %vm6976_vm3, %v12793_v45  ;;  %11550 = vmatpush.msra.mxu1 %v11494_v24  ;;  %v9513_v62 = vpop.f32.mrf.mxu0  ;;  %v9533_v31 = vpop.f32.mrf.mxu1  ;;  %v11496_v26 = vsel %vm641_vm9, %v14088_v30, %v14092_v41  ;;  %vm20929_vm14 = vmmov %vm20922_vm0 }
0x112c   :  { %11570 = vmatpush.msra.mxu2 %v11495_v42  ;;  %v9598_v21 = vadd.f32 %v9513_v62, %v19841_v36  ;;  %v9599_v43 = vadd.f32 %v9533_v31, %v9447_v51  ;;  %11531 = vmatpush.msra.mxu0 %v11487_v17  ;;  %v14133_v51 = vunpack.i.h.bf16 %v19880_v2  ;;  %vm20930_vm8 = vmmov %vm20922_vm0 }
0x112d   :  { %11590 = vmatpush.msrb.mxu3 %v11496_v26  ;;  %11551 = vmatpush.msra.mxu1 %v11488_v57  ;;  %vm20931_vm11 = vmmov %vm20922_vm0 }
0x112e   :  { %11571 = vmatpush.msra.mxu2 %v11489_v37  ;;  %v14116_v9 = vpop.permute.xlu1 %14115 }
0x112f   :  { %11591 = vmatpush.msrb.mxu3 %v11490_v0  ;;  %v14118_v55 = vunpack.i.h.bf16 %v14116_v9  ;;  %v14117_v35 = vunpack.i.l.bf16 %v14116_v9  ;;  %v14111_v28 = vpop.permute.xlu0 %14110 }
0x1130   :  { %v14113_v32 = vunpack.i.h.bf16 %v14111_v28  ;;  %v14112_v30 = vunpack.i.l.bf16 %v14111_v28 }
0x1131   :  { %12797 = vmatmul.msk.f32.vlgmr.msrb.gmra.mxu0 %vm6976_vm3, %v12793_v45  ;;  %12798 = vmatmul.msk.f32.vlgmr.msrb.gmra.mxu1 %vm6976_vm3, %v12793_v45  ;;  %v11699_v36 = vsel %vm20920_vm6, %v14117_v35, %v14118_v55 }
0x1132   :  { %12800 = vmatmul.msk.f32.vlgmr.msra.gmra.mxu3 %vm6976_vm3, %v12793_v45  ;;  %v9553_v12 = vpop.f32.mrf.mxu2  ;;  %v9573_v18 = vpop.f32.mrf.mxu3  ;;  %v11497_v6 = vsel %vm641_vm9, %v14092_v41, %v14112_v30  ;;  %v11498_v49 = vsel %vm641_vm9, %v14112_v30, %v14157_v25  ;;  %v11491_v3 = vsel %vm641_vm9, %v14108_v19, %v14113_v32  ;;  %v11492_v20 = vsel %vm641_vm9, %v14113_v32, %v14158_v47  ;;  %vm20921_vm9 = vmmov %vm20920_vm6 }
0x1133   :  { %12799 = vmatmul.msk.f32.vlgmr.msrb.gmra.mxu2 %vm6976_vm3, %v12793_v45  ;;  %v9600_v8 = vadd.f32 %v9553_v12, %v19877_v44  ;;  %v9601_v38 = vadd.f32 %v9573_v18, %v19871_v33  ;;  %v9593_v1 = vpop.f32.mrf.mxu0  ;;  %v9679_v54 = vpop.f32.mrf.mxu1  ;;  %11610 = vmatpush.msrb.mxu0 %v11497_v6  ;;  %v14132_v44 = vunpack.i.l.bf16 %v19880_v2  ;;  %vm20935_vm6 = vmmov %vm20933_vm2 }
0x1134   :  { %11650 = vmatpush.msrb.mxu2 %v14157_v25  ;;  %11630 = vmatpush.msrb.mxu1 %v11498_v49  ;;  %v9602_v27 = vadd.f32 %v9593_v1, %v19883_v14  ;;  %v9802_v5 = vadd.f32 %v9679_v54, %v9596_v61  ;;  %v19934_v33 = vpop.permute.xlu2 %14160 }
0x1135   :  { %11736 = vmatpush.msra.mxu3 %v11699_v36  ;;  %11611 = vmatpush.msrb.mxu0 %v11491_v3  ;;  %v11703_v53 = vsel %vm20925_vm13, %v14132_v44, %v14133_v51  ;;  %v14162_v50 = vunpack.i.l.bf16 %v19934_v33  ;;  %v14163_v35 = vunpack.i.h.bf16 %v19934_v33 }
0x1136   :  { %11651 = vmatpush.msrb.mxu2 %v14158_v47  ;;  %11631 = vmatpush.msrb.mxu1 %v11492_v20 }
0x1139   :  { %12802 = vmatmul.msk.f32.vlgmr.msra.gmra.mxu0 %vm6976_vm3, %v12801_v4  ;;  %12803 = vmatmul.msk.f32.vlgmr.msra.gmra.mxu1 %vm6976_vm3, %v12801_v4  ;;  %v14126_v59 = vpop.permute.xlu1 %14125  ;;  %v14121_v7 = vpop.permute.xlu0 %14120 }
0x113a   :  { %12805 = vmatmul.msk.f32.vlgmr.msrb.gmra.mxu3 %vm6976_vm3, %v12801_v4  ;;  %v14128_v58 = vunpack.i.h.bf16 %v14126_v59  ;;  %v14127_v14 = vunpack.i.l.bf16 %v14126_v59  ;;  %v14123_v56 = vunpack.i.h.bf16 %v14121_v7  ;;  %v14122_v16 = vunpack.i.l.bf16 %v14121_v7  ;;  %v9699_v52 = vpop.f32.mrf.mxu2  ;;  %v9719_v63 = vpop.f32.mrf.mxu3  ;;  %v12817_v59 = vld [vmem:[%s20095_s6 + $0xc0] sm:$0x3f] }
0x113b   :  { %12804 = vmatmul.msk.f32.vlgmr.msra.gmra.mxu2 %vm6976_vm3, %v12801_v4  ;;  %v9803_v13 = vadd.f32 %v9699_v52, %v19911_v29  ;;  %v19943_v46 = vadd.f32 %v9719_v63, %v9598_v21  ;;  %v9739_v45 = vpop.f32.mrf.mxu0  ;;  %v9759_v2 = vpop.f32.mrf.mxu1 }
0x113c   :  { %v19945_v42 = vadd.f32 %v9739_v45, %v9599_v43  ;;  %v19947_v23 = vadd.f32 %v9759_v2, %v9600_v8  ;;  %v11693_v39 = vsel %vm20921_vm9, %v14122_v16, %v14123_v56  ;;  %v11700_v10 = vsel %vm20922_vm0, %v14118_v55, %v14127_v14  ;;  %v19967_v17 = vpop.permute.xlu2 %14165  ;;  %vm20936_vm9 = vmmov %vm20933_vm2 }
0x113d   :  { %11737 = vmatpush.msra.mxu3 %v11693_v39  ;;  %11756 = vmatpush.msra.mxu0 %v11700_v10  ;;  %v11701_v22 = vsel %vm20923_vm12, %v14127_v14, %v14128_v58  ;;  %v11702_v48 = vsel %vm20924_vm4, %v14128_v58, %v14132_v44  ;;  %v11704_v55 = vsel %vm20930_vm8, %v14133_v51, %v14162_v50  ;;  %v14168_v28 = vunpack.i.h.bf16 %v19967_v17  ;;  %vm20937_vm0 = vmmov %vm20933_vm2 }
0x113e   :  { %11776 = vmatpush.msra.mxu1 %v11701_v22  ;;  %11796 = vmatpush.msra.mxu2 %v11702_v48  ;;  %v14167_v25 = vunpack.i.l.bf16 %v19967_v17  ;;  %vm20938_vm12 = vmmov %vm20937_vm0  ;;  %vm12206_vm8 = vcmask 1040384  }
0x113f   :  { %11816 = vmatpush.msrb.mxu3 %v11703_v53  ;;  %vm20939_vm4 = vmmov %vm20937_vm0 }
0x1140   :  { %v11900_v44 = vsel %vm20935_vm6, %v14167_v25, %v14168_v28  ;;  %vm20940_vm13 = vmmov %vm20937_vm0  ;;  %vm12216_vm6 = vcmask 1043456  }
0x1141   :  { %12806 = vmatmul.msk.f32.vlgmr.msrb.gmra.mxu0 %vm6976_vm3, %v12801_v4  ;;  %12807 = vmatmul.msk.f32.vlgmr.msrb.gmra.mxu1 %vm6976_vm3, %v12801_v4  ;;  %v14141_v40 = vpop.permute.xlu1 %14140  ;;  %v14136_v41 = vpop.permute.xlu0 %14135 }
0x1142   :  { %12810 = vmatmul.msk.f32.vlgmr.msra.gmra.mxu3 %vm6976_vm3, %v19957_v34  ;;  %v14143_v19 = vunpack.i.h.bf16 %v14141_v40  ;;  %v14142_v24 = vunpack.i.l.bf16 %v14141_v40  ;;  %v14138_v11 = vunpack.i.h.bf16 %v14136_v41  ;;  %v14137_v15 = vunpack.i.l.bf16 %v14136_v41  ;;  %v9779_v57 = vpop.f32.mrf.mxu2  ;;  %v9799_v37 = vpop.f32.mrf.mxu3 }
0x1143   :  { %12808 = vmatmul.msk.f32.vlgmr.msrb.gmra.mxu2 %vm6976_vm3, %v12801_v4  ;;  %v9807_v61 = vadd.f32 %v9779_v57, %v9601_v38  ;;  %v19965_v29 = vadd.f32 %v9799_v37, %v9602_v27 }
0x1144   :  { %v11694_v62 = vsel %vm20926_vm1, %v14123_v56, %v14137_v15  ;;  %v11695_v31 = vsel %vm20927_vm15, %v14137_v15, %v14138_v11  ;;  %v11696_v26 = vsel %vm20928_vm10, %v14138_v11, %v14142_v24  ;;  %v11697_v21 = vsel %vm20929_vm14, %v14142_v24, %v14143_v19  ;;  %v14181_v20 = vpop.permute.xlu2 %14180  ;;  %vm20941_vm1 = vmmov %vm20937_vm0 }
0x1145   :  { %v9885_v43 = vpop.f32.mrf.mxu0  ;;  %v9905_v60 = vpop.f32.mrf.mxu1  ;;  %11757 = vmatpush.msra.mxu0 %v11694_v62  ;;  %11777 = vmatpush.msra.mxu1 %v11695_v31  ;;  %v11698_v32 = vsel %vm20931_vm11, %v14143_v19, %v14163_v35  ;;  %v14183_v7 = vunpack.i.h.bf16 %v14181_v20  ;;  %v14182_v58 = vunpack.i.l.bf16 %v14181_v20  ;;  %vm20942_vm15 = vmmov %vm20937_vm0  ;;  %vm12151_vm14 = vcmask 259072  }
0x1146   :  { %v10008_v0 = vadd.f32 %v9885_v43, %v9802_v5  ;;  %v19973_v9 = vadd.f32 %v9905_v60, %v9803_v13  ;;  %11797 = vmatpush.msra.mxu2 %v11696_v26  ;;  %11817 = vmatpush.msrb.mxu3 %v11697_v21  ;;  %vm20943_vm10 = vmmov %vm20937_vm0  ;;  %vm12208_vm11 = vcmask 1042434  }
0x1147   :  { %11836 = vmatpush.msrb.mxu0 %v11704_v55  ;;  %11856 = vmatpush.msrb.mxu1 %v14162_v50  ;;  %v11902_v41 = vsel %vm20941_vm1, %v14182_v58, %v14183_v7 }
0x1149   :  { %12811 = vmatmul.msk.f32.vlgmr.msra.gmra.mxu0 %vm6976_vm3, %v19957_v34  ;;  %12812 = vmatmul.msk.f32.vlgmr.msra.gmra.mxu1 %vm6976_vm3, %v19957_v34  ;;  %v14151_v30 = vpop.permute.xlu1 %14150 }
0x114a   :  { %v14146_v36 = vpop.permute.xlu0 %14145  ;;  %12814 = vmatmul.msk.f32.vlgmr.msrb.gmra.mxu3 %vm6976_vm3, %v19957_v34  ;;  %11837 = vmatpush.msrb.mxu0 %v11698_v32  ;;  %v14153_v47 = vunpack.i.h.bf16 %v14151_v30  ;;  %v14152_v12 = vunpack.i.l.bf16 %v14151_v30 }
0x114b   :  { %12813 = vmatmul.msk.f32.vlgmr.msra.gmra.mxu2 %vm6976_vm3, %v19957_v34  ;;  %v14148_v18 = vunpack.i.h.bf16 %v14146_v36  ;;  %v14147_v6 = vunpack.i.l.bf16 %v14146_v36  ;;  %11857 = vmatpush.msrb.mxu1 %v14163_v35 }
0x114c   :  { %v9925_v49 = vpop.f32.mrf.mxu2  ;;  %v9945_v8 = vpop.f32.mrf.mxu3  ;;  %v11899_v51 = vsel %vm20934_vm7, %v14153_v47, %v14167_v25  ;;  %vm12214_vm7 = vcmask 1045508  }
0x114d   :  { %v11905_v38 = vsel %vm20932_vm5, %v14147_v6, %v14148_v18  ;;  %v11906_v1 = vsel %vm20933_vm2, %v14148_v18, %v14152_v12  ;;  %v10010_v54 = vadd.f32 %v9925_v49, %v19943_v46  ;;  %v10011_v3 = vadd.f32 %v9945_v8, %v19945_v42  ;;  %v9965_v27 = vpop.f32.mrf.mxu0  ;;  %v9985_v5 = vpop.f32.mrf.mxu1 }
0x114e   :  { %11942 = vmatpush.msrb.mxu2 %v11905_v38  ;;  %11962 = vmatpush.msra.mxu3 %v11906_v1  ;;  %v10012_v4 = vadd.f32 %v9965_v27, %v19947_v23  ;;  %v10013_v33 = vadd.f32 %v9985_v5, %v9807_v61  ;;  %vm12210_vm5 = vcmask 1041408   ;;  %vm12212_vm2 = vcmask 1044484  }
0x1150   :  { %11943 = vmatpush.msrb.mxu2 %v11899_v51  ;;  %11963 = vmatpush.msra.mxu3 %v11900_v44 }
0x1151   :  { %12815 = vmatmul.msk.f32.vlgmr.msrb.gmra.mxu0 %vm6976_vm3, %v19957_v34  ;;  %12816 = vmatmul.msk.f32.vlgmr.msrb.gmra.mxu1 %vm6976_vm3, %v19957_v34  ;;  %v14176_v14 = vpop.permute.xlu1 %14175  ;;  %v11901_v34 = vsel %vm20940_vm13, %v14168_v28, %v14182_v58 }
0x1152   :  { %v14171_v56 = vpop.permute.xlu0 %14170  ;;  %12819 = vmatmul.msk.f32.vlgmr.msra.gmra.mxu3 %vm6976_vm3, %v12817_v59  ;;  %v14178_v16 = vunpack.i.h.bf16 %v14176_v14  ;;  %v14177_v52 = vunpack.i.l.bf16 %v14176_v14 }
0x1153   :  { %12818 = vmatmul.msk.f32.vlgmr.msrb.gmra.mxu2 %vm6976_vm3, %v12817_v59  ;;  %v14173_v63 = vunpack.i.h.bf16 %v14171_v56  ;;  %v14172_v13 = vunpack.i.l.bf16 %v14171_v56 }
0x1154   :  { %v10005_v46 = vpop.f32.mrf.mxu2  ;;  %v10091_v45 = vpop.f32.mrf.mxu3  ;;  %v11910_v39 = vsel %vm20939_vm4, %v14177_v52, %v14178_v16 }
0x1155   :  { %v11907_v2 = vsel %vm20936_vm9, %v14152_v12, %v14172_v13  ;;  %v11908_v42 = vsel %vm20937_vm0, %v14172_v13, %v14173_v63  ;;  %v11909_v23 = vsel %vm20938_vm12, %v14173_v63, %v14177_v52  ;;  %v10014_v10 = vadd.f32 %v10005_v46, %v19965_v29  ;;  %v10111_v48 = vpop.f32.mrf.mxu0  ;;  %12042 = vmatpush.msrb.mxu3 %v11910_v39 }
0x1156   :  { %v10214_v22 = vadd.f32 %v10091_v45, %v10008_v0  ;;  %v10131_v53 = vpop.f32.mrf.mxu1  ;;  %11982 = vmatpush.msra.mxu0 %v11907_v2  ;;  %12002 = vmatpush.msra.mxu1 %v11908_v42  ;;  %v10215_v50 = vadd.f32 %v10111_v48, %v19973_v9 }
0x1157   :  { %v10216_v40 = vadd.f32 %v10131_v53, %v10010_v54  ;;  %12022 = vmatpush.msra.mxu2 %v11909_v23 }
0x1158   :  { %11983 = vmatpush.msra.mxu0 %v11901_v34  ;;  %12003 = vmatpush.msra.mxu1 %v11902_v41 }
0x1159   :  { %12820 = vmatmul.msk.f32.vlgmr.msra.gmra.mxu0 %vm6976_vm3, %v12817_v59  ;;  %12821 = vmatmul.msk.f32.vlgmr.msra.gmra.mxu1 %vm6976_vm3, %v12817_v59 }
0x115a   :  { %12062 = vmatpush.msrb.mxu0 %v14178_v16  ;;  %v14186_v19 = vpop.permute.xlu0 %14185 }
0x115b   :  { %v14188_v24 = vunpack.i.h.bf16 %v14186_v19  ;;  %v14187_v11 = vunpack.i.l.bf16 %v14186_v19 }
0x115c   :  { %v10151_v15 = vpop.f32.mrf.mxu2 }
0x115d   :  { %v10171_v57 = vpop.f32.mrf.mxu3  ;;  %12063 = vmatpush.msrb.mxu0 %v14188_v24  ;;  %v11903_v37 = vsel %vm20942_vm15, %v14183_v7, %v14187_v11  ;;  %v11904_v61 = vsel %vm20943_vm10, %v14187_v11, %v14188_v24  ;;  %v10217_v29 = vadd.f32 %v10151_v15, %v10011_v3  ;;  %v10191_v62 = vpop.f32.mrf.mxu0 }
0x115e   :  { %v10218_v17 = vadd.f32 %v10171_v57, %v10012_v4  ;;  %v10211_v31 = vpop.f32.mrf.mxu1  ;;  %12023 = vmatpush.msra.mxu2 %v11903_v37  ;;  %12043 = vmatpush.msrb.mxu3 %v11904_v61  ;;  %v10219_v26 = vadd.f32 %v10191_v62, %v10013_v33 }
0x115f   :  { %v10220_v21 = vadd.f32 %v10211_v31, %v10014_v10  ;;  %12822 = vmatmul.msk.f32.vlgmr.msra.gmra.mxu2 %vm6976_vm3, %v12817_v59  ;;  %12823 = vmatmul.msk.f32.vlgmr.msrb.gmra.mxu3 %vm6976_vm3, %v12817_v59 }
0x1161   :  { %12824 = vmatmul.msk.f32.vlgmr.msrb.gmra.mxu0 %vm6976_vm3, %v12817_v59  ;;  %vm12108_vm3 = vcmask 1045504  }
0x1164   :  { %v10297_v43 = vpop.f32.mrf.mxu2 }
0x1165   :  { %v10317_v60 = vpop.f32.mrf.mxu3  ;;  %v10420_v0 = vadd.f32 %v10297_v43, %v10214_v22  ;;  %v10337_v55 = vpop.f32.mrf.mxu0 }
0x1166   :  { %v10421_v9 = vadd.f32 %v10317_v60, %v10215_v50  ;;  %v10357_v35 = vpop.f32.mrf.mxu1  ;;  %v10422_v28 = vadd.f32 %v10337_v55, %v10216_v40 }
0x1167   :  { %v10423_v25 = vadd.f32 %v10357_v35, %v10217_v29 }
0x116c   :  { %v10377_v32 = vpop.f32.mrf.mxu2 }
0x116d   :  { %v10397_v30 = vpop.f32.mrf.mxu3  ;;  %v10424_v36 = vadd.f32 %v10377_v32, %v10218_v17  ;;  %v10417_v12 = vpop.f32.mrf.mxu0 }
0x116e   :  { %v10425_v47 = vadd.f32 %v10397_v30, %v10219_v26  ;;  %v10426_v18 = vadd.f32 %v10417_v12, %v10220_v21  ;;  %v10503_v6 = vpop.f32.mrf.mxu1 }
0x116f   :  { %v10626_v49 = vadd.f32 %v10503_v6, %v10420_v0 }
0x1175   :  { %v10523_v8 = vpop.f32.mrf.mxu2  ;;  %v10543_v1 = vpop.f32.mrf.mxu3 }
0x1176   :  { %v10627_v38 = vadd.f32 %v10523_v8, %v10421_v9  ;;  %v10563_v54 = vpop.f32.mrf.mxu0  ;;  %v10628_v3 = vadd.f32 %v10543_v1, %v10422_v28  ;;  %v10583_v5 = vpop.f32.mrf.mxu1 }
0x1177   :  { %v10629_v27 = vadd.f32 %v10563_v54, %v10423_v25  ;;  %v10630_v20 = vadd.f32 %v10583_v5, %v10424_v36 }
0x117d   :  { %v10603_v4 = vpop.f32.mrf.mxu2  ;;  %v10623_v51 = vpop.f32.mrf.mxu3 }
0x117e   :  { %v10631_v33 = vadd.f32 %v10603_v4, %v10425_v47  ;;  %v10709_v44 = vpop.f32.mrf.mxu0  ;;  %v10632_v59 = vadd.f32 %v10623_v51, %v10426_v18  ;;  %v10729_v58 = vpop.f32.mrf.mxu1 }
0x117f   :  { %v10832_v7 = vadd.f32 %v10709_v44, %v10626_v49  ;;  %v10833_v14 = vadd.f32 %v10729_v58, %v10627_v38 }
0x1185   :  { %v10749_v56 = vpop.f32.mrf.mxu2  ;;  %v10769_v52 = vpop.f32.mrf.mxu3 }
0x1186   :  { %v10834_v16 = vadd.f32 %v10749_v56, %v10628_v3  ;;  %v10789_v63 = vpop.f32.mrf.mxu0  ;;  %v10835_v13 = vadd.f32 %v10769_v52, %v10629_v27  ;;  %v10809_v45 = vpop.f32.mrf.mxu1 }
0x1187   :  { %v20019_v46 = vadd.f32 %v10789_v63, %v10630_v20  ;;  %v20021_v2 = vadd.f32 %v10809_v45, %v10631_v33 }
0x118d   :  { %v10829_v42 = vpop.f32.mrf.mxu2  ;;  %v10915_v39 = vpop.f32.mrf.mxu3 }
0x118e   :  { %v10838_v23 = vadd.f32 %v10829_v42, %v10632_v59  ;;  %v10935_v10 = vpop.f32.mrf.mxu0  ;;  %v11038_v22 = vadd.f32 %v10915_v39, %v10832_v7  ;;  %v10955_v53 = vpop.f32.mrf.mxu1 }
0x118f   :  { %v11039_v48 = vadd.f32 %v10935_v10, %v10833_v14  ;;  %v11040_v47 = vadd.f32 %v10955_v53, %v10834_v16  ;;  %v20035_v42 = vpop.permute.xlu1 %12078 }
0x1195   :  { %v10975_v34 = vpop.f32.mrf.mxu2  ;;  %v10995_v50 = vpop.f32.mrf.mxu3 }
0x1196   :  { %v20023_v40 = vpop.f32.mrf.mxu0  ;;  %v11035_v41 = vpop.f32.mrf.mxu1  ;;  %v11041_v18 = vadd.f32 %v10975_v34, %v10835_v13  ;;  %v11042_v53 = vadd.f32 %v10995_v50, %v20019_v46 }
0x1197   :  { %v11044_v58 = vadd.f32 %v11035_v41, %v10838_v23 }
0x119d   :  { %v11121_v19 = vpop.f32.mrf.mxu2  ;;  %v11141_v24 = vpop.f32.mrf.mxu3 }
0x119e   :  { %v11161_v11 = vpop.f32.mrf.mxu0  ;;  %v11181_v15 = vpop.f32.mrf.mxu1  ;;  %v11244_v6 = vadd.f32 %v11121_v19, %v11038_v22  ;;  %v11245_v38 = vadd.f32 %v11141_v24, %v11039_v48 }
0x119f   :  { %v11246_v1 = vadd.f32 %v11161_v11, %v11040_v47  ;;  %v11247_v3 = vadd.f32 %v11181_v15, %v11041_v18  ;;  %v11043_v11 = vadd.f32 %v20023_v40, %v20021_v2 }
0x11a5   :  { %v20025_v37 = vpop.f32.mrf.mxu3 }
0x11a6   :  { %v11201_v57 = vpop.f32.mrf.mxu2  ;;  %v11241_v61 = vpop.f32.mrf.mxu0 }
0x11a7   :  { %v11327_v29 = vpop.f32.mrf.mxu1  ;;  %v11250_v39 = vadd.f32 %v11241_v61, %v11044_v58  ;;  %v11248_v15 = vadd.f32 %v11201_v57, %v11042_v53 }
0x11a8   :  { %v11450_v27 = vadd.f32 %v11327_v29, %v11244_v6 }
0x11ad   :  { %v11367_v62 = vpop.f32.mrf.mxu3 }
0x11ae   :  { %v11347_v17 = vpop.f32.mrf.mxu2  ;;  %v11387_v31 = vpop.f32.mrf.mxu0  ;;  %v11452_v20 = vadd.f32 %v11367_v62, %v11246_v1 }
0x11af   :  { %v11407_v26 = vpop.f32.mrf.mxu1  ;;  %v11451_v5 = vadd.f32 %v11347_v17, %v11245_v38  ;;  %v11453_v4 = vadd.f32 %v11387_v31, %v11247_v3  ;;  %v20044_v17 = vpop.permute.xlu2 %12098  ;;  %v11249_v31 = vadd.f32 %v20025_v37, %v11043_v11 }
0x11b5   :  { %v11447_v43 = vpop.f32.mrf.mxu3 }
0x11b6   :  { %v20027_v21 = vpop.f32.mrf.mxu2  ;;  %v11533_v60 = vpop.f32.mrf.mxu0  ;;  %v11456_v24 = vadd.f32 %v11447_v43, %v11250_v39  ;;  %v11454_v43 = vadd.f32 %v11407_v26, %v11248_v15 }
0x11b7   :  { %v11553_v0 = vpop.f32.mrf.mxu1  ;;  %v11656_v33 = vadd.f32 %v11533_v60, %v11450_v27  ;;  %v11455_v40 = vadd.f32 %v20027_v21, %v11249_v31 }
0x11b8   :  { %v11657_v51 = vadd.f32 %v11553_v0, %v11451_v5 }
0x11bd   :  { %v11593_v55 = vpop.f32.mrf.mxu3 }
0x11be   :  { %v11573_v9 = vpop.f32.mrf.mxu2  ;;  %v11613_v35 = vpop.f32.mrf.mxu0  ;;  %v11659_v59 = vadd.f32 %v11593_v55, %v11453_v4 }
0x11bf   :  { %v20029_v28 = vpop.f32.mrf.mxu1  ;;  %v11658_v44 = vadd.f32 %v11573_v9, %v11452_v20  ;;  %v11660_v57 = vadd.f32 %v11613_v35, %v11454_v43 }
0x11c5   :  { %v11739_v32 = vpop.f32.mrf.mxu3 }
0x11c6   :  { %v11653_v25 = vpop.f32.mrf.mxu2  ;;  %v11759_v30 = vpop.f32.mrf.mxu0  ;;  %v11862_v7 = vadd.f32 %v11739_v32, %v11656_v33 }
0x11c7   :  { %v11779_v36 = vpop.f32.mrf.mxu1  ;;  %v11863_v14 = vadd.f32 %v11759_v30, %v11657_v51  ;;  %v11662_v62 = vadd.f32 %v11653_v25, %v11456_v24 }
0x11c8   :  { %v11864_v56 = vadd.f32 %v11779_v36, %v11658_v44 }
0x11cd   :  { %v20031_v49 = vpop.f32.mrf.mxu3 }
0x11ce   :  { %v11799_v12 = vpop.f32.mrf.mxu2  ;;  %v20033_v8 = vpop.f32.mrf.mxu0  ;;  %v11866_v21 = vadd.f32 %v20031_v49, %v11660_v57 }
0x11cf   :  { %v11859_v54 = vpop.f32.mrf.mxu1  ;;  %v11865_v52 = vadd.f32 %v11799_v12, %v11659_v59  ;;  %v11661_v12 = vadd.f32 %v20029_v28, %v11455_v40 }
0x11d0   :  { %v11868_v9 = vadd.f32 %v11859_v54, %v11662_v62 }
0x11d1   :  { %v11867_v3 = vadd.f32 %v20033_v8, %v11661_v12  ;;  %v20065_v8 = vstv %s20098_s9 }
0x11d5   :  { %v11965_v13 = vpop.f32.mrf.mxu3 }
0x11d6   :  { %v11945_v16 = vpop.f32.mrf.mxu2  ;;  %v11985_v45 = vpop.f32.mrf.mxu0  ;;  %v12069_v10 = vadd.f32 %v11965_v13, %v11863_v14 }
0x11d7   :  { %v12068_v63 = vadd.f32 %v11945_v16, %v11862_v7  ;;  %v12070_v22 = vadd.f32 %v11985_v45, %v11864_v56  ;;  %v12005_v48 = vpop.f32.mrf.mxu1 }
0x11d8   :  { %v12071_v19 = vadd.f32 %v12005_v48, %v11865_v52  ;;  %v12082_v23 = vadd.f32 %v20035_v42, %v12069_v10 }
0x11d9   :  { %v12081_v34 = vadd.f32 %v20035_v42, %v12068_v63  ;;  %v12083_v41 = vadd.f32 %v20035_v42, %v12070_v22 }
0x11da   :  { %v12084_v61 = vadd.f32 %v20035_v42, %v12071_v19  ;;  %v12089_v46 = vmax.f32 %v12082_v23, 0.0 }
0x11db   :  { %v12088_v29 = vmax.f32 %v12081_v34, 0.0  ;;  %v12090_v50 = vmax.f32 %v12083_v41, 0.0 }
0x11dc   :  { %v12091_v0 = vmax.f32 %v12084_v61, 0.0  ;;  %v12102_v55 = vmul.f32 %v20044_v17, %v12089_v46 }
0x11dd   :  { %v12101_v60 = vmul.f32 %v20044_v17, %v12088_v29  ;;  %v12103_v2 = vmul.f32 %v20044_v17, %v12090_v50 }
0x11de   :  { %v12104_v25 = vmul.f32 %v20044_v17, %v12091_v0  ;;  %v12065_v30 = vpop.f32.mrf.mxu0  ;;  %v12116_v37 = vsel %vm12108_vm3, %v12102_v55, 0.0 }
0x11df   :  { %v12109_v32 = vsel %vm12108_vm3, %v12101_v60, 0.0  ;;  %v12123_v26 = vsel %vm12108_vm3, %v12103_v2, 0.0  ;;  %v12074_v47 = vadd.f32 %v12065_v30, %v11868_v9  ;;  %v12117_v18 = vrot.slane %v12116_v37, 4 }
0x11e0   :  { %v12110_v36 = vrot.slane %v12109_v32, 4  ;;  %v12124_v6 = vrot.slane %v12123_v26, 4  ;;  %v12130_v38 = vsel %vm12108_vm3, %v12104_v25, 0.0  ;;  %v12185_v30 = vstv %s20100_s11 }
0x11e1   :  { %v12131_v1 = vrot.slane %v12130_v38, 4  ;;  %v12087_v54 = vadd.f32 %v20035_v42, %v12074_v47  ;;  %v12118_v27 = vadd.f32 %v12117_v18, %v12116_v37 }
0x11e2   :  { %v12111_v35 = vadd.f32 %v12110_v36, %v12109_v32  ;;  %v12125_v5 = vadd.f32 %v12124_v6, %v12123_v26  ;;  %v12025_v20 = vpop.f32.mrf.mxu2  ;;  %v12045_v4 = vpop.f32.mrf.mxu3 }
0x11e3   :  { %v12132_v51 = vadd.f32 %v12131_v1, %v12130_v38  ;;  %v12094_v44 = vmax.f32 %v12087_v54, 0.0  ;;  %v12072_v28 = vadd.f32 %v12025_v20, %v11866_v21  ;;  %v12119_v59 = vrot.slane %v12118_v27, 2 }
0x11e4   :  { %v12112_v33 = vrot.slane %v12111_v35, 2  ;;  %v12126_v7 = vrot.slane %v12125_v5, 2  ;;  %v12073_v58 = vadd.f32 %v12045_v4, %v11867_v3 }
0x11e5   :  { %v12133_v49 = vrot.slane %v12132_v51, 2  ;;  %v12107_v56 = vmul.f32 %v20044_v17, %v12094_v44  ;;  %v12085_v16 = vadd.f32 %v20035_v42, %v12072_v28  ;;  %v12120_v52 = vadd.f32 %v12119_v59, %v12118_v27 }
0x11e6   :  { %v12113_v14 = vadd.f32 %v12112_v33, %v12111_v35  ;;  %v12127_v63 = vadd.f32 %v12126_v7, %v12125_v5  ;;  %v12086_v13 = vadd.f32 %v20035_v42, %v12073_v58  ;;  %v12176_v42 = vstv %s20099_s10 }
0x11e7   :  { %v12134_v39 = vadd.f32 %v12133_v49, %v12132_v51  ;;  %v12152_v10 = vsel %vm12151_vm14, %v12107_v56, 0.0  ;;  %v12092_v22 = vmax.f32 %v12085_v16, 0.0  ;;  %v12121_v48 = vrot.slane %v12120_v52, 1 }
0x11e8   :  { %v12114_v45 = vrot.slane %v12113_v14, 1  ;;  %v12128_v53 = vrot.slane %v12127_v63, 1  ;;  %v12153_v34 = vrot.slane %v12152_v10, 4  ;;  %v12093_v19 = vmax.f32 %v12086_v13, 0.0 }
0x11e9   :  { %v12135_v23 = vrot.slane %v12134_v39, 1  ;;  %v12105_v41 = vmul.f32 %v20044_v17, %v12092_v22  ;;  %v12122_v11 = vadd.f32 %v12121_v48, %v12120_v52 }
0x11ea   :  { %v12115_v24 = vadd.f32 %v12114_v45, %v12113_v14  ;;  %v12129_v15 = vadd.f32 %v12128_v53, %v12127_v63  ;;  %v12154_v29 = vadd.f32 %v12153_v34, %v12152_v10  ;;  %v12106_v61 = vmul.f32 %v20044_v17, %v12093_v19 }
0x11eb   :  { %v12136_v46 = vadd.f32 %v12135_v23, %v12134_v39  ;;  %v12137_v50 = vsel %vm12108_vm3, %v12105_v41, 0.0  ;;  %v12162_v31 = vadd.f32 %v20065_v8, %v12122_v11 }
0x11ec   :  { %v12161_v62 = vadd.f32 %v20065_v8, %v12115_v24  ;;  %v12163_v43 = vadd.f32 %v20065_v8, %v12129_v15  ;;  %v12155_v60 = vrot.slane %v12154_v29, 2  ;;  %v12138_v0 = vrot.slane %v12137_v50, 4 }
0x11ed   :  { %v12164_v55 = vadd.f32 %v20065_v8, %v12136_v46  ;;  %v12144_v17 = vsel %vm12108_vm3, %v12106_v61, 0.0  ;;  %v12169_v2 = vmax.f32 %v12162_v31, 0.0  ;;  %v12219_v24 = vlaneseq }
0x11ee   :  { %v12168_v9 = vmax.f32 %v12161_v62, 0.0  ;;  %v12170_v40 = vmax.f32 %v12163_v43, 0.0  ;;  %v12156_v57 = vadd.f32 %v12155_v60, %v12154_v29  ;;  %v12139_v32 = vadd.f32 %v12138_v0, %v12137_v50 }
0x11ef   :  { %v12171_v36 = vmax.f32 %v12164_v55, 0.0  ;;  %v12145_v37 = vrot.slane %v12144_v17, 4  ;;  %v12178_v26 = vmul.f32 %v12176_v42, %v12169_v2  ;;  %vm12221_vm9 = vcmp.lt.s32.totalorder %v12219_v24, 800 }
0x11f0   :  { %v12177_v25 = vmul.f32 %v12176_v42, %v12168_v9  ;;  %v12179_v47 = vmul.f32 %v12176_v42, %v12170_v40  ;;  %v12157_v12 = vrot.slane %v12156_v57, 1  ;;  %v12140_v18 = vrot.slane %v12139_v32, 2 }
0x11f1   :  { %v12180_v6 = vmul.f32 %v12176_v42, %v12171_v36  ;;  %v12146_v38 = vadd.f32 %v12145_v37, %v12144_v17  ;;  %v12187_v21 = vadd.f32 %v12185_v30, %v12178_v26 }
0x11f2   :  { %v12188_v35 = vadd.f32 %v12185_v30, %v12179_v47  ;;  %v12158_v1 = vadd.f32 %v12157_v12, %v12156_v57  ;;  %v12141_v54 = vadd.f32 %v12140_v18, %v12139_v32  ;;  %v12186_v3 = vadd.f32 %v12185_v30, %v12177_v25 }
0x11f3   :  { %v12189_v27 = vadd.f32 %v12185_v30, %v12180_v6  ;;  %v12147_v5 = vrot.slane %v12146_v38, 2  ;;  %v12200_v20 = vrot.slane %v12187_v21, 7 }
0x11f4   :  { %v12201_v4 = vrot.slane %v12188_v35, 6  ;;  %v12167_v33 = vadd.f32 %v20065_v8, %v12158_v1  ;;  %v12142_v51 = vrot.slane %v12141_v54, 1 }
0x11f5   :  { %v12202_v44 = vrot.slane %v12189_v27, 5  ;;  %v12148_v28 = vadd.f32 %v12147_v5, %v12146_v38  ;;  %v12207_v59 = vsel %vm12206_vm8, %v12186_v3, %v12200_v20 }
0x11f6   :  { %v12143_v7 = vadd.f32 %v12142_v51, %v12141_v54  ;;  %v12174_v56 = vmax.f32 %v12167_v33, 0.0 }
0x11f7   :  { %v12209_v58 = vsel %vm12208_vm11, %v12201_v4, %v12202_v44  ;;  %v12149_v14 = vrot.slane %v12148_v28, 1 }
0x11f8   :  { %v12211_v49 = vsel %vm12210_vm5, %v12207_v59, %v12209_v58  ;;  %v12165_v16 = vadd.f32 %v20065_v8, %v12143_v7  ;;  %v12183_v45 = vmul.f32 %v12176_v42, %v12174_v56 }
0x11f9   :  { %v12150_v52 = vadd.f32 %v12149_v14, %v12148_v28 }
0x11fa   :  { %v12172_v63 = vmax.f32 %v12165_v16, 0.0  ;;  %v12192_v53 = vadd.f32 %v12185_v30, %v12183_v45 }
0x11fb   :  { %v12166_v13 = vadd.f32 %v20065_v8, %v12150_v52 }
0x11fc   :  { %v12181_v39 = vmul.f32 %v12176_v42, %v12172_v63  ;;  %v12205_v41 = vrot.slane %v12192_v53, 2 }
0x11fd   :  { %v12173_v10 = vmax.f32 %v12166_v13, 0.0 }
0x11fe   :  { %v12190_v22 = vadd.f32 %v12185_v30, %v12181_v39 }
0x11ff   :  { %v12182_v48 = vmul.f32 %v12176_v42, %v12173_v10 }
0x1200   :  { %v12203_v34 = vrot.slane %v12190_v22, 4 }
0x1201   :  { %v12191_v19 = vadd.f32 %v12185_v30, %v12182_v48 }
0x1203   :  { %v12204_v23 = vrot.slane %v12191_v19, 3 }
0x1205   :  { %v12213_v11 = vsel %vm12212_vm2, %v12203_v34, %v12204_v23 }
0x1206   :  { %v12215_v15 = vsel %vm12214_vm7, %v12213_v11, %v12205_v41 }
0x1207   :  { %v12217_v29 = vsel %vm12216_vm6, %v12211_v49, %v12215_v15 }
0x1208   :  { %12223 = vst.msk [vmem:[%s20101_s12] sm:$0x7f] %vm12221_vm9, %v12217_v29 }

</bundles_post_ra>
